<compile_context>
chip_gen: v6e
topology: v6e:2x2x1
jax: 0.10.0
libtpu: 0.0.40
codegen_flags: <defaults>
</compile_context>

<pallas_src>
import functools

import jax
import jax.numpy as jnp
from jax.experimental import pallas as pl
from jax.experimental.pallas import tpu as pltpu

_EPS = 1e-5
LAYER_SPECS = [(1, 0), (2, 1), (2, 1), (2, 1), (2, 1)]  # (stride, pad), k=4 everywhere


# ---------------------------------------------------------------------------
# small static helpers
# ---------------------------------------------------------------------------
def _round_up(n, m):
    return ((n + m - 1) // m) * m


def _cdiv(a, b):
    return (a + b - 1) // b


def _pick_tile(total, cap, quantum):
    """Largest tile <= cap that is a multiple of `quantum` and divides `total`."""
    cap = min(cap, total)
    start = cap - cap % quantum
    for t in range(start, 0, -quantum):
        if total % t == 0:
            return t
    return total


# ---------------------------------------------------------------------------
# Pallas GEMM kernel: fused BN+ReLU prologue, fused tanh epilogue,
# fused masked BN-statistics epilogue.  No K grid axis (tk == K).
# ---------------------------------------------------------------------------
def _gemm_kernel(*refs, prologue, want_stats, activation):
    i = 0
    if prologue:
        a_ref, b_ref = refs[0], refs[1]
        i = 2
    if want_stats:
        m_ref = refs[i]
        i += 1
    x_ref, w_ref, o_ref = refs[i], refs[i + 1], refs[i + 2]
    if want_stats:
        s_ref = refs[i + 3]

    x = x_ref[...]                                            # (tm, K) bf16
    if prologue:
        # BatchNorm apply + ReLU of the previous layer, per K column, in f32.
        x = jnp.maximum(x.astype(jnp.float32) * a_ref[...] + b_ref[...], 0.0)
        x = x.astype(jnp.bfloat16)

    y = jnp.dot(x, w_ref[...], preferred_element_type=jnp.float32)   # (tm, tn) f32

    if want_stats:
        # Masked per-column partial sums / sums-of-squares, one row per phase.
        y2 = y * y
        rows = [jnp.sum(y * m_ref[:, p:p + 1], axis=0, keepdims=True) for p in range(4)]
        rows += [jnp.sum(y2 * m_ref[:, p:p + 1], axis=0, keepdims=True) for p in range(4)]
        s_ref[0, :, :] = jnp.concatenate(rows, axis=0)        # (8, tn)

    if activation == "tanh":
        y = jnp.tanh(y)
    o_ref[...] = y.astype(o_ref.dtype)


def _fused_gemm(lhs, w, *, a_vec=None, b_vec=None, mask=None,
                activation=None, out_dtype=jnp.bfloat16):
    """lhs (mv, K) bf16, w (K, NL) bf16; K and NL multiples of 128.
    a_vec/b_vec (K,) f32 -> fused ReLU(a*x + b) prologue (previous layer's BN).
    mask (mv, 4) f32     -> fused masked (sum, sum^2) per-column stats epilogue.
    Returns (out (Mp, NL), stats (8, NL) f32 or None)."""
    mv, K = lhs.shape
    K2, NL = w.shape
    assert K == K2 and K % 128 == 0 and NL % 128 == 0
    prologue = a_vec is not None
    want_stats = mask is not None

    tn = _pick_tile(NL, 512, 128)
    grid_n = NL // tn
    # Keep >=2 blocks on a parallel axis when there is enough work (v7x: 2 TCs).
    want_two = grid_n < 2 and mv >= 32
    nb = max(2 if want_two else 1, _cdiv(mv, 512))
    tm = _round_up(_cdiv(mv, nb), 16)
    mp = _round_up(mv, tm)
    grid_m = mp // tm

    lhs_p = jnp.pad(lhs, ((0, mp - mv), (0, 0)))

    args, in_specs = [], []
    if prologue:
        args += [a_vec.reshape(1, K).astype(jnp.float32),
                 b_vec.reshape(1, K).astype(jnp.float32)]
        in_specs += [pl.BlockSpec((1, K), lambda i, j: (0, 0)),
                     pl.BlockSpec((1, K), lambda i, j: (0, 0))]
    if want_stats:
        args += [jnp.pad(mask.astype(jnp.float32), ((0, mp - mv), (0, 0)))]
        in_specs += [pl.BlockSpec((tm, 4), lambda i, j: (i, 0))]
    args += [lhs_p, w]
    in_specs += [pl.BlockSpec((tm, K), lambda i, j: (i, 0)),
                 pl.BlockSpec((K, tn), lambda i, j: (0, j))]

    out_shape = [jax.ShapeDtypeStruct((mp, NL), out_dtype)]
    out_specs = [pl.BlockSpec((tm, tn), lambda i, j: (i, j))]
    if want_stats:
        out_shape.append(jax.ShapeDtypeStruct((grid_m, 8, NL), jnp.float32))
        out_specs.append(pl.BlockSpec((1, 8, tn), lambda i, j: (i, 0, j)))

    flops = 2 * mp * K * NL + (8 * mp * NL if want_stats else 0)
    trans = mp * NL if activation == "tanh" else 0
    bytes_acc = (lhs_p.size * 2 + w.size * 2
                 + mp * NL * jnp.dtype(out_dtype).itemsize
                 + (grid_m * 8 * NL * 4 if want_stats else 0))

    kern = functools.partial(_gemm_kernel, prologue=prologue,
                             want_stats=want_stats, activation=activation)
    res = pl.pallas_call(
        kern,
        out_shape=out_shape,
        grid=(grid_m, grid_n),
        in_specs=in_specs,
        out_specs=out_specs,
        compiler_params=pltpu.CompilerParams(
            dimension_semantics=("parallel", "parallel")),
        cost_estimate=pl.CostEstimate(flops=flops, transcendentals=trans,
                                      bytes_accessed=bytes_acc),
    )(*args)

    if want_stats:
        out, part = res
        return out, jnp.sum(part, axis=0)                     # (8, NL)
    (out,) = res
    return out, None


# ---------------------------------------------------------------------------
# plain-JAX glue: weight re-layout, patch building, phase re-interleave, masks
# ---------------------------------------------------------------------------
def _w0_matrix(w0, kp, nlp):
    """convt_0 weight (z, Cout, 4, 4) -> (kp, nlp) GEMM matrix, columns densely
    packed as (ky, kx, co)."""
    zi, co = w0.shape[:2]
    wt = jnp.transpose(w0, (0, 2, 3, 1)).reshape(zi, 16 * co)
    wt = jnp.pad(wt, ((0, kp - zi), (0, nlp - 16 * co)))
    return wt.astype(jnp.bfloat16)


def _phase_w_matrix(wt, kp, nlp):
    """ConvT(k=4,s=2,p=1) weight (Cin,Cout,4,4) -> (kp, nlp) GEMM matrix.
    Rows densely packed as (dy, dx, ci); columns as (py, px, co).
    Phase (py,px), tap (dy,dx) uses W[:, :, 3-py-2dy, 3-px-2dx]."""
    cin, cout = wt.shape[:2]
    rows = []
    for dy in (0, 1):
        for dx in (0, 1):
            cols = [wt[:, :, 3 - py - 2 * dy, 3 - px - 2 * dx]
                    for py in (0, 1) for px in (0, 1)]
            rows.append(jnp.concatenate(cols, axis=1))         # (cin, 4*cout)
    m = jnp.concatenate(rows, axis=0)                          # (4*cin, 4*cout)
    m = jnp.pad(m, ((0, kp - 4 * cin), (0, nlp - 4 * cout)))
    return m.astype(jnp.bfloat16)


def _build_patches(act, pad_val, kp):
    """2x2 stride-1 patches of act padded by 1 with per-channel value pad_val.
    act (N,H,W,C) bf16 -> (N*(H+1)*(W+1), kp) bf16, K densely packed as (dy,dx,ci)."""
    N, H, W, C = act.shape
    v = pad_val.astype(act.dtype)
    xp = jnp.broadcast_to(v, (N, H + 2, W + 2, C))
    xp = xp.at[:, 1:H + 1, 1:W + 1, :].set(act)
    taps = [xp[:, dy:dy + H + 1, dx:dx + W + 1, :] for dy in (0, 1) for dx in (0, 1)]
    p = jnp.stack(taps, axis=3).reshape(N * (H + 1) * (W + 1), 4 * C)
    return jnp.pad(p, ((0, 0), (0, kp - 4 * C)))


def _assemble(zout, N, H, W, cout):
    """Phase-GEMM output rows (N,H+1,W+1) x dense cols (py,px,co) -> NHWC
    (N, 2H, 2W, cout).  out[2a+py, 2b+px, co] = Z[a+py, b+px, (py,px), co]."""
    z = zout[:N * (H + 1) * (W + 1), :4 * cout].reshape(N, H + 1, W + 1, 2, 2, cout)
    s00 = z[:, 0:H,     0:W,     0, 0, :]
    s01 = z[:, 0:H,     1:W + 1, 0, 1, :]
    s10 = z[:, 1:H + 1, 0:W,     1, 0, :]
    s11 = z[:, 1:H + 1, 1:W + 1, 1, 1, :]
    r0 = jnp.stack([s00, s01], axis=3)                         # even output rows
    r1 = jnp.stack([s10, s11], axis=3)                         # odd output rows
    out = jnp.stack([r0, r1], axis=2)                          # (N, H, 2, W, 2, cout)
    return out.reshape(N, 2 * H, 2 * W, cout)


def _phase_valid_mask(N, H, W):
    """(N*(H+1)*(W+1), 4) f32: mask[m, (py,px)] == 1 iff row m's phase-(py,px)
    entry lands in the assembled activation (is a real output pixel)."""
    PP = (H + 1) * (W + 1)
    m = jnp.arange(N * PP, dtype=jnp.int32)
    rem = m % PP
    a = rem // (W + 1)
    b = rem % (W + 1)
    cols = []
    for py in (0, 1):
        for px in (0, 1):
            ok = (a >= py) & (a <= H - 1 + py) & (b >= px) & (b <= W - 1 + px)
            cols.append(ok)
    return jnp.stack(cols, axis=1).astype(jnp.float32)


def _fold_bn(sum_c, sumsq_c, count, gamma, beta):
    """Training-mode BN folded to per-channel (scale, shift); also returns the
    raw-domain spatial-padding value so that relu(scale*pad + shift) == 0
    exactly (+-inf trick; gamma == 0 exactly remains unsupported)."""
    mean = sum_c / count
    var = jnp.maximum(sumsq_c / count - mean * mean, 0.0)
    a = gamma.astype(jnp.float32) * jax.lax.rsqrt(var + _EPS)
    b = beta.astype(jnp.float32) - mean * a
    pad_val = jnp.where(a > 0, -jnp.inf, jnp.where(a < 0, jnp.inf, 0.0))
    return a, b, pad_val.astype(jnp.float32)


def _bn_from_phase_stats(stats, cout, count, gamma, beta):
    """stats (8, NL): rows 0..3 masked sums per phase, 4..7 sums of squares."""
    s1 = sum(stats[p, p * cout:(p + 1) * cout] for p in range(4))
    s2 = sum(stats[4 + p, p * cout:(p + 1) * cout] for p in range(4))
    return _fold_bn(s1, s2, count, gamma, beta)


def _bn_from_grid_stats(stats, cout, count, gamma, beta):
    """Layer-0 stats: only mask column 0 used; columns grouped as 16 x cout."""
    s1 = stats[0, :16 * cout].reshape(16, cout).sum(axis=0)
    s2 = stats[4, :16 * cout].reshape(16, cout).sum(axis=0)
    return _fold_bn(s1, s2, count, gamma, beta)


# ---------------------------------------------------------------------------
# Generator forward
# ---------------------------------------------------------------------------
@jax.jit
def generator_forward(z_nchw, params):
    """z_nchw: (N, z_size, 1, 1) f32 -> NCHW (N, 3, 64, 64) f32 (BN in train mode)."""
    N, zsize = z_nchw.shape[0], z_nchw.shape[1]

    # ----- layer 0: ConvTranspose2d(k=4, s=1, p=0) on a 1x1 input == plain GEMM
    c1 = params["convt_0"].shape[1]
    k0 = _round_up(zsize, 128)
    nl0 = _round_up(16 * c1, 128)
    lhs0 = jnp.pad(z_nchw.reshape(N, zsize).astype(jnp.float32),
                   ((0, 0), (0, k0 - zsize))).astype(jnp.bfloat16)
    w0 = _w0_matrix(params["convt_0"], k0, nl0)
    mask0 = jnp.concatenate([jnp.ones((N, 1), jnp.float32),
                             jnp.zeros((N, 3), jnp.float32)], axis=1)
    z0, st0 = _fused_gemm(lhs0, w0, mask=mask0, out_dtype=jnp.bfloat16)
    act = z0[:N, :16 * c1].reshape(N, 4, 4, c1)               # raw convt_0 out, NHWC
    a, b, pad_val = _bn_from_grid_stats(st0, c1, N * 16,
                                        params["gamma_0"], params["beta_0"])

    # ----- layers 1..4: stride-2 ConvTranspose via sub-pixel phase decomposition
    for i in range(1, 5):
        wt = params[f"convt_{i}"]
        cin, cout = wt.shape[0], wt.shape[1]
        H = act.shape[1]
        kp = _round_up(4 * cin, 128)
        nlp = _round_up(4 * cout, 128)
        last = i == 4

        patches = _build_patches(act, pad_val, kp)            # (N*(H+1)^2, kp) bf16
        wmat = _phase_w_matrix(wt, kp, nlp)                    # (kp, nlp) bf16
        a_vec = jnp.pad(jnp.tile(a, 4), (0, kp - 4 * cin))
        b_vec = jnp.pad(jnp.tile(b, 4), (0, kp - 4 * cin))
        mask = None if last else _phase_valid_mask(N, H, H)

        zout, st = _fused_gemm(patches, wmat, a_vec=a_vec, b_vec=b_vec, mask=mask,
                               activation="tanh" if last else None,
                               out_dtype=jnp.bfloat16)
        act = _assemble(zout, N, H, H, cout)                   # (N, 2H, 2H, cout)

        if not last:
            a, b, pad_val = _bn_from_phase_stats(
                st, cout, N * (2 * H) * (2 * H),
                params[f"gamma_{i}"], params[f"beta_{i}"])

    return jnp.transpose(act.astype(jnp.float32), (0, 3, 1, 2))   # NHWC -> NCHW


# ---------------------------------------------------------------------------
# parameter init + pure-JAX reference (lax conv) for a correctness check
# ---------------------------------------------------------------------------
def init_params(key, z_size, ct1, ct2, ct3, ct4):
    chans = [(z_size, ct1), (ct1, ct2), (ct2, ct3), (ct3, ct4), (ct4, 3)]
    params = {}
    keys = jax.random.split(key, 13)
    ki = 0
    for i, (cin, cout) in enumerate(chans):
        params[f"convt_{i}"] = 0.05 * jax.random.normal(
            keys[ki], (cin, cout, 4, 4), jnp.float32)
        ki += 1
    for i, c in enumerate([ct1, ct2, ct3, ct4]):
        params[f"gamma_{i}"] = 1.0 + 0.1 * jax.random.normal(keys[ki], (c,), jnp.float32)
        ki += 1
        params[f"beta_{i}"] = 0.1 * jax.random.normal(keys[ki], (c,), jnp.float32)
        ki += 1
    return params


def _convt_ref(x, wt, stride, pad):
    k = wt.shape[2]
    rhs = jnp.transpose(wt[:, :, ::-1, ::-1], (2, 3, 0, 1))   # (kh, kw, cin, cout)
    return jax.lax.conv_general_dilated(
        x, rhs, window_strides=(1, 1),
        padding=[(k - 1 - pad, k - 1 - pad)] * 2,
        lhs_dilation=(stride, stride),
        dimension_numbers=("NHWC", "HWIO", "NHWC"),
        precision=jax.lax.Precision.HIGHEST)


@jax.jit
def generator_reference(z_nchw, params):
    x = jnp.transpose(z_nchw, (0, 2, 3, 1)).astype(jnp.float32)
    for i, (s, p) in enumerate(LAYER_SPECS):
        x = _convt_ref(x, params[f"convt_{i}"], s, p)
        if i < 4:
            mean = jnp.mean(x, axis=(0, 1, 2))
            var = jnp.mean(jnp.square(x - mean), axis=(0, 1, 2))
            x = (x - mean) * jax.lax.rsqrt(var + _EPS) * params[f"gamma_{i}"] \
                + params[f"beta_{i}"]
            x = jnp.maximum(x, 0.0)
        else:
            x = jnp.tanh(x)
    return jnp.transpose(x, (0, 3, 1, 2))


if __name__ == "__main__":
    # Small, module-consistent shapes: batch=2, z_size=16, channels 64/32/16/8.
    batch, z_size = 2, 16
    ct1, ct2, ct3, ct4 = 64, 32, 16, 8

    key = jax.random.PRNGKey(0)
    kz, kp = jax.random.split(key)
    z = jax.random.uniform(kz, (batch, z_size, 1, 1), jnp.float32, -1.0, 1.0)
    params = init_params(kp, z_size, ct1, ct2, ct3, ct4)

    out = jax.block_until_ready(generator_forward(z, params))
    assert out.shape == (batch, 3, 64, 64), out.shape
    assert bool(jnp.all(jnp.isfinite(out)))
    assert bool(jnp.all(jnp.abs(out) <= 1.0 + 1e-3))           # tanh range

    ref = jax.block_until_ready(generator_reference(z, params))
    err = float(jnp.max(jnp.abs(out - ref)))
    assert err < 0.1, f"max abs error vs reference: {err}"

    print("KERNEL_OK")
</pallas_src>

<mosaic_0001>
module attributes {stable_mosaic.version = 11 : i64} {
  func.func @_gemm_kernel(%arg0: i32, %arg1: i32, %arg2: memref<16x4xf32, #tpu.memory_space<vmem>>, %arg3: memref<16x128xbf16, #tpu.memory_space<vmem>>, %arg4: memref<128x512xbf16, #tpu.memory_space<vmem>>, %arg5: memref<16x512xbf16, #tpu.memory_space<vmem>>, %arg6: memref<1x8x512xf32, #tpu.memory_space<vmem>>) attributes {dimension_semantics = [#tpu.dimension_semantics<parallel>, #tpu.dimension_semantics<parallel>], iteration_bounds = array<i64: 1, 2>, scalar_prefetch = 0 : i64, scratch_operands = 0 : i64, tpu.core_type = #tpu.core_type<tc>, window_params = [{transform_indices = @transform_0, window_bounds = array<i64: 16, 4>}, {transform_indices = @transform_1, window_bounds = array<i64: 16, 128>}, {transform_indices = @transform_2, window_bounds = array<i64: 128, 512>}, {transform_indices = @transform_3, window_bounds = array<i64: 16, 512>}, {transform_indices = @transform_4, window_bounds = array<i64: 1, 8, 512>}]} {
    %c0 = arith.constant 0 : index
    %c0_0 = arith.constant 0 : index
    %0 = vector.load %arg3[%c0, %c0_0] : memref<16x128xbf16, #tpu.memory_space<vmem>>, vector<16x128xbf16>
    %c0_1 = arith.constant 0 : index
    %c0_2 = arith.constant 0 : index
    %1 = vector.load %arg4[%c0_1, %c0_2] : memref<128x512xbf16, #tpu.memory_space<vmem>>, vector<128x512xbf16>
    %cst = arith.constant dense<0.000000e+00> : vector<16x512xf32>
    %2 = tpu.matmul %0, %1, %cst {dimension_numbers = #tpu.dot_dimension_numbers<[1], [0], [0], [1], [0, 0, 1, 1], [], []>} : vector<16x128xbf16>, vector<128x512xbf16>, vector<16x512xf32> -> vector<16x512xf32>
    %3 = arith.mulf %2, %2 : vector<16x512xf32>
    %c0_3 = arith.constant 0 : index
    %c0_4 = arith.constant 0 : index
    %4 = vector.load %arg2[%c0_3, %c0_4] : memref<16x4xf32, #tpu.memory_space<vmem>>, vector<16x1xf32>
    %5 = vector.broadcast %4 : vector<16x1xf32> to vector<16x512xf32>
    %6 = arith.mulf %2, %5 : vector<16x512xf32>
    %cst_5 = arith.constant dense<0.000000e+00> : vector<512xf32>
    %7 = vector.multi_reduction <add>, %6, %cst_5 [0] : vector<16x512xf32> to vector<512xf32>
    %8 = vector.shape_cast %7 : vector<512xf32> to vector<1x512xf32>
    %c0_6 = arith.constant 0 : index
    %c1 = arith.constant 1 : index
    %9 = vector.load %arg2[%c0_6, %c1] : memref<16x4xf32, #tpu.memory_space<vmem>>, vector<16x1xf32>
    %10 = vector.broadcast %9 : vector<16x1xf32> to vector<16x512xf32>
    %11 = arith.mulf %2, %10 : vector<16x512xf32>
    %cst_7 = arith.constant dense<0.000000e+00> : vector<512xf32>
    %12 = vector.multi_reduction <add>, %11, %cst_7 [0] : vector<16x512xf32> to vector<512xf32>
    %13 = vector.shape_cast %12 : vector<512xf32> to vector<1x512xf32>
    %c0_8 = arith.constant 0 : index
    %c2 = arith.constant 2 : index
    %14 = vector.load %arg2[%c0_8, %c2] : memref<16x4xf32, #tpu.memory_space<vmem>>, vector<16x1xf32>
    %15 = vector.broadcast %14 : vector<16x1xf32> to vector<16x512xf32>
    %16 = arith.mulf %2, %15 : vector<16x512xf32>
    %cst_9 = arith.constant dense<0.000000e+00> : vector<512xf32>
    %17 = vector.multi_reduction <add>, %16, %cst_9 [0] : vector<16x512xf32> to vector<512xf32>
    %18 = vector.shape_cast %17 : vector<512xf32> to vector<1x512xf32>
    %c0_10 = arith.constant 0 : index
    %c3 = arith.constant 3 : index
    %19 = vector.load %arg2[%c0_10, %c3] : memref<16x4xf32, #tpu.memory_space<vmem>>, vector<16x1xf32>
    %20 = vector.broadcast %19 : vector<16x1xf32> to vector<16x512xf32>
    %21 = arith.mulf %2, %20 : vector<16x512xf32>
    %cst_11 = arith.constant dense<0.000000e+00> : vector<512xf32>
    %22 = vector.multi_reduction <add>, %21, %cst_11 [0] : vector<16x512xf32> to vector<512xf32>
    %23 = vector.shape_cast %22 : vector<512xf32> to vector<1x512xf32>
    %c0_12 = arith.constant 0 : index
    %c0_13 = arith.constant 0 : index
    %24 = vector.load %arg2[%c0_12, %c0_13] : memref<16x4xf32, #tpu.memory_space<vmem>>, vector<16x1xf32>
    %25 = vector.broadcast %24 : vector<16x1xf32> to vector<16x512xf32>
    %26 = arith.mulf %3, %25 : vector<16x512xf32>
    %cst_14 = arith.constant dense<0.000000e+00> : vector<512xf32>
    %27 = vector.multi_reduction <add>, %26, %cst_14 [0] : vector<16x512xf32> to vector<512xf32>
    %28 = vector.shape_cast %27 : vector<512xf32> to vector<1x512xf32>
    %c0_15 = arith.constant 0 : index
    %c1_16 = arith.constant 1 : index
    %29 = vector.load %arg2[%c0_15, %c1_16] : memref<16x4xf32, #tpu.memory_space<vmem>>, vector<16x1xf32>
    %30 = vector.broadcast %29 : vector<16x1xf32> to vector<16x512xf32>
    %31 = arith.mulf %3, %30 : vector<16x512xf32>
    %cst_17 = arith.constant dense<0.000000e+00> : vector<512xf32>
    %32 = vector.multi_reduction <add>, %31, %cst_17 [0] : vector<16x512xf32> to vector<512xf32>
    %33 = vector.shape_cast %32 : vector<512xf32> to vector<1x512xf32>
    %c0_18 = arith.constant 0 : index
    %c2_19 = arith.constant 2 : index
    %34 = vector.load %arg2[%c0_18, %c2_19] : memref<16x4xf32, #tpu.memory_space<vmem>>, vector<16x1xf32>
    %35 = vector.broadcast %34 : vector<16x1xf32> to vector<16x512xf32>
    %36 = arith.mulf %3, %35 : vector<16x512xf32>
    %cst_20 = arith.constant dense<0.000000e+00> : vector<512xf32>
    %37 = vector.multi_reduction <add>, %36, %cst_20 [0] : vector<16x512xf32> to vector<512xf32>
    %38 = vector.shape_cast %37 : vector<512xf32> to vector<1x512xf32>
    %c0_21 = arith.constant 0 : index
    %c3_22 = arith.constant 3 : index
    %39 = vector.load %arg2[%c0_21, %c3_22] : memref<16x4xf32, #tpu.memory_space<vmem>>, vector<16x1xf32>
    %40 = vector.broadcast %39 : vector<16x1xf32> to vector<16x512xf32>
    %41 = arith.mulf %3, %40 : vector<16x512xf32>
    %cst_23 = arith.constant dense<0.000000e+00> : vector<512xf32>
    %42 = vector.multi_reduction <add>, %41, %cst_23 [0] : vector<16x512xf32> to vector<512xf32>
    %43 = vector.shape_cast %42 : vector<512xf32> to vector<1x512xf32>
    %44 = tpu.concatenate %8, %13, %18, %23, %28, %33, %38, %43 in 0 : vector<1x512xf32>, vector<1x512xf32>, vector<1x512xf32>, vector<1x512xf32>, vector<1x512xf32>, vector<1x512xf32>, vector<1x512xf32>, vector<1x512xf32> -> vector<8x512xf32>
    %c0_24 = arith.constant 0 : index
    %c0_25 = arith.constant 0 : index
    %c0_26 = arith.constant 0 : index
    %45 = vector.load %arg6[%c0_24, %c0_25, %c0_26] : memref<1x8x512xf32, #tpu.memory_space<vmem>>, vector<1x8x512xf32>
    %46 = vector.shape_cast %45 : vector<1x8x512xf32> to vector<8x512xf32>
    %47 = vector.shape_cast %44 : vector<8x512xf32> to vector<1x8x512xf32>
    tpu.vector_store %arg6[%c0_24, %c0_25, %c0_26], %47 {strides = array<i32>} : memref<1x8x512xf32, #tpu.memory_space<vmem>>, vector<1x8x512xf32>,
    %48 = arith.truncf %2 : vector<16x512xf32> to vector<16x512xbf16>
    %c0_27 = arith.constant 0 : index
    %c0_28 = arith.constant 0 : index
    %49 = vector.load %arg5[%c0_27, %c0_28] : memref<16x512xbf16, #tpu.memory_space<vmem>>, vector<16x512xbf16>
    tpu.vector_store %arg5[%c0_27, %c0_28], %48 {strides = array<i32>} : memref<16x512xbf16, #tpu.memory_space<vmem>>, vector<16x512xbf16>,
    return
  }
  func.func @transform_0(%arg0: i32, %arg1: i32) -> (i32, i32) {
    %c0_i32 = arith.constant 0 : i32
    %c0_i32_0 = arith.constant 0 : i32
    return %arg0, %c0_i32 : i32, i32
  }
  func.func @transform_1(%arg0: i32, %arg1: i32) -> (i32, i32) {
    %c0_i32 = arith.constant 0 : i32
    %c0_i32_0 = arith.constant 0 : i32
    return %arg0, %c0_i32 : i32, i32
  }
  func.func @transform_2(%arg0: i32, %arg1: i32) -> (i32, i32) {
    %c0_i32 = arith.constant 0 : i32
    %c0_i32_0 = arith.constant 0 : i32
    return %c0_i32, %arg1 : i32, i32
  }
  func.func @transform_3(%arg0: i32, %arg1: i32) -> (i32, i32) {
    %c0_i32 = arith.constant 0 : i32
    return %arg0, %arg1 : i32, i32
  }
  func.func @transform_4(%arg0: i32, %arg1: i32) -> (i32, i32, i32) {
    %c0_i32 = arith.constant 0 : i32
    %c0_i32_0 = arith.constant 0 : i32
    return %arg0, %c0_i32, %arg1 : i32, i32, i32
  }
}

module attributes {stable_mosaic.version = 11 : i64} {
  func.func @_gemm_kernel(%arg0: i32, %arg1: i32, %arg2: memref<1x256xf32, #tpu.memory_space<vmem>>, %arg3: memref<1x256xf32, #tpu.memory_space<vmem>>, %arg4: memref<32x4xf32, #tpu.memory_space<vmem>>, %arg5: memref<32x256xbf16, #tpu.memory_space<vmem>>, %arg6: memref<256x128xbf16, #tpu.memory_space<vmem>>, %arg7: memref<32x128xbf16, #tpu.memory_space<vmem>>, %arg8: memref<1x8x128xf32, #tpu.memory_space<vmem>>) attributes {dimension_semantics = [#tpu.dimension_semantics<parallel>, #tpu.dimension_semantics<parallel>], iteration_bounds = array<i64: 2, 1>, scalar_prefetch = 0 : i64, scratch_operands = 0 : i64, tpu.core_type = #tpu.core_type<tc>, window_params = [{pipeline_mode = #tpu.pipeline_mode<synchronous>, transform_indices = @transform_0, window_bounds = array<i64: 1, 256>}, {pipeline_mode = #tpu.pipeline_mode<synchronous>, transform_indices = @transform_1, window_bounds = array<i64: 1, 256>}, {transform_indices = @transform_2, window_bounds = array<i64: 32, 4>}, {transform_indices = @transform_3, window_bounds = array<i64: 32, 256>}, {transform_indices = @transform_4, window_bounds = array<i64: 256, 128>}, {transform_indices = @transform_5, window_bounds = array<i64: 32, 128>}, {transform_indices = @transform_6, window_bounds = array<i64: 1, 8, 128>}]} {
    %c0 = arith.constant 0 : index
    %c0_0 = arith.constant 0 : index
    %0 = vector.load %arg5[%c0, %c0_0] : memref<32x256xbf16, #tpu.memory_space<vmem>>, vector<32x256xbf16>
    %1 = arith.extf %0 : vector<32x256xbf16> to vector<32x256xf32>
    %c0_1 = arith.constant 0 : index
    %c0_2 = arith.constant 0 : index
    %2 = vector.load %arg2[%c0_1, %c0_2] : memref<1x256xf32, #tpu.memory_space<vmem>>, vector<1x256xf32>
    %3 = vector.broadcast %2 : vector<1x256xf32> to vector<32x256xf32>
    %4 = arith.mulf %1, %3 : vector<32x256xf32>
    %c0_3 = arith.constant 0 : index
    %c0_4 = arith.constant 0 : index
    %5 = vector.load %arg3[%c0_3, %c0_4] : memref<1x256xf32, #tpu.memory_space<vmem>>, vector<1x256xf32>
    %6 = vector.broadcast %5 : vector<1x256xf32> to vector<32x256xf32>
    %7 = arith.addf %4, %6 : vector<32x256xf32>
    %cst = arith.constant 0.000000e+00 : f32
    %8 = vector.broadcast %cst : f32 to vector<32x256xf32>
    %9 = arith.maximumf %7, %8 : vector<32x256xf32>
    %10 = arith.truncf %9 : vector<32x256xf32> to vector<32x256xbf16>
    %c0_5 = arith.constant 0 : index
    %c0_6 = arith.constant 0 : index
    %11 = vector.load %arg6[%c0_5, %c0_6] : memref<256x128xbf16, #tpu.memory_space<vmem>>, vector<256x128xbf16>
    %cst_7 = arith.constant dense<0.000000e+00> : vector<32x128xf32>
    %12 = tpu.matmul %10, %11, %cst_7 {dimension_numbers = #tpu.dot_dimension_numbers<[1], [0], [0], [1], [0, 0, 1, 1], [], []>} : vector<32x256xbf16>, vector<256x128xbf16>, vector<32x128xf32> -> vector<32x128xf32>
    %13 = arith.mulf %12, %12 : vector<32x128xf32>
    %c0_8 = arith.constant 0 : index
    %c0_9 = arith.constant 0 : index
    %14 = vector.load %arg4[%c0_8, %c0_9] : memref<32x4xf32, #tpu.memory_space<vmem>>, vector<32x1xf32>
    %15 = vector.broadcast %14 : vector<32x1xf32> to vector<32x128xf32>
    %16 = arith.mulf %12, %15 : vector<32x128xf32>
    %cst_10 = arith.constant dense<0.000000e+00> : vector<128xf32>
    %17 = vector.multi_reduction <add>, %16, %cst_10 [0] : vector<32x128xf32> to vector<128xf32>
    %18 = vector.shape_cast %17 : vector<128xf32> to vector<1x128xf32>
    %c0_11 = arith.constant 0 : index
    %c1 = arith.constant 1 : index
    %19 = vector.load %arg4[%c0_11, %c1] : memref<32x4xf32, #tpu.memory_space<vmem>>, vector<32x1xf32>
    %20 = vector.broadcast %19 : vector<32x1xf32> to vector<32x128xf32>
    %21 = arith.mulf %12, %20 : vector<32x128xf32>
    %cst_12 = arith.constant dense<0.000000e+00> : vector<128xf32>
    %22 = vector.multi_reduction <add>, %21, %cst_12 [0] : vector<32x128xf32> to vector<128xf32>
    %23 = vector.shape_cast %22 : vector<128xf32> to vector<1x128xf32>
    %c0_13 = arith.constant 0 : index
    %c2 = arith.constant 2 : index
    %24 = vector.load %arg4[%c0_13, %c2] : memref<32x4xf32, #tpu.memory_space<vmem>>, vector<32x1xf32>
    %25 = vector.broadcast %24 : vector<32x1xf32> to vector<32x128xf32>
    %26 = arith.mulf %12, %25 : vector<32x128xf32>
    %cst_14 = arith.constant dense<0.000000e+00> : vector<128xf32>
    %27 = vector.multi_reduction <add>, %26, %cst_14 [0] : vector<32x128xf32> to vector<128xf32>
    %28 = vector.shape_cast %27 : vector<128xf32> to vector<1x128xf32>
    %c0_15 = arith.constant 0 : index
    %c3 = arith.constant 3 : index
    %29 = vector.load %arg4[%c0_15, %c3] : memref<32x4xf32, #tpu.memory_space<vmem>>, vector<32x1xf32>
    %30 = vector.broadcast %29 : vector<32x1xf32> to vector<32x128xf32>
    %31 = arith.mulf %12, %30 : vector<32x128xf32>
    %cst_16 = arith.constant dense<0.000000e+00> : vector<128xf32>
    %32 = vector.multi_reduction <add>, %31, %cst_16 [0] : vector<32x128xf32> to vector<128xf32>
    %33 = vector.shape_cast %32 : vector<128xf32> to vector<1x128xf32>
    %c0_17 = arith.constant 0 : index
    %c0_18 = arith.constant 0 : index
    %34 = vector.load %arg4[%c0_17, %c0_18] : memref<32x4xf32, #tpu.memory_space<vmem>>, vector<32x1xf32>
    %35 = vector.broadcast %34 : vector<32x1xf32> to vector<32x128xf32>
    %36 = arith.mulf %13, %35 : vector<32x128xf32>
    %cst_19 = arith.constant dense<0.000000e+00> : vector<128xf32>
    %37 = vector.multi_reduction <add>, %36, %cst_19 [0] : vector<32x128xf32> to vector<128xf32>
    %38 = vector.shape_cast %37 : vector<128xf32> to vector<1x128xf32>
    %c0_20 = arith.constant 0 : index
    %c1_21 = arith.constant 1 : index
    %39 = vector.load %arg4[%c0_20, %c1_21] : memref<32x4xf32, #tpu.memory_space<vmem>>, vector<32x1xf32>
    %40 = vector.broadcast %39 : vector<32x1xf32> to vector<32x128xf32>
    %41 = arith.mulf %13, %40 : vector<32x128xf32>
    %cst_22 = arith.constant dense<0.000000e+00> : vector<128xf32>
    %42 = vector.multi_reduction <add>, %41, %cst_22 [0] : vector<32x128xf32> to vector<128xf32>
    %43 = vector.shape_cast %42 : vector<128xf32> to vector<1x128xf32>
    %c0_23 = arith.constant 0 : index
    %c2_24 = arith.constant 2 : index
    %44 = vector.load %arg4[%c0_23, %c2_24] : memref<32x4xf32, #tpu.memory_space<vmem>>, vector<32x1xf32>
    %45 = vector.broadcast %44 : vector<32x1xf32> to vector<32x128xf32>
    %46 = arith.mulf %13, %45 : vector<32x128xf32>
    %cst_25 = arith.constant dense<0.000000e+00> : vector<128xf32>
    %47 = vector.multi_reduction <add>, %46, %cst_25 [0] : vector<32x128xf32> to vector<128xf32>
    %48 = vector.shape_cast %47 : vector<128xf32> to vector<1x128xf32>
    %c0_26 = arith.constant 0 : index
    %c3_27 = arith.constant 3 : index
    %49 = vector.load %arg4[%c0_26, %c3_27] : memref<32x4xf32, #tpu.memory_space<vmem>>, vector<32x1xf32>
    %50 = vector.broadcast %49 : vector<32x1xf32> to vector<32x128xf32>
    %51 = arith.mulf %13, %50 : vector<32x128xf32>
    %cst_28 = arith.constant dense<0.000000e+00> : vector<128xf32>
    %52 = vector.multi_reduction <add>, %51, %cst_28 [0] : vector<32x128xf32> to vector<128xf32>
    %53 = vector.shape_cast %52 : vector<128xf32> to vector<1x128xf32>
    %54 = tpu.concatenate %18, %23, %28, %33, %38, %43, %48, %53 in 0 : vector<1x128xf32>, vector<1x128xf32>, vector<1x128xf32>, vector<1x128xf32>, vector<1x128xf32>, vector<1x128xf32>, vector<1x128xf32>, vector<1x128xf32> -> vector<8x128xf32>
    %c0_29 = arith.constant 0 : index
    %c0_30 = arith.constant 0 : index
    %c0_31 = arith.constant 0 : index
    %55 = vector.load %arg8[%c0_29, %c0_30, %c0_31] : memref<1x8x128xf32, #tpu.memory_space<vmem>>, vector<1x8x128xf32>
    %56 = vector.shape_cast %55 : vector<1x8x128xf32> to vector<8x128xf32>
    %57 = vector.shape_cast %54 : vector<8x128xf32> to vector<1x8x128xf32>
    tpu.vector_store %arg8[%c0_29, %c0_30, %c0_31], %57 {strides = array<i32>} : memref<1x8x128xf32, #tpu.memory_space<vmem>>, vector<1x8x128xf32>,
    %58 = arith.truncf %12 : vector<32x128xf32> to vector<32x128xbf16>
    %c0_32 = arith.constant 0 : index
    %c0_33 = arith.constant 0 : index
    %59 = vector.load %arg7[%c0_32, %c0_33] : memref<32x128xbf16, #tpu.memory_space<vmem>>, vector<32x128xbf16>
    tpu.vector_store %arg7[%c0_32, %c0_33], %58 {strides = array<i32>} : memref<32x128xbf16, #tpu.memory_space<vmem>>, vector<32x128xbf16>,
    return
  }
  func.func @transform_0(%arg0: i32, %arg1: i32) -> (i32, i32) {
    %c0_i32 = arith.constant 0 : i32
    %c0_i32_0 = arith.constant 0 : i32
    %c0_i32_1 = arith.constant 0 : i32
    return %c0_i32, %c0_i32_0 : i32, i32
  }
  func.func @transform_1(%arg0: i32, %arg1: i32) -> (i32, i32) {
    %c0_i32 = arith.constant 0 : i32
    %c0_i32_0 = arith.constant 0 : i32
    %c0_i32_1 = arith.constant 0 : i32
    return %c0_i32, %c0_i32_0 : i32, i32
  }
  func.func @transform_2(%arg0: i32, %arg1: i32) -> (i32, i32) {
    %c0_i32 = arith.constant 0 : i32
    %c0_i32_0 = arith.constant 0 : i32
    return %arg0, %c0_i32 : i32, i32
  }
  func.func @transform_3(%arg0: i32, %arg1: i32) -> (i32, i32) {
    %c0_i32 = arith.constant 0 : i32
    %c0_i32_0 = arith.constant 0 : i32
    return %arg0, %c0_i32 : i32, i32
  }
  func.func @transform_4(%arg0: i32, %arg1: i32) -> (i32, i32) {
    %c0_i32 = arith.constant 0 : i32
    %c0_i32_0 = arith.constant 0 : i32
    return %c0_i32, %arg1 : i32, i32
  }
  func.func @transform_5(%arg0: i32, %arg1: i32) -> (i32, i32) {
    %c0_i32 = arith.constant 0 : i32
    return %arg0, %arg1 : i32, i32
  }
  func.func @transform_6(%arg0: i32, %arg1: i32) -> (i32, i32, i32) {
    %c0_i32 = arith.constant 0 : i32
    %c0_i32_0 = arith.constant 0 : i32
    return %arg0, %c0_i32, %arg1 : i32, i32, i32
  }
}

module attributes {stable_mosaic.version = 11 : i64} {
  func.func @_gemm_kernel(%arg0: i32, %arg1: i32, %arg2: memref<1x128xf32, #tpu.memory_space<vmem>>, %arg3: memref<1x128xf32, #tpu.memory_space<vmem>>, %arg4: memref<96x4xf32, #tpu.memory_space<vmem>>, %arg5: memref<96x128xbf16, #tpu.memory_space<vmem>>, %arg6: memref<128x128xbf16, #tpu.memory_space<vmem>>, %arg7: memref<96x128xbf16, #tpu.memory_space<vmem>>, %arg8: memref<1x8x128xf32, #tpu.memory_space<vmem>>) attributes {dimension_semantics = [#tpu.dimension_semantics<parallel>, #tpu.dimension_semantics<parallel>], iteration_bounds = array<i64: 2, 1>, scalar_prefetch = 0 : i64, scratch_operands = 0 : i64, tpu.core_type = #tpu.core_type<tc>, window_params = [{pipeline_mode = #tpu.pipeline_mode<synchronous>, transform_indices = @transform_0, window_bounds = array<i64: 1, 128>}, {pipeline_mode = #tpu.pipeline_mode<synchronous>, transform_indices = @transform_1, window_bounds = array<i64: 1, 128>}, {transform_indices = @transform_2, window_bounds = array<i64: 96, 4>}, {transform_indices = @transform_3, window_bounds = array<i64: 96, 128>}, {transform_indices = @transform_4, window_bounds = array<i64: 128, 128>}, {transform_indices = @transform_5, window_bounds = array<i64: 96, 128>}, {transform_indices = @transform_6, window_bounds = array<i64: 1, 8, 128>}]} {
    %c0 = arith.constant 0 : index
    %c0_0 = arith.constant 0 : index
    %0 = vector.load %arg5[%c0, %c0_0] : memref<96x128xbf16, #tpu.memory_space<vmem>>, vector<96x128xbf16>
    %1 = arith.extf %0 : vector<96x128xbf16> to vector<96x128xf32>
    %c0_1 = arith.constant 0 : index
    %c0_2 = arith.constant 0 : index
    %2 = vector.load %arg2[%c0_1, %c0_2] : memref<1x128xf32, #tpu.memory_space<vmem>>, vector<1x128xf32>
    %3 = vector.broadcast %2 : vector<1x128xf32> to vector<96x128xf32>
    %4 = arith.mulf %1, %3 : vector<96x128xf32>
    %c0_3 = arith.constant 0 : index
    %c0_4 = arith.constant 0 : index
    %5 = vector.load %arg3[%c0_3, %c0_4] : memref<1x128xf32, #tpu.memory_space<vmem>>, vector<1x128xf32>
    %6 = vector.broadcast %5 : vector<1x128xf32> to vector<96x128xf32>
    %7 = arith.addf %4, %6 : vector<96x128xf32>
    %cst = arith.constant 0.000000e+00 : f32
    %8 = vector.broadcast %cst : f32 to vector<96x128xf32>
    %9 = arith.maximumf %7, %8 : vector<96x128xf32>
    %10 = arith.truncf %9 : vector<96x128xf32> to vector<96x128xbf16>
    %c0_5 = arith.constant 0 : index
    %c0_6 = arith.constant 0 : index
    %11 = vector.load %arg6[%c0_5, %c0_6] : memref<128x128xbf16, #tpu.memory_space<vmem>>, vector<128x128xbf16>
    %cst_7 = arith.constant dense<0.000000e+00> : vector<96x128xf32>
    %12 = tpu.matmul %10, %11, %cst_7 {dimension_numbers = #tpu.dot_dimension_numbers<[1], [0], [0], [1], [0, 0, 1, 1], [], []>} : vector<96x128xbf16>, vector<128x128xbf16>, vector<96x128xf32> -> vector<96x128xf32>
    %13 = arith.mulf %12, %12 : vector<96x128xf32>
    %c0_8 = arith.constant 0 : index
    %c0_9 = arith.constant 0 : index
    %14 = vector.load %arg4[%c0_8, %c0_9] : memref<96x4xf32, #tpu.memory_space<vmem>>, vector<96x1xf32>
    %15 = vector.broadcast %14 : vector<96x1xf32> to vector<96x128xf32>
    %16 = arith.mulf %12, %15 : vector<96x128xf32>
    %cst_10 = arith.constant dense<0.000000e+00> : vector<128xf32>
    %17 = vector.multi_reduction <add>, %16, %cst_10 [0] : vector<96x128xf32> to vector<128xf32>
    %18 = vector.shape_cast %17 : vector<128xf32> to vector<1x128xf32>
    %c0_11 = arith.constant 0 : index
    %c1 = arith.constant 1 : index
    %19 = vector.load %arg4[%c0_11, %c1] : memref<96x4xf32, #tpu.memory_space<vmem>>, vector<96x1xf32>
    %20 = vector.broadcast %19 : vector<96x1xf32> to vector<96x128xf32>
    %21 = arith.mulf %12, %20 : vector<96x128xf32>
    %cst_12 = arith.constant dense<0.000000e+00> : vector<128xf32>
    %22 = vector.multi_reduction <add>, %21, %cst_12 [0] : vector<96x128xf32> to vector<128xf32>
    %23 = vector.shape_cast %22 : vector<128xf32> to vector<1x128xf32>
    %c0_13 = arith.constant 0 : index
    %c2 = arith.constant 2 : index
    %24 = vector.load %arg4[%c0_13, %c2] : memref<96x4xf32, #tpu.memory_space<vmem>>, vector<96x1xf32>
    %25 = vector.broadcast %24 : vector<96x1xf32> to vector<96x128xf32>
    %26 = arith.mulf %12, %25 : vector<96x128xf32>
    %cst_14 = arith.constant dense<0.000000e+00> : vector<128xf32>
    %27 = vector.multi_reduction <add>, %26, %cst_14 [0] : vector<96x128xf32> to vector<128xf32>
    %28 = vector.shape_cast %27 : vector<128xf32> to vector<1x128xf32>
    %c0_15 = arith.constant 0 : index
    %c3 = arith.constant 3 : index
    %29 = vector.load %arg4[%c0_15, %c3] : memref<96x4xf32, #tpu.memory_space<vmem>>, vector<96x1xf32>
    %30 = vector.broadcast %29 : vector<96x1xf32> to vector<96x128xf32>
    %31 = arith.mulf %12, %30 : vector<96x128xf32>
    %cst_16 = arith.constant dense<0.000000e+00> : vector<128xf32>
    %32 = vector.multi_reduction <add>, %31, %cst_16 [0] : vector<96x128xf32> to vector<128xf32>
    %33 = vector.shape_cast %32 : vector<128xf32> to vector<1x128xf32>
    %c0_17 = arith.constant 0 : index
    %c0_18 = arith.constant 0 : index
    %34 = vector.load %arg4[%c0_17, %c0_18] : memref<96x4xf32, #tpu.memory_space<vmem>>, vector<96x1xf32>
    %35 = vector.broadcast %34 : vector<96x1xf32> to vector<96x128xf32>
    %36 = arith.mulf %13, %35 : vector<96x128xf32>
    %cst_19 = arith.constant dense<0.000000e+00> : vector<128xf32>
    %37 = vector.multi_reduction <add>, %36, %cst_19 [0] : vector<96x128xf32> to vector<128xf32>
    %38 = vector.shape_cast %37 : vector<128xf32> to vector<1x128xf32>
    %c0_20 = arith.constant 0 : index
    %c1_21 = arith.constant 1 : index
    %39 = vector.load %arg4[%c0_20, %c1_21] : memref<96x4xf32, #tpu.memory_space<vmem>>, vector<96x1xf32>
    %40 = vector.broadcast %39 : vector<96x1xf32> to vector<96x128xf32>
    %41 = arith.mulf %13, %40 : vector<96x128xf32>
    %cst_22 = arith.constant dense<0.000000e+00> : vector<128xf32>
    %42 = vector.multi_reduction <add>, %41, %cst_22 [0] : vector<96x128xf32> to vector<128xf32>
    %43 = vector.shape_cast %42 : vector<128xf32> to vector<1x128xf32>
    %c0_23 = arith.constant 0 : index
    %c2_24 = arith.constant 2 : index
    %44 = vector.load %arg4[%c0_23, %c2_24] : memref<96x4xf32, #tpu.memory_space<vmem>>, vector<96x1xf32>
    %45 = vector.broadcast %44 : vector<96x1xf32> to vector<96x128xf32>
    %46 = arith.mulf %13, %45 : vector<96x128xf32>
    %cst_25 = arith.constant dense<0.000000e+00> : vector<128xf32>
    %47 = vector.multi_reduction <add>, %46, %cst_25 [0] : vector<96x128xf32> to vector<128xf32>
    %48 = vector.shape_cast %47 : vector<128xf32> to vector<1x128xf32>
    %c0_26 = arith.constant 0 : index
    %c3_27 = arith.constant 3 : index
    %49 = vector.load %arg4[%c0_26, %c3_27] : memref<96x4xf32, #tpu.memory_space<vmem>>, vector<96x1xf32>
    %50 = vector.broadcast %49 : vector<96x1xf32> to vector<96x128xf32>
    %51 = arith.mulf %13, %50 : vector<96x128xf32>
    %cst_28 = arith.constant dense<0.000000e+00> : vector<128xf32>
    %52 = vector.multi_reduction <add>, %51, %cst_28 [0] : vector<96x128xf32> to vector<128xf32>
    %53 = vector.shape_cast %52 : vector<128xf32> to vector<1x128xf32>
    %54 = tpu.concatenate %18, %23, %28, %33, %38, %43, %48, %53 in 0 : vector<1x128xf32>, vector<1x128xf32>, vector<1x128xf32>, vector<1x128xf32>, vector<1x128xf32>, vector<1x128xf32>, vector<1x128xf32>, vector<1x128xf32> -> vector<8x128xf32>
    %c0_29 = arith.constant 0 : index
    %c0_30 = arith.constant 0 : index
    %c0_31 = arith.constant 0 : index
    %55 = vector.load %arg8[%c0_29, %c0_30, %c0_31] : memref<1x8x128xf32, #tpu.memory_space<vmem>>, vector<1x8x128xf32>
    %56 = vector.shape_cast %55 : vector<1x8x128xf32> to vector<8x128xf32>
    %57 = vector.shape_cast %54 : vector<8x128xf32> to vector<1x8x128xf32>
    tpu.vector_store %arg8[%c0_29, %c0_30, %c0_31], %57 {strides = array<i32>} : memref<1x8x128xf32, #tpu.memory_space<vmem>>, vector<1x8x128xf32>,
    %58 = arith.truncf %12 : vector<96x128xf32> to vector<96x128xbf16>
    %c0_32 = arith.constant 0 : index
    %c0_33 = arith.constant 0 : index
    %59 = vector.load %arg7[%c0_32, %c0_33] : memref<96x128xbf16, #tpu.memory_space<vmem>>, vector<96x128xbf16>
    tpu.vector_store %arg7[%c0_32, %c0_33], %58 {strides = array<i32>} : memref<96x128xbf16, #tpu.memory_space<vmem>>, vector<96x128xbf16>,
    return
  }
  func.func @transform_0(%arg0: i32, %arg1: i32) -> (i32, i32) {
    %c0_i32 = arith.constant 0 : i32
    %c0_i32_0 = arith.constant 0 : i32
    %c0_i32_1 = arith.constant 0 : i32
    return %c0_i32, %c0_i32_0 : i32, i32
  }
  func.func @transform_1(%arg0: i32, %arg1: i32) -> (i32, i32) {
    %c0_i32 = arith.constant 0 : i32
    %c0_i32_0 = arith.constant 0 : i32
    %c0_i32_1 = arith.constant 0 : i32
    return %c0_i32, %c0_i32_0 : i32, i32
  }
  func.func @transform_2(%arg0: i32, %arg1: i32) -> (i32, i32) {
    %c0_i32 = arith.constant 0 : i32
    %c0_i32_0 = arith.constant 0 : i32
    return %arg0, %c0_i32 : i32, i32
  }
  func.func @transform_3(%arg0: i32, %arg1: i32) -> (i32, i32) {
    %c0_i32 = arith.constant 0 : i32
    %c0_i32_0 = arith.constant 0 : i32
    return %arg0, %c0_i32 : i32, i32
  }
  func.func @transform_4(%arg0: i32, %arg1: i32) -> (i32, i32) {
    %c0_i32 = arith.constant 0 : i32
    %c0_i32_0 = arith.constant 0 : i32
    return %c0_i32, %arg1 : i32, i32
  }
  func.func @transform_5(%arg0: i32, %arg1: i32) -> (i32, i32) {
    %c0_i32 = arith.constant 0 : i32
    return %arg0, %arg1 : i32, i32
  }
  func.func @transform_6(%arg0: i32, %arg1: i32) -> (i32, i32, i32) {
    %c0_i32 = arith.constant 0 : i32
    %c0_i32_0 = arith.constant 0 : i32
    return %arg0, %c0_i32, %arg1 : i32, i32, i32
  }
}

module attributes {stable_mosaic.version = 11 : i64} {
  func.func @_gemm_kernel(%arg0: i32, %arg1: i32, %arg2: memref<1x128xf32, #tpu.memory_space<vmem>>, %arg3: memref<1x128xf32, #tpu.memory_space<vmem>>, %arg4: memref<304x4xf32, #tpu.memory_space<vmem>>, %arg5: memref<304x128xbf16, #tpu.memory_space<vmem>>, %arg6: memref<128x128xbf16, #tpu.memory_space<vmem>>, %arg7: memref<304x128xbf16, #tpu.memory_space<vmem>>, %arg8: memref<1x8x128xf32, #tpu.memory_space<vmem>>) attributes {dimension_semantics = [#tpu.dimension_semantics<parallel>, #tpu.dimension_semantics<parallel>], iteration_bounds = array<i64: 2, 1>, scalar_prefetch = 0 : i64, scratch_operands = 0 : i64, tpu.core_type = #tpu.core_type<tc>, window_params = [{pipeline_mode = #tpu.pipeline_mode<synchronous>, transform_indices = @transform_0, window_bounds = array<i64: 1, 128>}, {pipeline_mode = #tpu.pipeline_mode<synchronous>, transform_indices = @transform_1, window_bounds = array<i64: 1, 128>}, {transform_indices = @transform_2, window_bounds = array<i64: 304, 4>}, {transform_indices = @transform_3, window_bounds = array<i64: 304, 128>}, {transform_indices = @transform_4, window_bounds = array<i64: 128, 128>}, {transform_indices = @transform_5, window_bounds = array<i64: 304, 128>}, {transform_indices = @transform_6, window_bounds = array<i64: 1, 8, 128>}]} {
    %c0 = arith.constant 0 : index
    %c0_0 = arith.constant 0 : index
    %0 = vector.load %arg5[%c0, %c0_0] : memref<304x128xbf16, #tpu.memory_space<vmem>>, vector<304x128xbf16>
    %1 = arith.extf %0 : vector<304x128xbf16> to vector<304x128xf32>
    %c0_1 = arith.constant 0 : index
    %c0_2 = arith.constant 0 : index
    %2 = vector.load %arg2[%c0_1, %c0_2] : memref<1x128xf32, #tpu.memory_space<vmem>>, vector<1x128xf32>
    %3 = vector.broadcast %2 : vector<1x128xf32> to vector<304x128xf32>
    %4 = arith.mulf %1, %3 : vector<304x128xf32>
    %c0_3 = arith.constant 0 : index
    %c0_4 = arith.constant 0 : index
    %5 = vector.load %arg3[%c0_3, %c0_4] : memref<1x128xf32, #tpu.memory_space<vmem>>, vector<1x128xf32>
    %6 = vector.broadcast %5 : vector<1x128xf32> to vector<304x128xf32>
    %7 = arith.addf %4, %6 : vector<304x128xf32>
    %cst = arith.constant 0.000000e+00 : f32
    %8 = vector.broadcast %cst : f32 to vector<304x128xf32>
    %9 = arith.maximumf %7, %8 : vector<304x128xf32>
    %10 = arith.truncf %9 : vector<304x128xf32> to vector<304x128xbf16>
    %c0_5 = arith.constant 0 : index
    %c0_6 = arith.constant 0 : index
    %11 = vector.load %arg6[%c0_5, %c0_6] : memref<128x128xbf16, #tpu.memory_space<vmem>>, vector<128x128xbf16>
    %cst_7 = arith.constant dense<0.000000e+00> : vector<304x128xf32>
    %12 = tpu.matmul %10, %11, %cst_7 {dimension_numbers = #tpu.dot_dimension_numbers<[1], [0], [0], [1], [0, 0, 1, 1], [], []>} : vector<304x128xbf16>, vector<128x128xbf16>, vector<304x128xf32> -> vector<304x128xf32>
    %13 = arith.mulf %12, %12 : vector<304x128xf32>
    %c0_8 = arith.constant 0 : index
    %c0_9 = arith.constant 0 : index
    %14 = vector.load %arg4[%c0_8, %c0_9] : memref<304x4xf32, #tpu.memory_space<vmem>>, vector<304x1xf32>
    %15 = vector.broadcast %14 : vector<304x1xf32> to vector<304x128xf32>
    %16 = arith.mulf %12, %15 : vector<304x128xf32>
    %cst_10 = arith.constant dense<0.000000e+00> : vector<128xf32>
    %17 = vector.multi_reduction <add>, %16, %cst_10 [0] : vector<304x128xf32> to vector<128xf32>
    %18 = vector.shape_cast %17 : vector<128xf32> to vector<1x128xf32>
    %c0_11 = arith.constant 0 : index
    %c1 = arith.constant 1 : index
    %19 = vector.load %arg4[%c0_11, %c1] : memref<304x4xf32, #tpu.memory_space<vmem>>, vector<304x1xf32>
    %20 = vector.broadcast %19 : vector<304x1xf32> to vector<304x128xf32>
    %21 = arith.mulf %12, %20 : vector<304x128xf32>
    %cst_12 = arith.constant dense<0.000000e+00> : vector<128xf32>
    %22 = vector.multi_reduction <add>, %21, %cst_12 [0] : vector<304x128xf32> to vector<128xf32>
    %23 = vector.shape_cast %22 : vector<128xf32> to vector<1x128xf32>
    %c0_13 = arith.constant 0 : index
    %c2 = arith.constant 2 : index
    %24 = vector.load %arg4[%c0_13, %c2] : memref<304x4xf32, #tpu.memory_space<vmem>>, vector<304x1xf32>
    %25 = vector.broadcast %24 : vector<304x1xf32> to vector<304x128xf32>
    %26 = arith.mulf %12, %25 : vector<304x128xf32>
    %cst_14 = arith.constant dense<0.000000e+00> : vector<128xf32>
    %27 = vector.multi_reduction <add>, %26, %cst_14 [0] : vector<304x128xf32> to vector<128xf32>
    %28 = vector.shape_cast %27 : vector<128xf32> to vector<1x128xf32>
    %c0_15 = arith.constant 0 : index
    %c3 = arith.constant 3 : index
    %29 = vector.load %arg4[%c0_15, %c3] : memref<304x4xf32, #tpu.memory_space<vmem>>, vector<304x1xf32>
    %30 = vector.broadcast %29 : vector<304x1xf32> to vector<304x128xf32>
    %31 = arith.mulf %12, %30 : vector<304x128xf32>
    %cst_16 = arith.constant dense<0.000000e+00> : vector<128xf32>
    %32 = vector.multi_reduction <add>, %31, %cst_16 [0] : vector<304x128xf32> to vector<128xf32>
    %33 = vector.shape_cast %32 : vector<128xf32> to vector<1x128xf32>
    %c0_17 = arith.constant 0 : index
    %c0_18 = arith.constant 0 : index
    %34 = vector.load %arg4[%c0_17, %c0_18] : memref<304x4xf32, #tpu.memory_space<vmem>>, vector<304x1xf32>
    %35 = vector.broadcast %34 : vector<304x1xf32> to vector<304x128xf32>
    %36 = arith.mulf %13, %35 : vector<304x128xf32>
    %cst_19 = arith.constant dense<0.000000e+00> : vector<128xf32>
    %37 = vector.multi_reduction <add>, %36, %cst_19 [0] : vector<304x128xf32> to vector<128xf32>
    %38 = vector.shape_cast %37 : vector<128xf32> to vector<1x128xf32>
    %c0_20 = arith.constant 0 : index
    %c1_21 = arith.constant 1 : index
    %39 = vector.load %arg4[%c0_20, %c1_21] : memref<304x4xf32, #tpu.memory_space<vmem>>, vector<304x1xf32>
    %40 = vector.broadcast %39 : vector<304x1xf32> to vector<304x128xf32>
    %41 = arith.mulf %13, %40 : vector<304x128xf32>
    %cst_22 = arith.constant dense<0.000000e+00> : vector<128xf32>
    %42 = vector.multi_reduction <add>, %41, %cst_22 [0] : vector<304x128xf32> to vector<128xf32>
    %43 = vector.shape_cast %42 : vector<128xf32> to vector<1x128xf32>
    %c0_23 = arith.constant 0 : index
    %c2_24 = arith.constant 2 : index
    %44 = vector.load %arg4[%c0_23, %c2_24] : memref<304x4xf32, #tpu.memory_space<vmem>>, vector<304x1xf32>
    %45 = vector.broadcast %44 : vector<304x1xf32> to vector<304x128xf32>
    %46 = arith.mulf %13, %45 : vector<304x128xf32>
    %cst_25 = arith.constant dense<0.000000e+00> : vector<128xf32>
    %47 = vector.multi_reduction <add>, %46, %cst_25 [0] : vector<304x128xf32> to vector<128xf32>
    %48 = vector.shape_cast %47 : vector<128xf32> to vector<1x128xf32>
    %c0_26 = arith.constant 0 : index
    %c3_27 = arith.constant 3 : index
    %49 = vector.load %arg4[%c0_26, %c3_27] : memref<304x4xf32, #tpu.memory_space<vmem>>, vector<304x1xf32>
    %50 = vector.broadcast %49 : vector<304x1xf32> to vector<304x128xf32>
    %51 = arith.mulf %13, %50 : vector<304x128xf32>
    %cst_28 = arith.constant dense<0.000000e+00> : vector<128xf32>
    %52 = vector.multi_reduction <add>, %51, %cst_28 [0] : vector<304x128xf32> to vector<128xf32>
    %53 = vector.shape_cast %52 : vector<128xf32> to vector<1x128xf32>
    %54 = tpu.concatenate %18, %23, %28, %33, %38, %43, %48, %53 in 0 : vector<1x128xf32>, vector<1x128xf32>, vector<1x128xf32>, vector<1x128xf32>, vector<1x128xf32>, vector<1x128xf32>, vector<1x128xf32>, vector<1x128xf32> -> vector<8x128xf32>
    %c0_29 = arith.constant 0 : index
    %c0_30 = arith.constant 0 : index
    %c0_31 = arith.constant 0 : index
    %55 = vector.load %arg8[%c0_29, %c0_30, %c0_31] : memref<1x8x128xf32, #tpu.memory_space<vmem>>, vector<1x8x128xf32>
    %56 = vector.shape_cast %55 : vector<1x8x128xf32> to vector<8x128xf32>
    %57 = vector.shape_cast %54 : vector<8x128xf32> to vector<1x8x128xf32>
    tpu.vector_store %arg8[%c0_29, %c0_30, %c0_31], %57 {strides = array<i32>} : memref<1x8x128xf32, #tpu.memory_space<vmem>>, vector<1x8x128xf32>,
    %58 = arith.truncf %12 : vector<304x128xf32> to vector<304x128xbf16>
    %c0_32 = arith.constant 0 : index
    %c0_33 = arith.constant 0 : index
    %59 = vector.load %arg7[%c0_32, %c0_33] : memref<304x128xbf16, #tpu.memory_space<vmem>>, vector<304x128xbf16>
    tpu.vector_store %arg7[%c0_32, %c0_33], %58 {strides = array<i32>} : memref<304x128xbf16, #tpu.memory_space<vmem>>, vector<304x128xbf16>,
    return
  }
  func.func @transform_0(%arg0: i32, %arg1: i32) -> (i32, i32) {
    %c0_i32 = arith.constant 0 : i32
    %c0_i32_0 = arith.constant 0 : i32
    %c0_i32_1 = arith.constant 0 : i32
    return %c0_i32, %c0_i32_0 : i32, i32
  }
  func.func @transform_1(%arg0: i32, %arg1: i32) -> (i32, i32) {
    %c0_i32 = arith.constant 0 : i32
    %c0_i32_0 = arith.constant 0 : i32
    %c0_i32_1 = arith.constant 0 : i32
    return %c0_i32, %c0_i32_0 : i32, i32
  }
  func.func @transform_2(%arg0: i32, %arg1: i32) -> (i32, i32) {
    %c0_i32 = arith.constant 0 : i32
    %c0_i32_0 = arith.constant 0 : i32
    return %arg0, %c0_i32 : i32, i32
  }
  func.func @transform_3(%arg0: i32, %arg1: i32) -> (i32, i32) {
    %c0_i32 = arith.constant 0 : i32
    %c0_i32_0 = arith.constant 0 : i32
    return %arg0, %c0_i32 : i32, i32
  }
  func.func @transform_4(%arg0: i32, %arg1: i32) -> (i32, i32) {
    %c0_i32 = arith.constant 0 : i32
    %c0_i32_0 = arith.constant 0 : i32
    return %c0_i32, %arg1 : i32, i32
  }
  func.func @transform_5(%arg0: i32, %arg1: i32) -> (i32, i32) {
    %c0_i32 = arith.constant 0 : i32
    return %arg0, %arg1 : i32, i32
  }
  func.func @transform_6(%arg0: i32, %arg1: i32) -> (i32, i32, i32) {
    %c0_i32 = arith.constant 0 : i32
    %c0_i32_0 = arith.constant 0 : i32
    return %arg0, %c0_i32, %arg1 : i32, i32, i32
  }
}

module attributes {stable_mosaic.version = 11 : i64} {
  func.func @_gemm_kernel(%arg0: i32, %arg1: i32, %arg2: memref<1x128xf32, #tpu.memory_space<vmem>>, %arg3: memref<1x128xf32, #tpu.memory_space<vmem>>, %arg4: memref<448x128xbf16, #tpu.memory_space<vmem>>, %arg5: memref<128x128xbf16, #tpu.memory_space<vmem>>, %arg6: memref<448x128xbf16, #tpu.memory_space<vmem>>) attributes {dimension_semantics = [#tpu.dimension_semantics<parallel>, #tpu.dimension_semantics<parallel>], iteration_bounds = array<i64: 5, 1>, scalar_prefetch = 0 : i64, scratch_operands = 0 : i64, tpu.core_type = #tpu.core_type<tc>, window_params = [{pipeline_mode = #tpu.pipeline_mode<synchronous>, transform_indices = @transform_0, window_bounds = array<i64: 1, 128>}, {pipeline_mode = #tpu.pipeline_mode<synchronous>, transform_indices = @transform_1, window_bounds = array<i64: 1, 128>}, {transform_indices = @transform_2, window_bounds = array<i64: 448, 128>}, {transform_indices = @transform_3, window_bounds = array<i64: 128, 128>}, {transform_indices = @transform_4, window_bounds = array<i64: 448, 128>}]} {
    %c0 = arith.constant 0 : index
    %c0_0 = arith.constant 0 : index
    %0 = vector.load %arg4[%c0, %c0_0] : memref<448x128xbf16, #tpu.memory_space<vmem>>, vector<448x128xbf16>
    %1 = arith.extf %0 : vector<448x128xbf16> to vector<448x128xf32>
    %c0_1 = arith.constant 0 : index
    %c0_2 = arith.constant 0 : index
    %2 = vector.load %arg2[%c0_1, %c0_2] : memref<1x128xf32, #tpu.memory_space<vmem>>, vector<1x128xf32>
    %3 = vector.broadcast %2 : vector<1x128xf32> to vector<448x128xf32>
    %4 = arith.mulf %1, %3 : vector<448x128xf32>
    %c0_3 = arith.constant 0 : index
    %c0_4 = arith.constant 0 : index
    %5 = vector.load %arg3[%c0_3, %c0_4] : memref<1x128xf32, #tpu.memory_space<vmem>>, vector<1x128xf32>
    %6 = vector.broadcast %5 : vector<1x128xf32> to vector<448x128xf32>
    %7 = arith.addf %4, %6 : vector<448x128xf32>
    %cst = arith.constant 0.000000e+00 : f32
    %8 = vector.broadcast %cst : f32 to vector<448x128xf32>
    %9 = arith.maximumf %7, %8 : vector<448x128xf32>
    %10 = arith.truncf %9 : vector<448x128xf32> to vector<448x128xbf16>
    %c0_5 = arith.constant 0 : index
    %c0_6 = arith.constant 0 : index
    %11 = vector.load %arg5[%c0_5, %c0_6] : memref<128x128xbf16, #tpu.memory_space<vmem>>, vector<128x128xbf16>
    %cst_7 = arith.constant dense<0.000000e+00> : vector<448x128xf32>
    %12 = tpu.matmul %10, %11, %cst_7 {dimension_numbers = #tpu.dot_dimension_numbers<[1], [0], [0], [1], [0, 0, 1, 1], [], []>} : vector<448x128xbf16>, vector<128x128xbf16>, vector<448x128xf32> -> vector<448x128xf32>
    %13 = math.tanh %12 : vector<448x128xf32>
    %14 = arith.truncf %13 : vector<448x128xf32> to vector<448x128xbf16>
    %c0_8 = arith.constant 0 : index
    %c0_9 = arith.constant 0 : index
    %15 = vector.load %arg6[%c0_8, %c0_9] : memref<448x128xbf16, #tpu.memory_space<vmem>>, vector<448x128xbf16>
    tpu.vector_store %arg6[%c0_8, %c0_9], %14 {strides = array<i32>} : memref<448x128xbf16, #tpu.memory_space<vmem>>, vector<448x128xbf16>,
    return
  }
  func.func @transform_0(%arg0: i32, %arg1: i32) -> (i32, i32) {
    %c0_i32 = arith.constant 0 : i32
    %c0_i32_0 = arith.constant 0 : i32
    %c0_i32_1 = arith.constant 0 : i32
    return %c0_i32, %c0_i32_0 : i32, i32
  }
  func.func @transform_1(%arg0: i32, %arg1: i32) -> (i32, i32) {
    %c0_i32 = arith.constant 0 : i32
    %c0_i32_0 = arith.constant 0 : i32
    %c0_i32_1 = arith.constant 0 : i32
    return %c0_i32, %c0_i32_0 : i32, i32
  }
  func.func @transform_2(%arg0: i32, %arg1: i32) -> (i32, i32) {
    %c0_i32 = arith.constant 0 : i32
    %c0_i32_0 = arith.constant 0 : i32
    return %arg0, %c0_i32 : i32, i32
  }
  func.func @transform_3(%arg0: i32, %arg1: i32) -> (i32, i32) {
    %c0_i32 = arith.constant 0 : i32
    %c0_i32_0 = arith.constant 0 : i32
    return %c0_i32, %arg1 : i32, i32
  }
  func.func @transform_4(%arg0: i32, %arg1: i32) -> (i32, i32) {
    %c0_i32 = arith.constant 0 : i32
    return %arg0, %arg1 : i32, i32
  }
}

</mosaic_0001>

<bundles_post_ra>
// kernel: squeeze.107
= control target key start
LH: loop header
LB: loop body
LE: loop exit
PB: predicated region body
PF: predicated region fallthrough
CT: control target
= control target key end

     0   :  { %vm3_vm0 = vcmask 523264   ;;  %s13_s9 = smov 64   ;;  %s33_s0 = inlined_call_operand.vmem [shape: f32[1024], index: 0, kind: input, shape index: {}]   ;;  %s34_s1 = inlined_call_operand.vmem [shape: f32[16,64], index: 1, kind: output, shape index: {}]  }
   0x1   :  { %v2_v0 = vld [vmem:[%s33_s0] sm:$0xff]  }
   0x2   :  { %4 = vst.msk [vmem:[%s34_s1] ss:$2 sm:$0xff] %vm3_vm0, %v2_v0   ;;  %6 = vrot.lane.b32.xlu0 %v2_v0, %s13_s9 }
  0x74   :  { %v7_v1 = vpop.permute.xlu0 %6  }
  0x75   :  { %11 = vst.msk [vmem:[%s34_s1 + $0x1] ss:$2 sm:$0xff] %vm3_vm0, %v7_v1  }

// kernel: tile.43
= control target key start
LH: loop header
LB: loop body
LE: loop exit
PB: predicated region body
PF: predicated region fallthrough
CT: control target
= control target key end

     0   :  { %s22_s0 = inlined_call_operand.vmem [shape: f32[64], index: 0, kind: input, shape index: {}]   ;;  %s23_s1 = inlined_call_operand.vmem [shape: f32[4,64], index: 1, kind: output, shape index: {}]  }
   0x1   :  { %v4_v0 = vld [vmem:[%s22_s0] ss:$0 sm:$0xff] }
   0x2   :  { %5 = vst [vmem:[%s23_s1] sm:$0xf] %v4_v0 }

// kernel: generator_forward.5
= control target key start
LH: loop header
LB: loop body
LE: loop exit
PB: predicated region body
PF: predicated region fallthrough
CT: control target
= control target key end

     0   :  { %10 = vsyncpa [#allocation3], 0  ;;  %s1507_s15 = smov 0   ;;  %s1509_s16 = smov 0   ;;  %s1927_s0 = inlined_call_operand.hbm [shape: f32[16,4], index: 0, kind: input, shape index: {}]   ;;  %s1928_s1 = inlined_call_operand.vmem [shape: bf16[16,128], index: 1, kind: input, shape index: {}]   ;;  %s1929_s2 = inlined_call_operand.vmem [shape: bf16[128,1024], index: 2, kind: input, shape index: {}]   ;;  %s1930_s3 = inlined_call_operand.vmem [shape: bf16[16,1024], index: 3, kind: output, shape index: {0}]   ;;  %s1931_s4 = inlined_call_operand.vmem [shape: f32[1,8,1024], index: 4, kind: output, shape index: {1}]  }
   0x1   :  { %s1511_s17 = smov 0   ;;  %s1513_s18 = smov 0  }
   0x2   :  { %s1515_s19 = smov 0  }
   0x3 LB: > { %s1230_s20 = sadd.s32 4294967295, %s1473_s19   ;;  %s25_s21 = sadd.s32 1, %s1469_s18  ;;  %s1473_s19 = sphi %s1515_s19, %s16_s19   ;;  %s1469_s18 = sphi %s1513_s18, %s1941_s18   ;;  %s1465_s17 = sphi %s1511_s17, %s1940_s17   ;;  %s1461_s16 = sphi %s1509_s16, %s1939_s16   ;;  %s1457_s15 = sphi %s1507_s15, %s1938_s15  }
   0x4   : > { %p26_p0 = scmp.ge.s32.totalorder %s25_s21, 2  ;;  %s87_s22 = sadd.s32 1, %s1461_s16 }
   0x5   : > { %p94_p1 = scmp.ne.s32.totalorder %s1461_s16, %s1457_s15  ;;  %p95_p2 = scmp.eq.s32.totalorder %s1473_s19, 0 }
   0x6   : > { %s1943_s21 = smov (%p26_p0, %s25_s21), 0  ;;  %p126_p4 = scmp.eq.s32.totalorder %s1230_s20, 1 }
   0x7   : > { %p1540_p3 = por %p95_p2, %p94_p1  ;;  %s84_s24 = ssub.s32 %s1469_s18, %s1943_s21 }
   0x8   : > { %p1232_p5 = scmp.ge.s32.totalorder %s1473_s19, 1  ;;  %p85_p6 = scmp.eq.s32.totalorder %s84_s24, 0 }
   0x9   : > { %p1547_p7 = por %p126_p4, %p94_p1  ;;  %p167_p8 = scmp.lt.s32.totalorder %s1473_s19, 3 }
   0xa   : > { %s1553_s26 = scalar_select %p85_p6, %s1461_s16, %s87_s22  }
   0xb   : > { %s1933_s25 = scalar_select %p1547_p7, 1, 0 }
   0xc   : > { %p1555_p9 = pnand %p1232_p5, %p167_p8  ;;  %p1559_p10 = scmp.eq.s32.totalorder %s1230_s20, 0 }
   0xd   : > { %s1475_s29 = smov [#allocation2]  }
   0xe   : > { %p1297_p11 = pneg %p1555_p9  ;;  %s182_s30 = sshll.u32 %s1475_s29, 4  ;;  %s183_s30 = int_to_ptr.vmem [resolvable:$true] %s182_s30 }
   0xf   : > { %s1416_s5 = scalar_lea.vmem %s183_s30, 256  ;;  %p1424_p4 = scmp.lt.s32.totalorder %s183_s30, %s183_s30 }
  0x10   : > { %p1298_p12 = pnand %p1559_p10, %p1297_p11  ;;  %p1417_p0 = scmp.ne.s32.totalorder %s183_s30, %s1416_s5 }
  0x11   : > { %p1425_p5 = scmp.lt.s32.totalorder %s1416_s5, %s1416_s5 }
  0x12   : > { %p1407_p13 = pneg %p1298_p12 }
  0x13   : > { %p1426_p6 = por %p1425_p5, %p1424_p4 }
  0x14   : > { %p1419_p1 = pnand %p1417_p0, %p1407_p13 }
  0x16   : > { %p1420_p2 = pneg %p1419_p1 }
  0x18   : > { %p1427_p8 = pnand %p1426_p6, %p1420_p2 }
  0x1a   : > { %1430 = shalt.err (!%p1427_p8)
}
  0x1b   : > { %s1476_s6 = smov 128   ;;  %s1477_s7 = smov 8  }
  0x1c   : > { %1300 = dma.hbm_to_vmem [thread:$0]  (!%p1298_p12), %s1927_s0, 256, %s183_s30, [#allocation3], %s1476_s6, %s1476_s6, %s1477_s7  }
  0x1d   : > { %p1235_p7 = scmp.ge.s32.totalorder %s1473_s19, 2 }
  0x1f   : > { %201 = sbr.rel (%p1235_p7) target bundleno = 56 (0x38), region = 24 }
  0x24   : > { %204 = sbr.rel (!%p1540_p3) target bundleno = 56 (0x38), region = 28  ;;  %s206_s10 = sand.u32 (%p1540_p3), 1, %s1461_s16  }
  0x25   : > { %s1287_s11 = sshll.u32 (%p1540_p3), %s1469_s18, 4  ;;  %s1236_s12 = sshll.u32 (%p1540_p3), %s206_s10, 8 }
  0x26   : > { %s1578_s20 = scalar_lea.vmem (%p1540_p3), %s1929_s2, %s1287_s11  ;;  %s1583_s22 = scalar_lea.vmem (%p1540_p3), [#allocation4], %s1236_s12 }
  0x27   : > { %v224_v0 = vld [vmem:[%s1578_s20] sm:$0xff] (%p1540_p3)  ;;  %v226_v1 = vld [vmem:[%s1578_s20 + $0x8] sm:$0xff] (%p1540_p3) }
  0x28   : > { %v228_v2 = vld [vmem:[%s1578_s20 + $0x20] sm:$0xff] (%p1540_p3)  ;;  %225 = vst [vmem:[%s1583_s22] sm:$0xff] (%p1540_p3), %v224_v0  ;;  %227 = vst [vmem:[%s1583_s22 + $0x8] sm:$0xff] (%p1540_p3), %v226_v1  ;;  %v230_v3 = vld [vmem:[%s1578_s20 + $0x28] sm:$0xff] (%p1540_p3) }
  0x29   : > { %229 = vst [vmem:[%s1583_s22 + $0x10] sm:$0xff] %v228_v2  ;;  %v232_v4 = vld [vmem:[%s1578_s20 + $0x40] sm:$0xff]  ;;  %v234_v5 = vld [vmem:[%s1578_s20 + $0x48] sm:$0xff]  ;;  %231 = vst [vmem:[%s1583_s22 + $0x18] sm:$0xff] %v230_v3 }
  0x2a   : > { %233 = vst [vmem:[%s1583_s22 + $0x20] sm:$0xff] %v232_v4  ;;  %235 = vst [vmem:[%s1583_s22 + $0x28] sm:$0xff] %v234_v5  ;;  %v236_v6 = vld [vmem:[%s1578_s20 + $0x60] sm:$0xff]  ;;  %v238_v7 = vld [vmem:[%s1578_s20 + $0x68] sm:$0xff] }
  0x2b   : > { %v240_v8 = vld [vmem:[%s1578_s20 + $0x80] sm:$0xff]  ;;  %237 = vst [vmem:[%s1583_s22 + $0x30] sm:$0xff] %v236_v6  ;;  %239 = vst [vmem:[%s1583_s22 + $0x38] sm:$0xff] %v238_v7  ;;  %v242_v9 = vld [vmem:[%s1578_s20 + $0x88] sm:$0xff] }
  0x2c   : > { %241 = vst [vmem:[%s1583_s22 + $0x40] sm:$0xff] %v240_v8  ;;  %v244_v10 = vld [vmem:[%s1578_s20 + $0xa0] sm:$0xff]  ;;  %v246_v11 = vld [vmem:[%s1578_s20 + $0xa8] sm:$0xff]  ;;  %243 = vst [vmem:[%s1583_s22 + $0x48] sm:$0xff] %v242_v9 }
  0x2d   : > { %245 = vst [vmem:[%s1583_s22 + $0x50] sm:$0xff] %v244_v10  ;;  %247 = vst [vmem:[%s1583_s22 + $0x58] sm:$0xff] %v246_v11  ;;  %v248_v12 = vld [vmem:[%s1578_s20 + $0xc0] sm:$0xff]  ;;  %v250_v13 = vld [vmem:[%s1578_s20 + $0xc8] sm:$0xff] }
  0x2e   : > { %v252_v14 = vld [vmem:[%s1578_s20 + $0xe0] sm:$0xff]  ;;  %249 = vst [vmem:[%s1583_s22 + $0x60] sm:$0xff] %v248_v12  ;;  %251 = vst [vmem:[%s1583_s22 + $0x68] sm:$0xff] %v250_v13  ;;  %v254_v15 = vld [vmem:[%s1578_s20 + $0xe8] sm:$0xff] }
  0x2f   : > { %253 = vst [vmem:[%s1583_s22 + $0x70] sm:$0xff] %v252_v14  ;;  %v256_v16 = vld [vmem:[%s1578_s20 + $0x100] sm:$0xff]  ;;  %v258_v17 = vld [vmem:[%s1578_s20 + $0x108] sm:$0xff]  ;;  %255 = vst [vmem:[%s1583_s22 + $0x78] sm:$0xff] %v254_v15 }
  0x30   : > { %257 = vst [vmem:[%s1583_s22 + $0x80] sm:$0xff] %v256_v16  ;;  %259 = vst [vmem:[%s1583_s22 + $0x88] sm:$0xff] %v258_v17  ;;  %v260_v18 = vld [vmem:[%s1578_s20 + $0x120] sm:$0xff]  ;;  %v262_v19 = vld [vmem:[%s1578_s20 + $0x128] sm:$0xff] }
  0x31   : > { %v264_v20 = vld [vmem:[%s1578_s20 + $0x140] sm:$0xff]  ;;  %261 = vst [vmem:[%s1583_s22 + $0x90] sm:$0xff] %v260_v18  ;;  %263 = vst [vmem:[%s1583_s22 + $0x98] sm:$0xff] %v262_v19  ;;  %v266_v21 = vld [vmem:[%s1578_s20 + $0x148] sm:$0xff] }
  0x32   : > { %265 = vst [vmem:[%s1583_s22 + $0xa0] sm:$0xff] %v264_v20  ;;  %v268_v22 = vld [vmem:[%s1578_s20 + $0x160] sm:$0xff]  ;;  %v270_v23 = vld [vmem:[%s1578_s20 + $0x168] sm:$0xff]  ;;  %267 = vst [vmem:[%s1583_s22 + $0xa8] sm:$0xff] %v266_v21 }
  0x33   : > { %269 = vst [vmem:[%s1583_s22 + $0xb0] sm:$0xff] %v268_v22  ;;  %271 = vst [vmem:[%s1583_s22 + $0xb8] sm:$0xff] %v270_v23  ;;  %v272_v24 = vld [vmem:[%s1578_s20 + $0x180] sm:$0xff]  ;;  %v274_v25 = vld [vmem:[%s1578_s20 + $0x188] sm:$0xff] }
  0x34   : > { %v276_v26 = vld [vmem:[%s1578_s20 + $0x1a0] sm:$0xff]  ;;  %273 = vst [vmem:[%s1583_s22 + $0xc0] sm:$0xff] %v272_v24  ;;  %275 = vst [vmem:[%s1583_s22 + $0xc8] sm:$0xff] %v274_v25  ;;  %v278_v27 = vld [vmem:[%s1578_s20 + $0x1a8] sm:$0xff] }
  0x35   : > { %277 = vst [vmem:[%s1583_s22 + $0xd0] sm:$0xff] %v276_v26  ;;  %v280_v28 = vld [vmem:[%s1578_s20 + $0x1c0] sm:$0xff]  ;;  %v282_v29 = vld [vmem:[%s1578_s20 + $0x1c8] sm:$0xff]  ;;  %279 = vst [vmem:[%s1583_s22 + $0xd8] sm:$0xff] %v278_v27 }
  0x36   : > { %281 = vst [vmem:[%s1583_s22 + $0xe0] sm:$0xff] %v280_v28  ;;  %283 = vst [vmem:[%s1583_s22 + $0xe8] sm:$0xff] %v282_v29  ;;  %v284_v30 = vld [vmem:[%s1578_s20 + $0x1e0] sm:$0xff]  ;;  %v286_v31 = vld [vmem:[%s1578_s20 + $0x1e8] sm:$0xff] }
  0x37   : > { %285 = vst [vmem:[%s1583_s22 + $0xf0] sm:$0xff] %v284_v30  ;;  %287 = vst [vmem:[%s1583_s22 + $0xf8] sm:$0xff] %v286_v31 }
  0x38 PF: > { %296 = sbr.rel (%p1555_p9) target bundleno = 379 (0x17b), region = 51 }
  0x3d   : > { %1452 = dma.done.wait (%p1559_p10), [#allocation3], 256  }
  0x3e   : > { %1454 = vsyncadd (%p1559_p10), [#allocation3], 4294967040  ;;  %s303_s23 = sand.u32 1, %s1457_s15   ;;  %v1478_v32 = vmov 0   ;;  %v1479_v33 = vmov 1   ;;  %v656_v60 = vld [vmem:[#allocation2] sm:$0xff] }
  0x3f   : > { %s1241_s24 = sshll.u32 %s303_s23, 8  ;;  %594 = vmatprep.mubr.bf16.mxu0 %v1478_v32  ;;  %637 = vmatprep.mubr.bf16.mxu1 %v1478_v32  ;;  %v657_v63 = vld [vmem:[#allocation2 + $0x8] sm:$0xff]  ;;  %v1404_v4 = vld [vmem:[%s1928_s1] sm:$0xff]   ;;  %v1480_v5 = vmov 2   ;;  %v1481_v6 = vmov 3   ;;  %s1242_s30 = sshll.u32 %s303_s23, 5 }
  0x40   : > { %1351 = vset.pattern.permute.xlu1 %v1479_v33  ;;  %1350 = vset.pattern.permute.xlu0 %v1478_v32  ;;  %s1655_s29 = scalar_lea.vmem [#allocation4], %s1241_s24  ;;  %s1734_s15 = scalar_lea.vmem [#allocation5], %s1242_s30  ;;  %vm980_vm0 = vcmask 1040384   ;;  %vm985_vm1 = vcmask 1041408   ;;  %vm990_vm2 = vcmask 1042432   ;;  %vm995_vm3 = vcmask 1043456  }
  0x41   : > { %v1356_v34 = vld [vmem:[%s1655_s29 + $0xe4] ss:$16 sps:$4 sm:$0xff]   ;;  %v1358_v35 = vld [vmem:[%s1655_s29 + $0xec] ss:$16 sps:$4 sm:$0xff]   ;;  %v1360_v36 = vld [vmem:[%s1655_s29 + $0xe0] ss:$16 sps:$4 sm:$0xff]   ;;  %705 = vperm.xlu1 %1351, %v656_v60   ;;  %660 = vperm.xlu0 %1350, %v656_v60  }
  0x42   : > { %562 = vmatprep.subr.bf16.mxu0 %v1356_v34  ;;  %v1361_v37 = vld [vmem:[%s1655_s29 + $0xe8] ss:$16 sps:$4 sm:$0xff]   ;;  %605 = vmatprep.subr.bf16.mxu1 %v1358_v35  ;;  %v1362_v38 = vld [vmem:[%s1655_s29 + $0xc4] ss:$16 sps:$4 sm:$0xff]   ;;  %v1364_v39 = vld [vmem:[%s1655_s29 + $0xcc] ss:$16 sps:$4 sm:$0xff]  }
  0x43   : > { %563 = vmatpush1.bf16.msra.mxu0 %v1360_v36  ;;  %606 = vmatpush1.bf16.msra.mxu1 %v1361_v37  ;;  %v1366_v40 = vld [vmem:[%s1655_s29 + $0xc0] ss:$16 sps:$4 sm:$0xff]   ;;  %v1367_v41 = vld [vmem:[%s1655_s29 + $0xc8] ss:$16 sps:$4 sm:$0xff]   ;;  %v1368_v42 = vld [vmem:[%s1655_s29 + $0xa4] ss:$16 sps:$4 sm:$0xff]  }
  0x44   : > { %564 = vmatprep.subr.bf16.mxu0 %v1362_v38  ;;  %607 = vmatprep.subr.bf16.mxu1 %v1364_v39  ;;  %v1370_v43 = vld [vmem:[%s1655_s29 + $0xac] ss:$16 sps:$4 sm:$0xff]   ;;  %v1372_v44 = vld [vmem:[%s1655_s29 + $0xa0] ss:$16 sps:$4 sm:$0xff]   ;;  %v1373_v45 = vld [vmem:[%s1655_s29 + $0xa8] ss:$16 sps:$4 sm:$0xff]  }
  0x45   : > { %v1374_v46 = vld [vmem:[%s1655_s29 + $0x84] ss:$16 sps:$4 sm:$0xff]   ;;  %v1376_v47 = vld [vmem:[%s1655_s29 + $0x8c] ss:$16 sps:$4 sm:$0xff]   ;;  %v1378_v48 = vld [vmem:[%s1655_s29 + $0x80] ss:$16 sps:$4 sm:$0xff]   ;;  %709 = vperm.xlu1 %1351, %v657_v63   ;;  %665 = vperm.xlu0 %1350, %v657_v63  }
  0x46   : > { %v1379_v49 = vld [vmem:[%s1655_s29 + $0x88] ss:$16 sps:$4 sm:$0xff]   ;;  %v1380_v50 = vld [vmem:[%s1655_s29 + $0x64] ss:$16 sps:$4 sm:$0xff]   ;;  %v1382_v51 = vld [vmem:[%s1655_s29 + $0x6c] ss:$16 sps:$4 sm:$0xff]  }
  0x47   : > { %565 = vmatpush1.bf16.msra.mxu0 %v1366_v40  ;;  %608 = vmatpush1.bf16.msra.mxu1 %v1367_v41  ;;  %v1384_v52 = vld [vmem:[%s1655_s29 + $0x60] ss:$16 sps:$4 sm:$0xff]   ;;  %v1385_v53 = vld [vmem:[%s1655_s29 + $0x68] ss:$16 sps:$4 sm:$0xff]   ;;  %v1386_v54 = vld [vmem:[%s1655_s29 + $0x44] ss:$16 sps:$4 sm:$0xff]  }
  0x48   : > { %566 = vmatprep.subr.bf16.mxu0 %v1368_v42  ;;  %609 = vmatprep.subr.bf16.mxu1 %v1370_v43  ;;  %v1388_v55 = vld [vmem:[%s1655_s29 + $0x4c] ss:$16 sps:$4 sm:$0xff]   ;;  %v1390_v56 = vld [vmem:[%s1655_s29 + $0x40] ss:$16 sps:$4 sm:$0xff]   ;;  %v1391_v57 = vld [vmem:[%s1655_s29 + $0x48] ss:$16 sps:$4 sm:$0xff]  }
  0x49   : > { %v1392_v58 = vld [vmem:[%s1655_s29 + $0x24] ss:$16 sps:$4 sm:$0xff]   ;;  %v1394_v59 = vld [vmem:[%s1655_s29 + $0x2c] ss:$16 sps:$4 sm:$0xff]   ;;  %v1396_v61 = vld [vmem:[%s1655_s29 + $0x20] ss:$16 sps:$4 sm:$0xff]   ;;  %1353 = vset.pattern.permute.xlu1 %v1480_v5  ;;  %1352 = vset.pattern.permute.xlu0 %v1480_v5 }
  0x4a   : > { %v1397_v62 = vld [vmem:[%s1655_s29 + $0x28] ss:$16 sps:$4 sm:$0xff]   ;;  %v1398_v0 = vld [vmem:[%s1655_s29 + $0x4] ss:$16 sps:$4 sm:$0xff]   ;;  %v1400_v1 = vld [vmem:[%s1655_s29 + $0xc] ss:$16 sps:$4 sm:$0xff]   ;;  %753 = vperm.xlu1 %1353, %v657_v63   ;;  %749 = vperm.xlu0 %1352, %v656_v60  }
  0x4b   : > { %567 = vmatpush1.bf16.msra.mxu0 %v1372_v44  ;;  %610 = vmatpush1.bf16.msra.mxu1 %v1373_v45  ;;  %v1402_v2 = vld [vmem:[%s1655_s29] ss:$16 sps:$4 sm:$0xff]   ;;  %v1403_v3 = vld [vmem:[%s1655_s29 + $0x8] ss:$16 sps:$4 sm:$0xff]   ;;  %s1243_s5 = sshll.u32 %s1465_s17, 2  ;;  %vm1000_vm4 = vcmask 1044480  }
  0x4c   : > { %568 = vmatprep.subr.bf16.mxu0 %v1374_v46  ;;  %611 = vmatprep.subr.bf16.mxu1 %v1376_v47  ;;  %p1773_p3 = scmp.lt.s32.totalorder %s1243_s5, 7  ;;  %vm1005_vm5 = vcmask 1045504   ;;  %vm1010_vm6 = vcmask 1046528   ;;  %p1937_p7 = scmp.ne.s32.totalorder %s1933_s25, 0 }
  0x4d   : > { %s1292_s11 = sshll.u32 (%p1937_p7), %s1465_s17, 4 }
  0x4e   : > { %1354 = vset.pattern.permute.xlu1 %v1481_v6  ;;  %1355 = vset.pattern.permute.xlu0 %v1481_v6  ;;  %s1945_s5 = smov (!%p1773_p3, %s1243_s5), 7  ;;  %s1068_s14 = scalar_lea.vmem (%p1937_p7), %s1930_s3, %s1292_s11 }
  0x4f   : > { %569 = vmatpush1.bf16.msra.mxu0 %v1378_v48  ;;  %612 = vmatpush1.bf16.msra.mxu1 %v1379_v49  ;;  %s1244_s7 = sshll.u32 %s1945_s5, 3 }
  0x50   : > { %570 = vmatprep.subr.bf16.mxu0 %v1380_v50  ;;  %613 = vmatprep.subr.bf16.mxu1 %v1382_v51  ;;  %s1811_s10 = scalar_lea.vmem %s1931_s4, %s1244_s7 }
  0x51   : > { %793 = vperm.xlu1 %1354, %v656_v60   ;;  %797 = vperm.xlu0 %1355, %v657_v63  }
  0x53   : > { %571 = vmatpush1.bf16.msra.mxu0 %v1384_v52  ;;  %614 = vmatpush1.bf16.msra.mxu1 %v1385_v53 }
  0x54   : > { %572 = vmatprep.subr.bf16.mxu0 %v1386_v54  ;;  %615 = vmatprep.subr.bf16.mxu1 %v1388_v55 }
  0x57   : > { %573 = vmatpush1.bf16.msra.mxu0 %v1390_v56  ;;  %616 = vmatpush1.bf16.msra.mxu1 %v1391_v57 }
  0x58   : > { %574 = vmatprep.subr.bf16.mxu0 %v1392_v58  ;;  %617 = vmatprep.subr.bf16.mxu1 %v1394_v59 }
  0x5b   : > { %575 = vmatpush1.bf16.msra.mxu0 %v1396_v61  ;;  %618 = vmatpush1.bf16.msra.mxu1 %v1397_v62 }
  0x5c   : > { %576 = vmatprep.subr.bf16.mxu0 %v1398_v0  ;;  %619 = vmatprep.subr.bf16.mxu1 %v1400_v1 }
  0x5f   : > { %577 = vmatpush1.bf16.msra.mxu0 %v1402_v2  ;;  %620 = vmatpush1.bf16.msra.mxu1 %v1403_v3 }
  0x62   : > { %595 = vmatmul.mubr.bf16.vlgmr.msra.gmra.mxu0 %v1404_v4  ;;  %638 = vmatmul.mubr.bf16.vlgmr.msra.gmra.mxu1 %v1404_v4 }
  0xbc   : > { %v706_v7 = vpop.permute.xlu1 %705  ;;  %v661_v9 = vpop.permute.xlu0 %660 }
  0xc0   : > { %v1692_v8 = vpop.permute.xlu1 %709  ;;  %v1696_v11 = vpop.permute.xlu0 %665 }
  0xc5   : > { %v1694_v10 = vpop.permute.xlu1 %753  ;;  %v750_v12 = vpop.permute.xlu0 %749 }
  0xcc   : > { %v794_v13 = vpop.permute.xlu1 %793  ;;  %v1743_v51 = vpop.permute.xlu0 %797 }
 0x122   : > { %v596_v14 = vpop.f32.mrf.mxu0  ;;  %v639_v15 = vpop.f32.mrf.mxu1 }
 0x123   : > { %v648_v16 = vmul.f32 %v596_v14, %v596_v14  ;;  %v668_v17 = vmul.f32 %v661_v9, %v596_v14  ;;  %v712_v18 = vmul.f32 %v706_v7, %v596_v14  ;;  %v756_v19 = vmul.f32 %v750_v12, %v596_v14 }
 0x124   : > { %v800_v20 = vmul.f32 %v794_v13, %v596_v14  ;;  %v650_v21 = vmul.f32 %v639_v15, %v639_v15  ;;  %v1698_v22 = vmul.f32 %v661_v9, %v639_v15  ;;  %v1700_v23 = vmul.f32 %v706_v7, %v639_v15  ;;  %v598_v24 = vpop.f32.mrf.mxu0  ;;  %v641_v37 = vpop.f32.mrf.mxu1 }
 0x125   : > { %v836_v25 = vmul.f32 %v661_v9, %v648_v16  ;;  %v872_v26 = vmul.f32 %v706_v7, %v648_v16  ;;  %v908_v27 = vmul.f32 %v750_v12, %v648_v16  ;;  %v944_v28 = vmul.f32 %v794_v13, %v648_v16 }
 0x126   : > { %v1704_v29 = vmul.f32 %v750_v12, %v639_v15  ;;  %v1706_v30 = vmul.f32 %v794_v13, %v639_v15  ;;  %v1708_v31 = vmul.f32 %v661_v9, %v650_v21  ;;  %v1710_v32 = vmul.f32 %v706_v7, %v650_v21  ;;  %v1724_v42 = vpop.f32.mrf.mxu0 }
 0x127   : > { %v1712_v33 = vmul.f32 %v750_v12, %v650_v21  ;;  %v1714_v34 = vmul.f32 %v794_v13, %v650_v21  ;;  %v649_v35 = vmul.f32 %v598_v24, %v598_v24  ;;  %v1716_v36 = vmul.f32 %v661_v9, %v598_v24 }
 0x128   : > { %v1718_v38 = vmul.f32 %v706_v7, %v598_v24  ;;  %v1720_v39 = vmul.f32 %v750_v12, %v598_v24  ;;  %v1722_v40 = vmul.f32 %v794_v13, %v598_v24  ;;  %v1288_v41 = vpack.c.bf16 %v598_v24, %v596_v14 }
 0x129   : > { %v1726_v43 = vmul.f32 %v661_v9, %v649_v35  ;;  %v1728_v44 = vmul.f32 %v706_v7, %v649_v35  ;;  %v1730_v45 = vmul.f32 %v750_v12, %v649_v35  ;;  %v1732_v46 = vmul.f32 %v794_v13, %v649_v35 }
 0x12a   : > { %1043 = vst [vmem:[%s1734_s15] sm:$0xff] %v1288_v41  ;;  %v651_v47 = vmul.f32 %v641_v37, %v641_v37  ;;  %v1737_v48 = vmul.f32 %v661_v9, %v641_v37  ;;  %v1739_v49 = vmul.f32 %v706_v7, %v641_v37  ;;  %v1741_v50 = vmul.f32 %v750_v12, %v641_v37 }
 0x12b   : > { %v1745_v52 = vmul.f32 %v794_v13, %v641_v37  ;;  %v1289_v53 = vpack.c.bf16 %v641_v37, %v639_v15  ;;  %v652_v54 = vmul.f32 %v1724_v42, %v1724_v42  ;;  %v672_v55 = vmul.f32 %v1696_v11, %v1724_v42 }
 0x12c   : > { %v1751_v56 = vmul.f32 %v661_v9, %v651_v47  ;;  %v1753_v57 = vmul.f32 %v706_v7, %v651_v47  ;;  %v1755_v58 = vmul.f32 %v750_v12, %v651_v47  ;;  %v1757_v59 = vmul.f32 %v794_v13, %v651_v47 }
 0x12d   : > { %1044 = vst [vmem:[%s1734_s15 + $0x8] sm:$0xff] %v1289_v53  ;;  %v676_v60 = vadd.f32 %v672_v55, %v668_v17  ;;  %v716_v61 = vmul.f32 %v1692_v8, %v1724_v42  ;;  %v760_v62 = vmul.f32 %v1694_v10, %v1724_v42  ;;  %v804_v63 = vmul.f32 %v1743_v51, %v1724_v42 }
 0x12e   : > { %v840_v0 = vmul.f32 %v1696_v11, %v652_v54  ;;  %v876_v1 = vmul.f32 %v1692_v8, %v652_v54  ;;  %v912_v2 = vmul.f32 %v1694_v10, %v652_v54  ;;  %v948_v3 = vmul.f32 %v1743_v51, %v652_v54 }
 0x12f   : > { %v677_v4 = vrot.slane %v676_v60, 4  ;;  %v720_v5 = vadd.f32 %v716_v61, %v712_v18  ;;  %v764_v6 = vadd.f32 %v760_v62, %v756_v19  ;;  %v808_v7 = vadd.f32 %v804_v63, %v800_v20 }
 0x130   : > { %v844_v9 = vadd.f32 %v840_v0, %v836_v25  ;;  %v880_v12 = vadd.f32 %v876_v1, %v872_v26  ;;  %v916_v13 = vadd.f32 %v912_v2, %v908_v27  ;;  %v952_v14 = vadd.f32 %v948_v3, %v944_v28 }
 0x131   : > { %v678_v15 = vadd.f32 %v677_v4, %v676_v60  ;;  %v721_v16 = vrot.slane %v720_v5, 4  ;;  %v765_v17 = vrot.slane %v764_v6, 4  ;;  %v809_v21 = vrot.slane %v808_v7, 4 }
 0x132   : > { %v845_v24 = vrot.slane %v844_v9, 4  ;;  %v881_v35 = vrot.slane %v880_v12, 4  ;;  %v917_v37 = vrot.slane %v916_v13, 4  ;;  %v953_v41 = vrot.slane %v952_v14, 4 }
 0x133   : > { %v679_v47 = vrot.slane %v678_v15, 2  ;;  %v722_v18 = vadd.f32 %v721_v16, %v720_v5  ;;  %v766_v53 = vadd.f32 %v765_v17, %v764_v6  ;;  %v810_v19 = vadd.f32 %v809_v21, %v808_v7 }
 0x134   : > { %v846_v20 = vadd.f32 %v845_v24, %v844_v9  ;;  %v882_v25 = vadd.f32 %v881_v35, %v880_v12  ;;  %v918_v26 = vadd.f32 %v917_v37, %v916_v13  ;;  %v954_v27 = vadd.f32 %v953_v41, %v952_v14  ;;  %v1777_v12 = vpop.f32.mrf.mxu1 }
 0x135   : > { %v680_v28 = vadd.f32 %v679_v47, %v678_v15  ;;  %v723_v54 = vrot.slane %v722_v18, 2  ;;  %v767_v55 = vrot.slane %v766_v53, 2  ;;  %v811_v60 = vrot.slane %v810_v19, 2 }
 0x136   : > { %v847_v61 = vrot.slane %v846_v20, 2  ;;  %v883_v62 = vrot.slane %v882_v25, 2  ;;  %v919_v63 = vrot.slane %v918_v26, 2  ;;  %v955_v0 = vrot.slane %v954_v27, 2 }
 0x137   : > { %v681_v1 = vrot.slane %v680_v28, 1  ;;  %v724_v2 = vadd.f32 %v723_v54, %v722_v18  ;;  %v768_v3 = vadd.f32 %v767_v55, %v766_v53  ;;  %v812_v4 = vadd.f32 %v811_v60, %v810_v19 }
 0x138   : > { %v848_v5 = vadd.f32 %v847_v61, %v846_v20  ;;  %v884_v6 = vadd.f32 %v883_v62, %v882_v25  ;;  %v920_v7 = vadd.f32 %v919_v63, %v918_v26  ;;  %v956_v9 = vadd.f32 %v955_v0, %v954_v27 }
 0x139   : > { %v682_v13 = vadd.f32 %v681_v1, %v680_v28  ;;  %v725_v14 = vrot.slane %v724_v2, 1  ;;  %v769_v15 = vrot.slane %v768_v3, 1  ;;  %v813_v16 = vrot.slane %v812_v4, 1 }
 0x13a   : > { %v849_v17 = vrot.slane %v848_v5, 1  ;;  %v885_v21 = vrot.slane %v884_v6, 1  ;;  %v921_v24 = vrot.slane %v920_v7, 1  ;;  %v957_v35 = vrot.slane %v956_v9, 1 }
 0x13b   : > { %v726_v37 = vadd.f32 %v725_v14, %v724_v2  ;;  %v770_v41 = vadd.f32 %v769_v15, %v768_v3  ;;  %v814_v47 = vadd.f32 %v813_v16, %v812_v4  ;;  %v654_v18 = vmul.f32 %v1777_v12, %v1777_v12 }
 0x13c   : > { %v850_v53 = vadd.f32 %v849_v17, %v848_v5  ;;  %v886_v19 = vadd.f32 %v885_v21, %v884_v6  ;;  %v922_v20 = vadd.f32 %v921_v24, %v920_v7  ;;  %v958_v25 = vadd.f32 %v957_v35, %v956_v9 }
 0x13d   : > { %v981_v26 = vsel %vm980_vm0, %v682_v13, %v726_v37  ;;  %v674_v27 = vmul.f32 %v1696_v11, %v1777_v12  ;;  %v718_v28 = vmul.f32 %v1692_v8, %v1777_v12  ;;  %v762_v54 = vmul.f32 %v1694_v10, %v1777_v12 }
 0x13e   : > { %v986_v55 = vsel %vm985_vm1, %v981_v26, %v770_v41  ;;  %v806_v60 = vmul.f32 %v1743_v51, %v1777_v12  ;;  %v842_v61 = vmul.f32 %v1696_v11, %v654_v18  ;;  %v878_v62 = vmul.f32 %v1692_v8, %v654_v18 }
 0x13f   : > { %v991_v63 = vsel %vm990_vm2, %v986_v55, %v814_v47  ;;  %v690_v0 = vadd.f32 %v674_v27, %v1698_v22  ;;  %v734_v1 = vadd.f32 %v718_v28, %v1700_v23  ;;  %v778_v2 = vadd.f32 %v762_v54, %v1704_v29 }
 0x140   : > { %v996_v3 = vsel %vm995_vm3, %v991_v63, %v850_v53  ;;  %v822_v4 = vadd.f32 %v806_v60, %v1706_v30  ;;  %v858_v5 = vadd.f32 %v842_v61, %v1708_v31  ;;  %v894_v6 = vadd.f32 %v878_v62, %v1710_v32 }
 0x141   : > { %v1001_v22 = vsel %vm1000_vm4, %v996_v3, %v886_v19  ;;  %v691_v7 = vrot.slane %v690_v0, 4  ;;  %v735_v23 = vrot.slane %v734_v1, 4  ;;  %v779_v9 = vrot.slane %v778_v2, 4 }
 0x142   : > { %v1006_v29 = vsel %vm1005_vm5, %v1001_v22, %v922_v20  ;;  %v823_v13 = vrot.slane %v822_v4, 4  ;;  %v859_v14 = vrot.slane %v858_v5, 4  ;;  %v895_v30 = vrot.slane %v894_v6, 4  ;;  %v1821_v22 = vpop.f32.mrf.mxu0 }
 0x143   : > { %v1011_v31 = vsel %vm1010_vm6, %v1006_v29, %v958_v25  ;;  %v692_v15 = vadd.f32 %v691_v7, %v690_v0  ;;  %v736_v32 = vadd.f32 %v735_v23, %v734_v1  ;;  %v780_v16 = vadd.f32 %v779_v9, %v778_v2 }
 0x144   : > { %1015 = vst [vmem:[%s1811_s10] sm:$0xff] %v1011_v31  ;;  %v824_v17 = vadd.f32 %v823_v13, %v822_v4  ;;  %v860_v21 = vadd.f32 %v859_v14, %v858_v5  ;;  %v896_v24 = vadd.f32 %v895_v30, %v894_v6  ;;  %v914_v35 = vmul.f32 %v1694_v10, %v654_v18 }
 0x145   : > { %v693_v37 = vrot.slane %v692_v15, 2  ;;  %v737_v41 = vrot.slane %v736_v32, 2  ;;  %v781_v47 = vrot.slane %v780_v16, 2  ;;  %v950_v53 = vmul.f32 %v1743_v51, %v654_v18 }
 0x146   : > { %v825_v19 = vrot.slane %v824_v17, 2  ;;  %v861_v20 = vrot.slane %v860_v21, 2  ;;  %v897_v26 = vrot.slane %v896_v24, 2  ;;  %v930_v27 = vadd.f32 %v914_v35, %v1712_v33 }
 0x147   : > { %v694_v25 = vadd.f32 %v693_v37, %v692_v15  ;;  %v738_v28 = vadd.f32 %v737_v41, %v736_v32  ;;  %v782_v54 = vadd.f32 %v781_v47, %v780_v16  ;;  %v966_v55 = vadd.f32 %v950_v53, %v1714_v34 }
 0x148   : > { %v826_v60 = vadd.f32 %v825_v19, %v824_v17  ;;  %v862_v61 = vadd.f32 %v861_v20, %v860_v21  ;;  %v898_v62 = vadd.f32 %v897_v26, %v896_v24  ;;  %v931_v63 = vrot.slane %v930_v27, 4 }
 0x149   : > { %v695_v0 = vrot.slane %v694_v25, 1  ;;  %v739_v1 = vrot.slane %v738_v28, 1  ;;  %v783_v2 = vrot.slane %v782_v54, 1  ;;  %v967_v3 = vrot.slane %v966_v55, 4 }
 0x14a   : > { %v827_v4 = vrot.slane %v826_v60, 1  ;;  %v863_v18 = vrot.slane %v862_v61, 1  ;;  %v899_v5 = vrot.slane %v898_v62, 1  ;;  %v932_v6 = vadd.f32 %v931_v63, %v930_v27 }
 0x14b   : > { %v696_v33 = vadd.f32 %v695_v0, %v694_v25  ;;  %v740_v7 = vadd.f32 %v739_v1, %v738_v28  ;;  %v784_v23 = vadd.f32 %v783_v2, %v782_v54  ;;  %v968_v9 = vadd.f32 %v967_v3, %v966_v55 }
 0x14c   : > { %v828_v29 = vadd.f32 %v827_v4, %v826_v60  ;;  %v864_v34 = vadd.f32 %v863_v18, %v862_v61  ;;  %v900_v13 = vadd.f32 %v899_v5, %v898_v62  ;;  %v933_v14 = vrot.slane %v932_v6, 2 }
 0x14d   : > { %v969_v30 = vrot.slane %v968_v9, 2  ;;  %v983_v31 = vsel %vm980_vm0, %v696_v33, %v740_v7  ;;  %v653_v15 = vmul.f32 %v1821_v22, %v1821_v22  ;;  %v673_v32 = vmul.f32 %v1696_v11, %v1821_v22 }
 0x14e   : > { %v934_v16 = vadd.f32 %v933_v14, %v932_v6  ;;  %v988_v17 = vsel %vm985_vm1, %v983_v31, %v784_v23  ;;  %v717_v21 = vmul.f32 %v1692_v8, %v1821_v22  ;;  %v761_v24 = vmul.f32 %v1694_v10, %v1821_v22 }
 0x14f   : > { %v970_v35 = vadd.f32 %v969_v30, %v968_v9  ;;  %v993_v37 = vsel %vm990_vm2, %v988_v17, %v828_v29  ;;  %v683_v41 = vadd.f32 %v673_v32, %v1716_v36  ;;  %v805_v47 = vmul.f32 %v1743_v51, %v1821_v22 }
 0x150   : > { %v935_v53 = vrot.slane %v934_v16, 1  ;;  %v998_v19 = vsel %vm995_vm3, %v993_v37, %v864_v34  ;;  %v727_v20 = vadd.f32 %v717_v21, %v1718_v38  ;;  %v771_v26 = vadd.f32 %v761_v24, %v1720_v39 }
 0x151   : > { %v971_v27 = vrot.slane %v970_v35, 1  ;;  %v1003_v25 = vsel %vm1000_vm4, %v998_v19, %v900_v13  ;;  %v684_v28 = vrot.slane %v683_v41, 4  ;;  %v815_v54 = vadd.f32 %v805_v47, %v1722_v40 }
 0x152   : > { %v936_v55 = vadd.f32 %v935_v53, %v934_v16  ;;  %v728_v60 = vrot.slane %v727_v20, 4  ;;  %v772_v61 = vrot.slane %v771_v26, 4  ;;  %v841_v36 = vmul.f32 %v1696_v11, %v653_v15 }
 0x153   : > { %v972_v62 = vadd.f32 %v971_v27, %v970_v35  ;;  %v685_v63 = vadd.f32 %v684_v28, %v683_v41  ;;  %v816_v0 = vrot.slane %v815_v54, 4  ;;  %v877_v1 = vmul.f32 %v1692_v8, %v653_v15 }
 0x154   : > { %v1008_v38 = vsel %vm1005_vm5, %v1003_v25, %v936_v55  ;;  %v729_v2 = vadd.f32 %v728_v60, %v727_v20  ;;  %v773_v39 = vadd.f32 %v772_v61, %v771_v26  ;;  %v851_v3 = vadd.f32 %v841_v36, %v1726_v43  ;;  %v1854_v20 = vpop.f32.mrf.mxu1 }
 0x155   : > { %v1847_v4 = vsel %vm1010_vm6, %v1008_v38, %v972_v62  ;;  %v686_v40 = vrot.slane %v685_v63, 2  ;;  %v817_v18 = vadd.f32 %v816_v0, %v815_v54  ;;  %v887_v5 = vadd.f32 %v877_v1, %v1728_v44 }
 0x156   : > { %v730_v6 = vrot.slane %v729_v2, 2  ;;  %v774_v33 = vrot.slane %v773_v39, 2  ;;  %v852_v7 = vrot.slane %v851_v3, 4  ;;  %v913_v23 = vmul.f32 %v1694_v10, %v653_v15  ;;  %1017 = vst [vmem:[%s1811_s10 + $0x10] sm:$0xff] %v1847_v4 }
 0x157   : > { %v687_v9 = vadd.f32 %v686_v40, %v685_v63  ;;  %v818_v29 = vrot.slane %v817_v18, 2  ;;  %v888_v34 = vrot.slane %v887_v5, 4  ;;  %v949_v13 = vmul.f32 %v1743_v51, %v653_v15 }
 0x158   : > { %v731_v14 = vadd.f32 %v730_v6, %v729_v2  ;;  %v775_v30 = vadd.f32 %v774_v33, %v773_v39  ;;  %v853_v43 = vadd.f32 %v852_v7, %v851_v3  ;;  %v923_v31 = vadd.f32 %v913_v23, %v1730_v45 }
 0x159   : > { %v688_v32 = vrot.slane %v687_v9, 1  ;;  %v819_v16 = vadd.f32 %v818_v29, %v817_v18  ;;  %v889_v17 = vadd.f32 %v888_v34, %v887_v5  ;;  %v959_v44 = vadd.f32 %v949_v13, %v1732_v46 }
 0x15a   : > { %v732_v21 = vrot.slane %v731_v14, 1  ;;  %v776_v24 = vrot.slane %v775_v30, 1  ;;  %v854_v35 = vrot.slane %v853_v43, 2  ;;  %v924_v37 = vrot.slane %v923_v31, 4 }
 0x15b   : > { %v689_v41 = vadd.f32 %v688_v32, %v687_v9  ;;  %v820_v47 = vrot.slane %v819_v16, 1  ;;  %v890_v53 = vrot.slane %v889_v17, 2  ;;  %v960_v19 = vrot.slane %v959_v44, 4 }
 0x15c   : > { %v733_v15 = vadd.f32 %v732_v21, %v731_v14  ;;  %v777_v26 = vadd.f32 %v776_v24, %v775_v30  ;;  %v855_v27 = vadd.f32 %v854_v35, %v853_v43  ;;  %v925_v45 = vadd.f32 %v924_v37, %v923_v31 }
 0x15d   : > { %v821_v25 = vadd.f32 %v820_v47, %v819_v16  ;;  %v891_v28 = vadd.f32 %v890_v53, %v889_v17  ;;  %v961_v54 = vadd.f32 %v960_v19, %v959_v44  ;;  %v1290_v46 = vpack.c.bf16 %v1821_v22, %v1724_v42 }
 0x15e   : > { %v856_v55 = vrot.slane %v855_v27, 1  ;;  %v926_v60 = vrot.slane %v925_v45, 2  ;;  %v982_v61 = vsel %vm980_vm0, %v689_v41, %v733_v15  ;;  %v655_v36 = vmul.f32 %v1854_v20, %v1854_v20 }
 0x15f   : > { %v892_v62 = vrot.slane %v891_v28, 1  ;;  %v962_v63 = vrot.slane %v961_v54, 2  ;;  %v987_v0 = vsel %vm985_vm1, %v982_v61, %v777_v26  ;;  %1045 = vst [vmem:[%s1734_s15 + $0x10] sm:$0xff] %v1290_v46  ;;  %v675_v1 = vmul.f32 %v1696_v11, %v1854_v20 }
 0x160   : > { %v857_v38 = vadd.f32 %v856_v55, %v855_v27  ;;  %v927_v2 = vadd.f32 %v926_v60, %v925_v45  ;;  %v992_v39 = vsel %vm990_vm2, %v987_v0, %v821_v25  ;;  %v719_v42 = vmul.f32 %v1692_v8, %v1854_v20 }
 0x161   : > { %v893_v22 = vadd.f32 %v892_v62, %v891_v28  ;;  %v963_v3 = vadd.f32 %v962_v63, %v961_v54  ;;  %v697_v40 = vadd.f32 %v675_v1, %v1737_v48  ;;  %v763_v18 = vmul.f32 %v1694_v10, %v1854_v20 }
 0x162   : > { %v928_v5 = vrot.slane %v927_v2, 1  ;;  %v997_v6 = vsel %vm995_vm3, %v992_v39, %v857_v38  ;;  %v741_v33 = vadd.f32 %v719_v42, %v1739_v49  ;;  %v807_v7 = vmul.f32 %v1743_v51, %v1854_v20 }
 0x163   : > { %v964_v23 = vrot.slane %v963_v3, 1  ;;  %v1002_v9 = vsel %vm1000_vm4, %v997_v6, %v893_v22  ;;  %v698_v29 = vrot.slane %v697_v40, 4  ;;  %v785_v34 = vadd.f32 %v763_v18, %v1741_v50 }
 0x164   : > { %v929_v13 = vadd.f32 %v928_v5, %v927_v2  ;;  %v742_v48 = vrot.slane %v741_v33, 4  ;;  %v829_v14 = vadd.f32 %v807_v7, %v1745_v52  ;;  %v843_v30 = vmul.f32 %v1696_v11, %v655_v36 }
 0x165   : > { %v965_v43 = vadd.f32 %v964_v23, %v963_v3  ;;  %v699_v31 = vadd.f32 %v698_v29, %v697_v40  ;;  %v786_v49 = vrot.slane %v785_v34, 4  ;;  %v879_v32 = vmul.f32 %v1692_v8, %v655_v36 }
 0x166   : > { %v1007_v16 = vsel %vm1005_vm5, %v1002_v9, %v929_v13  ;;  %v743_v17 = vadd.f32 %v742_v48, %v741_v33  ;;  %v830_v44 = vrot.slane %v829_v14, 4  ;;  %v865_v21 = vadd.f32 %v843_v30, %v1751_v56 }
 0x167   : > { %v1012_v50 = vsel %vm1010_vm6, %v1007_v16, %v965_v43  ;;  %v700_v24 = vrot.slane %v699_v31, 2  ;;  %v787_v35 = vadd.f32 %v786_v49, %v785_v34  ;;  %v901_v52 = vadd.f32 %v879_v32, %v1753_v57  ;;  %v1081_v43 = vld [vmem:[%s1734_s15] sm:$0xff] (%p1937_p7)  ;;  %v1085_v49 = vld [vmem:[%s1734_s15 + $0x10] sm:$0xff] (%p1937_p7) }
 0x168   : > { %1016 = vst [vmem:[%s1811_s10 + $0x8] sm:$0xff] %v1012_v50  ;;  %v744_v11 = vrot.slane %v743_v17, 2  ;;  %v831_v37 = vadd.f32 %v830_v44, %v829_v14  ;;  %v866_v41 = vrot.slane %v865_v21, 4  ;;  %v915_v47 = vmul.f32 %v1694_v10, %v655_v36  ;;  %1082 = vst [vmem:[%s1068_s14] sm:$0xff] (%p1937_p7), %v1081_v43 }
 0x169   : > { %v701_v8 = vadd.f32 %v700_v24, %v699_v31  ;;  %v788_v53 = vrot.slane %v787_v35, 2  ;;  %v902_v19 = vrot.slane %v901_v52, 4  ;;  %v951_v15 = vmul.f32 %v1743_v51, %v655_v36  ;;  %v1083_v31 = vld [vmem:[%s1734_s15 + $0x8] sm:$0xff] (%p1937_p7)  ;;  %1086 = vst [vmem:[%s1068_s14 + $0x20] sm:$0xff] (%p1937_p7), %v1085_v49 }
 0x16a   : > { %v745_v56 = vadd.f32 %v744_v11, %v743_v17  ;;  %v832_v26 = vrot.slane %v831_v37, 2  ;;  %v867_v27 = vadd.f32 %v866_v41, %v865_v21  ;;  %v937_v45 = vadd.f32 %v915_v47, %v1755_v58  ;;  %1084 = vst [vmem:[%s1068_s14 + $0x8] sm:$0xff] (%p1937_p7), %v1083_v31 }
 0x16b   : > { %v702_v25 = vrot.slane %v701_v8, 1  ;;  %v789_v57 = vadd.f32 %v788_v53, %v787_v35  ;;  %v903_v28 = vadd.f32 %v902_v19, %v901_v52  ;;  %v973_v54 = vadd.f32 %v951_v15, %v1757_v59 }
 0x16c   : > { %v746_v46 = vrot.slane %v745_v56, 1  ;;  %v833_v55 = vadd.f32 %v832_v26, %v831_v37  ;;  %v868_v10 = vrot.slane %v867_v27, 2  ;;  %v938_v60 = vrot.slane %v937_v45, 4 }
 0x16d   : > { %v703_v4 = vadd.f32 %v702_v25, %v701_v8  ;;  %v790_v61 = vrot.slane %v789_v57, 1  ;;  %v904_v62 = vrot.slane %v903_v28, 2  ;;  %v974_v63 = vrot.slane %v973_v54, 4 }
 0x16e   : > { %v747_v51 = vadd.f32 %v746_v46, %v745_v56  ;;  %v834_v36 = vrot.slane %v833_v55, 1  ;;  %v869_v0 = vadd.f32 %v868_v10, %v867_v27  ;;  %v939_v1 = vadd.f32 %v938_v60, %v937_v45 }
 0x16f   : > { %v791_v38 = vadd.f32 %v790_v61, %v789_v57  ;;  %v905_v58 = vadd.f32 %v904_v62, %v903_v28  ;;  %v975_v2 = vadd.f32 %v974_v63, %v973_v54  ;;  %v1291_v39 = vpack.c.bf16 %v1854_v20, %v1777_v12 }
 0x170   : > { %v835_v59 = vadd.f32 %v834_v36, %v833_v55  ;;  %v870_v42 = vrot.slane %v869_v0, 1  ;;  %v940_v22 = vrot.slane %v939_v1, 2  ;;  %v984_v3 = vsel %vm980_vm0, %v703_v4, %v747_v51 }
 0x171   : > { %v906_v40 = vrot.slane %v905_v58, 1  ;;  %v976_v18 = vrot.slane %v975_v2, 2  ;;  %v989_v5 = vsel %vm985_vm1, %v984_v3, %v791_v38  ;;  %1046 = vst [vmem:[%s1734_s15 + $0x18] sm:$0xff] %v1291_v39 }
 0x172   : > { %v871_v6 = vadd.f32 %v870_v42, %v869_v0  ;;  %v941_v33 = vadd.f32 %v940_v22, %v939_v1  ;;  %v994_v7 = vsel %vm990_vm2, %v989_v5, %v835_v59 }
 0x173   : > { %v907_v23 = vadd.f32 %v906_v40, %v905_v58  ;;  %v977_v9 = vadd.f32 %v976_v18, %v975_v2 }
 0x174   : > { %v942_v29 = vrot.slane %v941_v33, 1  ;;  %v999_v12 = vsel %vm995_vm3, %v994_v7, %v871_v6 }
 0x175   : > { %v978_v20 = vrot.slane %v977_v9, 1  ;;  %v1004_v34 = vsel %vm1000_vm4, %v999_v12, %v907_v23 }
 0x176   : > { %v943_v13 = vadd.f32 %v942_v29, %v941_v33  ;;  %1062 = sbr.rel (!%p1937_p7) target bundleno = 379 (0x17b), region = 63 }
 0x177   : > { %v979_v48 = vadd.f32 %v978_v20, %v977_v9 }
 0x178   : > { %v1009_v14 = vsel %vm1005_vm5, %v1004_v34, %v943_v13  ;;  %v1087_v32 = vld [vmem:[%s1734_s15 + $0x18] sm:$0xff] (%p1937_p7) }
 0x179   : > { %v1014_v30 = vsel %vm1010_vm6, %v1009_v14, %v979_v48  ;;  %1088 = vst [vmem:[%s1068_s14 + $0x28] sm:$0xff] (%p1937_p7), %v1087_v32 }
 0x17a   : > { %1018 = vst [vmem:[%s1811_s10 + $0x18] sm:$0xff] %v1014_v30 }
 0x17b PF: > { %s16_s19 = sadd.s32 1, %s1473_s19   ;;  %s1938_s15 = smov %s1461_s16 }
 0x17c   : > { %p13_p9 = scmp.ge.s32.totalorder %s16_s19, 4   ;;  %s1939_s16 = smov %s1553_s26 }
 0x17d   : > { %s1940_s17 = smov %s1469_s18  ;;  %s1941_s18 = smov %s1943_s21 }
 0x17e   :  { %15 = sbr.rel (!%p13_p9) target bundleno = 3 (0x3), region = 134 }
 0x183   :  { %1120 = vsyncpa [#allocation3], 1 }
 0x184   :  { %1122 = vsyncpa [#allocation3 + $0x1], 1 }

// kernel: tile.53
= control target key start
LH: loop header
LB: loop body
LE: loop exit
PB: predicated region body
PF: predicated region fallthrough
CT: control target
= control target key end

     0   :  { %s22_s0 = inlined_call_operand.vmem [shape: f32[32], index: 0, kind: input, shape index: {}]   ;;  %s23_s1 = inlined_call_operand.vmem [shape: f32[4,32], index: 1, kind: output, shape index: {}]  }
   0x1   :  { %v4_v0 = vld [vmem:[%s22_s0] ss:$0 sm:$0xff] }
   0x2   :  { %5 = vst [vmem:[%s23_s1] sm:$0xf] %v4_v0 }

// kernel: generator_forward.6
= control target key start
LH: loop header
LB: loop body
LE: loop exit
PB: predicated region body
PF: predicated region fallthrough
CT: control target
= control target key end

     0   :  { %s1151_s21 = smov 0   ;;  %s1153_s22 = smov 0   ;;  %s1288_s0 = inlined_call_operand.vmem [shape: f32[1,256], index: 0, kind: input, shape index: {}]   ;;  %s1289_s1 = inlined_call_operand.vmem [shape: f32[1,256], index: 1, kind: input, shape index: {}]   ;;  %s1290_s2 = inlined_call_operand.vmem [shape: f32[64,4], index: 2, kind: input, shape index: {}]   ;;  %s1291_s3 = inlined_call_operand.vmem [shape: bf16[64,256], index: 3, kind: input, shape index: {}]   ;;  %s1292_s4 = inlined_call_operand.vmem [shape: bf16[256,128], index: 4, kind: input, shape index: {}]   ;;  %s1293_s5 = inlined_call_operand.vmem [shape: bf16[64,128], index: 5, kind: output, shape index: {0}]   ;;  %s1294_s6 = inlined_call_operand.vmem [shape: f32[2,8,128], index: 6, kind: output, shape index: {1}]  }
   0x1   :  { %s1155_s23 = smov 0  }
   0x2 LB: > { %s29_s24 = sadd.s32 1, %s1106_s22  ;;  %p941_p0 = scmp.ge.s32.totalorder %s1110_s23, 1  ;;  %s1110_s23 = sphi %s1155_s23, %s17_s23   ;;  %s1106_s22 = sphi %s1153_s22, %s1296_s22   ;;  %s1102_s21 = sphi %s1151_s21, %s1295_s21  }
   0x3   : > { %p31_p1 = scmp.ge.s32.totalorder %s29_s24, 2  ;;  %p253_p2 = scmp.lt.s32.totalorder %s1110_s23, 3 }
   0x5   : > { %s1298_s24 = smov (%p31_p1, %s29_s24), 0  ;;  %p254_p3 = pnand %p941_p0, %p253_p2 }
   0x6   : > { %s942_s27 = sshll.u32 (!%p254_p3), %s1102_s21, 2  ;;  %p329_p5 = scmp.lt.s32.totalorder (!%p254_p3), %s1102_s21, 1 }
   0x7   : > { %257 = sbr.rel (%p254_p3) target bundleno = 280 (0x118), region = 40  ;;  %p304_p4 = scmp.lt.s32.totalorder (!%p254_p3), %s942_s27, 7 }
   0xc   : > { %v1072_v0 = vld [vmem:[%s1292_s4 + $0x78] sm:$0xff]   ;;  %v1074_v2 = vld [vmem:[%s1292_s4 + $0x70] sm:$0xff]   ;;  %v1076_v4 = vld [vmem:[%s1292_s4 + $0x68] sm:$0xff]   ;;  %v351_v5 = vlaneseq  ;;  %s1300_s27 = smov (!%p304_p4, %s942_s27), 7  ;;  %v1112_v9 = vmov 1   ;;  %v1113_v13 = vmov 0  }
   0xd   : > { %v1073_v1 = vld [vmem:[%s1292_s4 + $0x38] sm:$0xff]   ;;  %988 = vmatprep.subr.bf16.mxu0 %v1072_v0  ;;  %1016 = vmatprep.subr.bf16.mxu1 %v1072_v0  ;;  %v1075_v3 = vld [vmem:[%s1292_s4 + $0x30] sm:$0xff]   ;;  %v1077_v6 = vld [vmem:[%s1292_s4 + $0x28] sm:$0xff]   ;;  %s943_s16 = sshll.u32 %s1300_s27, 3  ;;  %s948_s7 = sshll.u32 %s1300_s27, 2  ;;  %vm758_vm0 = vcmask 1040384  }
   0xe   : > { %989 = vmatpush3.bf16.msra.mxu0 %v1073_v1  ;;  %1024 = vmatpush3.bf16.msra.mxu1 %v1073_v1  ;;  %v1078_v7 = vld [vmem:[%s1292_s4 + $0x60] sm:$0xff]   ;;  %v352_v8 = vshrl.u32 %v351_v5, 7  ;;  %v1080_v11 = vld [vmem:[%s1292_s4 + $0x58] sm:$0xff]   ;;  %s314_s28 = scalar_lea.vmem %s1291_s3, %s943_s16  ;;  %v1082_v16 = vld [vmem:[%s1292_s4 + $0x50] sm:$0xff]   ;;  %s1216_s11 = scalar_lea.vmem %s1290_s2, %s943_s16  ;;  %vm760_vm1 = vcmask 1041408   ;;  %vm762_vm2 = vcmask 1042432  }
   0xf   : > { %990 = vmatprep.subr.bf16.mxu0 %v1074_v2  ;;  %1017 = vmatprep.subr.bf16.mxu1 %v1074_v2  ;;  %v1079_v10 = vld [vmem:[%s1292_s4 + $0x20] sm:$0xff]   ;;  %v1081_v14 = vld [vmem:[%s1292_s4 + $0x18] sm:$0xff]   ;;  %v338_v18 = vld [vmem:[%s314_s28 + $0x8] sm:$0xff]  ;;  %s327_s10 = scalar_lea.vmem %s1293_s5, %s948_s7  ;;  %s1302_s21 = smov (!%p329_p5, %s1102_s21), 1  ;;  %vm764_vm3 = vcmask 1043456   ;;  %vm766_vm4 = vcmask 1044480  }
  0x10   : > { %1061 = vset.pattern.permute.xlu1 %v1112_v9  ;;  %v353_v12 = vsub.s32 0, %v352_v8  ;;  %1060 = vset.pattern.permute.xlu0 %v1113_v13  ;;  %v357_v15 = vsub.s32 1, %v352_v8  ;;  %v337_v17 = vld [vmem:[%s314_s28] sm:$0xff]  ;;  %v343_v22 = vunpack.c.l.bf16 %v338_v18  ;;  %v344_v23 = vunpack.c.h.bf16 %v338_v18  ;;  %v339_v25 = vld [vmem:[%s314_s28 + $0x10] sm:$0xff]  ;;  %v340_v26 = vld [vmem:[%s314_s28 + $0x18] sm:$0xff]  ;;  %s949_s27 = sshll.u32 %s1302_s21, 3 }
  0x11   : > { %v349_v19 = vld [vmem:[%s1288_s0] sm:$0x3]  ;;  %v341_v20 = vunpack.c.l.bf16 %v337_v17  ;;  %v342_v21 = vunpack.c.h.bf16 %v337_v17  ;;  %v1083_v32 = vld [vmem:[%s1292_s4 + $0x10] sm:$0xff]   ;;  %v345_v33 = vunpack.c.l.bf16 %v339_v25  ;;  %v346_v34 = vunpack.c.h.bf16 %v339_v25  ;;  %v1084_v37 = vld [vmem:[%s1292_s4 + $0x48] sm:$0xff]   ;;  %s335_s13 = scalar_lea.vmem %s1294_s6, %s949_s27 }
  0x12   : > { %991 = vmatpush3.bf16.msra.mxu0 %v1075_v3  ;;  %1025 = vmatpush3.bf16.msra.mxu1 %v1075_v3  ;;  %v369_v24 = vld [vmem:[%s1289_s1] sm:$0x3]  ;;  %v354_v27 = vrot.slane %v349_v19, %v353_v12  ;;  %v358_v28 = vrot.slane %v349_v19, %v357_v15  ;;  %v347_v35 = vunpack.c.l.bf16 %v340_v26  ;;  %v348_v36 = vunpack.c.h.bf16 %v340_v26  ;;  %v583_v49 = vld [vmem:[%s1216_s11 + $0x8] sm:$0xff] }
  0x13   : > { %992 = vmatprep.subr.bf16.mxu0 %v1076_v4  ;;  %1018 = vmatprep.subr.bf16.mxu1 %v1076_v4  ;;  %v374_v29 = vrot.slane %v369_v24, %v353_v12  ;;  %v378_v30 = vrot.slane %v369_v24, %v357_v15  ;;  %v1225_v31 = vld [vmem:[%s1216_s11] sm:$0xff]  ;;  %v1085_v50 = vld [vmem:[%s1292_s4 + $0x8] sm:$0xff]   ;;  %v1115_v8 = vmov 3   ;;  %vm768_vm5 = vcmask 1045504  }
  0x14   : > { %v362_v38 = vmul.f32 %v358_v28, %v342_v21  ;;  %v364_v39 = vmul.f32 %v358_v28, %v344_v23  ;;  %v361_v40 = vmul.f32 %v354_v27, %v341_v20  ;;  %v366_v41 = vmul.f32 %v358_v28, %v346_v34  ;;  %620 = vperm.xlu1 %1061, %v1225_v31   ;;  %v1086_v54 = vld [vmem:[%s1292_s4 + $0x40] sm:$0xff]  }
  0x15   : > { %v368_v42 = vmul.f32 %v358_v28, %v348_v36  ;;  %v363_v43 = vmul.f32 %v354_v27, %v343_v22  ;;  %v365_v44 = vmul.f32 %v354_v27, %v345_v33  ;;  %v367_v48 = vmul.f32 %v354_v27, %v347_v35  ;;  %588 = vperm.xlu0 %1060, %v1225_v31   ;;  %v1087_v1 = vld [vmem:[%s1292_s4] sm:$0xff]  }
  0x16   : > { %993 = vmatpush3.bf16.msra.mxu0 %v1077_v6  ;;  %1026 = vmatpush3.bf16.msra.mxu1 %v1077_v6  ;;  %v382_v45 = vadd.f32 %v378_v30, %v362_v38  ;;  %v384_v46 = vadd.f32 %v378_v30, %v364_v39  ;;  %v381_v47 = vadd.f32 %v374_v29, %v361_v40  ;;  %v1114_v6 = vmov 2  }
  0x17   : > { %994 = vmatprep.subr.bf16.mxu0 %v1078_v7  ;;  %1019 = vmatprep.subr.bf16.mxu1 %v1078_v7  ;;  %v386_v51 = vadd.f32 %v378_v30, %v366_v41  ;;  %v388_v52 = vadd.f32 %v378_v30, %v368_v42  ;;  %v383_v53 = vadd.f32 %v374_v29, %v363_v43  ;;  %v584_v7 = vld [vmem:[%s1216_s11 + $0x10] sm:$0xff]  ;;  %vm770_vm6 = vcmask 1046528  }
  0x18   : > { %v390_v55 = vmax.f32 %v382_v45, 0.0  ;;  %v392_v56 = vmax.f32 %v384_v46, 0.0  ;;  %v385_v57 = vadd.f32 %v374_v29, %v365_v44  ;;  %v387_v60 = vadd.f32 %v374_v29, %v367_v48  ;;  %624 = vperm.xlu1 %1061, %v583_v49  }
  0x19   : > { %v394_v58 = vmax.f32 %v386_v51, 0.0  ;;  %v396_v59 = vmax.f32 %v388_v52, 0.0  ;;  %v389_v62 = vmax.f32 %v381_v47, 0.0  ;;  %v391_v63 = vmax.f32 %v383_v53, 0.0  ;;  %593 = vperm.xlu0 %1060, %v583_v49  }
  0x1a   : > { %995 = vmatpush3.bf16.msra.mxu0 %v1079_v10  ;;  %1027 = vmatpush3.bf16.msra.mxu1 %v1079_v10  ;;  %v398_v61 = vpack.c.bf16 %v392_v56, %v390_v55  ;;  %v393_v0 = vmax.f32 %v385_v57, 0.0  ;;  %v395_v3 = vmax.f32 %v387_v60, 0.0  ;;  %v585_v10 = vld [vmem:[%s1216_s11 + $0x18] sm:$0xff] }
  0x1b   : > { %996 = vmatprep.subr.bf16.mxu0 %v1080_v11  ;;  %1020 = vmatprep.subr.bf16.mxu1 %v1080_v11  ;;  %v400_v2 = vpack.c.bf16 %v396_v59, %v394_v58  ;;  %v397_v4 = vpack.c.bf16 %v391_v63, %v389_v62 }
  0x1c   : > { %561 = vmatprep.mubr.bf16.mxu0 %v398_v61  ;;  %v399_v5 = vpack.c.bf16 %v395_v3, %v393_v0  ;;  %1062 = vset.pattern.permute.xlu1 %v1114_v6 }
  0x1d   : > { %569 = vmatprep.mubr.bf16.mxu1 %v400_v2  ;;  %1064 = vset.pattern.permute.xlu0 %v1112_v9 }
  0x1e   : > { %997 = vmatpush3.bf16.msra.mxu0 %v1081_v14  ;;  %1028 = vmatpush3.bf16.msra.mxu1 %v1081_v14 }
  0x1f   : > { %998 = vmatprep.subr.bf16.mxu0 %v1082_v16  ;;  %1021 = vmatprep.subr.bf16.mxu1 %v1082_v16 }
  0x20   : > { %653 = vperm.xlu1 %1062, %v583_v49   ;;  %628 = vperm.xlu0 %1064, %v584_v7  }
  0x22   : > { %999 = vmatpush3.bf16.msra.mxu0 %v1083_v32  ;;  %1029 = vmatpush3.bf16.msra.mxu1 %v1083_v32 }
  0x23   : > { %1000 = vmatprep.subr.bf16.mxu0 %v1084_v37  ;;  %1022 = vmatprep.subr.bf16.mxu1 %v1084_v37 }
  0x24   : > { %1063 = vset.pattern.permute.xlu1 %v1113_v13  ;;  %1065 = vset.pattern.permute.xlu0 %v1114_v6 }
  0x25   : > { %598 = vperm.xlu1 %1063, %v584_v7   ;;  %649 = vperm.xlu0 %1065, %v1225_v31  }
  0x26   : > { %1001 = vmatpush3.bf16.msra.mxu0 %v1085_v50  ;;  %1030 = vmatpush3.bf16.msra.mxu1 %v1085_v50 }
  0x27   : > { %1002 = vmatprep.subr.bf16.mxu0 %v1086_v54  ;;  %1023 = vmatprep.subr.bf16.mxu1 %v1086_v54 }
  0x29   : > { %1066 = vset.pattern.permute.xlu1 %v1115_v8  ;;  %657 = vperm.xlu0 %1065, %v584_v7  }
  0x2a   : > { %1003 = vmatpush3.bf16.msra.mxu0 %v1087_v1  ;;  %1031 = vmatpush3.bf16.msra.mxu1 %v1087_v1 }
  0x2b   : > { %678 = vperm.xlu1 %1066, %v1225_v31  }
  0x2d   : > { %562 = vmatmul.mubr.bf16.vlgmr.msra.gmra.mxu0 %v397_v4  ;;  %570 = vmatmul.mubr.bf16.vlgmr.msra.gmra.mxu1 %v399_v5 }
  0x2e   : > { %1069 = vset.pattern.permute.xlu0 %v1115_v8 }
  0x2f   : > { %682 = vperm.xlu1 %1066, %v583_v49   ;;  %686 = vperm.xlu0 %1069, %v584_v7  }
  0x33   : > { %1067 = vset.pattern.permute.xlu1 %v1113_v13 }
  0x34   : > { %603 = vperm.xlu1 %1067, %v585_v10  }
  0x38   : > { %1068 = vset.pattern.permute.xlu1 %v1112_v9 }
  0x39   : > { %632 = vperm.xlu1 %1068, %v585_v10  }
  0x3d   : > { %1070 = vset.pattern.permute.xlu1 %v1114_v6 }
  0x3e   : > { %661 = vperm.xlu1 %1070, %v585_v10  }
  0x42   : > { %1071 = vset.pattern.permute.xlu1 %v1115_v8 }
  0x43   : > { %690 = vperm.xlu1 %1071, %v585_v10  }
  0x8f   : > { %v621_v11 = vpop.permute.xlu1 %620 }
  0x90   : > { %v589_v15 = vpop.permute.xlu0 %588 }
  0x93   : > { %v1253_v12 = vpop.permute.xlu1 %624 }
  0x94   : > { %v594_v17 = vpop.permute.xlu0 %593 }
  0x9b   : > { %v1255_v14 = vpop.permute.xlu1 %653  ;;  %v629_v19 = vpop.permute.xlu0 %628 }
  0xa0   : > { %v599_v16 = vpop.permute.xlu1 %598  ;;  %v650_v20 = vpop.permute.xlu0 %649 }
  0xa4   : > { %v658_v9 = vpop.permute.xlu0 %657 }
  0xa6   : > { %v679_v18 = vpop.permute.xlu1 %678 }
  0xaa   : > { %v683_v13 = vpop.permute.xlu1 %682  ;;  %v687_v29 = vpop.permute.xlu0 %686 }
  0xaf   : > { %v1257_v21 = vpop.permute.xlu1 %603 }
  0xb4   : > { %v1259_v24 = vpop.permute.xlu1 %632 }
  0xb9   : > { %v662_v49 = vpop.permute.xlu1 %661 }
  0xed   : > { %v1004_v22 = vpop.f32.mrf.mxu0  ;;  %v1010_v23 = vpop.f32.mrf.mxu1 }
  0xef   : > { %v1005_v25 = vpop.f32.mrf.mxu0  ;;  %v1011_v26 = vpop.f32.mrf.mxu1 }
  0xf0   : > { %v1006_v27 = vadd.f32 %v1005_v25, %v1004_v22  ;;  %v1012_v28 = vadd.f32 %v1011_v26, %v1010_v23 }
  0xf1   : > { %v1007_v30 = vpop.f32.mrf.mxu0  ;;  %v1013_v31 = vpop.f32.mrf.mxu1 }
  0xf2   : > { %v606_v32 = vmul.f32 %v1006_v27, %v589_v15  ;;  %v635_v33 = vmul.f32 %v1006_v27, %v621_v11  ;;  %v664_v34 = vmul.f32 %v1006_v27, %v650_v20  ;;  %v608_v35 = vmul.f32 %v1012_v28, %v599_v16 }
  0xf3   : > { %v637_v36 = vmul.f32 %v1012_v28, %v629_v19  ;;  %v580_v37 = vmul.f32 %v1012_v28, %v1012_v28  ;;  %v666_v38 = vmul.f32 %v1012_v28, %v658_v9  ;;  %v1008_v39 = vpop.f32.mrf.mxu0  ;;  %v1014_v40 = vpop.f32.mrf.mxu1  ;;  %v578_v41 = vmul.f32 %v1006_v27, %v1006_v27 }
  0xf4   : > { %v1009_v42 = vadd.f32 %v1008_v39, %v1007_v30  ;;  %v1015_v43 = vadd.f32 %v1014_v40, %v1013_v31  ;;  %v693_v44 = vmul.f32 %v1006_v27, %v679_v18  ;;  %v695_v45 = vmul.f32 %v1012_v28, %v687_v29 }
  0xf5   : > { %v708_v46 = vmul.f32 %v599_v16, %v580_v37  ;;  %v721_v47 = vmul.f32 %v629_v19, %v580_v37  ;;  %v734_v48 = vmul.f32 %v658_v9, %v580_v37  ;;  %v706_v50 = vmul.f32 %v589_v15, %v578_v41  ;;  %v691_v16 = vpop.permute.xlu1 %690 }
  0xf6   : > { %v607_v51 = vmul.f32 %v1009_v42, %v594_v17  ;;  %v636_v52 = vmul.f32 %v1009_v42, %v1253_v12  ;;  %v665_v53 = vmul.f32 %v1009_v42, %v1255_v14  ;;  %v980_v54 = vpack.c.bf16 %v1009_v42, %v1006_v27 }
  0xf7   : > { %v609_v55 = vmul.f32 %v1015_v43, %v1257_v21  ;;  %v638_v56 = vmul.f32 %v1015_v43, %v1259_v24  ;;  %v667_v57 = vmul.f32 %v1015_v43, %v662_v49  ;;  %v985_v58 = vpack.c.bf16 %v1015_v43, %v1012_v28 }
  0xf8   : > { %v610_v59 = vadd.f32 %v607_v51, %v606_v32  ;;  %v639_v60 = vadd.f32 %v636_v52, %v635_v33  ;;  %v668_v61 = vadd.f32 %v665_v53, %v664_v34  ;;  %981 = vst [vmem:[%s327_s10] sm:$0xff] %v980_v54   ;;  %v579_v62 = vmul.f32 %v1009_v42, %v1009_v42 }
  0xf9   : > { %987 = vst [vmem:[%s327_s10 + $0x8] sm:$0xff] %v985_v58   ;;  %v694_v63 = vmul.f32 %v1009_v42, %v683_v13  ;;  %v719_v0 = vmul.f32 %v621_v11, %v578_v41  ;;  %v732_v1 = vmul.f32 %v650_v20, %v578_v41  ;;  %v745_v2 = vmul.f32 %v679_v18, %v578_v41 }
  0xfa   : > { %v611_v3 = vadd.f32 %v610_v59, %v608_v35  ;;  %v640_v4 = vadd.f32 %v639_v60, %v637_v36  ;;  %v669_v5 = vadd.f32 %v668_v61, %v666_v38  ;;  %v707_v6 = vmul.f32 %v594_v17, %v579_v62 }
  0xfb   : > { %v697_v7 = vadd.f32 %v694_v63, %v693_v44  ;;  %v720_v8 = vmul.f32 %v1253_v12, %v579_v62  ;;  %v733_v10 = vmul.f32 %v1255_v14, %v579_v62  ;;  %v746_v15 = vmul.f32 %v683_v13, %v579_v62 }
  0xfc   : > { %v612_v19 = vadd.f32 %v611_v3, %v609_v55  ;;  %v641_v9 = vadd.f32 %v640_v4, %v638_v56  ;;  %v670_v22 = vadd.f32 %v669_v5, %v667_v57  ;;  %v747_v23 = vmul.f32 %v687_v29, %v580_v37 }
  0xfd   : > { %v749_v25 = vadd.f32 %v746_v15, %v745_v2  ;;  %v698_v26 = vadd.f32 %v697_v7, %v695_v45  ;;  %v581_v11 = vmul.f32 %v1015_v43, %v1015_v43  ;;  %v723_v20 = vadd.f32 %v720_v8, %v719_v0 }
  0xfe   : > { %v613_v18 = vrot.slane %v612_v19, 4  ;;  %v642_v27 = vrot.slane %v641_v9, 4  ;;  %v671_v28 = vrot.slane %v670_v22, 4  ;;  %v696_v30 = vmul.f32 %v1015_v43, %v691_v16 }
  0xff   : > { %v750_v17 = vadd.f32 %v749_v25, %v747_v23  ;;  %v709_v31 = vmul.f32 %v1257_v21, %v581_v11  ;;  %v722_v12 = vmul.f32 %v1259_v24, %v581_v11  ;;  %v735_v14 = vmul.f32 %v662_v49, %v581_v11 }
 0x100   : > { %v614_v13 = vadd.f32 %v613_v18, %v612_v19  ;;  %v643_v32 = vadd.f32 %v642_v27, %v641_v9  ;;  %v672_v33 = vadd.f32 %v671_v28, %v670_v22  ;;  %v699_v34 = vadd.f32 %v698_v26, %v696_v30 }
 0x101   : > { %v710_v29 = vadd.f32 %v707_v6, %v706_v50  ;;  %v724_v35 = vadd.f32 %v723_v20, %v721_v47  ;;  %v736_v36 = vadd.f32 %v733_v10, %v732_v1  ;;  %v748_v37 = vmul.f32 %v691_v16, %v581_v11 }
 0x102   : > { %v615_v38 = vrot.slane %v614_v13, 2  ;;  %v644_v39 = vrot.slane %v643_v32, 2  ;;  %v673_v40 = vrot.slane %v672_v33, 2  ;;  %v700_v41 = vrot.slane %v699_v34, 4 }
 0x103   : > { %v711_v42 = vadd.f32 %v710_v29, %v708_v46  ;;  %v725_v43 = vadd.f32 %v724_v35, %v722_v12  ;;  %v737_v44 = vadd.f32 %v736_v36, %v734_v48  ;;  %v751_v21 = vadd.f32 %v750_v17, %v748_v37 }
 0x104   : > { %v616_v45 = vadd.f32 %v615_v38, %v614_v13  ;;  %v645_v24 = vadd.f32 %v644_v39, %v643_v32  ;;  %v674_v49 = vadd.f32 %v673_v40, %v672_v33  ;;  %v701_v51 = vadd.f32 %v700_v41, %v699_v34 }
 0x105   : > { %v712_v52 = vadd.f32 %v711_v42, %v709_v31  ;;  %v726_v53 = vrot.slane %v725_v43, 4  ;;  %v738_v54 = vadd.f32 %v737_v44, %v735_v14  ;;  %v752_v50 = vrot.slane %v751_v21, 4 }
 0x106   : > { %v617_v47 = vrot.slane %v616_v45, 1  ;;  %v646_v55 = vrot.slane %v645_v24, 1  ;;  %v675_v56 = vrot.slane %v674_v49, 1  ;;  %v702_v57 = vrot.slane %v701_v51, 2 }
 0x107   : > { %v713_v58 = vrot.slane %v712_v52, 4  ;;  %v727_v59 = vadd.f32 %v726_v53, %v725_v43  ;;  %v739_v60 = vrot.slane %v738_v54, 4  ;;  %v753_v46 = vadd.f32 %v752_v50, %v751_v21 }
 0x108   : > { %v618_v61 = vadd.f32 %v617_v47, %v616_v45  ;;  %v647_v48 = vadd.f32 %v646_v55, %v645_v24  ;;  %v676_v62 = vadd.f32 %v675_v56, %v674_v49  ;;  %v703_v63 = vadd.f32 %v702_v57, %v701_v51 }
 0x109   : > { %v714_v0 = vadd.f32 %v713_v58, %v712_v52  ;;  %v728_v1 = vrot.slane %v727_v59, 2  ;;  %v740_v2 = vadd.f32 %v739_v60, %v738_v54  ;;  %v754_v3 = vrot.slane %v753_v46, 2 }
 0x10a   : > { %v704_v4 = vrot.slane %v703_v63, 1  ;;  %v759_v5 = vsel %vm758_vm0, %v618_v61, %v647_v48 }
 0x10b   : > { %v715_v6 = vrot.slane %v714_v0, 2  ;;  %v729_v7 = vadd.f32 %v728_v1, %v727_v59  ;;  %v741_v8 = vrot.slane %v740_v2, 2  ;;  %v755_v10 = vadd.f32 %v754_v3, %v753_v46 }
 0x10c   : > { %v761_v19 = vsel %vm760_vm1, %v759_v5, %v676_v62  ;;  %v705_v9 = vadd.f32 %v704_v4, %v703_v63 }
 0x10d   : > { %v716_v15 = vadd.f32 %v715_v6, %v714_v0  ;;  %v742_v16 = vadd.f32 %v741_v8, %v740_v2  ;;  %v730_v22 = vrot.slane %v729_v7, 1  ;;  %v756_v26 = vrot.slane %v755_v10, 1 }
 0x10e   : > { %v763_v11 = vsel %vm762_vm2, %v761_v19, %v705_v9 }
 0x10f   : > { %v717_v23 = vrot.slane %v716_v15, 1  ;;  %v743_v25 = vrot.slane %v742_v16, 1  ;;  %v731_v18 = vadd.f32 %v730_v22, %v729_v7  ;;  %v757_v30 = vadd.f32 %v756_v26, %v755_v10 }
 0x111   : > { %v718_v20 = vadd.f32 %v717_v23, %v716_v15  ;;  %v744_v27 = vadd.f32 %v743_v25, %v742_v16 }
 0x113   : > { %v765_v28 = vsel %vm764_vm3, %v763_v11, %v718_v20 }
 0x114   : > { %v767_v17 = vsel %vm766_vm4, %v765_v28, %v731_v18 }
 0x115   : > { %v769_v31 = vsel %vm768_vm5, %v767_v17, %v744_v27 }
 0x116   : > { %v771_v12 = vsel %vm770_vm6, %v769_v31, %v757_v30 }
 0x117   : > { %772 = vst [vmem:[%s335_s13] sm:$0xff] %v771_v12 }
 0x118 PF: > { %s17_s23 = sadd.s32 1, %s1110_s23   ;;  %s1295_s21 = smov %s1106_s22 }
 0x119   : > { %p14_p6 = scmp.ge.s32.totalorder %s17_s23, 4   ;;  %s1296_s22 = smov %s1298_s24 }
 0x11b   :  { %16 = sbr.rel (!%p14_p6) target bundleno = 2 (0x2), region = 88 }

// kernel: tile.63
= control target key start
LH: loop header
LB: loop body
LE: loop exit
PB: predicated region body
PF: predicated region fallthrough
CT: control target
= control target key end

     0   :  { %s22_s0 = inlined_call_operand.vmem [shape: f32[16], index: 0, kind: input, shape index: {}]   ;;  %s23_s1 = inlined_call_operand.vmem [shape: f32[4,16], index: 1, kind: output, shape index: {}]  }
   0x1   :  { %v4_v0 = vld [vmem:[%s22_s0] ss:$0 sm:$0xff] }
   0x2   :  { %5 = vst [vmem:[%s23_s1] sm:$0xf] %v4_v0 }

// kernel: tile.64
= control target key start
LH: loop header
LB: loop body
LE: loop exit
PB: predicated region body
PF: predicated region fallthrough
CT: control target
= control target key end

     0   :  { %vm8_vm0 = vcmask 130048   ;;  %s40_s8 = smov 16   ;;  %s41_s9 = smov 32   ;;  %vm14_vm1 = vcmask 523648   ;;  %vm20_vm2 = vcmask 392448   ;;  %vm26_vm3 = vcmask 261248   ;;  %s58_s0 = inlined_call_operand.vmem [shape: f32[4,16], index: 0, kind: input, shape index: {}]   ;;  %s59_s1 = inlined_call_operand.vmem [shape: f32[64], index: 1, kind: output, shape index: {}]  }
   0x1   :  { %v5_v0 = vld [vmem:[%s58_s0] sm:$0xf]  ;;  %s39_s0 = smov 48  }
   0x2   :  { %6 = vst [vmem:[#allocation1] sm:$0xf] %v5_v0 }
   0x9   :  { %v11_v1 = vld [vmem:[#allocation1 + $0x3] sm:$0x1]   ;;  %v23_v2 = vld [vmem:[#allocation1 + $0x1] sm:$0x1]   ;;  %v7_v3 = vld [vmem:[#allocation1] sm:$0x1]  }
   0xa   :  { %12 = vrot.lane.b32.xlu0 %v11_v1, %s39_s0  ;;  %24 = vrot.lane.b32.xlu1 %v23_v2, %s40_s8  ;;  %v17_v4 = vld [vmem:[#allocation1 + $0x2] sm:$0x1]   ;;  %9 = vst.msk [vmem:[#allocation0] sm:$0x1] %vm8_vm0, %v7_v3  }
   0xe   :  { %18 = vrot.lane.b32.xlu0 %v17_v4, %s41_s9 }
  0x7c   :  { %v13_v5 = vpop.permute.xlu0 %12   ;;  %v25_v6 = vpop.permute.xlu1 %24  }
  0x7d   :  { %15 = vst.msk [vmem:[#allocation0] sm:$0x1] %vm14_vm1, %v13_v5  }
  0x80   :  { %v19_v7 = vpop.permute.xlu0 %18  }
  0x81   :  { %21 = vst.msk [vmem:[#allocation0] sm:$0x1] %vm20_vm2, %v19_v7  }
  0x82   :  { %27 = vst.msk [vmem:[#allocation0] sm:$0x1] %vm26_vm3, %v25_v6  }
  0x89   :  { %v32_v8 = vld [vmem:[#allocation0] sm:$0x1] }
  0x8a   :  { %35 = vst [vmem:[%s59_s1] sm:$0x1] %v32_v8 }

// kernel: generator_forward.7
= control target key start
LH: loop header
LB: loop body
LE: loop exit
PB: predicated region body
PF: predicated region fallthrough
CT: control target
= control target key end

     0   :  { %s1516_s21 = smov 0   ;;  %s1518_s22 = smov 0   ;;  %s2065_s0 = inlined_call_operand.vmem [shape: f32[1,128], index: 0, kind: input, shape index: {}]   ;;  %s2066_s1 = inlined_call_operand.vmem [shape: f32[1,128], index: 1, kind: input, shape index: {}]   ;;  %s2067_s2 = inlined_call_operand.vmem [shape: f32[192,4], index: 2, kind: input, shape index: {}]   ;;  %s2068_s3 = inlined_call_operand.vmem [shape: bf16[192,128], index: 3, kind: input, shape index: {}]   ;;  %s2069_s4 = inlined_call_operand.vmem [shape: bf16[128,128], index: 4, kind: input, shape index: {}]   ;;  %s2070_s5 = inlined_call_operand.vmem [shape: bf16[192,128], index: 5, kind: output, shape index: {0}]   ;;  %s2071_s6 = inlined_call_operand.vmem [shape: f32[2,8,128], index: 6, kind: output, shape index: {1}]  }
   0x1   :  { %s1520_s23 = smov 0  }
   0x2 LB: > { %s29_s24 = sadd.s32 1, %s1471_s22  ;;  %p1242_p0 = scmp.ge.s32.totalorder %s1475_s23, 1  ;;  %s1475_s23 = sphi %s1520_s23, %s17_s23   ;;  %s1471_s22 = sphi %s1518_s22, %s2115_s22   ;;  %s1467_s21 = sphi %s1516_s21, %s2114_s21  }
   0x3   : > { %p31_p1 = scmp.ge.s32.totalorder %s29_s24, 2  ;;  %p252_p2 = scmp.lt.s32.totalorder %s1475_s23, 3 }
   0x5   : > { %s2117_s24 = smov (%p31_p1, %s29_s24), 0  ;;  %p253_p3 = pnand %p1242_p0, %p252_p2 }
   0x7   : > { %256 = sbr.rel (%p253_p3) target bundleno = 322 (0x142), region = 40 }
   0xc   : > { %v1445_v0 = vld [vmem:[%s2069_s4 + $0x38] sm:$0xff]   ;;  %v1446_v1 = vld [vmem:[%s2069_s4 + $0x30] sm:$0xff]   ;;  %v1477_v2 = vmov 0   ;;  %s301_s29 = smul.u32 12, %s1467_s21  ;;  %v1447_v3 = vld [vmem:[%s2069_s4 + $0x28] sm:$0xff]   ;;  %vm1019_vm0 = vcmask 1040384  }
   0xd   : > { %1434 = vset.pattern.permute.xlu1 %v1477_v2  ;;  %1433 = vset.pattern.permute.xlu0 %v1477_v2  ;;  %v1448_v4 = vld [vmem:[%s2069_s4 + $0x20] sm:$0xff]   ;;  %v1449_v9 = vld [vmem:[%s2069_s4 + $0x18] sm:$0xff]   ;;  %v1450_v26 = vld [vmem:[%s2069_s4 + $0x10] sm:$0xff]   ;;  %vm1021_vm1 = vcmask 1041408   ;;  %vm1023_vm2 = vcmask 1042432   ;;  %vm1025_vm3 = vcmask 1043456  }
   0xe   : > { %1361 = vmatprep.subr.bf16.mxu0 %v1445_v0  ;;  %1389 = vmatprep.subr.bf16.mxu1 %v1445_v0  ;;  %p302_p4 = scmp.lt.s32.totalorder %s301_s29, 23  ;;  %v1585_v10 = vld [vmem:[%s2065_s0] ss:$0 sm:$0xff]  ;;  %v1451_v43 = vld [vmem:[%s2069_s4 + $0x8] sm:$0xff]   ;;  %p326_p5 = scmp.lt.s32.totalorder %s1467_s21, 1  ;;  %vm1027_vm4 = vcmask 1044480  }
   0xf   : > { %1362 = vmatpush3.bf16.msra.mxu0 %v1445_v0  ;;  %1397 = vmatpush3.bf16.msra.mxu1 %v1445_v0  ;;  %v1595_v16 = vld [vmem:[%s2066_s1] ss:$0 sm:$0xff]  ;;  %vm1029_vm5 = vcmask 1045504   ;;  %vm1031_vm6 = vcmask 1046528  }
  0x10   : > { %1363 = vmatprep.subr.bf16.mxu0 %v1446_v1  ;;  %1390 = vmatprep.subr.bf16.mxu1 %v1446_v1  ;;  %s2119_s29 = smov (!%p302_p4, %s301_s29), 23  ;;  %v1452_v58 = vld [vmem:[%s2069_s4] sm:$0xff]   ;;  %s2121_s21 = smov (!%p326_p5, %s1467_s21), 1 }
  0x11   : > { %s1243_s8 = sshll.u32 %s2119_s29, 3  ;;  %s1244_s14 = sshll.u32 %s2119_s29, 2 }
  0x12   : > { %s1552_s11 = scalar_lea.vmem %s2067_s2, %s1243_s8  ;;  %s1571_s17 = scalar_lea.vmem %s2068_s3, %s1244_s14 }
  0x13   : > { %1364 = vmatpush3.bf16.msra.mxu0 %v1446_v1  ;;  %1398 = vmatpush3.bf16.msra.mxu1 %v1446_v1  ;;  %v1559_v5 = vld [vmem:[%s1552_s11 + $0x10] sm:$0xff]  ;;  %v1562_v6 = vld [vmem:[%s1552_s11] sm:$0xff]  ;;  %v1574_v7 = vld [vmem:[%s1552_s11 + $0x18] sm:$0xff]  ;;  %s1782_s13 = scalar_lea.vmem %s2070_s5, %s1244_s14  ;;  %s1246_s29 = sshll.u32 %s2121_s21, 3 }
  0x14   : > { %1365 = vmatprep.subr.bf16.mxu0 %v1447_v3  ;;  %1391 = vmatprep.subr.bf16.mxu1 %v1447_v3  ;;  %v1577_v8 = vld [vmem:[%s1552_s11 + $0x8] sm:$0xff]  ;;  %v1284_v11 = vld [vmem:[%s1571_s17] sm:$0xff]   ;;  %v1338_v12 = vld [vmem:[%s1571_s17 + $0x10] sm:$0xff]   ;;  %s332_s16 = scalar_lea.vmem %s2071_s6, %s1246_s29 }
  0x15   : > { %595 = vperm.xlu1 %1434, %v1559_v5   ;;  %585 = vperm.xlu0 %1433, %v1562_v6   ;;  %v1337_v13 = vld [vmem:[%s1571_s17 + $0x8] sm:$0xff]   ;;  %v1285_v14 = vunpack.c.l.bf16 %v1284_v11  ;;  %v1286_v15 = vunpack.c.h.bf16 %v1284_v11  ;;  %v1293_v17 = vunpack.c.l.bf16 %v1338_v12  ;;  %v1294_v18 = vunpack.c.h.bf16 %v1338_v12  ;;  %v1339_v19 = vld [vmem:[%s1571_s17 + $0x18] sm:$0xff]   ;;  %v1602_v21 = vld [vmem:[%s1552_s11 + $0x20] sm:$0xff] }
  0x16   : > { %v1599_v20 = vld [vmem:[%s1552_s11 + $0x28] sm:$0xff]  ;;  %v1289_v22 = vunpack.c.l.bf16 %v1337_v13  ;;  %v1290_v23 = vunpack.c.h.bf16 %v1337_v13  ;;  %v1297_v24 = vunpack.c.l.bf16 %v1339_v19  ;;  %v1340_v25 = vld [vmem:[%s1571_s17 + $0x20] sm:$0xff]   ;;  %v1298_v30 = vunpack.c.h.bf16 %v1339_v19  ;;  %v1619_v37 = vld [vmem:[%s1552_s11 + $0x38] sm:$0xff] }
  0x17   : > { %1366 = vmatpush3.bf16.msra.mxu0 %v1447_v3  ;;  %1399 = vmatpush3.bf16.msra.mxu1 %v1447_v3  ;;  %v365_v27 = vmul.f32 %v1285_v14, %v1585_v10  ;;  %v366_v28 = vmul.f32 %v1286_v15, %v1585_v10  ;;  %v369_v29 = vmul.f32 %v1293_v17, %v1585_v10  ;;  %v1301_v36 = vunpack.c.l.bf16 %v1340_v25  ;;  %v1622_v38 = vld [vmem:[%s1552_s11 + $0x30] sm:$0xff]  ;;  %v1341_v49 = vld [vmem:[%s1571_s17 + $0x28] sm:$0xff]   ;;  %v1640_v54 = vld [vmem:[%s1552_s11 + $0x40] sm:$0xff] }
  0x18   : > { %1367 = vmatprep.subr.bf16.mxu0 %v1448_v4  ;;  %1392 = vmatprep.subr.bf16.mxu1 %v1448_v4  ;;  %v370_v31 = vmul.f32 %v1294_v18, %v1585_v10  ;;  %v367_v32 = vmul.f32 %v1289_v22, %v1585_v10  ;;  %v368_v40 = vmul.f32 %v1290_v23, %v1585_v10  ;;  %v1302_v42 = vunpack.c.h.bf16 %v1340_v25  ;;  %v1637_v53 = vld [vmem:[%s1552_s11 + $0x48] sm:$0xff]  ;;  %v1654_v1 = vld [vmem:[%s1552_s11 + $0x58] sm:$0xff]  ;;  %v1657_v2 = vld [vmem:[%s1552_s11 + $0x50] sm:$0xff] }
  0x19   : > { %600 = vperm.xlu1 %1434, %v1574_v7   ;;  %590 = vperm.xlu0 %1433, %v1577_v8   ;;  %v384_v33 = vadd.f32 %v1595_v16, %v365_v27  ;;  %v385_v34 = vadd.f32 %v1595_v16, %v366_v28  ;;  %v388_v35 = vadd.f32 %v1595_v16, %v369_v29  ;;  %v1305_v61 = vunpack.c.l.bf16 %v1341_v49 }
  0x1a   : > { %v389_v39 = vadd.f32 %v1595_v16, %v370_v31  ;;  %v371_v41 = vmul.f32 %v1297_v24, %v1585_v10  ;;  %v372_v47 = vmul.f32 %v1298_v30, %v1585_v10  ;;  %v386_v51 = vadd.f32 %v1595_v16, %v367_v32 }
  0x1b   : > { %1368 = vmatpush3.bf16.msra.mxu0 %v1448_v4  ;;  %1400 = vmatpush3.bf16.msra.mxu1 %v1448_v4  ;;  %v396_v44 = vmax.f32 %v384_v33, 0.0  ;;  %v397_v45 = vmax.f32 %v385_v34, 0.0  ;;  %v400_v46 = vmax.f32 %v388_v35, 0.0  ;;  %v373_v52 = vmul.f32 %v1301_v36, %v1585_v10 }
  0x1c   : > { %1369 = vmatprep.subr.bf16.mxu0 %v1449_v9  ;;  %1393 = vmatprep.subr.bf16.mxu1 %v1449_v9  ;;  %v401_v48 = vmax.f32 %v389_v39, 0.0  ;;  %v387_v56 = vadd.f32 %v1595_v16, %v368_v40  ;;  %v374_v57 = vmul.f32 %v1302_v42, %v1585_v10  ;;  %v390_v59 = vadd.f32 %v1595_v16, %v371_v41 }
  0x1d   : > { %610 = vperm.xlu1 %1434, %v1599_v20   ;;  %605 = vperm.xlu0 %1433, %v1602_v21   ;;  %v408_v50 = vpack.c.bf16 %v397_v45, %v396_v44  ;;  %v391_v60 = vadd.f32 %v1595_v16, %v372_v47  ;;  %v1306_v62 = vunpack.c.h.bf16 %v1341_v49  ;;  %v392_v63 = vadd.f32 %v1595_v16, %v373_v52 }
  0x1e   : > { %v410_v55 = vpack.c.bf16 %v401_v48, %v400_v46  ;;  %v393_v0 = vadd.f32 %v1595_v16, %v374_v57  ;;  %v398_v3 = vmax.f32 %v386_v51, 0.0  ;;  %v399_v4 = vmax.f32 %v387_v56, 0.0 }
  0x1f   : > { %1370 = vmatpush3.bf16.msra.mxu0 %v1449_v9  ;;  %1401 = vmatpush3.bf16.msra.mxu1 %v1449_v9  ;;  %v402_v9 = vmax.f32 %v390_v59, 0.0  ;;  %v403_v11 = vmax.f32 %v391_v60, 0.0  ;;  %v375_v12 = vmul.f32 %v1305_v61, %v1585_v10  ;;  %v376_v13 = vmul.f32 %v1306_v62, %v1585_v10 }
  0x20   : > { %1371 = vmatprep.subr.bf16.mxu0 %v1450_v26  ;;  %1394 = vmatprep.subr.bf16.mxu1 %v1450_v26  ;;  %v404_v14 = vmax.f32 %v392_v63, 0.0  ;;  %v405_v15 = vmax.f32 %v393_v0, 0.0  ;;  %v409_v17 = vpack.c.bf16 %v399_v4, %v398_v3  ;;  %v1478_v24 = vmov 1  }
  0x21   : > { %620 = vperm.xlu1 %1434, %v1619_v37   ;;  %615 = vperm.xlu0 %1433, %v1622_v38   ;;  %v411_v18 = vpack.c.bf16 %v403_v11, %v402_v9  ;;  %v394_v19 = vadd.f32 %v1595_v16, %v375_v12  ;;  %v395_v22 = vadd.f32 %v1595_v16, %v376_v13  ;;  %v1479_v16 = vmov 2  }
  0x22   : > { %1377 = vmatprep.mubr.bf16.mxu0 %v408_v50  ;;  %1381 = vmatprep.mubr.bf16.mxu1 %v410_v55  ;;  %v412_v23 = vpack.c.bf16 %v405_v15, %v404_v14  ;;  %v1480_v27 = vmov 3  }
  0x23   : > { %1372 = vmatpush3.bf16.msra.mxu0 %v1450_v26  ;;  %1402 = vmatpush3.bf16.msra.mxu1 %v1450_v26  ;;  %v406_v10 = vmax.f32 %v394_v19, 0.0  ;;  %v407_v25 = vmax.f32 %v395_v22, 0.0 }
  0x24   : > { %1373 = vmatprep.subr.bf16.mxu0 %v1451_v43  ;;  %1395 = vmatprep.subr.bf16.mxu1 %v1451_v43 }
  0x25   : > { %630 = vperm.xlu1 %1434, %v1637_v53   ;;  %625 = vperm.xlu0 %1433, %v1640_v54   ;;  %v413_v26 = vpack.c.bf16 %v407_v25, %v406_v10 }
  0x27   : > { %1374 = vmatpush3.bf16.msra.mxu0 %v1451_v43  ;;  %1403 = vmatpush3.bf16.msra.mxu1 %v1451_v43 }
  0x28   : > { %1375 = vmatprep.subr.bf16.mxu0 %v1452_v58  ;;  %1396 = vmatprep.subr.bf16.mxu1 %v1452_v58 }
  0x29   : > { %640 = vperm.xlu1 %1434, %v1654_v1   ;;  %635 = vperm.xlu0 %1433, %v1657_v2  }
  0x2b   : > { %1376 = vmatpush3.bf16.msra.mxu0 %v1452_v58  ;;  %1404 = vmatpush3.bf16.msra.mxu1 %v1452_v58 }
  0x2d   : > { %1436 = vset.pattern.permute.xlu1 %v1478_v24  ;;  %1435 = vset.pattern.permute.xlu0 %v1478_v24 }
  0x2e   : > { %677 = vperm.xlu1 %1436, %v1577_v8   ;;  %673 = vperm.xlu0 %1435, %v1562_v6  }
  0x2f   : > { %1378 = vmatmul.mubr.bf16.vlgmr.msra.gmra.mxu0 %v409_v17  ;;  %1382 = vmatmul.mubr.bf16.vlgmr.msra.gmra.mxu1 %v411_v18 }
  0x30   : > { %1385 = vmatprep.mubr.bf16.mxu1 %v412_v23 }
  0x32   : > { %681 = vperm.xlu1 %1436, %v1559_v5   ;;  %685 = vperm.xlu0 %1435, %v1574_v7  }
  0x36   : > { %689 = vperm.xlu1 %1436, %v1602_v21   ;;  %693 = vperm.xlu0 %1435, %v1599_v20  }
  0x37   : > { %1386 = vmatmul.mubr.bf16.gmra.mxu1 %v413_v26 }
  0x3a   : > { %697 = vperm.xlu1 %1436, %v1622_v38   ;;  %701 = vperm.xlu0 %1435, %v1619_v37  }
  0x3e   : > { %705 = vperm.xlu1 %1436, %v1640_v54   ;;  %709 = vperm.xlu0 %1435, %v1637_v53  }
  0x42   : > { %1437 = vset.pattern.permute.xlu1 %v1479_v16  ;;  %1438 = vset.pattern.permute.xlu0 %v1479_v16 }
  0x43   : > { %750 = vperm.xlu1 %1437, %v1562_v6   ;;  %754 = vperm.xlu0 %1438, %v1577_v8  }
  0x47   : > { %1439 = vset.pattern.permute.xlu1 %v1480_v27  ;;  %758 = vperm.xlu0 %1438, %v1559_v5  }
  0x48   : > { %827 = vperm.xlu1 %1439, %v1562_v6  }
  0x4b   : > { %762 = vperm.xlu0 %1438, %v1574_v7  }
  0x4c   : > { %831 = vperm.xlu1 %1439, %v1577_v8  }
  0x4f   : > { %766 = vperm.xlu0 %1438, %v1602_v21  }
  0x50   : > { %835 = vperm.xlu1 %1439, %v1559_v5  }
  0x53   : > { %770 = vperm.xlu0 %1438, %v1599_v20  }
  0x54   : > { %839 = vperm.xlu1 %1439, %v1574_v7  }
  0x57   : > { %774 = vperm.xlu0 %1438, %v1622_v38  }
  0x58   : > { %843 = vperm.xlu1 %1439, %v1602_v21  }
  0x5b   : > { %778 = vperm.xlu0 %1438, %v1619_v37  }
  0x5c   : > { %847 = vperm.xlu1 %1439, %v1599_v20  }
  0x5f   : > { %782 = vperm.xlu0 %1438, %v1640_v54  }
  0x60   : > { %851 = vperm.xlu1 %1439, %v1622_v38  }
  0x63   : > { %786 = vperm.xlu0 %1438, %v1637_v53  }
  0x64   : > { %855 = vperm.xlu1 %1439, %v1619_v37  }
  0x67   : > { %1441 = vset.pattern.permute.xlu0 %v1480_v27 }
  0x68   : > { %859 = vperm.xlu1 %1439, %v1640_v54   ;;  %863 = vperm.xlu0 %1441, %v1637_v53  }
  0x6c   : > { %1440 = vset.pattern.permute.xlu1 %v1478_v24  ;;  %867 = vperm.xlu0 %1441, %v1657_v2  }
  0x6d   : > { %713 = vperm.xlu1 %1440, %v1657_v2  }
  0x70   : > { %871 = vperm.xlu0 %1441, %v1654_v1  }
  0x71   : > { %1442 = vset.pattern.permute.xlu1 %v1479_v16 }
  0x72   : > { %790 = vperm.xlu1 %1442, %v1657_v2  }
  0x76   : > { %1443 = vset.pattern.permute.xlu1 %v1478_v24 }
  0x77   : > { %717 = vperm.xlu1 %1443, %v1654_v1  }
  0x7b   : > { %1444 = vset.pattern.permute.xlu1 %v1479_v16 }
  0x7c   : > { %794 = vperm.xlu1 %1444, %v1654_v1  }
  0x90   : > { %v596_v5 = vpop.permute.xlu1 %595  ;;  %v1703_v7 = vpop.permute.xlu0 %585 }
  0x94   : > { %v1701_v6 = vpop.permute.xlu1 %600  ;;  %v1707_v20 = vpop.permute.xlu0 %590 }
  0x98   : > { %v1705_v8 = vpop.permute.xlu1 %610  ;;  %v1711_v28 = vpop.permute.xlu0 %605 }
  0x9c   : > { %v1709_v21 = vpop.permute.xlu1 %620  ;;  %v616_v30 = vpop.permute.xlu0 %615 }
  0xa0   : > { %v1713_v29 = vpop.permute.xlu1 %630  ;;  %v1719_v33 = vpop.permute.xlu0 %625 }
  0xa1   : > { %2084 = vst [vmem:[#allocation2_spill] sm:$0xff] %v1713_v29  ;;  %2086 = vst [vmem:[#allocation4_spill] sm:$0xff] %v1719_v33 }
  0xa4   : > { %v1715_v31 = vpop.permute.xlu1 %640  ;;  %v1721_v35 = vpop.permute.xlu0 %635 }
  0xa5   : > { %2085 = vst [vmem:[#allocation3_spill] sm:$0xff] %v1715_v31 }
  0xa9   : > { %v1717_v32 = vpop.permute.xlu1 %677  ;;  %v674_v37 = vpop.permute.xlu0 %673 }
  0xad   : > { %v682_v34 = vpop.permute.xlu1 %681  ;;  %v1725_v39 = vpop.permute.xlu0 %685 }
  0xb1   : > { %v1723_v36 = vpop.permute.xlu1 %689  ;;  %v1729_v41 = vpop.permute.xlu0 %693 }
  0xb5   : > { %v698_v38 = vpop.permute.xlu1 %697  ;;  %v1731_v43 = vpop.permute.xlu0 %701 }
  0xb9   : > { %v1727_v40 = vpop.permute.xlu1 %705  ;;  %v1735_v45 = vpop.permute.xlu0 %709 }
  0xba   : > { %2087 = vst [vmem:[#allocation5_spill] sm:$0xff] %v1727_v40  ;;  %2088 = vst [vmem:[#allocation6_spill] sm:$0xff] %v1735_v45 }
  0xbe   : > { %v751_v42 = vpop.permute.xlu1 %750  ;;  %v1739_v47 = vpop.permute.xlu0 %754 }
  0xc2   : > { %v759_v49 = vpop.permute.xlu0 %758 }
  0xc3   : > { %v1733_v44 = vpop.permute.xlu1 %827 }
  0xc6   : > { %v1745_v51 = vpop.permute.xlu0 %762 }
  0xc7   : > { %v1737_v46 = vpop.permute.xlu1 %831 }
  0xc8   : > { %2089 = vst [vmem:[#allocation7_spill] sm:$0xff] %v1737_v46 }
  0xca   : > { %v1749_v53 = vpop.permute.xlu0 %766 }
  0xcb   : > { %v1741_v48 = vpop.permute.xlu1 %835 }
  0xcc   : > { %2090 = vst [vmem:[#allocation8_spill] sm:$0xff] %v1741_v48 }
  0xce   : > { %v1753_v57 = vpop.permute.xlu0 %770 }
  0xcf   : > { %v1743_v50 = vpop.permute.xlu1 %839 }
  0xd2   : > { %v1766_v4 = vpop.permute.xlu0 %774 }
  0xd3   : > { %v1747_v52 = vpop.permute.xlu1 %843  ;;  %2094 = vst [vmem:[#allocation12_spill] sm:$0xff] %v1766_v4 }
  0xd7   : > { %v1751_v56 = vpop.permute.xlu1 %847 }
  0xdb   : > { %v1763_v63 = vpop.permute.xlu1 %851 }
  0xdc   : > { %2093 = vst [vmem:[#allocation11_spill] sm:$0xff] %v1763_v63 }
  0xef   : > { %v1379_v54 = vpop.f32.mrf.mxu0  ;;  %v1383_v55 = vpop.f32.mrf.mxu1 }
  0xf0   : > { %v1755_v59 = vmul.f32 %v1379_v54, %v1379_v54  ;;  %v1759_v61 = vmul.f32 %v1383_v55, %v1383_v55  ;;  %v645_v0 = vmul.f32 %v1379_v54, %v596_v5  ;;  %v722_v1 = vmul.f32 %v1379_v54, %v682_v34 }
  0xf1   : > { %v512_v58 = vpop.f32.mrf.mxu0  ;;  %v1757_v60 = vpop.f32.mrf.mxu1  ;;  %v799_v2 = vmul.f32 %v1379_v54, %v759_v49  ;;  %v876_v3 = vmul.f32 %v1379_v54, %v1741_v48  ;;  %v1769_v11 = vmul.f32 %v1383_v55, %v616_v30  ;;  %v1771_v12 = vmul.f32 %v1383_v55, %v698_v38 }
  0xf2   : > { %2091 = vst [vmem:[#allocation9_spill] sm:$0xff] %v1755_v59  ;;  %2092 = vst [vmem:[#allocation10_spill] sm:$0xff] %v1759_v61  ;;  %v905_v9 = vmul.f32 %v596_v5, %v1755_v59  ;;  %v1773_v13 = vmul.f32 %v512_v58, %v512_v58  ;;  %v934_v15 = vmul.f32 %v682_v34, %v1755_v59 }
  0xf3   : > { %v1761_v62 = vpop.f32.mrf.mxu0  ;;  %v1775_v14 = vpop.f32.mrf.mxu1  ;;  %v1786_v17 = vmul.f32 %v759_v49, %v1755_v59  ;;  %v1789_v18 = vmul.f32 %v1383_v55, %v1766_v4  ;;  %v1792_v19 = vmul.f32 %v1383_v55, %v1763_v63  ;;  %v1795_v22 = vmul.f32 %v616_v30, %v1759_v61 }
  0xf4   : > { %v1798_v23 = vmul.f32 %v698_v38, %v1759_v61  ;;  %v643_v24 = vmul.f32 %v1703_v7, %v512_v58  ;;  %v1315_v10 = vpack.c.bf16 %v1761_v62, %v1379_v54  ;;  %v720_v26 = vmul.f32 %v674_v37, %v512_v58  ;;  %v1817_v63 = vpop.permute.xlu1 %855 }
  0xf5   : > { %2095 = vst [vmem:[#allocation13_spill] sm:$0xff] %v1786_v17  ;;  %2096 = vst [vmem:[#allocation14_spill] sm:$0xff] %v1789_v18  ;;  %v515_v25 = vpop.f32.mrf.mxu0  ;;  %v797_v16 = vmul.f32 %v751_v42, %v512_v58  ;;  %v874_v27 = vmul.f32 %v1733_v44, %v512_v58  ;;  %v1805_v5 = vmul.f32 %v1757_v60, %v1757_v60  ;;  %v1815_v54 = vpop.f32.mrf.mxu1 }
  0xf6   : > { %2097 = vst [vmem:[#allocation15_spill] sm:$0xff] %v1792_v19  ;;  %2098 = vst [vmem:[#allocation16_spill] sm:$0xff] %v1798_v23  ;;  %v903_v30 = vmul.f32 %v1703_v7, %v1773_v13  ;;  %v932_v34 = vmul.f32 %v674_v37, %v1773_v13  ;;  %v647_v38 = vmul.f32 %v1711_v28, %v1757_v60 }
  0xf7   : > { %v724_v49 = vmul.f32 %v1723_v36, %v1757_v60  ;;  %1342 = vst [vmem:[%s1782_s13 + $0x8] sm:$0xff] %v1315_v10   ;;  %v1821_v48 = vmul.f32 %v1761_v62, %v1761_v62  ;;  %v1325_v7 = vpack.c.bf16 %v1775_v14, %v1383_v55  ;;  %v1824_v59 = vmul.f32 %v515_v25, %v515_v25 }
  0xf8   : > { %v644_v37 = vmul.f32 %v1707_v20, %v515_v25  ;;  %v721_v4 = vmul.f32 %v1717_v32, %v515_v25  ;;  %v798_v61 = vmul.f32 %v1739_v47, %v515_v25  ;;  %v875_v10 = vmul.f32 %v1737_v46, %v515_v25  ;;  %v1841_v46 = vpop.f32.mrf.mxu1  ;;  %v1847_v33 = vpop.permute.xlu1 %859 }
  0xf9   : > { %v1310_v19 = vpack.c.bf16 %v515_v25, %v512_v58  ;;  %v1831_v17 = vmul.f32 %v751_v42, %v1773_v13  ;;  %1344 = vst [vmem:[%s1782_s13 + $0x18] sm:$0xff] %v1325_v7   ;;  %v904_v55 = vmul.f32 %v1707_v20, %v1824_v59  ;;  %v933_v31 = vmul.f32 %v1717_v32, %v1824_v59 }
  0xfa   : > { %v655_v18 = vadd.f32 %v644_v37, %v643_v24  ;;  %v646_v45 = vmul.f32 %v1761_v62, %v1701_v6  ;;  %v732_v29 = vadd.f32 %v721_v4, %v720_v26  ;;  %v809_v23 = vadd.f32 %v798_v61, %v797_v16  ;;  %v1865_v16 = vpop.permute.xlu0 %778 }
  0xfb   : > { %v886_v40 = vadd.f32 %v875_v10, %v874_v27  ;;  %1311 = vst [vmem:[%s1782_s13] sm:$0xff] %v1310_v19   ;;  %v723_v42 = vmul.f32 %v1761_v62, %v1725_v39  ;;  %v915_v24 = vadd.f32 %v904_v55, %v903_v30  ;;  %v944_v25 = vadd.f32 %v933_v31, %v932_v34 }
  0xfc   : > { %v656_v58 = vadd.f32 %v655_v18, %v645_v0  ;;  %v906_v20 = vmul.f32 %v1701_v6, %v1821_v48  ;;  %v733_v7 = vadd.f32 %v732_v29, %v722_v1  ;;  %v810_v32 = vadd.f32 %v809_v23, %v799_v2 }
  0xfd   : > { %v887_v37 = vadd.f32 %v886_v40, %v876_v3  ;;  %v916_v61 = vadd.f32 %v915_v24, %v905_v9  ;;  %v945_v26 = vadd.f32 %v944_v25, %v934_v15  ;;  %v1851_v19 = vmul.f32 %v1815_v54, %v1815_v54  ;;  %v1859_v40 = vpop.f32.mrf.mxu1 }
  0xfe   : > { %v657_v4 = vadd.f32 %v656_v58, %v646_v45  ;;  %v800_v0 = vmul.f32 %v1761_v62, %v1745_v51  ;;  %v877_v31 = vmul.f32 %v1761_v62, %v1743_v50  ;;  %v935_v6 = vmul.f32 %v1725_v39, %v1821_v48  ;;  %v1867_v62 = vpop.permute.xlu1 %713 }
  0xff   : > { %v734_v29 = vadd.f32 %v733_v7, %v723_v42  ;;  %v907_v45 = vmul.f32 %v1711_v28, %v1805_v5  ;;  %v917_v1 = vadd.f32 %v916_v61, %v906_v20  ;;  %v648_v2 = vmul.f32 %v1705_v8, %v1815_v54  ;;  %v1883_v55 = vpop.f32.mrf.mxu1 }
 0x100   : > { %v658_v3 = vadd.f32 %v657_v4, %v647_v38  ;;  %v811_v9 = vadd.f32 %v810_v32, %v800_v0  ;;  %v888_v15 = vadd.f32 %v887_v37, %v877_v31  ;;  %v946_v18 = vadd.f32 %v945_v26, %v935_v6 }
 0x101   : > { %v735_v23 = vadd.f32 %v734_v29, %v724_v49  ;;  %v725_v27 = vmul.f32 %v1729_v41, %v1815_v54  ;;  %v908_v28 = vmul.f32 %v1705_v8, %v1851_v19  ;;  %v918_v30 = vadd.f32 %v917_v1, %v907_v45  ;;  %v1912_v61 = vpop.f32.mrf.mxu1 }
 0x102   : > { %v659_v39 = vadd.f32 %v658_v3, %v648_v2  ;;  %v1875_v34 = vmul.f32 %v1733_v44, %v1773_v13  ;;  %v801_v38 = vmul.f32 %v1749_v53, %v1757_v60  ;;  %v878_v49 = vmul.f32 %v1747_v52, %v1757_v60  ;;  %v1921_v31 = vpop.permute.xlu1 %790 }
 0x103   : > { %v936_v10 = vmul.f32 %v1723_v36, %v1805_v5  ;;  %v736_v8 = vadd.f32 %v735_v23, %v725_v27  ;;  %v919_v58 = vadd.f32 %v918_v30, %v908_v28  ;;  %v1320_v44 = vpack.c.bf16 %v1815_v54, %v1757_v60  ;;  %v2101_v28 = vld [vmem:[#allocation16_spill] sm:$0xff] }
 0x104   : > { %v660_v42 = vadd.f32 %v659_v39, %v1769_v11  ;;  %v1890_v13 = vmul.f32 %v1745_v51, %v1821_v48  ;;  %v1894_v24 = vmul.f32 %v1775_v14, %v1775_v14  ;;  %v650_v36 = vmul.f32 %v1775_v14, %v1709_v21 }
 0x105   : > { %v947_v25 = vadd.f32 %v946_v18, %v936_v10  ;;  %v962_v11 = vmul.f32 %v1739_v47, %v1824_v59  ;;  %v812_v20 = vadd.f32 %v811_v9, %v801_v38  ;;  %v889_v7 = vadd.f32 %v888_v15, %v878_v49  ;;  %1343 = vst [vmem:[%s1782_s13 + $0x10] sm:$0xff] %v1320_v44   ;;  %v1914_v47 = vpop.permute.xlu0 %782  ;;  %v2102_v38 = vld [vmem:[#allocation2_spill] sm:$0xff] }
 0x106   : > { %v920_v32 = vadd.f32 %v919_v58, %v1795_v22  ;;  %v727_v51 = vmul.f32 %v1775_v14, %v1731_v43  ;;  %v804_v60 = vmul.f32 %v1775_v14, %v1865_v16  ;;  %v1908_v37 = vmul.f32 %v1775_v14, %v1817_v63  ;;  %v2103_v44 = vld [vmem:[#allocation6_spill] sm:$0xff] }
 0x107   : > { %v937_v4 = vmul.f32 %v1729_v41, %v1851_v19  ;;  %v737_v22 = vadd.f32 %v736_v8, %v1771_v12  ;;  %v802_v26 = vmul.f32 %v1753_v57, %v1815_v54  ;;  %v879_v0 = vmul.f32 %v1751_v56, %v1815_v54 }
 0x108   : > { %v1925_v14 = vmul.f32 %v1859_v40, %v1859_v40  ;;  %v910_v41 = vmul.f32 %v1709_v21, %v1894_v24  ;;  %v939_v6 = vmul.f32 %v1731_v43, %v1894_v24  ;;  %v1335_v29 = vpack.c.bf16 %v1883_v55, %v1841_v46  ;;  %v2099_v43 = vld [vmem:[#allocation4_spill] sm:$0xff] }
 0x109   : > { %v948_v12 = vadd.f32 %v947_v25, %v937_v4  ;;  %v973_v45 = vadd.f32 %v962_v11, %v1831_v17  ;;  %v813_v1 = vadd.f32 %v812_v20, %v802_v26  ;;  %v890_v54 = vadd.f32 %v889_v7, %v879_v0  ;;  %v2100_v17 = vld [vmem:[#allocation5_spill] sm:$0xff]  ;;  %v1956_v58 = vpop.permute.xlu0 %786 }
 0x10a   : > { %v1936_v2 = vmul.f32 %v1912_v61, %v1912_v61  ;;  %v653_v3 = vmul.f32 %v1841_v46, %v1721_v35  ;;  %v1942_v21 = vmul.f32 %v1841_v46, %v1841_v46  ;;  %v651_v9 = vmul.f32 %v2099_v43, %v1859_v40  ;;  %1346 = vst [vmem:[%s1782_s13 + $0x28] sm:$0xff] %v1335_v29  }
 0x10b   : > { %v661_v15 = vadd.f32 %v660_v42, %v650_v36  ;;  %v728_v18 = vmul.f32 %v2100_v17, %v1859_v40  ;;  %v911_v23 = vmul.f32 %v2099_v43, %v1925_v14  ;;  %v738_v39 = vadd.f32 %v737_v22, %v727_v51  ;;  %v1958_v42 = vpop.permute.xlu1 %717  ;;  %v2105_v22 = vld [vmem:[#allocation14_spill] sm:$0xff] }
 0x10c   : > { %v921_v27 = vadd.f32 %v920_v32, %v910_v41  ;;  %v949_v30 = vadd.f32 %v948_v12, %v2101_v28  ;;  %v652_v49 = vmul.f32 %v2102_v38, %v1912_v61  ;;  %v1330_v8 = vpack.c.bf16 %v1912_v61, %v1859_v40  ;;  %v2104_v32 = vld [vmem:[#allocation3_spill] sm:$0xff] }
 0x10d   : > { %v662_v10 = vadd.f32 %v661_v15, %v651_v9  ;;  %v729_v36 = vmul.f32 %v2103_v44, %v1912_v61  ;;  %v739_v25 = vadd.f32 %v738_v39, %v728_v18  ;;  %v912_v11 = vmul.f32 %v2102_v38, %v1936_v2  ;;  %v1980_v39 = vpop.permute.xlu0 %863 }
 0x10e   : > { %v922_v20 = vadd.f32 %v921_v27, %v911_v23  ;;  %v730_v7 = vmul.f32 %v1841_v46, %v1867_v62  ;;  %v654_v51 = vmul.f32 %v1883_v55, %v2104_v32  ;;  %1345 = vst [vmem:[%s1782_s13 + $0x20] sm:$0xff] %v1330_v8   ;;  %v814_v26 = vadd.f32 %v813_v1, %v2105_v22  ;;  %v2106_v8 = vld [vmem:[#allocation13_spill] sm:$0xff]  ;;  %v2107_v22 = vld [vmem:[#allocation15_spill] sm:$0xff] }
 0x10f   : > { %v663_v4 = vadd.f32 %v662_v10, %v652_v49  ;;  %v913_v0 = vmul.f32 %v1721_v35, %v1942_v21  ;;  %v1974_v41 = vmul.f32 %v1883_v55, %v1883_v55  ;;  %v740_v12 = vadd.f32 %v739_v25, %v729_v36  ;;  %v1992_v10 = vpop.permute.xlu1 %794 }
 0x110   : > { %v923_v29 = vadd.f32 %v922_v20, %v912_v11  ;;  %v950_v9 = vadd.f32 %v949_v30, %v939_v6  ;;  %v805_v15 = vmul.f32 %v1914_v47, %v1859_v40  ;;  %v815_v18 = vadd.f32 %v814_v26, %v804_v60 }
 0x111   : > { %v664_v43 = vadd.f32 %v663_v4, %v653_v3  ;;  %v807_v23 = vmul.f32 %v1841_v46, %v1921_v31  ;;  %v731_v35 = vmul.f32 %v1883_v55, %v1958_v42  ;;  %v741_v1 = vadd.f32 %v740_v12, %v730_v7  ;;  %v2003_v12 = vpop.permute.xlu0 %867 }
 0x112   : > { %v924_v27 = vadd.f32 %v923_v29, %v913_v0  ;;  %v940_v28 = vmul.f32 %v2100_v17, %v1925_v14  ;;  %v806_v6 = vmul.f32 %v1956_v58, %v1912_v61  ;;  %v816_v3 = vadd.f32 %v815_v18, %v805_v15 }
 0x113   : > { %v665_v38 = vadd.f32 %v664_v43, %v654_v51  ;;  %v914_v60 = vmul.f32 %v2104_v32, %v1974_v41  ;;  %v742_v30 = vadd.f32 %v741_v1, %v731_v35  ;;  %v941_v49 = vmul.f32 %v2103_v44, %v1936_v2  ;;  %v2109_v35 = vld [vmem:[#allocation10_spill] sm:$0xff]  ;;  %v2110_v1 = vld [vmem:[#allocation12_spill] sm:$0xff] }
 0x114   : > { %v974_v36 = vadd.f32 %v973_v45, %v2106_v8  ;;  %v951_v11 = vadd.f32 %v950_v9, %v940_v28  ;;  %v817_v20 = vadd.f32 %v816_v3, %v806_v6  ;;  %v965_v17 = vmul.f32 %v1749_v53, %v1805_v5 }
 0x115   : > { %v666_v25 = vrot.slane %v665_v38, 4  ;;  %v743_v7 = vrot.slane %v742_v30, 4  ;;  %v925_v51 = vadd.f32 %v924_v27, %v914_v60  ;;  %v891_v32 = vadd.f32 %v890_v54, %v2107_v22  ;;  %v2111_v60 = vld [vmem:[#allocation9_spill] sm:$0xff]  ;;  %v872_v22 = vpop.permute.xlu0 %871 }
 0x116   : > { %v975_v4 = vadd.f32 %v974_v36, %v1890_v13  ;;  %v808_v44 = vmul.f32 %v1883_v55, %v1992_v10  ;;  %v818_v0 = vadd.f32 %v817_v20, %v807_v23  ;;  %v966_v45 = vmul.f32 %v1753_v57, %v1851_v19  ;;  %v2108_v13 = vld [vmem:[#allocation7_spill] sm:$0xff] }
 0x117   : > { %v667_v26 = vadd.f32 %v666_v25, %v665_v38  ;;  %v744_v29 = vadd.f32 %v743_v7, %v742_v30  ;;  %v882_v53 = vmul.f32 %v1847_v33, %v1859_v40  ;;  %v892_v9 = vadd.f32 %v891_v32, %v1908_v37  ;;  %v2112_v30 = vld [vmem:[#allocation8_spill] sm:$0xff] }
 0x118   : > { %v976_v43 = vadd.f32 %v975_v4, %v965_v17  ;;  %v991_v54 = vmul.f32 %v2108_v13, %v1824_v59  ;;  %v952_v15 = vadd.f32 %v951_v11, %v941_v49  ;;  %v819_v18 = vadd.f32 %v818_v0, %v808_v44 }
 0x119   : > { %v967_v23 = vmul.f32 %v2110_v1, %v2109_v35  ;;  %v926_v27 = vrot.slane %v925_v51, 4  ;;  %v883_v57 = vmul.f32 %v1980_v39, %v1912_v61  ;;  %v893_v38 = vadd.f32 %v892_v9, %v882_v53 }
 0x11a   : > { %v977_v28 = vadd.f32 %v976_v43, %v966_v45  ;;  %v942_v6 = vmul.f32 %v1867_v62, %v1942_v21  ;;  %v668_v40 = vrot.slane %v667_v26, 2  ;;  %v745_v3 = vrot.slane %v744_v29, 2 }
 0x11b   : > { %v820_v37 = vrot.slane %v819_v18, 4  ;;  %v992_v59 = vmul.f32 %v2112_v30, %v2111_v60  ;;  %v968_v49 = vmul.f32 %v1865_v16, %v1894_v24  ;;  %v894_v36 = vadd.f32 %v893_v38, %v883_v57  ;;  %v2113_v57 = vld [vmem:[#allocation11_spill] sm:$0xff] }
 0x11c   : > { %v978_v8 = vadd.f32 %v977_v28, %v967_v23  ;;  %v1002_v25 = vadd.f32 %v991_v54, %v1875_v34  ;;  %v884_v61 = vmul.f32 %v1841_v46, %v2003_v12  ;;  %v953_v11 = vadd.f32 %v952_v15, %v942_v6 }
 0x11d   : > { %v821_v20 = vadd.f32 %v820_v37, %v819_v18  ;;  %v943_v62 = vmul.f32 %v1958_v42, %v1974_v41  ;;  %v969_v17 = vmul.f32 %v1914_v47, %v1925_v14  ;;  %v927_v4 = vadd.f32 %v926_v27, %v925_v51 }
 0x11e   : > { %v979_v7 = vadd.f32 %v978_v8, %v968_v49  ;;  %v669_v32 = vadd.f32 %v668_v40, %v667_v26  ;;  %v746_v16 = vadd.f32 %v745_v3, %v744_v29  ;;  %v895_v0 = vadd.f32 %v894_v36, %v884_v61 }
 0x11f   : > { %v822_v44 = vrot.slane %v821_v20, 2  ;;  %v993_v34 = vmul.f32 %v1743_v50, %v1821_v48  ;;  %v970_v46 = vmul.f32 %v1956_v58, %v1936_v2  ;;  %v971_v42 = vmul.f32 %v1921_v31, %v1942_v21 }
 0x120   : > { %v980_v45 = vadd.f32 %v979_v7, %v969_v17  ;;  %v954_v43 = vadd.f32 %v953_v11, %v943_v62  ;;  %v1003_v53 = vadd.f32 %v1002_v25, %v992_v59  ;;  %v885_v47 = vmul.f32 %v1883_v55, %v872_v22 }
 0x121   : > { %v823_v51 = vadd.f32 %v822_v44, %v821_v20  ;;  %v928_v26 = vrot.slane %v927_v4, 2  ;;  %v994_v29 = vmul.f32 %v1747_v52, %v1805_v5  ;;  %v670_v13 = vrot.slane %v669_v32, 1 }
 0x122   : > { %v981_v9 = vadd.f32 %v980_v45, %v970_v46  ;;  %v747_v54 = vrot.slane %v746_v16, 1  ;;  %v1004_v48 = vadd.f32 %v1003_v53, %v993_v34  ;;  %v896_v50 = vadd.f32 %v895_v0, %v885_v47 }
 0x123   : > { %v972_v58 = vmul.f32 %v1992_v10, %v1974_v41  ;;  %v955_v18 = vrot.slane %v954_v43, 4  ;;  %v995_v31 = vmul.f32 %v1751_v56, %v1851_v19  ;;  %v824_v23 = vrot.slane %v823_v51, 1 }
 0x124   : > { %v982_v15 = vadd.f32 %v981_v9, %v971_v42  ;;  %v1005_v1 = vadd.f32 %v1004_v48, %v994_v29  ;;  %v897_v55 = vrot.slane %v896_v50, 4  ;;  %v929_v28 = vadd.f32 %v928_v26, %v927_v4 }
 0x125   : > { %v996_v52 = vmul.f32 %v2113_v57, %v2109_v35  ;;  %v671_v5 = vadd.f32 %v670_v13, %v669_v32  ;;  %v748_v38 = vadd.f32 %v747_v54, %v746_v16  ;;  %v956_v10 = vadd.f32 %v955_v18, %v954_v43 }
 0x126   : > { %v983_v27 = vadd.f32 %v982_v15, %v972_v58  ;;  %v1006_v6 = vadd.f32 %v1005_v1, %v995_v31  ;;  %v898_v40 = vadd.f32 %v897_v55, %v896_v50  ;;  %v997_v37 = vmul.f32 %v1817_v63, %v1894_v24 }
 0x127   : > { %v825_v19 = vadd.f32 %v824_v23, %v823_v51  ;;  %v930_v30 = vrot.slane %v929_v28, 1  ;;  %v1020_v59 = vsel %vm1019_vm0, %v671_v5, %v748_v38  ;;  %v998_v49 = vmul.f32 %v1847_v33, %v1925_v14 }
 0x128   : > { %v984_v3 = vrot.slane %v983_v27, 4  ;;  %v1007_v60 = vadd.f32 %v1006_v6, %v996_v52  ;;  %v899_v56 = vrot.slane %v898_v40, 2  ;;  %v957_v25 = vrot.slane %v956_v10, 2 }
 0x129   : > { %v999_v61 = vmul.f32 %v1980_v39, %v1936_v2  ;;  %v1022_v63 = vsel %vm1021_vm1, %v1020_v59, %v825_v19  ;;  %v931_v24 = vadd.f32 %v930_v30, %v929_v28  ;;  %v1000_v62 = vmul.f32 %v2003_v12, %v1942_v21 }
 0x12a   : > { %v1008_v35 = vadd.f32 %v1007_v60, %v997_v37  ;;  %v900_v8 = vadd.f32 %v899_v56, %v898_v40  ;;  %v985_v36 = vadd.f32 %v984_v3, %v983_v27  ;;  %v958_v7 = vadd.f32 %v957_v25, %v956_v10 }
 0x12b   : > { %v1001_v32 = vmul.f32 %v872_v22, %v1974_v41 }
 0x12c   : > { %v1009_v11 = vadd.f32 %v1008_v35, %v998_v49  ;;  %v901_v20 = vrot.slane %v900_v8, 1  ;;  %v986_v14 = vrot.slane %v985_v36, 2  ;;  %v959_v0 = vrot.slane %v958_v7, 1 }
 0x12e   : > { %v1010_v17 = vadd.f32 %v1009_v11, %v999_v61  ;;  %v902_v33 = vadd.f32 %v901_v20, %v900_v8  ;;  %v987_v44 = vadd.f32 %v986_v14, %v985_v36  ;;  %v960_v21 = vadd.f32 %v959_v0, %v958_v7 }
 0x130   : > { %v1011_v4 = vadd.f32 %v1010_v17, %v1000_v62  ;;  %v1024_v16 = vsel %vm1023_vm2, %v1022_v63, %v902_v33  ;;  %v988_v45 = vrot.slane %v987_v44, 1 }
 0x131   : > { %v1026_v2 = vsel %vm1025_vm3, %v1024_v16, %v931_v24 }
 0x132   : > { %v1012_v39 = vadd.f32 %v1011_v4, %v1001_v32  ;;  %v1028_v43 = vsel %vm1027_vm4, %v1026_v2, %v960_v21  ;;  %v989_v53 = vadd.f32 %v988_v45, %v987_v44 }
 0x134   : > { %v1013_v34 = vrot.slane %v1012_v39, 4  ;;  %v1030_v41 = vsel %vm1029_vm5, %v1028_v43, %v989_v53 }
 0x136   : > { %v1014_v46 = vadd.f32 %v1013_v34, %v1012_v39 }
 0x138   : > { %v1015_v12 = vrot.slane %v1014_v46, 2 }
 0x13a   : > { %v1016_v42 = vadd.f32 %v1015_v12, %v1014_v46 }
 0x13c   : > { %v1017_v47 = vrot.slane %v1016_v42, 1 }
 0x13e   : > { %v1018_v22 = vadd.f32 %v1017_v47, %v1016_v42 }
 0x140   : > { %v1032_v51 = vsel %vm1031_vm6, %v1030_v41, %v1018_v22 }
 0x141   : > { %1033 = vst [vmem:[%s332_s16] sm:$0xff] %v1032_v51 }
 0x142 PF: > { %s17_s23 = sadd.s32 1, %s1475_s23   ;;  %s2114_s21 = smov %s1471_s22 }
 0x143   : > { %p14_p6 = scmp.ge.s32.totalorder %s17_s23, 4   ;;  %s2115_s22 = smov %s2117_s24 }
 0x145   :  { %16 = sbr.rel (!%p14_p6) target bundleno = 2 (0x2), region = 88 }

// kernel: tile.73
= control target key start
LH: loop header
LB: loop body
LE: loop exit
PB: predicated region body
PF: predicated region fallthrough
CT: control target
= control target key end

     0   :  { %s22_s0 = inlined_call_operand.vmem [shape: f32[8], index: 0, kind: input, shape index: {}]   ;;  %s23_s1 = inlined_call_operand.vmem [shape: f32[4,8], index: 1, kind: output, shape index: {}]  }
   0x1   :  { %v4_v0 = vld [vmem:[%s22_s0] ss:$0 sm:$0xff] }
   0x2   :  { %5 = vst [vmem:[%s23_s1] sm:$0xf] %v4_v0 }

// kernel: tile.74
= control target key start
LH: loop header
LB: loop body
LE: loop exit
PB: predicated region body
PF: predicated region fallthrough
CT: control target
= control target key end

     0   :  { %vm8_vm0 = vcmask 64512   ;;  %s40_s8 = smov 8   ;;  %s41_s9 = smov 16   ;;  %vm14_vm1 = vcmask 261312   ;;  %vm20_vm2 = vcmask 195712   ;;  %vm26_vm3 = vcmask 130112   ;;  %s58_s0 = inlined_call_operand.vmem [shape: f32[4,8], index: 0, kind: input, shape index: {}]   ;;  %s59_s1 = inlined_call_operand.vmem [shape: f32[32], index: 1, kind: output, shape index: {}]  }
   0x1   :  { %v5_v0 = vld [vmem:[%s58_s0] sm:$0xf]  ;;  %s39_s0 = smov 24  }
   0x2   :  { %6 = vst [vmem:[#allocation1] sm:$0xf] %v5_v0 }
   0x9   :  { %v11_v1 = vld [vmem:[#allocation1 + $0x3] sm:$0x1]   ;;  %v23_v2 = vld [vmem:[#allocation1 + $0x1] sm:$0x1]   ;;  %v7_v3 = vld [vmem:[#allocation1] sm:$0x1]  }
   0xa   :  { %12 = vrot.lane.b32.xlu0 %v11_v1, %s39_s0  ;;  %24 = vrot.lane.b32.xlu1 %v23_v2, %s40_s8  ;;  %v17_v4 = vld [vmem:[#allocation1 + $0x2] sm:$0x1]   ;;  %9 = vst.msk [vmem:[#allocation0] sm:$0x1] %vm8_vm0, %v7_v3  }
   0xe   :  { %18 = vrot.lane.b32.xlu0 %v17_v4, %s41_s9 }
  0x7c   :  { %v13_v5 = vpop.permute.xlu0 %12   ;;  %v25_v6 = vpop.permute.xlu1 %24  }
  0x7d   :  { %15 = vst.msk [vmem:[#allocation0] sm:$0x1] %vm14_vm1, %v13_v5  }
  0x80   :  { %v19_v7 = vpop.permute.xlu0 %18  }
  0x81   :  { %21 = vst.msk [vmem:[#allocation0] sm:$0x1] %vm20_vm2, %v19_v7  }
  0x82   :  { %27 = vst.msk [vmem:[#allocation0] sm:$0x1] %vm26_vm3, %v25_v6  }
  0x89   :  { %v32_v8 = vld [vmem:[#allocation0] sm:$0x1] }
  0x8a   :  { %35 = vst [vmem:[%s59_s1] sm:$0x1] %v32_v8 }

// kernel: generator_forward.8
= control target key start
LH: loop header
LB: loop body
LE: loop exit
PB: predicated region body
PF: predicated region fallthrough
CT: control target
= control target key end

     0   :  { %s3090_s21 = smov 0   ;;  %s3092_s22 = smov 0   ;;  %s4617_s0 = inlined_call_operand.vmem [shape: f32[1,128], index: 0, kind: input, shape index: {}]   ;;  %s4618_s1 = inlined_call_operand.vmem [shape: f32[1,128], index: 1, kind: input, shape index: {}]   ;;  %s4619_s2 = inlined_call_operand.vmem [shape: f32[608,4], index: 2, kind: input, shape index: {}]   ;;  %s4620_s3 = inlined_call_operand.vmem [shape: bf16[608,128], index: 3, kind: input, shape index: {}]   ;;  %s4621_s4 = inlined_call_operand.vmem [shape: bf16[128,128], index: 4, kind: input, shape index: {}]   ;;  %s4622_s5 = inlined_call_operand.vmem [shape: bf16[608,128], index: 5, kind: output, shape index: {0}]   ;;  %s4623_s6 = inlined_call_operand.vmem [shape: f32[2,8,128], index: 6, kind: output, shape index: {1}]  }
   0x1   :  { %s3094_s23 = smov 0  }
   0x2 LB: > { %s29_s24 = sadd.s32 1, %s3043_s22  ;;  %p2529_p0 = scmp.ge.s32.totalorder %s3047_s23, 1  ;;  %s3047_s23 = sphi %s3094_s23, %s17_s23   ;;  %s3043_s22 = sphi %s3092_s22, %s5111_s22   ;;  %s3039_s21 = sphi %s3090_s21, %s5110_s21  }
   0x3   : > { %p31_p1 = scmp.ge.s32.totalorder %s29_s24, 2  ;;  %p252_p2 = scmp.lt.s32.totalorder %s3047_s23, 3 }
   0x5   : > { %s5113_s24 = smov (%p31_p1, %s29_s24), 0  ;;  %p253_p3 = pnand %p2529_p0, %p252_p2 }
   0x7   : > { %256 = sbr.rel (%p253_p3) target bundleno = 484 (0x1e4), region = 40 }
   0xc   : > { %v3003_v0 = vld [vmem:[%s4621_s4 + $0x38] sm:$0xff]   ;;  %v3049_v1 = vmov 0.0   ;;  %v3004_v2 = vld [vmem:[%s4621_s4 + $0x30] sm:$0xff]   ;;  %s301_s29 = smul.u32 38, %s3039_s21  ;;  %v3050_v3 = vmov 0   ;;  %vm3051_vm0 = vmmov 0  }
   0xd   : > { %2856 = vmatprep.subr.bf16.mxu0 %v3049_v1  ;;  %2948 = vmatprep.subr.bf16.mxu1 %v3049_v1  ;;  %v3005_v4 = vld [vmem:[%s4621_s4 + $0x28] sm:$0xff]   ;;  %v3006_v7 = vld [vmem:[%s4621_s4 + $0x20] sm:$0xff]   ;;  %v3007_v10 = vld [vmem:[%s4621_s4 + $0x18] sm:$0xff]   ;;  %p326_p5 = scmp.lt.s32.totalorder %s3039_s21, 1  ;;  %vm2176_vm1 = vcmask 1040384   ;;  %vm2178_vm2 = vcmask 1041408  }
   0xe   : > { %2857 = vmatpush3.bf16.msra.mxu0 %v3003_v0  ;;  %2956 = vmatpush3.bf16.msra.mxu1 %v3003_v0  ;;  %p302_p4 = scmp.lt.s32.totalorder %s301_s29, 75  ;;  %v3172_v12 = vld [vmem:[%s4617_s0] ss:$0 sm:$0xff]  ;;  %v3008_v25 = vld [vmem:[%s4621_s4 + $0x10] sm:$0xff]   ;;  %v3009_v38 = vld [vmem:[%s4621_s4 + $0x8] sm:$0xff]   ;;  %vm2180_vm3 = vcmask 1042432  }
   0xf   : > { %2858 = vmatprep.subr.bf16.mxu0 %v3049_v1  ;;  %2949 = vmatprep.subr.bf16.mxu1 %v3049_v1  ;;  %v3191_v23 = vld [vmem:[%s4618_s1] ss:$0 sm:$0xff]  ;;  %s5117_s21 = smov (!%p326_p5, %s3039_s21), 1  ;;  %vm2182_vm4 = vcmask 1043456   ;;  %vm2184_vm5 = vcmask 1044480   ;;  %vm2186_vm6 = vcmask 1045504  }
  0x10   : > { %2995 = vset.pattern.permute.xlu1 %v3050_v3  ;;  %2994 = vset.pattern.permute.xlu0 %v3050_v3  ;;  %s5115_s29 = smov (!%p302_p4, %s301_s29), 75  ;;  %v3010_v50 = vld [vmem:[%s4621_s4] sm:$0xff]   ;;  %vm2188_vm7 = vcmask 1046528  }
  0x11   : > { %2872 = vmatprep.mubr.msk.bf16.mxu0 %vm3051_vm0, %v3049_v1  ;;  %2912 = vmatprep.mubr.msk.bf16.mxu1 %vm3051_vm0, %v3049_v1  ;;  %s2530_s8 = sshll.u32 %s5115_s29, 3  ;;  %s2531_s9 = sshll.u32 %s5115_s29, 2 }
  0x12   : > { %2859 = vmatpush3.bf16.msra.mxu0 %v3004_v2  ;;  %2957 = vmatpush3.bf16.msra.mxu1 %v3004_v2  ;;  %s3137_s12 = scalar_lea.vmem %s4619_s2, %s2530_s8  ;;  %s3155_s17 = scalar_lea.vmem %s4620_s3, %s2531_s9 }
  0x13   : > { %2860 = vmatprep.subr.bf16.mxu0 %v3049_v1  ;;  %2950 = vmatprep.subr.bf16.mxu1 %v3049_v1  ;;  %v3140_v5 = vld [vmem:[%s3137_s12 + $0x10] sm:$0xff]  ;;  %v3143_v6 = vld [vmem:[%s3137_s12] sm:$0xff]  ;;  %v3158_v8 = vld [vmem:[%s3137_s12 + $0x18] sm:$0xff]  ;;  %s3656_s15 = scalar_lea.vmem %s4622_s5, %s2531_s9  ;;  %s2533_s29 = sshll.u32 %s5117_s21, 3 }
  0x14   : > { %894 = vperm.xlu1 %2995, %v3140_v5   ;;  %884 = vperm.xlu0 %2994, %v3143_v6   ;;  %v3161_v9 = vld [vmem:[%s3137_s12 + $0x8] sm:$0xff]  ;;  %v2623_v11 = vld [vmem:[%s3155_s17] sm:$0xff]   ;;  %v2802_v15 = vld [vmem:[%s3155_s17 + $0x50] sm:$0xff]   ;;  %s332_s16 = scalar_lea.vmem %s4623_s6, %s2533_s29 }
  0x15   : > { %v2624_v13 = vunpack.c.l.bf16 %v2623_v11  ;;  %v2625_v14 = vunpack.c.h.bf16 %v2623_v11  ;;  %v3178_v16 = vld [vmem:[%s3137_s12 + $0x28] sm:$0xff]  ;;  %v3181_v17 = vld [vmem:[%s3137_s12 + $0x20] sm:$0xff]  ;;  %v2664_v18 = vunpack.c.l.bf16 %v2802_v15  ;;  %v2665_v19 = vunpack.c.h.bf16 %v2802_v15  ;;  %v2803_v24 = vld [vmem:[%s3155_s17 + $0x58] sm:$0xff]  }
  0x16   : > { %2861 = vmatpush3.bf16.msra.mxu0 %v3005_v4  ;;  %2958 = vmatpush3.bf16.msra.mxu1 %v3005_v4  ;;  %v2793_v20 = vld [vmem:[%s3155_s17 + $0x8] sm:$0xff]   ;;  %v3202_v29 = vld [vmem:[%s3137_s12 + $0x38] sm:$0xff]  ;;  %v3205_v30 = vld [vmem:[%s3137_s12 + $0x30] sm:$0xff]  ;;  %v2668_v34 = vunpack.c.l.bf16 %v2803_v24  ;;  %v2669_v37 = vunpack.c.h.bf16 %v2803_v24 }
  0x17   : > { %2862 = vmatprep.subr.bf16.mxu0 %v3049_v1  ;;  %2951 = vmatprep.subr.bf16.mxu1 %v3049_v1  ;;  %v417_v21 = vmul.f32 %v2624_v13, %v3172_v12  ;;  %v418_v22 = vmul.f32 %v2625_v14, %v3172_v12  ;;  %v437_v26 = vmul.f32 %v2664_v18, %v3172_v12  ;;  %v2628_v28 = vunpack.c.l.bf16 %v2793_v20  ;;  %v3220_v40 = vld [vmem:[%s3137_s12 + $0x48] sm:$0xff]  ;;  %v3223_v41 = vld [vmem:[%s3137_s12 + $0x40] sm:$0xff]  ;;  %v2794_v46 = vld [vmem:[%s3155_s17 + $0x10] sm:$0xff]  }
  0x18   : > { %899 = vperm.xlu1 %2995, %v3158_v8   ;;  %889 = vperm.xlu0 %2994, %v3161_v9   ;;  %v438_v27 = vmul.f32 %v2665_v19, %v3172_v12  ;;  %v2629_v33 = vunpack.c.h.bf16 %v2793_v20  ;;  %v439_v45 = vmul.f32 %v2668_v34, %v3172_v12  ;;  %v440_v49 = vmul.f32 %v2669_v37, %v3172_v12  ;;  %v2804_v51 = vld [vmem:[%s3155_s17 + $0x60] sm:$0xff]   ;;  %v3239_v54 = vld [vmem:[%s3137_s12 + $0x58] sm:$0xff]  ;;  %v3242_v55 = vld [vmem:[%s3137_s12 + $0x50] sm:$0xff] }
  0x19   : > { %v462_v31 = vadd.f32 %v3191_v23, %v417_v21  ;;  %v463_v32 = vadd.f32 %v3191_v23, %v418_v22  ;;  %v482_v35 = vadd.f32 %v3191_v23, %v437_v26  ;;  %v419_v39 = vmul.f32 %v2628_v28, %v3172_v12  ;;  %v2795_v0 = vld [vmem:[%s3155_s17 + $0x18] sm:$0xff]   ;;  %v2805_v4 = vld [vmem:[%s3155_s17 + $0x68] sm:$0xff]  }
  0x1a   : > { %2863 = vmatpush3.bf16.msra.mxu0 %v3006_v7  ;;  %2959 = vmatpush3.bf16.msra.mxu1 %v3006_v7  ;;  %v483_v36 = vadd.f32 %v3191_v23, %v438_v27  ;;  %v420_v44 = vmul.f32 %v2629_v33, %v3172_v12  ;;  %v2632_v53 = vunpack.c.l.bf16 %v2794_v46  ;;  %v484_v58 = vadd.f32 %v3191_v23, %v439_v45  ;;  %v3255_v7 = vld [vmem:[%s3137_s12 + $0x68] sm:$0xff]  ;;  %v3271_v26 = vld [vmem:[%s3137_s12 + $0x78] sm:$0xff]  ;;  %v3274_v27 = vld [vmem:[%s3137_s12 + $0x70] sm:$0xff] }
  0x1b   : > { %2864 = vmatprep.subr.bf16.mxu0 %v3049_v1  ;;  %2952 = vmatprep.subr.bf16.mxu1 %v3049_v1  ;;  %v500_v42 = vmax.f32 %v462_v31, 0.0  ;;  %v501_v43 = vmax.f32 %v463_v32, 0.0  ;;  %v520_v47 = vmax.f32 %v482_v35, 0.0  ;;  %v464_v52 = vadd.f32 %v3191_v23, %v419_v39 }
  0x1c   : > { %909 = vperm.xlu1 %2995, %v3178_v16   ;;  %904 = vperm.xlu0 %2994, %v3181_v17   ;;  %v521_v48 = vmax.f32 %v483_v36, 0.0  ;;  %v465_v57 = vadd.f32 %v3191_v23, %v420_v44  ;;  %v2633_v59 = vunpack.c.h.bf16 %v2794_v46  ;;  %v485_v61 = vadd.f32 %v3191_v23, %v440_v49  ;;  %v3290_v44 = vld [vmem:[%s3137_s12 + $0x80] sm:$0xff] }
  0x1d   : > { %v538_v56 = vpack.c.bf16 %v501_v43, %v500_v42  ;;  %v2672_v62 = vunpack.c.l.bf16 %v2804_v51  ;;  %v2673_v63 = vunpack.c.h.bf16 %v2804_v51  ;;  %v502_v2 = vmax.f32 %v464_v52, 0.0  ;;  %v3287_v43 = vld [vmem:[%s3137_s12 + $0x88] sm:$0xff] }
  0x1e   : > { %2865 = vmatpush3.bf16.msra.mxu0 %v3007_v10  ;;  %2960 = vmatpush3.bf16.msra.mxu1 %v3007_v10  ;;  %v548_v60 = vpack.c.bf16 %v521_v48, %v520_v47  ;;  %v421_v3 = vmul.f32 %v2632_v53, %v3172_v12  ;;  %v3258_v10 = vld [vmem:[%s3137_s12 + $0x60] sm:$0xff]  ;;  %v503_v11 = vmax.f32 %v465_v57, 0.0  ;;  %v522_v13 = vmax.f32 %v484_v58, 0.0  ;;  %v2806_v48 = vld [vmem:[%s3155_s17 + $0x70] sm:$0xff]  }
  0x1f   : > { %2866 = vmatprep.subr.bf16.mxu0 %v3049_v1  ;;  %2953 = vmatprep.subr.bf16.mxu1 %v3049_v1  ;;  %v422_v14 = vmul.f32 %v2633_v59, %v3172_v12  ;;  %v2636_v15 = vunpack.c.l.bf16 %v2795_v0  ;;  %v523_v18 = vmax.f32 %v485_v61, 0.0  ;;  %v441_v19 = vmul.f32 %v2672_v62, %v3172_v12  ;;  %v3305_v59 = vld [vmem:[%s3137_s12 + $0x98] sm:$0xff] }
  0x20   : > { %919 = vperm.xlu1 %2995, %v3202_v29   ;;  %914 = vperm.xlu0 %2994, %v3205_v30   ;;  %v442_v20 = vmul.f32 %v2673_v63, %v3172_v12  ;;  %v2637_v21 = vunpack.c.h.bf16 %v2795_v0  ;;  %v2676_v22 = vunpack.c.l.bf16 %v2805_v4  ;;  %v2677_v24 = vunpack.c.h.bf16 %v2805_v4  ;;  %v2797_v63 = vld [vmem:[%s3155_s17 + $0x28] sm:$0xff]  }
  0x21   : > { %v539_v28 = vpack.c.bf16 %v503_v11, %v502_v2  ;;  %v466_v31 = vadd.f32 %v3191_v23, %v421_v3  ;;  %v467_v32 = vadd.f32 %v3191_v23, %v422_v14  ;;  %v423_v33 = vmul.f32 %v2636_v15, %v3172_v12  ;;  %v2800_v11 = vld [vmem:[%s3155_s17 + $0x40] sm:$0xff]  }
  0x22   : > { %2867 = vmatpush3.bf16.msra.mxu0 %v3008_v25  ;;  %2961 = vmatpush3.bf16.msra.mxu1 %v3008_v25  ;;  %v2796_v25 = vld [vmem:[%s3155_s17 + $0x20] sm:$0xff]   ;;  %v549_v34 = vpack.c.bf16 %v523_v18, %v522_v13  ;;  %v486_v35 = vadd.f32 %v3191_v23, %v441_v19  ;;  %v487_v36 = vadd.f32 %v3191_v23, %v442_v20  ;;  %v2680_v58 = vunpack.c.l.bf16 %v2806_v48  ;;  %v3319_v18 = vld [vmem:[%s3137_s12 + $0xa8] sm:$0xff] }
  0x23   : > { %2868 = vmatprep.subr.bf16.mxu0 %v3049_v1  ;;  %2954 = vmatprep.subr.bf16.mxu1 %v3049_v1  ;;  %v424_v37 = vmul.f32 %v2637_v21, %v3172_v12  ;;  %v444_v39 = vmul.f32 %v2677_v24, %v3172_v12  ;;  %v2640_v42 = vunpack.c.l.bf16 %v2796_v25  ;;  %v504_v45 = vmax.f32 %v466_v31, 0.0  ;;  %v3323_v21 = vld [vmem:[%s3137_s12 + $0xa0] sm:$0xff] }
  0x24   : > { %929 = vperm.xlu1 %2995, %v3220_v40   ;;  %924 = vperm.xlu0 %2994, %v3223_v41   ;;  %v505_v46 = vmax.f32 %v467_v32, 0.0  ;;  %v468_v47 = vadd.f32 %v3191_v23, %v423_v33  ;;  %v524_v49 = vmax.f32 %v486_v35, 0.0  ;;  %v2641_v52 = vunpack.c.h.bf16 %v2796_v25  ;;  %v2810_v25 = vld [vmem:[%s3155_s17 + $0x90] sm:$0xff]  }
  0x25   : > { %v469_v51 = vadd.f32 %v3191_v23, %v424_v37  ;;  %v425_v57 = vmul.f32 %v2640_v42, %v3172_v12  ;;  %v2681_v4 = vunpack.c.h.bf16 %v2806_v48  ;;  %v445_v19 = vmul.f32 %v2680_v58, %v3172_v12  ;;  %v3346_v48 = vld [vmem:[%s3137_s12 + $0xb0] sm:$0xff] }
  0x26   : > { %2869 = vmatpush3.bf16.msra.mxu0 %v3009_v38  ;;  %2962 = vmatpush3.bf16.msra.mxu1 %v3009_v38  ;;  %v443_v38 = vmul.f32 %v2676_v22, %v3172_v12  ;;  %v540_v61 = vpack.c.bf16 %v505_v46, %v504_v45  ;;  %v506_v62 = vmax.f32 %v468_v47, 0.0  ;;  %v426_v3 = vmul.f32 %v2641_v52, %v3172_v12  ;;  %v2807_v22 = vld [vmem:[%s3155_s17 + $0x78] sm:$0xff]  }
  0x27   : > { %2870 = vmatprep.subr.bf16.mxu0 %v3049_v1  ;;  %2955 = vmatprep.subr.bf16.mxu1 %v3049_v1  ;;  %v507_v2 = vmax.f32 %v469_v51, 0.0  ;;  %v3314_v15 = vadd.f32 %v3191_v23, %v425_v57  ;;  %v2644_v20 = vunpack.c.l.bf16 %v2797_v63  ;;  %v2656_v24 = vunpack.c.l.bf16 %v2800_v11  ;;  %v3343_v47 = vld [vmem:[%s3137_s12 + $0xb8] sm:$0xff]  ;;  %4793 = vst [vmem:[#allocation2_spill] sm:$0xff] %v3346_v48 }
  0x28   : > { %939 = vperm.xlu1 %2995, %v3239_v54   ;;  %934 = vperm.xlu0 %2994, %v3242_v55   ;;  %v488_v53 = vadd.f32 %v3191_v23, %v443_v38  ;;  %v3328_v31 = vadd.f32 %v3191_v23, %v426_v3  ;;  %v446_v32 = vmul.f32 %v2681_v4, %v3172_v12  ;;  %v2645_v33 = vunpack.c.h.bf16 %v2797_v63  ;;  %v2801_v38 = vld [vmem:[%s3155_s17 + $0x48] sm:$0xff]  }
  0x29   : > { %v508_v35 = vmax.f32 %v3314_v15, 0.0  ;;  %v433_v37 = vmul.f32 %v2656_v24, %v3172_v12  ;;  %v427_v42 = vmul.f32 %v2644_v20, %v3172_v12  ;;  %v2684_v45 = vunpack.c.l.bf16 %v2807_v22 }
  0x2a   : > { %2871 = vmatpush3.bf16.msra.mxu0 %v3010_v50  ;;  %2963 = vmatpush3.bf16.msra.mxu1 %v3010_v50  ;;  %v525_v50 = vmax.f32 %v487_v36, 0.0  ;;  %v526_v13 = vmax.f32 %v488_v53, 0.0  ;;  %v2657_v36 = vunpack.c.h.bf16 %v2800_v11  ;;  %v2696_v46 = vunpack.c.l.bf16 %v2810_v25 }
  0x2b   : > { %v478_v51 = vadd.f32 %v3191_v23, %v433_v37  ;;  %v2697_v52 = vunpack.c.h.bf16 %v2810_v25  ;;  %v491_v53 = vadd.f32 %v3191_v23, %v446_v32  ;;  %v2660_v58 = vunpack.c.l.bf16 %v2801_v38  ;;  %v2808_v37 = vld [vmem:[%s3155_s17 + $0x80] sm:$0xff]  }
  0x2c   : > { %949 = vperm.xlu1 %2995, %v3255_v7   ;;  %944 = vperm.xlu0 %2994, %v3258_v10   ;;  %v550_v0 = vpack.c.bf16 %v525_v50, %v524_v49  ;;  %v2685_v49 = vunpack.c.h.bf16 %v2807_v22  ;;  %v434_v50 = vmul.f32 %v2657_v36, %v3172_v12  ;;  %v453_v57 = vmul.f32 %v2696_v46, %v3172_v12 }
  0x2d   : > { %2873 = vmatmul.mubr.bf16.vlgmr.msra.gmra.mxu0 %v538_v56  ;;  %2913 = vmatmul.mubr.bf16.vlgmr.msra.gmra.mxu1 %v548_v60  ;;  %v489_v56 = vadd.f32 %v3191_v23, %v444_v39  ;;  %v3308_v60 = vld [vmem:[%s3137_s12 + $0x90] sm:$0xff]  ;;  %v490_v39 = vadd.f32 %v3191_v23, %v445_v19  ;;  %v454_v63 = vmul.f32 %v2697_v52, %v3172_v12 }
  0x2e   : > { %2876 = vmatprep.mubr.msk.bf16.mxu0 %vm3051_vm0, %v3049_v1  ;;  %2916 = vmatprep.mubr.msk.bf16.mxu1 %vm3051_vm0, %v3049_v1  ;;  %v447_v3 = vmul.f32 %v2684_v45, %v3172_v12  ;;  %v498_v4 = vadd.f32 %v3191_v23, %v453_v57  ;;  %v435_v11 = vmul.f32 %v2660_v58, %v3172_v12  ;;  %v2798_v19 = vld [vmem:[%s3155_s17 + $0x30] sm:$0xff]  }
  0x2f   : > { %v527_v14 = vmax.f32 %v489_v56, 0.0  ;;  %v428_v56 = vmul.f32 %v2645_v33, %v3172_v12  ;;  %v448_v15 = vmul.f32 %v2685_v49, %v3172_v12  ;;  %v499_v22 = vadd.f32 %v3191_v23, %v454_v63 }
  0x30   : > { %959 = vperm.xlu1 %2995, %v3271_v26   ;;  %954 = vperm.xlu0 %2994, %v3274_v27   ;;  %v528_v25 = vmax.f32 %v490_v39, 0.0  ;;  %v536_v32 = vmax.f32 %v498_v4, 0.0  ;;  %v480_v33 = vadd.f32 %v3191_v23, %v435_v11  ;;  %v472_v36 = vadd.f32 %v3191_v23, %v427_v42  ;;  %v3389_v42 = vld [vmem:[%s3137_s12 + $0xd0] sm:$0xff]  ;;  %v3400_v11 = vld [vmem:[%s3137_s12 + $0xe8] sm:$0xff] }
  0x31   : > { %v473_v39 = vadd.f32 %v3191_v23, %v428_v56  ;;  %v492_v45 = vadd.f32 %v3191_v23, %v447_v3  ;;  %v2648_v46 = vunpack.c.l.bf16 %v2798_v19  ;;  %4795 = vst [vmem:[#allocation4_spill] sm:$0xff] %v3389_v42  ;;  %v2649_v52 = vunpack.c.h.bf16 %v2798_v19 }
  0x32   : > { %v518_v49 = vmax.f32 %v480_v33, 0.0  ;;  %v2689_v56 = vunpack.c.h.bf16 %v2808_v37  ;;  %v3418_v33 = vld [vmem:[%s3137_s12 + $0xf8] sm:$0xff] }
  0x33   : > { %v511_v3 = vmax.f32 %v473_v39, 0.0  ;;  %v429_v4 = vmul.f32 %v2648_v46, %v3172_v12  ;;  %v430_v19 = vmul.f32 %v2649_v52, %v3172_v12  ;;  %v3429_v52 = vld [vmem:[%s3137_s12 + $0x108] sm:$0xff] }
  0x34   : > { %969 = vperm.xlu1 %2995, %v3287_v43   ;;  %964 = vperm.xlu0 %2994, %v3290_v44  }
  0x35   : > { %2877 = vmatmul.mubr.bf16.gmra.mxu0 %v539_v28  ;;  %2917 = vmatmul.mubr.bf16.gmra.mxu1 %v549_v34  ;;  %v541_v28 = vpack.c.bf16 %v507_v2, %v506_v62  ;;  %v551_v34 = vpack.c.bf16 %v527_v14, %v526_v13  ;;  %v516_v62 = vmax.f32 %v478_v51, 0.0  ;;  %v509_v2 = vmax.f32 %v3328_v31, 0.0  ;;  %v3362_v13 = vld [vmem:[%s3137_s12 + $0xc8] sm:$0xff]  ;;  %v3365_v14 = vld [vmem:[%s3137_s12 + $0xc0] sm:$0xff] }
  0x36   : > { %2880 = vmatprep.mubr.msk.bf16.mxu0 %vm3051_vm0, %v3049_v1  ;;  %2920 = vmatprep.mubr.msk.bf16.mxu1 %vm3051_vm0, %v3049_v1  ;;  %4794 = vst [vmem:[#allocation3_spill] sm:$0xff] %v3365_v14  ;;  %v529_v31 = vmax.f32 %v491_v53, 0.0  ;;  %v493_v51 = vadd.f32 %v3191_v23, %v448_v15  ;;  %v3403_v15 = vld [vmem:[%s3137_s12 + $0xe0] sm:$0xff] }
  0x37   : > { %v542_v58 = vpack.c.bf16 %v509_v2, %v508_v35  ;;  %4796 = vst [vmem:[#allocation5_spill] sm:$0xff] %v3403_v15  ;;  %v530_v35 = vmax.f32 %v492_v45, 0.0 }
  0x38   : > { %979 = vperm.xlu1 %2995, %v3305_v59   ;;  %974 = vperm.xlu0 %2994, %v3308_v60   ;;  %v531_v2 = vmax.f32 %v493_v51, 0.0 }
  0x3c   : > { %989 = vperm.xlu1 %2995, %v3319_v18   ;;  %984 = vperm.xlu0 %2994, %v3323_v21  }
  0x3d   : > { %2881 = vmatmul.mubr.bf16.gmra.mxu0 %v540_v61  ;;  %2921 = vmatmul.mubr.bf16.gmra.mxu1 %v550_v0  ;;  %v479_v61 = vadd.f32 %v3191_v23, %v434_v50  ;;  %v2661_v0 = vunpack.c.h.bf16 %v2801_v38  ;;  %v3386_v50 = vld [vmem:[%s3137_s12 + $0xd8] sm:$0xff] }
  0x3e   : > { %2884 = vmatprep.mubr.msk.bf16.mxu0 %vm3051_vm0, %v3049_v1  ;;  %2924 = vmatprep.mubr.msk.bf16.mxu1 %vm3051_vm0, %v3049_v1 }
  0x3f   : > { %v517_v20 = vmax.f32 %v479_v61, 0.0  ;;  %v436_v24 = vmul.f32 %v2661_v0, %v3172_v12  ;;  %v552_v61 = vpack.c.bf16 %v529_v31, %v528_v25  ;;  %v510_v0 = vmax.f32 %v472_v36, 0.0  ;;  %v2809_v25 = vld [vmem:[%s3155_s17 + $0x88] sm:$0xff]   ;;  %v3421_v36 = vld [vmem:[%s3137_s12 + $0xf0] sm:$0xff] }
  0x40   : > { %999 = vperm.xlu1 %2995, %v3343_v47   ;;  %994 = vperm.xlu0 %2994, %v3346_v48   ;;  %4797 = vst [vmem:[#allocation6_spill] sm:$0xff] %v3421_v36  ;;  %v2693_v51 = vunpack.c.h.bf16 %v2809_v25 }
  0x41   : > { %v3378_v38 = vpack.c.bf16 %v517_v20, %v516_v62  ;;  %v2688_v62 = vunpack.c.l.bf16 %v2808_v37  ;;  %v543_v31 = vpack.c.bf16 %v511_v3, %v510_v0  ;;  %v553_v37 = vpack.c.bf16 %v531_v2, %v530_v35  ;;  %v3445_v2 = vld [vmem:[%s3137_s12 + $0x118] sm:$0xff] }
  0x42   : > { %v452_v35 = vmul.f32 %v2693_v51, %v3172_v12 }
  0x43   : > { %v449_v20 = vmul.f32 %v2688_v62, %v3172_v12 }
  0x44   : > { %1009 = vperm.xlu1 %2995, %v3362_v13   ;;  %1004 = vperm.xlu0 %2994, %v3365_v14  }
  0x45   : > { %2885 = vmatmul.mubr.bf16.gmra.mxu0 %v541_v28  ;;  %2925 = vmatmul.mubr.bf16.gmra.mxu1 %v551_v34  ;;  %v537_v28 = vmax.f32 %v499_v22, 0.0  ;;  %v481_v34 = vadd.f32 %v3191_v23, %v436_v24  ;;  %v450_v22 = vmul.f32 %v2689_v56, %v3172_v12  ;;  %v2799_v24 = vld [vmem:[%s3155_s17 + $0x38] sm:$0xff]   ;;  %v494_v45 = vadd.f32 %v3191_v23, %v449_v20 }
  0x46   : > { %2888 = vmatprep.mubr.msk.bf16.mxu0 %vm3051_vm0, %v3049_v1  ;;  %2928 = vmatprep.mubr.msk.bf16.mxu1 %vm3051_vm0, %v3049_v1  ;;  %v2653_v39 = vunpack.c.h.bf16 %v2799_v24 }
  0x47   : > { %v3392_v53 = vpack.c.bf16 %v537_v28, %v536_v32  ;;  %v519_v57 = vmax.f32 %v481_v34, 0.0  ;;  %v474_v32 = vadd.f32 %v3191_v23, %v429_v4  ;;  %v475_v28 = vadd.f32 %v3191_v23, %v430_v19  ;;  %v3448_v19 = vld [vmem:[%s3137_s12 + $0x110] sm:$0xff] }
  0x48   : > { %1019 = vperm.xlu1 %2995, %v3386_v50   ;;  %1014 = vperm.xlu0 %2994, %v3389_v42   ;;  %v2652_v34 = vunpack.c.l.bf16 %v2799_v24  ;;  %v495_v46 = vadd.f32 %v3191_v23, %v450_v22  ;;  %v432_v56 = vmul.f32 %v2653_v39, %v3172_v12  ;;  %v532_v0 = vmax.f32 %v494_v45, 0.0  ;;  %4799 = vst [vmem:[#allocation8_spill] sm:$0xff] %v3448_v19 }
  0x49   : > { %v3394_v63 = vpack.c.bf16 %v519_v57, %v518_v49  ;;  %v2692_v49 = vunpack.c.l.bf16 %v2809_v25  ;;  %v3432_v57 = vld [vmem:[%s3137_s12 + $0x100] sm:$0xff] }
  0x4a   : > { %4798 = vst [vmem:[#allocation7_spill] sm:$0xff] %v3432_v57  ;;  %v431_v62 = vmul.f32 %v2652_v34, %v3172_v12  ;;  %v533_v3 = vmax.f32 %v495_v46, 0.0 }
  0x4b   : > { %v451_v4 = vmul.f32 %v2692_v49, %v3172_v12  ;;  %v477_v12 = vadd.f32 %v3191_v23, %v432_v56  ;;  %v3052_v49 = vmov 1  }
  0x4c   : > { %1029 = vperm.xlu1 %2995, %v3400_v11   ;;  %1024 = vperm.xlu0 %2994, %v3403_v15   ;;  %v476_v22 = vadd.f32 %v3191_v23, %v431_v62  ;;  %v554_v24 = vpack.c.bf16 %v533_v3, %v532_v0 }
  0x4d   : > { %2889 = vmatmul.mubr.bf16.gmra.mxu0 %v542_v58  ;;  %2929 = vmatmul.mubr.bf16.gmra.mxu1 %v552_v61  ;;  %v512_v58 = vmax.f32 %v474_v32, 0.0  ;;  %v513_v61 = vmax.f32 %v475_v28, 0.0  ;;  %v496_v25 = vadd.f32 %v3191_v23, %v451_v4  ;;  %v3457_v32 = vld [vmem:[%s3137_s12 + $0x128] sm:$0xff]  ;;  %v515_v34 = vmax.f32 %v477_v12, 0.0 }
  0x4e   : > { %2892 = vmatprep.mubr.msk.bf16.mxu0 %vm3051_vm0, %v3049_v1  ;;  %2932 = vmatprep.mubr.msk.bf16.mxu1 %vm3051_vm0, %v3049_v1  ;;  %v514_v28 = vmax.f32 %v476_v22, 0.0  ;;  %v4624_v12 = vmov 2  }
  0x4f   : > { %v544_v20 = vpack.c.bf16 %v513_v61, %v512_v58  ;;  %v534_v39 = vmax.f32 %v496_v25, 0.0 }
  0x50   : > { %1039 = vperm.xlu1 %2995, %v3418_v33   ;;  %1034 = vperm.xlu0 %2994, %v3421_v36  }
  0x54   : > { %1049 = vperm.xlu1 %2995, %v3429_v52   ;;  %1044 = vperm.xlu0 %2994, %v3432_v57  }
  0x55   : > { %2893 = vmatmul.mubr.bf16.gmra.mxu0 %v543_v31  ;;  %2933 = vmatmul.mubr.bf16.gmra.mxu1 %v553_v37  ;;  %v497_v31 = vadd.f32 %v3191_v23, %v452_v35  ;;  %v3460_v37 = vld [vmem:[%s3137_s12 + $0x120] sm:$0xff]  ;;  %v545_v23 = vpack.c.bf16 %v515_v34, %v514_v28 }
  0x56   : > { %2896 = vmatprep.mubr.msk.bf16.mxu0 %vm3051_vm0, %v3049_v1  ;;  %2936 = vmatprep.mubr.msk.bf16.mxu1 %vm3051_vm0, %v3049_v1 }
  0x57   : > { %v535_v45 = vmax.f32 %v497_v31, 0.0 }
  0x58   : > { %1059 = vperm.xlu1 %2995, %v3445_v2   ;;  %1054 = vperm.xlu0 %2994, %v3448_v19  }
  0x59   : > { %v555_v46 = vpack.c.bf16 %v535_v45, %v534_v39 }
  0x5c   : > { %1069 = vperm.xlu1 %2995, %v3457_v32   ;;  %1064 = vperm.xlu0 %2994, %v3460_v37  }
  0x5d   : > { %2897 = vmatmul.mubr.bf16.gmra.mxu0 %v544_v20  ;;  %2937 = vmatmul.mubr.bf16.gmra.mxu1 %v554_v24 }
  0x5e   : > { %2900 = vmatprep.mubr.msk.bf16.mxu0 %vm3051_vm0, %v3049_v1  ;;  %2940 = vmatprep.mubr.msk.bf16.mxu1 %vm3051_vm0, %v3049_v1 }
  0x60   : > { %2997 = vset.pattern.permute.xlu1 %v3052_v49  ;;  %2996 = vset.pattern.permute.xlu0 %v3052_v49 }
  0x61   : > { %1158 = vperm.xlu1 %2997, %v3161_v9   ;;  %1154 = vperm.xlu0 %2996, %v3143_v6  }
  0x65   : > { %2901 = vmatmul.mubr.bf16.gmra.mxu0 %v545_v23  ;;  %2941 = vmatmul.mubr.bf16.gmra.mxu1 %v555_v46 }
  0x66   : > { %2904 = vmatprep.mubr.msk.bf16.mxu0 %vm3051_vm0, %v3049_v1  ;;  %2944 = vmatprep.mubr.msk.bf16.mxu1 %vm3051_vm0, %v3049_v1 }
  0x67   : > { %1162 = vperm.xlu1 %2997, %v3140_v5   ;;  %1166 = vperm.xlu0 %2996, %v3158_v8  }
  0x6b   : > { %1170 = vperm.xlu1 %2997, %v3181_v17   ;;  %1174 = vperm.xlu0 %2996, %v3178_v16  }
  0x6d   : > { %2905 = vmatmul.mubr.bf16.gmra.mxu0 %v3378_v38  ;;  %2945 = vmatmul.mubr.bf16.gmra.mxu1 %v3392_v53 }
  0x6e   : > { %2908 = vmatprep.mubr.msk.bf16.mxu0 %vm3051_vm0, %v3049_v1 }
  0x6f   : > { %1178 = vperm.xlu1 %2997, %v3205_v30   ;;  %1182 = vperm.xlu0 %2996, %v3202_v29  }
  0x73   : > { %1186 = vperm.xlu1 %2997, %v3223_v41   ;;  %1190 = vperm.xlu0 %2996, %v3220_v40  }
  0x75   : > { %2909 = vmatmul.mubr.bf16.gmra.mxu0 %v3394_v63 }
  0x77   : > { %1194 = vperm.xlu1 %2997, %v3242_v55   ;;  %1198 = vperm.xlu0 %2996, %v3239_v54  }
  0x7b   : > { %1202 = vperm.xlu1 %2997, %v3258_v10   ;;  %1206 = vperm.xlu0 %2996, %v3255_v7  }
  0x7f   : > { %1210 = vperm.xlu1 %2997, %v3274_v27   ;;  %1214 = vperm.xlu0 %2996, %v3271_v26  }
  0x83   : > { %1218 = vperm.xlu1 %2997, %v3290_v44   ;;  %1222 = vperm.xlu0 %2996, %v3287_v43  }
  0x87   : > { %1226 = vperm.xlu1 %2997, %v3308_v60   ;;  %1230 = vperm.xlu0 %2996, %v3305_v59  }
  0x8b   : > { %1234 = vperm.xlu1 %2997, %v3323_v21   ;;  %1238 = vperm.xlu0 %2996, %v3319_v18  }
  0x8f   : > { %1242 = vperm.xlu1 %2997, %v3346_v48   ;;  %1246 = vperm.xlu0 %2996, %v3343_v47   ;;  %v3501_v1 = vpop.permute.xlu1 %894  ;;  %v3503_v38 = vpop.permute.xlu0 %884 }
  0x93   : > { %1250 = vperm.xlu1 %2997, %v3365_v14   ;;  %1254 = vperm.xlu0 %2996, %v3362_v13   ;;  %v3507_v53 = vpop.permute.xlu1 %899  ;;  %v3509_v63 = vpop.permute.xlu0 %889 }
  0x97   : > { %1258 = vperm.xlu1 %2997, %v3389_v42   ;;  %1262 = vperm.xlu0 %2996, %v3386_v50   ;;  %v3513_v51 = vpop.permute.xlu1 %909  ;;  %v3515_v58 = vpop.permute.xlu0 %904 }
  0x9b   : > { %1266 = vperm.xlu1 %2997, %v3403_v15   ;;  %1270 = vperm.xlu0 %2996, %v3400_v11   ;;  %v3519_v61 = vpop.permute.xlu1 %919  ;;  %v3521_v62 = vpop.permute.xlu0 %914 }
  0x9c   : > { %4800 = vst [vmem:[#allocation9_spill] sm:$0xff] %v3519_v61 }
  0x9f   : > { %1274 = vperm.xlu1 %2997, %v3421_v36   ;;  %1278 = vperm.xlu0 %2996, %v3418_v33   ;;  %v3525_v56 = vpop.permute.xlu1 %929  ;;  %v3527_v0 = vpop.permute.xlu0 %924 }
  0xa0   : > { %4801 = vst [vmem:[#allocation10_spill] sm:$0xff] %v3525_v56 }
  0xa3   : > { %1282 = vperm.xlu1 %2997, %v3432_v57   ;;  %1286 = vperm.xlu0 %2996, %v3429_v52   ;;  %v3531_v3 = vpop.permute.xlu1 %939  ;;  %v3533_v4 = vpop.permute.xlu0 %934 }
  0xa4   : > { %4802 = vst [vmem:[#allocation11_spill] sm:$0xff] %v3531_v3  ;;  %4803 = vst [vmem:[#allocation12_spill] sm:$0xff] %v3533_v4 }
  0xa7   : > { %1290 = vperm.xlu1 %2997, %v3448_v19   ;;  %1294 = vperm.xlu0 %2996, %v3445_v2   ;;  %v3537_v35 = vpop.permute.xlu1 %949  ;;  %v3539_v20 = vpop.permute.xlu0 %944 }
  0xa8   : > { %4804 = vst [vmem:[#allocation13_spill] sm:$0xff] %v3537_v35  ;;  %4805 = vst [vmem:[#allocation14_spill] sm:$0xff] %v3539_v20 }
  0xab   : > { %1298 = vperm.xlu1 %2997, %v3460_v37   ;;  %1302 = vperm.xlu0 %2996, %v3457_v32   ;;  %v3543_v22 = vpop.permute.xlu1 %959  ;;  %v3545_v24 = vpop.permute.xlu0 %954 }
  0xac   : > { %4806 = vst [vmem:[#allocation15_spill] sm:$0xff] %v3543_v22  ;;  %4807 = vst [vmem:[#allocation16_spill] sm:$0xff] %v3545_v24 }
  0xaf   : > { %2998 = vset.pattern.permute.xlu1 %v4624_v12  ;;  %2999 = vset.pattern.permute.xlu0 %v4624_v12  ;;  %v3551_v25 = vpop.permute.xlu1 %969  ;;  %v3553_v31 = vpop.permute.xlu0 %964 }
  0xb0   : > { %1387 = vperm.xlu1 %2998, %v3143_v6   ;;  %1391 = vperm.xlu0 %2999, %v3161_v9   ;;  %4808 = vst [vmem:[#allocation17_spill] sm:$0xff] %v3551_v25  ;;  %4809 = vst [vmem:[#allocation18_spill] sm:$0xff] %v3553_v31 }
  0xb3   : > { %v3557_v32 = vpop.permute.xlu1 %979  ;;  %v3559_v28 = vpop.permute.xlu0 %974 }
  0xb4   : > { %1395 = vperm.xlu1 %2998, %v3140_v5   ;;  %1403 = vperm.xlu0 %2999, %v3181_v17   ;;  %4810 = vst [vmem:[#allocation19_spill] sm:$0xff] %v3557_v32  ;;  %4811 = vst [vmem:[#allocation20_spill] sm:$0xff] %v3559_v28 }
  0xb7   : > { %v3563_v34 = vpop.permute.xlu1 %989  ;;  %v3565_v39 = vpop.permute.xlu0 %984 }
  0xb8   : > { %1399 = vperm.xlu1 %2998, %v3158_v8   ;;  %1411 = vperm.xlu0 %2999, %v3205_v30   ;;  %4812 = vst [vmem:[#allocation21_spill] sm:$0xff] %v3563_v34  ;;  %4813 = vst [vmem:[#allocation22_spill] sm:$0xff] %v3565_v39 }
  0xbb   : > { %v3569_v45 = vpop.permute.xlu1 %999  ;;  %v3571_v23 = vpop.permute.xlu0 %994 }
  0xbc   : > { %1407 = vperm.xlu1 %2998, %v3178_v16   ;;  %1419 = vperm.xlu0 %2999, %v3223_v41   ;;  %4814 = vst [vmem:[#allocation23_spill] sm:$0xff] %v3569_v45  ;;  %4815 = vst [vmem:[#allocation24_spill] sm:$0xff] %v3571_v23 }
  0xbf   : > { %v3575_v46 = vpop.permute.xlu1 %1009  ;;  %v3577_v49 = vpop.permute.xlu0 %1004 }
  0xc0   : > { %1415 = vperm.xlu1 %2998, %v3202_v29   ;;  %1427 = vperm.xlu0 %2999, %v3242_v55   ;;  %4816 = vst [vmem:[#allocation25_spill] sm:$0xff] %v3575_v46  ;;  %4817 = vst [vmem:[#allocation26_spill] sm:$0xff] %v3577_v49 }
  0xc3   : > { %v3581_v12 = vpop.permute.xlu1 %1019  ;;  %v3583_v34 = vpop.permute.xlu0 %1014 }
  0xc4   : > { %1423 = vperm.xlu1 %2998, %v3220_v40   ;;  %1435 = vperm.xlu0 %2999, %v3258_v10   ;;  %4818 = vst [vmem:[#allocation27_spill] sm:$0xff] %v3581_v12  ;;  %4819 = vst [vmem:[#allocation28_spill] sm:$0xff] %v3583_v34 }
  0xc7   : > { %v3587_v45 = vpop.permute.xlu1 %1029  ;;  %v3589_v23 = vpop.permute.xlu0 %1024 }
  0xc8   : > { %1431 = vperm.xlu1 %2998, %v3239_v54   ;;  %1443 = vperm.xlu0 %2999, %v3274_v27   ;;  %4820 = vst [vmem:[#allocation29_spill] sm:$0xff] %v3587_v45  ;;  %4821 = vst [vmem:[#allocation30_spill] sm:$0xff] %v3589_v23 }
  0xcb   : > { %v3593_v46 = vpop.permute.xlu1 %1039  ;;  %v3595_v49 = vpop.permute.xlu0 %1034 }
  0xcc   : > { %1439 = vperm.xlu1 %2998, %v3255_v7   ;;  %1451 = vperm.xlu0 %2999, %v3290_v44   ;;  %4822 = vst [vmem:[#allocation31_spill] sm:$0xff] %v3593_v46  ;;  %4823 = vst [vmem:[#allocation32_spill] sm:$0xff] %v3595_v49 }
  0xcf   : > { %v3599_v12 = vpop.permute.xlu1 %1049  ;;  %v3601_v34 = vpop.permute.xlu0 %1044 }
  0xd0   : > { %1447 = vperm.xlu1 %2998, %v3271_v26   ;;  %1459 = vperm.xlu0 %2999, %v3308_v60   ;;  %4824 = vst [vmem:[#allocation33_spill] sm:$0xff] %v3599_v12  ;;  %4825 = vst [vmem:[#allocation34_spill] sm:$0xff] %v3601_v34 }
  0xd3   : > { %v3605_v45 = vpop.permute.xlu1 %1059  ;;  %v3607_v7 = vpop.permute.xlu0 %1054 }
  0xd4   : > { %1455 = vperm.xlu1 %2998, %v3287_v43   ;;  %1467 = vperm.xlu0 %2999, %v3323_v21   ;;  %4826 = vst [vmem:[#allocation35_spill] sm:$0xff] %v3605_v45  ;;  %4827 = vst [vmem:[#allocation36_spill] sm:$0xff] %v3607_v7 }
  0xd7   : > { %v3611_v46 = vpop.permute.xlu1 %1069  ;;  %v3613_v26 = vpop.permute.xlu0 %1064 }
  0xd8   : > { %1463 = vperm.xlu1 %2998, %v3305_v59   ;;  %1475 = vperm.xlu0 %2999, %v3346_v48   ;;  %4828 = vst [vmem:[#allocation37_spill] sm:$0xff] %v3611_v46  ;;  %4829 = vst [vmem:[#allocation38_spill] sm:$0xff] %v3613_v26 }
  0xdc   : > { %1471 = vperm.xlu1 %2998, %v3319_v18   ;;  %1483 = vperm.xlu0 %2999, %v3365_v14   ;;  %v3617_v12 = vpop.permute.xlu1 %1158  ;;  %v3619_v43 = vpop.permute.xlu0 %1154 }
  0xe0   : > { %1479 = vperm.xlu1 %2998, %v3343_v47   ;;  %1491 = vperm.xlu0 %2999, %v3389_v42  }
  0xe2   : > { %v3623_v45 = vpop.permute.xlu1 %1162  ;;  %v3625_v59 = vpop.permute.xlu0 %1166 }
  0xe4   : > { %1487 = vperm.xlu1 %2998, %v3362_v13   ;;  %1499 = vperm.xlu0 %2999, %v3403_v15  }
  0xe6   : > { %v3629_v46 = vpop.permute.xlu1 %1170  ;;  %v3631_v18 = vpop.permute.xlu0 %1174 }
  0xe8   : > { %1495 = vperm.xlu1 %2998, %v3386_v50   ;;  %1507 = vperm.xlu0 %2999, %v3421_v36  }
  0xea   : > { %v3635_v47 = vpop.permute.xlu1 %1178  ;;  %v3637_v26 = vpop.permute.xlu0 %1182 }
  0xec   : > { %1503 = vperm.xlu1 %2998, %v3400_v11   ;;  %1515 = vperm.xlu0 %2999, %v3432_v57  }
  0xed   : > { %v3641_v13 = vpop.f32.mrf.mxu0  ;;  %v3643_v7 = vpop.f32.mrf.mxu1 }
  0xee   : > { %4830 = vst [vmem:[#allocation39_spill] sm:$0xff] %v3641_v13  ;;  %4831 = vst [vmem:[#allocation40_spill] sm:$0xff] %v3643_v7  ;;  %v3645_v34 = vpop.permute.xlu1 %1186  ;;  %v3647_v49 = vpop.permute.xlu0 %1190  ;;  %v1072_v42 = vmul.f32 %v3503_v38, %v3641_v13 }
  0xef   : > { %v2874_v23 = vpop.f32.mrf.mxu0  ;;  %v2914_v50 = vpop.f32.mrf.mxu1 }
  0xf0   : > { %1511 = vperm.xlu1 %2998, %v3418_v33   ;;  %1523 = vperm.xlu0 %2999, %v3448_v19  }
  0xf1   : > { %v3658_v11 = vpop.f32.mrf.mxu0  ;;  %v3660_v32 = vpop.f32.mrf.mxu1 }
  0xf2   : > { %4832 = vst [vmem:[#allocation41_spill] sm:$0xff] %v3658_v11  ;;  %4833 = vst [vmem:[#allocation42_spill] sm:$0xff] %v3660_v32  ;;  %v3662_v28 = vpop.permute.xlu1 %1194  ;;  %v3664_v23 = vpop.permute.xlu0 %1198  ;;  %v2701_v33 = vpack.c.bf16 %v3658_v11, %v3641_v13  ;;  %v2751_v50 = vpack.c.bf16 %v3660_v32, %v3643_v7 }
  0xf3   : > { %4834 = vst [vmem:[#allocation43_spill] sm:$0xff] %v3662_v28  ;;  %4835 = vst [vmem:[#allocation44_spill] sm:$0xff] %v3664_v23  ;;  %v2875_v25 = vpop.f32.mrf.mxu0  ;;  %v2915_v31 = vpop.f32.mrf.mxu1 }
  0xf4   : > { %2702 = vst [vmem:[%s3656_s15] sm:$0xff] %v2701_v33   ;;  %1519 = vperm.xlu1 %2998, %v3429_v52   ;;  %1531 = vperm.xlu0 %2999, %v3460_v37   ;;  %2820 = vst [vmem:[%s3656_s15 + $0x50] sm:$0xff] %v2751_v50   ;;  %v3054_v25 = vmov 3  }
  0xf5   : > { %v3674_v22 = vpop.f32.mrf.mxu0  ;;  %v3676_v24 = vpop.f32.mrf.mxu1 }
  0xf6   : > { %4836 = vst [vmem:[#allocation45_spill] sm:$0xff] %v3674_v22  ;;  %4837 = vst [vmem:[#allocation46_spill] sm:$0xff] %v3676_v24  ;;  %v3678_v35 = vpop.permute.xlu1 %1202  ;;  %v3680_v20 = vpop.permute.xlu0 %1206  ;;  %v3790_v14 = vmul.f32 %v3674_v22, %v3674_v22 }
  0xf7   : > { %4838 = vst [vmem:[#allocation47_spill] sm:$0xff] %v3678_v35  ;;  %4839 = vst [vmem:[#allocation48_spill] sm:$0xff] %v3680_v20  ;;  %v2878_v3 = vpop.f32.mrf.mxu0  ;;  %v2918_v19 = vpop.f32.mrf.mxu1  ;;  %v3779_v35 = vmul.f32 %v3643_v7, %v3643_v7 }
  0xf8   : > { %1527 = vperm.xlu1 %2998, %v3445_v2   ;;  %3001 = vset.pattern.permute.xlu0 %v3054_v25  ;;  %4864 = vst [vmem:[#allocation73_spill] sm:$0xff] %v3790_v14 }
  0xf9   : > { %1624 = vperm.xlu0 %3001, %v3161_v9   ;;  %v3684_v52 = vpop.f32.mrf.mxu0  ;;  %v3686_v37 = vpop.f32.mrf.mxu1  ;;  %4861 = vst [vmem:[#allocation70_spill] sm:$0xff] %v3779_v35 }
  0xfa   : > { %4840 = vst [vmem:[#allocation49_spill] sm:$0xff] %v3684_v52  ;;  %4841 = vst [vmem:[#allocation50_spill] sm:$0xff] %v3686_v37  ;;  %v3688_v31 = vpop.permute.xlu1 %1210  ;;  %v3690_v33 = vpop.permute.xlu0 %1214  ;;  %v2706_v50 = vpack.c.bf16 %v3684_v52, %v3674_v22  ;;  %v2756_v19 = vpack.c.bf16 %v3686_v37, %v3676_v24  ;;  %v1075_v28 = vmul.f32 %v3507_v53, %v3684_v52 }
  0xfb   : > { %4842 = vst [vmem:[#allocation51_spill] sm:$0xff] %v3688_v31  ;;  %4843 = vst [vmem:[#allocation52_spill] sm:$0xff] %v3690_v33  ;;  %v2879_v3 = vpop.f32.mrf.mxu0  ;;  %v2919_v2 = vpop.f32.mrf.mxu1  ;;  %v1306_v33 = vmul.f32 %v3617_v12, %v3658_v11 }
  0xfc   : > { %2811 = vst [vmem:[%s3656_s15 + $0x8] sm:$0xff] %v2706_v50   ;;  %3000 = vset.pattern.permute.xlu1 %v3054_v25  ;;  %2821 = vst [vmem:[%s3656_s15 + $0x58] sm:$0xff] %v2756_v19  }
  0xfd   : > { %1620 = vperm.xlu1 %3000, %v3143_v6   ;;  %1636 = vperm.xlu0 %3001, %v3181_v17   ;;  %v3700_v9 = vpop.f32.mrf.mxu0  ;;  %v3702_v57 = vpop.f32.mrf.mxu1 }
  0xfe   : > { %4844 = vst [vmem:[#allocation53_spill] sm:$0xff] %v3700_v9  ;;  %4845 = vst [vmem:[#allocation54_spill] sm:$0xff] %v3702_v57  ;;  %v3704_v36 = vpop.permute.xlu1 %1218  ;;  %v3706_v4 = vpop.permute.xlu0 %1222 }
  0xff   : > { %4846 = vst [vmem:[#allocation55_spill] sm:$0xff] %v3704_v36  ;;  %4847 = vst [vmem:[#allocation56_spill] sm:$0xff] %v3706_v4  ;;  %v2882_v15 = vpop.f32.mrf.mxu0  ;;  %v2922_v3 = vpop.f32.mrf.mxu1 }
 0x101   : > { %1628 = vperm.xlu1 %3000, %v3140_v5   ;;  %1644 = vperm.xlu0 %3001, %v3205_v30   ;;  %v3710_v25 = vpop.f32.mrf.mxu0  ;;  %v3712_v6 = vpop.f32.mrf.mxu1 }
 0x102   : > { %4848 = vst [vmem:[#allocation57_spill] sm:$0xff] %v3710_v25  ;;  %4849 = vst [vmem:[#allocation58_spill] sm:$0xff] %v3712_v6  ;;  %v3714_v17 = vpop.permute.xlu1 %1226  ;;  %v3716_v50 = vpop.permute.xlu0 %1230  ;;  %v2711_v19 = vpack.c.bf16 %v3710_v25, %v3700_v9  ;;  %v2761_v2 = vpack.c.bf16 %v3712_v6, %v3702_v57 }
 0x103   : > { %4850 = vst [vmem:[#allocation59_spill] sm:$0xff] %v3714_v17  ;;  %4851 = vst [vmem:[#allocation60_spill] sm:$0xff] %v3716_v50  ;;  %v2883_v15 = vpop.f32.mrf.mxu0  ;;  %v2923_v3 = vpop.f32.mrf.mxu1 }
 0x104   : > { %2812 = vst [vmem:[%s3656_s15 + $0x10] sm:$0xff] %v2711_v19   ;;  %2822 = vst [vmem:[%s3656_s15 + $0x60] sm:$0xff] %v2761_v2   ;;  %v1073_v3 = vmul.f32 %v3509_v63, %v3658_v11 }
 0x105   : > { %1632 = vperm.xlu1 %3000, %v3158_v8   ;;  %1652 = vperm.xlu0 %3001, %v3223_v41   ;;  %v3726_v5 = vpop.f32.mrf.mxu0  ;;  %v3728_v30 = vpop.f32.mrf.mxu1  ;;  %v3742_v41 = vmul.f32 %v3658_v11, %v3658_v11  ;;  %v3775_v11 = vmul.f32 %v3565_v39, %v3643_v7  ;;  %v3796_v39 = vmul.f32 %v3660_v32, %v3660_v32 }
 0x106   : > { %4852 = vst [vmem:[#allocation61_spill] sm:$0xff] %v3726_v5  ;;  %4853 = vst [vmem:[#allocation62_spill] sm:$0xff] %v3728_v30  ;;  %v3730_v17 = vpop.permute.xlu1 %1234  ;;  %v3732_v50 = vpop.permute.xlu0 %1238 }
 0x107   : > { %v2886_v4 = vpop.f32.mrf.mxu0  ;;  %v2926_v36 = vpop.f32.mrf.mxu1  ;;  %4856 = vst [vmem:[#allocation65_spill] sm:$0xff] %v3742_v41  ;;  %4860 = vst [vmem:[#allocation69_spill] sm:$0xff] %v3775_v11 }
 0x108   : > { %4865 = vst [vmem:[#allocation74_spill] sm:$0xff] %v3796_v39 }
 0x109   : > { %1640 = vperm.xlu1 %3000, %v3178_v16   ;;  %1660 = vperm.xlu0 %3001, %v3242_v55   ;;  %v3736_v19 = vpop.f32.mrf.mxu0  ;;  %v3738_v8 = vpop.f32.mrf.mxu1  ;;  %v3752_v55 = vmul.f32 %v3641_v13, %v3641_v13 }
 0x10a   : > { %4854 = vst [vmem:[#allocation63_spill] sm:$0xff] %v3736_v19  ;;  %4855 = vst [vmem:[#allocation64_spill] sm:$0xff] %v3738_v8  ;;  %v3744_v2 = vpop.permute.xlu1 %1242  ;;  %v3746_v15 = vpop.permute.xlu0 %1246  ;;  %v2716_v4 = vpack.c.bf16 %v3736_v19, %v3726_v5  ;;  %v2766_v31 = vpack.c.bf16 %v3738_v8, %v3728_v30 }
 0x10b   : > { %v2887_v36 = vpop.f32.mrf.mxu0  ;;  %v2927_v16 = vpop.f32.mrf.mxu1  ;;  %4857 = vst [vmem:[#allocation66_spill] sm:$0xff] %v3752_v55  ;;  %v1852_v56 = vmul.f32 %v3503_v38, %v3752_v55  ;;  %v1933_v23 = vmul.f32 %v3619_v43, %v3752_v55  ;;  %v1076_v55 = vmul.f32 %v3515_v58, %v3700_v9 }
 0x10c   : > { %2813 = vst [vmem:[%s3656_s15 + $0x18] sm:$0xff] %v2716_v4   ;;  %v1305_v36 = vmul.f32 %v3619_v43, %v3641_v13  ;;  %v1853_v4 = vmul.f32 %v3509_v63, %v3742_v41  ;;  %2823 = vst [vmem:[%s3656_s15 + $0x68] sm:$0xff] %v2766_v31   ;;  %v1074_v63 = vmul.f32 %v3501_v1, %v3674_v22 }
 0x10d   : > { %1648 = vperm.xlu1 %3000, %v3202_v29   ;;  %1668 = vperm.xlu0 %3001, %v3258_v10   ;;  %v3767_v16 = vpop.f32.mrf.mxu0  ;;  %v3769_v20 = vpop.f32.mrf.mxu1  ;;  %v1934_v10 = vmul.f32 %v3617_v12, %v3742_v41  ;;  %v1110_v12 = vadd.f32 %v1073_v3, %v1072_v42 }
 0x10e   : > { %4858 = vst [vmem:[#allocation67_spill] sm:$0xff] %v3767_v16  ;;  %4859 = vst [vmem:[#allocation68_spill] sm:$0xff] %v3769_v20  ;;  %v3782_v13 = vpop.permute.xlu1 %1250  ;;  %v3784_v29 = vpop.permute.xlu0 %1254  ;;  %v1343_v41 = vadd.f32 %v1306_v33, %v1305_v36  ;;  %v1890_v43 = vadd.f32 %v1853_v4, %v1852_v56  ;;  %v1308_v33 = vmul.f32 %v3625_v59, %v3684_v52 }
 0x10f   : > { %4862 = vst [vmem:[#allocation71_spill] sm:$0xff] %v3782_v13  ;;  %4863 = vst [vmem:[#allocation72_spill] sm:$0xff] %v3784_v29  ;;  %v2890_v11 = vpop.f32.mrf.mxu0  ;;  %v2930_v31 = vpop.f32.mrf.mxu1  ;;  %v1307_v29 = vmul.f32 %v3623_v45, %v3674_v22  ;;  %v3806_v13 = vmul.f32 %v3684_v52, %v3684_v52  ;;  %v1971_v22 = vadd.f32 %v1934_v10, %v1933_v23 }
 0x110   : > { %v3812_v11 = vmul.f32 %v3676_v24, %v3676_v24  ;;  %v1935_v4 = vmul.f32 %v3623_v45, %v3790_v14  ;;  %v3836_v52 = vmul.f32 %v3700_v9, %v3700_v9  ;;  %v1309_v23 = vmul.f32 %v3629_v46, %v3700_v9 }
 0x111   : > { %4866 = vst [vmem:[#allocation75_spill] sm:$0xff] %v3806_v13  ;;  %1656 = vperm.xlu1 %3000, %v3220_v40   ;;  %1676 = vperm.xlu0 %3001, %v3274_v27   ;;  %v3816_v42 = vpop.f32.mrf.mxu0  ;;  %v3818_v38 = vpop.f32.mrf.mxu1  ;;  %v1854_v40 = vmul.f32 %v3501_v1, %v3790_v14  ;;  %v1111_v27 = vadd.f32 %v1110_v12, %v1074_v63 }
 0x112   : > { %4867 = vst [vmem:[#allocation76_spill] sm:$0xff] %v3812_v11  ;;  %4868 = vst [vmem:[#allocation77_spill] sm:$0xff] %v3816_v42  ;;  %v3822_v3 = vpop.permute.xlu1 %1258  ;;  %v3824_v36 = vpop.permute.xlu0 %1262  ;;  %v2721_v31 = vpack.c.bf16 %v3816_v42, %v3767_v16  ;;  %v2771_v1 = vpack.c.bf16 %v3818_v38, %v3769_v20  ;;  %v1077_v45 = vmul.f32 %v3513_v51, %v3710_v25 }
 0x113   : > { %4869 = vst [vmem:[#allocation78_spill] sm:$0xff] %v3818_v38  ;;  %4870 = vst [vmem:[#allocation79_spill] sm:$0xff] %v3824_v36  ;;  %v2891_v48 = vpop.f32.mrf.mxu0  ;;  %v2931_v56 = vpop.f32.mrf.mxu1  ;;  %v1344_v36 = vadd.f32 %v1343_v41, %v1307_v29  ;;  %v1112_v10 = vadd.f32 %v1111_v27, %v1075_v28  ;;  %v1936_v29 = vmul.f32 %v3625_v59, %v3806_v13 }
 0x114   : > { %4871 = vst [vmem:[#allocation80_spill] sm:$0xff] %v3836_v52  ;;  %2814 = vst [vmem:[%s3656_s15 + $0x20] sm:$0xff] %v2721_v31   ;;  %v1855_v48 = vmul.f32 %v3507_v53, %v3806_v13  ;;  %v1310_v31 = vmul.f32 %v3631_v18, %v3710_v25  ;;  %v3859_v53 = vmul.f32 %v3686_v37, %v3686_v37 }
 0x115   : > { %1664 = vperm.xlu1 %3000, %v3239_v54   ;;  %1684 = vperm.xlu0 %3001, %v3290_v44   ;;  %v3849_v63 = vpop.f32.mrf.mxu0  ;;  %v3851_v41 = vpop.f32.mrf.mxu1  ;;  %v1345_v12 = vadd.f32 %v1344_v36, %v1308_v33  ;;  %2824 = vst [vmem:[%s3656_s15 + $0x70] sm:$0xff] %v2771_v1   ;;  %v1891_v28 = vadd.f32 %v1890_v43, %v1854_v40 }
 0x116   : > { %4872 = vst [vmem:[#allocation81_spill] sm:$0xff] %v3849_v63  ;;  %4873 = vst [vmem:[#allocation82_spill] sm:$0xff] %v3859_v53  ;;  %v3862_v54 = vpop.permute.xlu1 %1266  ;;  %v3864_v44 = vpop.permute.xlu0 %1270  ;;  %v1113_v27 = vadd.f32 %v1112_v10, %v1076_v55  ;;  %v1972_v14 = vadd.f32 %v1971_v22, %v1935_v4  ;;  %v1856_v59 = vmul.f32 %v3515_v58, %v3836_v52 }
 0x117   : > { %4874 = vst [vmem:[#allocation83_spill] sm:$0xff] %v3864_v44  ;;  %v2894_v56 = vpop.f32.mrf.mxu0  ;;  %v2934_v9 = vpop.f32.mrf.mxu1  ;;  %v3870_v33 = vmul.f32 %v3710_v25, %v3710_v25  ;;  %v1346_v36 = vadd.f32 %v1345_v12, %v1309_v23  ;;  %v3874_v1 = vmul.f32 %v3702_v57, %v3702_v57  ;;  %v1937_v44 = vmul.f32 %v3629_v46, %v3836_v52 }
 0x118   : > { %v1892_v43 = vadd.f32 %v1891_v28, %v1855_v48  ;;  %v1114_v55 = vadd.f32 %v1113_v27, %v1077_v45  ;;  %v3880_v22 = vmul.f32 %v3712_v6, %v3712_v6  ;;  %v3011_v9 = vld [vmem:[%s3137_s12 + $0x68] sm:$0xff]  ;;  %v1973_v4 = vadd.f32 %v1972_v14, %v1936_v29 }
 0x119   : > { %4875 = vst [vmem:[#allocation84_spill] sm:$0xff] %v3870_v33  ;;  %4876 = vst [vmem:[#allocation85_spill] sm:$0xff] %v3874_v1  ;;  %1672 = vperm.xlu1 %3000, %v3011_v9   ;;  %1692 = vperm.xlu0 %3001, %v3308_v60   ;;  %v3884_v58 = vpop.f32.mrf.mxu0  ;;  %v3886_v40 = vpop.f32.mrf.mxu1  ;;  %v1347_v23 = vadd.f32 %v1346_v36, %v1310_v31  ;;  %v1078_v46 = vmul.f32 %v3521_v62, %v3726_v5 }
 0x11a   : > { %4877 = vst [vmem:[#allocation86_spill] sm:$0xff] %v3880_v22  ;;  %4878 = vst [vmem:[#allocation87_spill] sm:$0xff] %v3884_v58  ;;  %v1311_v48 = vmul.f32 %v3635_v47, %v3726_v5  ;;  %v3892_v10 = vpop.permute.xlu1 %1274  ;;  %v3894_v45 = vpop.permute.xlu0 %1278  ;;  %v2726_v60 = vpack.c.bf16 %v3884_v58, %v3849_v63  ;;  %v2776_v14 = vpack.c.bf16 %v3886_v40, %v3851_v41 }
 0x11b   : > { %4879 = vst [vmem:[#allocation88_spill] sm:$0xff] %v3886_v40  ;;  %4880 = vst [vmem:[#allocation89_spill] sm:$0xff] %v3892_v10  ;;  %v2895_v29 = vpop.f32.mrf.mxu0  ;;  %v2935_v12 = vpop.f32.mrf.mxu1  ;;  %v1857_v31 = vmul.f32 %v3513_v51, %v3870_v33  ;;  %v1893_v28 = vadd.f32 %v1892_v43, %v1856_v59  ;;  %v1938_v27 = vmul.f32 %v3631_v18, %v3870_v33  ;;  %v3012_v59 = vld [vmem:[%s3137_s12 + $0x78] sm:$0xff] }
 0x11c   : > { %4881 = vst [vmem:[#allocation90_spill] sm:$0xff] %v3894_v45  ;;  %v3906_v56 = vmul.f32 %v3730_v17, %v3643_v7  ;;  %v3910_v36 = vmul.f32 %v3730_v17, %v3779_v35  ;;  %v1312_v9 = vmul.f32 %v3637_v26, %v3736_v19  ;;  %v3916_v29 = vmul.f32 %v3728_v30, %v3728_v30 }
 0x11d   : > { %2815 = vst [vmem:[%s3656_s15 + $0x28] sm:$0xff] %v2726_v60   ;;  %v3921_v51 = vmul.f32 %v3732_v50, %v3660_v32  ;;  %v3925_v18 = vmul.f32 %v3732_v50, %v3796_v39  ;;  %v1079_v17 = vmul.f32 %v3519_v61, %v3736_v19  ;;  %2825 = vst [vmem:[%s3656_s15 + $0x78] sm:$0xff] %v2776_v14   ;;  %1680 = vperm.xlu1 %3000, %v3012_v59   ;;  %v3932_v43 = vpop.f32.mrf.mxu0  ;;  %v3934_v12 = vpop.f32.mrf.mxu1 }
 0x11e   : > { %4882 = vst [vmem:[#allocation91_spill] sm:$0xff] %v3910_v36  ;;  %4883 = vst [vmem:[#allocation92_spill] sm:$0xff] %v3916_v29  ;;  %1700 = vperm.xlu0 %3001, %v3323_v21   ;;  %v1115_v60 = vadd.f32 %v1114_v55, %v1078_v46  ;;  %v1348_v35 = vadd.f32 %v1347_v23, %v1311_v48  ;;  %v1313_v32 = vmul.f32 %v3645_v34, %v3767_v16  ;;  %v3938_v7 = vpop.permute.xlu1 %1282  ;;  %v3940_v50 = vpop.permute.xlu0 %1286 }
 0x11f   : > { %4884 = vst [vmem:[#allocation93_spill] sm:$0xff] %v3925_v18  ;;  %4885 = vst [vmem:[#allocation94_spill] sm:$0xff] %v3932_v43  ;;  %v3944_v14 = vmul.f32 %v3726_v5, %v3726_v5  ;;  %v3948_v21 = vmul.f32 %v3744_v2, %v3676_v24  ;;  %v3952_v55 = vmul.f32 %v3744_v2, %v3812_v11  ;;  %v2898_v23 = vpop.f32.mrf.mxu0  ;;  %v2938_v46 = vpop.f32.mrf.mxu1 }
 0x120   : > { %4886 = vst [vmem:[#allocation95_spill] sm:$0xff] %v3934_v12  ;;  %4887 = vst [vmem:[#allocation96_spill] sm:$0xff] %v3938_v7  ;;  %v1894_v48 = vadd.f32 %v1893_v28, %v1857_v31  ;;  %v1974_v59 = vadd.f32 %v1973_v4, %v1937_v44  ;;  %v3956_v39 = vmul.f32 %v3746_v15, %v3686_v37  ;;  %v3013_v44 = vld [vmem:[%s3137_s12 + $0x88] sm:$0xff]  ;;  %v4894_v4 = vld [vmem:[#allocation2_spill] sm:$0xff] }
 0x121   : > { %4888 = vst [vmem:[#allocation97_spill] sm:$0xff] %v3940_v50  ;;  %4889 = vst [vmem:[#allocation98_spill] sm:$0xff] %v3944_v14  ;;  %v3960_v18 = vmul.f32 %v3746_v15, %v3859_v53  ;;  %v1349_v50 = vadd.f32 %v1348_v35, %v1312_v9  ;;  %v1314_v24 = vmul.f32 %v3647_v49, %v3816_v42  ;;  %1688 = vperm.xlu1 %3000, %v3013_v44   ;;  %v3972_v28 = vpop.f32.mrf.mxu0  ;;  %v3974_v15 = vpop.f32.mrf.mxu1  ;;  %v4897_v9 = vld [vmem:[#allocation43_spill] sm:$0xff] }
 0x122   : > { %4890 = vst [vmem:[#allocation99_spill] sm:$0xff] %v3952_v55  ;;  %4891 = vst [vmem:[#allocation100_spill] sm:$0xff] %v3956_v39  ;;  %v1116_v36 = vadd.f32 %v1115_v60, %v1079_v17  ;;  %v1080_v2 = vmul.f32 %v3527_v0, %v3767_v16  ;;  %v3968_v31 = vmul.f32 %v3738_v8, %v3738_v8  ;;  %1708 = vperm.xlu0 %3001, %v4894_v4   ;;  %v3978_v60 = vpop.permute.xlu1 %1290  ;;  %v3980_v23 = vpop.permute.xlu0 %1294  ;;  %v4900_v4 = vld [vmem:[#allocation71_spill] sm:$0xff] }
 0x123   : > { %4892 = vst [vmem:[#allocation101_spill] sm:$0xff] %v3960_v18  ;;  %4895 = vst [vmem:[#allocation2_spill] sm:$0xff] %v3972_v28  ;;  %v1350_v35 = vadd.f32 %v1349_v50, %v1313_v32  ;;  %v1315_v17 = vmul.f32 %v4897_v9, %v3849_v63  ;;  %v2731_v46 = vpack.c.bf16 %v3972_v28, %v3932_v43  ;;  %v2899_v50 = vpop.f32.mrf.mxu0  ;;  %v2939_v37 = vpop.f32.mrf.mxu1 }
 0x124   : > { %4893 = vst [vmem:[#allocation102_spill] sm:$0xff] %v3968_v31  ;;  %4896 = vst [vmem:[#allocation103_spill] sm:$0xff] %v3974_v15  ;;  %v1858_v44 = vmul.f32 %v3521_v62, %v3944_v14  ;;  %v3988_v53 = vmul.f32 %v4900_v4, %v3702_v57  ;;  %v2781_v32 = vpack.c.bf16 %v3974_v15, %v3934_v12  ;;  %v4903_v62 = vld [vmem:[#allocation72_spill] sm:$0xff] }
 0x125   : > { %4898 = vst [vmem:[#allocation43_spill] sm:$0xff] %v3978_v60  ;;  %4899 = vst [vmem:[#allocation104_spill] sm:$0xff] %v3980_v23  ;;  %v1939_v23 = vmul.f32 %v3635_v47, %v3944_v14  ;;  %v1975_v11 = vadd.f32 %v1974_v59, %v1938_v27  ;;  %v3996_v60 = vmul.f32 %v4900_v4, %v3874_v1  ;;  %v4905_v57 = vld [vmem:[#allocation44_spill] sm:$0xff]  ;;  %v4907_v47 = vld [vmem:[#allocation10_spill] sm:$0xff] }
 0x126   : > { %4901 = vst [vmem:[#allocation71_spill] sm:$0xff] %v3988_v53  ;;  %v4000_v18 = vmul.f32 %v4903_v62, %v3712_v6  ;;  %v1351_v55 = vadd.f32 %v1350_v35, %v1314_v24  ;;  %v1316_v7 = vmul.f32 %v4905_v57, %v3884_v58  ;;  %2816 = vst [vmem:[%s3656_s15 + $0x30] sm:$0xff] %v2731_v46   ;;  %v3014_v59 = vld [vmem:[%s3137_s12 + $0x98] sm:$0xff]  ;;  %v4908_v4 = vld [vmem:[#allocation3_spill] sm:$0xff]  ;;  %v4014_v6 = vpop.f32.mrf.mxu0  ;;  %v4016_v24 = vpop.f32.mrf.mxu1 }
 0x127   : > { %4902 = vst [vmem:[#allocation105_spill] sm:$0xff] %v3996_v60  ;;  %v4007_v37 = vmul.f32 %v4903_v62, %v3880_v22  ;;  %v1117_v50 = vadd.f32 %v1116_v36, %v1080_v2  ;;  %v1081_v27 = vmul.f32 %v4907_v47, %v3816_v42  ;;  %2826 = vst [vmem:[%s3656_s15 + $0x80] sm:$0xff] %v2781_v32   ;;  %1696 = vperm.xlu1 %3000, %v3014_v59   ;;  %v4911_v62 = vld [vmem:[#allocation47_spill] sm:$0xff]  ;;  %v4024_v2 = vpop.permute.xlu1 %1298  ;;  %v4026_v32 = vpop.permute.xlu0 %1302 }
 0x128   : > { %4904 = vst [vmem:[#allocation72_spill] sm:$0xff] %v4000_v18  ;;  %1716 = vperm.xlu0 %3001, %v4908_v4   ;;  %4909 = vst [vmem:[#allocation3_spill] sm:$0xff] %v4014_v6  ;;  %v4020_v35 = vmul.f32 %v3769_v20, %v3769_v20  ;;  %v1352_v46 = vadd.f32 %v1351_v55, %v1315_v17  ;;  %v1317_v36 = vmul.f32 %v4911_v62, %v3932_v43  ;;  %v2902_v22 = vpop.f32.mrf.mxu0  ;;  %v2942_v1 = vpop.f32.mrf.mxu1  ;;  %v4935_v18 = vld [vmem:[#allocation65_spill] sm:$0xff] }
 0x129   : > { %4906 = vst [vmem:[#allocation44_spill] sm:$0xff] %v4007_v37  ;;  %4910 = vst [vmem:[#allocation106_spill] sm:$0xff] %v4016_v24  ;;  %v4030_v59 = vmul.f32 %v3736_v19, %v3736_v19  ;;  %v4034_v4 = vmul.f32 %v3822_v3, %v3728_v30  ;;  %v4038_v55 = vmul.f32 %v3767_v16, %v3767_v16  ;;  %v4919_v37 = vld [vmem:[#allocation79_spill] sm:$0xff]  ;;  %v4921_v30 = vld [vmem:[#allocation48_spill] sm:$0xff] }
 0x12a   : > { %4912 = vst [vmem:[#allocation47_spill] sm:$0xff] %v4024_v2  ;;  %4913 = vst [vmem:[#allocation107_spill] sm:$0xff] %v4026_v32  ;;  %v4040_v17 = vadd.f32 %v1894_v48, %v1858_v44  ;;  %v1976_v2 = vadd.f32 %v1975_v11, %v1939_v23  ;;  %v4044_v32 = vmul.f32 %v3822_v3, %v3916_v29  ;;  %v3015_v3 = vld [vmem:[%s3137_s12 + $0xa8] sm:$0xff]  ;;  %v4924_v48 = vld [vmem:[#allocation4_spill] sm:$0xff]  ;;  %v4064_v23 = vpop.f32.mrf.mxu0 }
 0x12b   : > { %4914 = vst [vmem:[#allocation108_spill] sm:$0xff] %v4030_v59  ;;  %4915 = vst [vmem:[#allocation109_spill] sm:$0xff] %v4034_v4  ;;  %v4048_v60 = vmul.f32 %v4919_v37, %v3738_v8  ;;  %v1353_v15 = vadd.f32 %v1352_v46, %v1316_v7  ;;  %v1318_v22 = vmul.f32 %v4921_v30, %v3972_v28  ;;  %1704 = vperm.xlu1 %3000, %v3015_v3   ;;  %v4066_v7 = vpop.f32.mrf.mxu1  ;;  %v4928_v46 = vld [vmem:[#allocation51_spill] sm:$0xff] }
 0x12c   : > { %4916 = vst [vmem:[#allocation110_spill] sm:$0xff] %v4038_v55  ;;  %4917 = vst [vmem:[#allocation111_spill] sm:$0xff] %v4040_v17  ;;  %v4054_v1 = vmul.f32 %v4919_v37, %v3968_v31  ;;  %v4056_v12 = vadd.f32 %v1117_v50, %v1081_v27  ;;  %v4060_v11 = vmul.f32 %v3818_v38, %v3818_v38  ;;  %1724 = vperm.xlu0 %3001, %v4924_v48   ;;  %v1388_v31 = vpop.permute.xlu1 %1387  ;;  %v4930_v29 = vld [vmem:[#allocation39_spill] sm:$0xff]  ;;  %v2903_v47 = vpop.f32.mrf.mxu0 }
 0x12d   : > { %4918 = vst [vmem:[#allocation112_spill] sm:$0xff] %v4044_v32  ;;  %4920 = vst [vmem:[#allocation79_spill] sm:$0xff] %v4048_v60  ;;  %v1354_v44 = vadd.f32 %v1353_v15, %v1317_v36  ;;  %v2736_v37 = vpack.c.bf16 %v4064_v23, %v4014_v6  ;;  %v1940_v50 = vmul.f32 %v3637_v26, %v4030_v59  ;;  %v1392_v15 = vpop.permute.xlu0 %1391  ;;  %v4931_v32 = vld [vmem:[#allocation66_spill] sm:$0xff]  ;;  %v2943_v17 = vpop.f32.mrf.mxu1 }
 0x12e   : > { %4922 = vst [vmem:[#allocation48_spill] sm:$0xff] %v4054_v1  ;;  %4923 = vst [vmem:[#allocation113_spill] sm:$0xff] %v4060_v11  ;;  %v4074_v27 = vmul.f32 %v3816_v42, %v3816_v42  ;;  %v1319_v3 = vmul.f32 %v4928_v46, %v4014_v6  ;;  %v2786_v48 = vpack.c.bf16 %v4066_v7, %v4016_v24  ;;  %v4933_v24 = vld [vmem:[#allocation52_spill] sm:$0xff]  ;;  %v4104_v17 = vpop.f32.mrf.mxu0 }
 0x12f   : > { %4925 = vst [vmem:[#allocation4_spill] sm:$0xff] %v4064_v23  ;;  %4926 = vst [vmem:[#allocation114_spill] sm:$0xff] %v4066_v7  ;;  %v4082_v36 = vmul.f32 %v3527_v0, %v4038_v55  ;;  %v1941_v26 = vmul.f32 %v3645_v34, %v4038_v55  ;;  %v1355_v8 = vadd.f32 %v1354_v44, %v1318_v22  ;;  %v4934_v0 = vld [vmem:[#allocation41_spill] sm:$0xff] }
 0x130   : > { %4927 = vst [vmem:[#allocation115_spill] sm:$0xff] %v4074_v27  ;;  %2817 = vst [vmem:[%s3656_s15 + $0x38] sm:$0xff] %v2736_v37   ;;  %v1538_v1 = vmul.f32 %v1388_v31, %v4930_v29  ;;  %v2014_v60 = vmul.f32 %v1388_v31, %v4931_v32  ;;  %v4091_v7 = vmul.f32 %v3849_v63, %v3849_v63  ;;  %v3016_v22 = vld [vmem:[%s3137_s12 + $0xb8] sm:$0xff]  ;;  %v4937_v31 = vld [vmem:[#allocation12_spill] sm:$0xff]  ;;  %v4106_v37 = vpop.f32.mrf.mxu1  ;;  %v2906_v10 = vpop.f32.mrf.mxu0 }
 0x131   : > { %4929 = vst [vmem:[#allocation51_spill] sm:$0xff] %v4082_v36  ;;  %v1320_v4 = vmul.f32 %v4933_v24, %v4064_v23  ;;  %2827 = vst [vmem:[%s3656_s15 + $0x88] sm:$0xff] %v2786_v48   ;;  %v1539_v36 = vmul.f32 %v1392_v15, %v4934_v0  ;;  %v2015_v34 = vmul.f32 %v1392_v15, %v4935_v18  ;;  %1712 = vperm.xlu1 %3000, %v3016_v22   ;;  %v4936_v44 = vld [vmem:[#allocation5_spill] sm:$0xff]  ;;  %v4941_v0 = vld [vmem:[#allocation55_spill] sm:$0xff]  ;;  %v1404_v53 = vpop.permute.xlu0 %1403 }
 0x132   : > { %4932 = vst [vmem:[#allocation116_spill] sm:$0xff] %v4091_v7  ;;  %1732 = vperm.xlu0 %3001, %v4936_v44   ;;  %v4102_v47 = vmul.f32 %v4937_v31, %v3849_v63  ;;  %4938 = vst [vmem:[#allocation52_spill] sm:$0xff] %v4104_v17  ;;  %v1977_v32 = vadd.f32 %v1976_v2, %v1940_v50  ;;  %v1942_v48 = vmul.f32 %v3647_v49, %v4074_v27  ;;  %v1396_v31 = vpop.permute.xlu1 %1395  ;;  %v4943_v2 = vld [vmem:[#allocation45_spill] sm:$0xff]  ;;  %v2946_v39 = vpop.f32.mrf.mxu1 }
 0x133   : > { %4939 = vst [vmem:[#allocation5_spill] sm:$0xff] %v4106_v37  ;;  %v4112_v15 = vmul.f32 %v3884_v58, %v3884_v58  ;;  %v1356_v22 = vadd.f32 %v1355_v8, %v1319_v3  ;;  %v1576_v18 = vadd.f32 %v1539_v36, %v1538_v1  ;;  %v2052_v44 = vadd.f32 %v2015_v34, %v2014_v60  ;;  %v4944_v49 = vld [vmem:[#allocation73_spill] sm:$0xff]  ;;  %v3017_v1 = vld [vmem:[%s3137_s12 + $0xc8] sm:$0xff]  ;;  %v4134_v39 = vpop.f32.mrf.mxu0 }
 0x134   : > { %v1321_v29 = vmul.f32 %v4941_v0, %v4104_v17  ;;  %v4118_v45 = vmul.f32 %v3851_v41, %v3851_v41  ;;  %v1540_v50 = vmul.f32 %v1396_v31, %v4943_v2  ;;  %v2016_v40 = vmul.f32 %v1396_v31, %v4944_v49  ;;  %v4947_v31 = vld [vmem:[#allocation6_spill] sm:$0xff]  ;;  %v4136_v10 = vpop.f32.mrf.mxu1 }
 0x135   : > { %4940 = vst [vmem:[#allocation117_spill] sm:$0xff] %v4112_v15  ;;  %v1978_v61 = vadd.f32 %v1977_v32, %v1941_v26  ;;  %v4124_v8 = vmul.f32 %v3862_v54, %v3769_v20  ;;  %v1357_v60 = vadd.f32 %v1356_v22, %v1320_v4  ;;  %1720 = vperm.xlu1 %3000, %v3017_v1   ;;  %4948 = vst [vmem:[#allocation6_spill] sm:$0xff] %v4134_v39  ;;  %v4951_v1 = vld [vmem:[#allocation56_spill] sm:$0xff]  ;;  %v3018_v20 = vld [vmem:[%s3137_s12 + $0xd8] sm:$0xff] }
 0x136   : > { %4942 = vst [vmem:[#allocation55_spill] sm:$0xff] %v4118_v45  ;;  %v1943_v3 = vmul.f32 %v4897_v9, %v4091_v7  ;;  %v4131_v36 = vmul.f32 %v3932_v43, %v3932_v43  ;;  %v1577_v34 = vadd.f32 %v1576_v18, %v1540_v50  ;;  %v2053_v2 = vadd.f32 %v2052_v44, %v2016_v40  ;;  %v4950_v9 = vld [vmem:[#allocation53_spill] sm:$0xff]  ;;  %v1400_v18 = vpop.permute.xlu1 %1399  ;;  %v1412_v44 = vpop.permute.xlu0 %1411 }
 0x137   : > { %4945 = vst [vmem:[#allocation118_spill] sm:$0xff] %v4124_v8  ;;  %1740 = vperm.xlu0 %3001, %v4947_v31   ;;  %4949 = vst [vmem:[#allocation120_spill] sm:$0xff] %v4136_v10  ;;  %v1979_v32 = vadd.f32 %v1978_v61, %v1942_v48  ;;  %v1944_v4 = vmul.f32 %v4905_v57, %v4112_v15  ;;  %v1358_v26 = vadd.f32 %v1357_v60, %v1321_v29  ;;  %v4952_v48 = vld [vmem:[#allocation49_spill] sm:$0xff]  ;;  %v2907_v29 = vpop.f32.mrf.mxu0  ;;  %v2947_v60 = vpop.f32.mrf.mxu1 }
 0x138   : > { %4946 = vst [vmem:[#allocation119_spill] sm:$0xff] %v4131_v36  ;;  %v1542_v22 = vmul.f32 %v1404_v53, %v4950_v9  ;;  %v1322_v49 = vmul.f32 %v4951_v1, %v4134_v39  ;;  %v2741_v40 = vpack.c.bf16 %v4134_v39, %v4104_v17  ;;  %v2018_v50 = vmul.f32 %v1404_v53, %v3836_v52 }
 0x139   : > { %v2791_v61 = vpack.c.bf16 %v4136_v10, %v4106_v37  ;;  %v1541_v31 = vmul.f32 %v1400_v18, %v4952_v48  ;;  %v2017_v57 = vmul.f32 %v1400_v18, %v3806_v13  ;;  %1728 = vperm.xlu1 %3000, %v3018_v20   ;;  %v1980_v8 = vadd.f32 %v1979_v32, %v1943_v3  ;;  %v4955_v18 = vld [vmem:[#allocation83_spill] sm:$0xff]  ;;  %v4170_v32 = vpop.f32.mrf.mxu0 }
 0x13a   : > { %v1359_v9 = vadd.f32 %v1358_v26, %v1322_v49  ;;  %2818 = vst [vmem:[%s3656_s15 + $0x40] sm:$0xff] %v2741_v40   ;;  %v4154_v45 = vmul.f32 %v4014_v6, %v4014_v6  ;;  %v4158_v53 = vmul.f32 %v3972_v28, %v3972_v28  ;;  %v4162_v52 = vmul.f32 %v3862_v54, %v4020_v35  ;;  %v4956_v3 = vld [vmem:[#allocation7_spill] sm:$0xff]  ;;  %v1408_v60 = vpop.permute.xlu1 %1407  ;;  %v1420_v13 = vpop.permute.xlu0 %1419 }
 0x13b   : > { %v4166_v29 = vmul.f32 %v4955_v18, %v3818_v38  ;;  %2828 = vst [vmem:[%s3656_s15 + $0x90] sm:$0xff] %v2791_v61   ;;  %v1578_v49 = vadd.f32 %v1577_v34, %v1541_v31  ;;  %v2054_v20 = vadd.f32 %v2053_v2, %v2017_v57  ;;  %1748 = vperm.xlu0 %3001, %v4956_v3   ;;  %4957 = vst [vmem:[#allocation83_spill] sm:$0xff] %v4170_v32  ;;  %v4958_v40 = vld [vmem:[#allocation59_spill] sm:$0xff]  ;;  %v2910_v3 = vpop.f32.mrf.mxu0 }
 0x13c   : > { %4953 = vst [vmem:[#allocation56_spill] sm:$0xff] %v4154_v45  ;;  %4954 = vst [vmem:[#allocation121_spill] sm:$0xff] %v4158_v53  ;;  %v4174_v26 = vmul.f32 %v4955_v18, %v4060_v11  ;;  %v1323_v54 = vmul.f32 %v4958_v40, %v4170_v32  ;;  %v1945_v48 = vmul.f32 %v4911_v62, %v4131_v36  ;;  %v3019_v37 = vld [vmem:[%s3137_s12 + $0xe8] sm:$0xff] }
 0x13d   : > { %v1981_v61 = vadd.f32 %v1980_v8, %v1944_v4  ;;  %v1543_v34 = vmul.f32 %v1408_v60, %v3710_v25  ;;  %v1579_v2 = vadd.f32 %v1578_v49, %v1542_v22  ;;  %v2019_v31 = vmul.f32 %v1408_v60, %v3870_v33  ;;  %1736 = vperm.xlu1 %3000, %v3019_v37   ;;  %v4960_v49 = vld [vmem:[#allocation8_spill] sm:$0xff]  ;;  %v4194_v37 = vpop.f32.mrf.mxu0 }
 0x13e   : > { %v2055_v57 = vadd.f32 %v2054_v20, %v2018_v50  ;;  %v1360_v10 = vadd.f32 %v1359_v9, %v1323_v54  ;;  %v1947_v18 = vmul.f32 %v4928_v46, %v4154_v45  ;;  %v1946_v11 = vmul.f32 %v4921_v30, %v4158_v53  ;;  %4961 = vst [vmem:[#allocation59_spill] sm:$0xff] %v4194_v37  ;;  %v4962_v46 = vld [vmem:[#allocation60_spill] sm:$0xff]  ;;  %v1416_v20 = vpop.permute.xlu1 %1415  ;;  %v1428_v54 = vpop.permute.xlu0 %1427 }
 0x13f   : > { %v4189_v62 = vmul.f32 %v4064_v23, %v4064_v23  ;;  %v1544_v8 = vmul.f32 %v1412_v44, %v3726_v5  ;;  %v2020_v4 = vmul.f32 %v1412_v44, %v3944_v14  ;;  %v1580_v22 = vadd.f32 %v1579_v2, %v1543_v34  ;;  %1756 = vperm.xlu0 %3001, %v4960_v49   ;;  %v2911_v3 = vpop.f32.mrf.mxu0  ;;  %v3020_v5 = vld [vmem:[%s3137_s12 + $0xf8] sm:$0xff] }
 0x140   : > { %v2056_v50 = vadd.f32 %v2055_v57, %v2019_v31  ;;  %v1324_v9 = vmul.f32 %v4962_v46, %v4194_v37  ;;  %v2746_v30 = vpack.c.bf16 %v4194_v37, %v4170_v32  ;;  %v1982_v60 = vadd.f32 %v1981_v61, %v1945_v48 }
 0x141   : > { %4959 = vst [vmem:[#allocation7_spill] sm:$0xff] %v4189_v62  ;;  %v4202_v44 = vmul.f32 %v4104_v17, %v4104_v17  ;;  %v1545_v34 = vmul.f32 %v1416_v20, %v3736_v19  ;;  %v1581_v2 = vadd.f32 %v1580_v22, %v1544_v8  ;;  %v2021_v31 = vmul.f32 %v1416_v20, %v4030_v59  ;;  %v3021_v8 = vld [vmem:[%s3137_s12 + $0x120] sm:$0xff] }
 0x142   : > { %v2057_v57 = vadd.f32 %v2056_v50, %v2020_v4  ;;  %v1546_v49 = vmul.f32 %v1420_v13, %v3767_v16  ;;  %v1361_v14 = vadd.f32 %v1360_v10, %v1324_v9  ;;  %2819 = vst [vmem:[%s3656_s15 + $0x48] sm:$0xff] %v2746_v30   ;;  %1744 = vperm.xlu1 %3000, %v3020_v5   ;;  %v1436_v22 = vpop.permute.xlu0 %1435 }
 0x143   : > { %v1983_v33 = vadd.f32 %v1982_v60, %v1946_v11  ;;  %v1948_v48 = vmul.f32 %v4933_v24, %v4189_v62  ;;  %v2022_v61 = vmul.f32 %v1420_v13, %v4038_v55  ;;  %v1582_v25 = vadd.f32 %v1581_v2, %v1545_v34  ;;  %1764 = vperm.xlu0 %3001, %v3021_v8   ;;  %v1424_v11 = vpop.permute.xlu1 %1423  ;;  %v4980_v55 = vld [vmem:[#allocation95_spill] sm:$0xff] }
 0x144   : > { %v2058_v38 = vadd.f32 %v2057_v57, %v2021_v31  ;;  %v4215_v4 = vmul.f32 %v4134_v39, %v4134_v39  ;;  %v1119_v10 = vadd.f32 %v4056_v12, %v4102_v47  ;;  %v1362_v5 = vadd.f32 %v1361_v14, %v3906_v56  ;;  %v3022_v12 = vld [vmem:[%s3137_s12 + $0x108] sm:$0xff]  ;;  %v4964_v31 = vld [vmem:[#allocation9_spill] sm:$0xff] }
 0x145   : > { %v1949_v13 = vmul.f32 %v4941_v0, %v4202_v44  ;;  %v1984_v24 = vadd.f32 %v1983_v33, %v1947_v18  ;;  %v1547_v50 = vmul.f32 %v1424_v11, %v3816_v42  ;;  %v1583_v9 = vadd.f32 %v1582_v25, %v1546_v49  ;;  %v3023_v18 = vld [vmem:[%s3137_s12 + $0x128] sm:$0xff] }
 0x146   : > { %v2023_v30 = vmul.f32 %v1424_v11, %v4074_v27  ;;  %v2059_v20 = vadd.f32 %v2058_v38, %v2022_v61  ;;  %v1363_v60 = vadd.f32 %v1362_v5, %v3921_v51  ;;  %v1548_v34 = vmul.f32 %v1428_v54, %v3849_v63  ;;  %1752 = vperm.xlu1 %3000, %v3022_v12   ;;  %v4963_v38 = vld [vmem:[#allocation11_spill] sm:$0xff]  ;;  %v1444_v49 = vpop.permute.xlu0 %1443  ;;  %v4965_v11 = vld [vmem:[#allocation100_spill] sm:$0xff] }
 0x147   : > { %v1985_v56 = vadd.f32 %v1984_v24, %v1948_v48  ;;  %v4229_v14 = vmul.f32 %v4170_v32, %v4170_v32  ;;  %v2024_v0 = vmul.f32 %v1428_v54, %v4091_v7  ;;  %v1584_v33 = vadd.f32 %v1583_v9, %v1547_v50  ;;  %1768 = vperm.xlu0 %3001, %v3023_v18   ;;  %v1432_v3 = vpop.permute.xlu1 %1431  ;;  %v3024_v9 = vld [vmem:[%s3137_s12 + $0x118] sm:$0xff] }
 0x148   : > { %v2060_v47 = vadd.f32 %v2059_v20, %v2023_v30  ;;  %v1950_v25 = vmul.f32 %v4951_v1, %v4215_v4  ;;  %v1083_v51 = vmul.f32 %v4963_v38, %v3884_v58  ;;  %v1364_v2 = vadd.f32 %v1363_v60, %v3948_v21 }
 0x149   : > { %v1859_v57 = vmul.f32 %v4964_v31, %v4030_v59  ;;  %v1986_v48 = vadd.f32 %v1985_v56, %v1949_v13  ;;  %v1549_v54 = vmul.f32 %v1432_v3, %v3884_v58  ;;  %v1585_v61 = vadd.f32 %v1584_v33, %v1548_v34  ;;  %v4966_v34 = vld [vmem:[#allocation89_spill] sm:$0xff]  ;;  %v4967_v56 = vld [vmem:[#allocation55_spill] sm:$0xff]  ;;  %v4969_v33 = vld [vmem:[#allocation90_spill] sm:$0xff] }
 0x14a   : > { %v2025_v8 = vmul.f32 %v1432_v3, %v4112_v15  ;;  %v2061_v5 = vadd.f32 %v2060_v47, %v2024_v0  ;;  %v1365_v24 = vadd.f32 %v1364_v2, %v4965_v11  ;;  %v1550_v1 = vmul.f32 %v1436_v22, %v3932_v43  ;;  %1760 = vperm.xlu1 %3000, %v3024_v9   ;;  %v4970_v2 = vld [vmem:[#allocation71_spill] sm:$0xff]  ;;  %v1452_v3 = vpop.permute.xlu0 %1451 }
 0x14b   : > { %v2026_v50 = vmul.f32 %v1436_v22, %v4131_v36  ;;  %v1951_v21 = vmul.f32 %v4958_v40, %v4229_v14  ;;  %v1586_v30 = vadd.f32 %v1585_v61, %v1549_v54  ;;  %v1987_v13 = vadd.f32 %v1986_v48, %v1950_v25  ;;  %v4968_v22 = vld [vmem:[#allocation88_spill] sm:$0xff]  ;;  %v1440_v31 = vpop.permute.xlu1 %1439 }
 0x14c   : > { %v2062_v20 = vadd.f32 %v2061_v5, %v2025_v8  ;;  %v4250_v60 = vmul.f32 %v4194_v37, %v4194_v37  ;;  %v1335_v12 = vmul.f32 %v4966_v34, %v3851_v41  ;;  %v4256_v0 = vmul.f32 %v4966_v34, %v4967_v56  ;;  %v4971_v5 = vld [vmem:[#allocation72_spill] sm:$0xff] }
 0x14d   : > { %v4260_v47 = vmul.f32 %v4969_v33, %v4968_v22  ;;  %v1366_v40 = vadd.f32 %v1365_v24, %v4970_v2  ;;  %v1551_v25 = vmul.f32 %v1440_v31, %v3972_v28  ;;  %v1587_v48 = vadd.f32 %v1586_v30, %v1550_v1  ;;  %v4973_v1 = vld [vmem:[#allocation14_spill] sm:$0xff] }
 0x14e   : > { %v2027_v54 = vmul.f32 %v1440_v31, %v4158_v53  ;;  %v2063_v61 = vadd.f32 %v2062_v20, %v2026_v50  ;;  %v1120_v8 = vadd.f32 %v1119_v10, %v1083_v51  ;;  %v1552_v9 = vmul.f32 %v1444_v49, %v4014_v6  ;;  %v4974_v50 = vld [vmem:[#allocation109_spill] sm:$0xff]  ;;  %v4975_v51 = vld [vmem:[#allocation111_spill] sm:$0xff] }
 0x14f   : > { %v1367_v11 = vadd.f32 %v1366_v40, %v4971_v5  ;;  %v2028_v34 = vmul.f32 %v1444_v49, %v4154_v45  ;;  %v4972_v58 = vmov 2   ;;  %v1588_v63 = vadd.f32 %v1587_v48, %v1551_v25  ;;  %v4976_v40 = vld [vmem:[#allocation10_spill] sm:$0xff]  ;;  %v1448_v49 = vpop.permute.xlu1 %1447  ;;  %v1460_v5 = vpop.permute.xlu0 %1459 }
 0x150   : > { %3002 = vset.pattern.permute.xlu1 %v4972_v58  ;;  %v2064_v42 = vadd.f32 %v2063_v61, %v2027_v54  ;;  %v1952_v24 = vmul.f32 %v4962_v46, %v4250_v60  ;;  %v1988_v2 = vadd.f32 %v1987_v13, %v1951_v21  ;;  %v1084_v30 = vmul.f32 %v4973_v1, %v3932_v43  ;;  %v4977_v46 = vld [vmem:[#allocation79_spill] sm:$0xff]  ;;  %v4978_v13 = vld [vmem:[#allocation12_spill] sm:$0xff] }
 0x151   : > { %1535 = vperm.xlu1 %3002, %v3023_v18   ;;  %v1368_v10 = vadd.f32 %v1367_v11, %v4974_v50  ;;  %v1896_v20 = vadd.f32 %v4975_v51, %v1859_v57  ;;  %v1861_v31 = vmul.f32 %v4976_v40, %v4074_v27  ;;  %v1553_v58 = vmul.f32 %v1448_v49, %v4064_v23  ;;  %v4979_v61 = vld [vmem:[#allocation51_spill] sm:$0xff] }
 0x152   : > { %v1589_v25 = vadd.f32 %v1588_v63, %v1552_v9  ;;  %v2029_v18 = vmul.f32 %v1448_v49, %v4189_v62  ;;  %v2065_v48 = vadd.f32 %v2064_v42, %v2028_v34  ;;  %v1862_v54 = vmul.f32 %v4978_v13, %v4091_v7  ;;  %v4981_v63 = vld [vmem:[#allocation96_spill] sm:$0xff]  ;;  %v4982_v42 = vld [vmem:[#allocation118_spill] sm:$0xff] }
 0x153   : > { %v1369_v21 = vadd.f32 %v1368_v10, %v4977_v46  ;;  %v1897_v11 = vadd.f32 %v1896_v20, %v4979_v61  ;;  %v1554_v57 = vmul.f32 %v1452_v3, %v4104_v17  ;;  %v2030_v50 = vmul.f32 %v1452_v3, %v4202_v44  ;;  %v1456_v49 = vpop.permute.xlu1 %1455  ;;  %v1468_v46 = vpop.permute.xlu0 %1467  ;;  %v4983_v3 = vld [vmem:[#allocation13_spill] sm:$0xff] }
 0x154   : > { %v1590_v51 = vadd.f32 %v1589_v25, %v1553_v58  ;;  %v2066_v40 = vadd.f32 %v2065_v48, %v2029_v18  ;;  %v1989_v43 = vadd.f32 %v1988_v2, %v1952_v24  ;;  %v1121_v27 = vadd.f32 %v1120_v8, %v1084_v30  ;;  %v4984_v18 = vld [vmem:[#allocation91_spill] sm:$0xff] }
 0x155   : > { %v4287_v9 = vmul.f32 %v4981_v63, %v4980_v55  ;;  %v1370_v34 = vadd.f32 %v1369_v21, %v4982_v42  ;;  %v1898_v10 = vadd.f32 %v1897_v11, %v1861_v31  ;;  %v1555_v13 = vmul.f32 %v1456_v49, %v4134_v39  ;;  %v4985_v21 = vld [vmem:[#allocation103_spill] sm:$0xff]  ;;  %v4986_v11 = vld [vmem:[#allocation97_spill] sm:$0xff] }
 0x156   : > { %v1591_v20 = vadd.f32 %v1590_v51, %v1554_v57  ;;  %v2031_v61 = vmul.f32 %v1456_v49, %v4215_v4  ;;  %v2067_v7 = vadd.f32 %v2066_v40, %v2030_v50  ;;  %v1085_v58 = vmul.f32 %v4983_v3, %v3972_v28  ;;  %v4987_v50 = vld [vmem:[#allocation16_spill] sm:$0xff] }
 0x157   : > { %v1371_v8 = vadd.f32 %v1370_v34, %v4166_v29  ;;  %v1863_v24 = vmul.f32 %v4963_v38, %v4112_v15  ;;  %v4299_v2 = vmul.f32 %v4980_v55, %v4980_v55  ;;  %v1556_v30 = vmul.f32 %v1460_v5, %v4170_v32  ;;  %v1464_v40 = vpop.permute.xlu1 %1463  ;;  %v1476_v42 = vpop.permute.xlu0 %1475 }
 0x158   : > { %v1592_v31 = vadd.f32 %v1591_v20, %v1555_v13  ;;  %v2068_v25 = vadd.f32 %v2067_v7, %v2031_v61  ;;  %v1990_v48 = vadd.f32 %v1989_v43, %v4984_v18  ;;  %v4305_v57 = vmul.f32 %v4986_v11, %v4985_v21  ;;  %v4988_v7 = vld [vmem:[#allocation93_spill] sm:$0xff] }
 0x159   : > { %v1086_v29 = vmul.f32 %v4987_v50, %v4014_v6  ;;  %v4309_v51 = vadd.f32 %v1371_v8, %v1335_v12  ;;  %v2032_v38 = vmul.f32 %v1460_v5, %v4229_v14  ;;  %v1899_v34 = vadd.f32 %v1898_v10, %v1862_v54  ;;  %v4989_v12 = vld [vmem:[#allocation40_spill] sm:$0xff]  ;;  %v4990_v5 = vld [vmem:[#allocation99_spill] sm:$0xff]  ;;  %v4991_v10 = vld [vmem:[#allocation70_spill] sm:$0xff] }
 0x15a   : > { %v1557_v49 = vmul.f32 %v1464_v40, %v4194_v37  ;;  %v1593_v13 = vadd.f32 %v1592_v31, %v1556_v30  ;;  %v1991_v20 = vadd.f32 %v1990_v48, %v4988_v7  ;;  %v1122_v43 = vadd.f32 %v1121_v27, %v1085_v58 }
 0x15b   : > { %v1864_v61 = vmul.f32 %v4973_v1, %v4131_v36  ;;  %v2033_v18 = vmul.f32 %v1464_v40, %v4250_v60  ;;  %v2069_v28 = vadd.f32 %v2068_v25, %v2032_v38  ;;  %v1900_v6 = vadd.f32 %v1899_v34, %v1863_v24  ;;  %v1472_v27 = vpop.permute.xlu1 %1471  ;;  %v1484_v58 = vpop.permute.xlu0 %1483  ;;  %v4992_v1 = vld [vmem:[#allocation15_spill] sm:$0xff]  ;;  %v4993_v40 = vld [vmem:[#allocation101_spill] sm:$0xff]  ;;  %v4994_v24 = vld [vmem:[#allocation42_spill] sm:$0xff] }
 0x15c   : > { %v1558_v8 = vmul.f32 %v1468_v46, %v4989_v12  ;;  %v1594_v15 = vadd.f32 %v1593_v13, %v1557_v49  ;;  %v1992_v16 = vadd.f32 %v1991_v20, %v4990_v5  ;;  %v1123_v59 = vadd.f32 %v1122_v43, %v1086_v29  ;;  %v4995_v13 = vld [vmem:[#allocation74_spill] sm:$0xff]  ;;  %v4997_v20 = vld [vmem:[#allocation105_spill] sm:$0xff] }
 0x15d   : > { %v1865_v54 = vmul.f32 %v4983_v3, %v4158_v53  ;;  %v2034_v30 = vmul.f32 %v1468_v46, %v4991_v10  ;;  %v2070_v31 = vadd.f32 %v2069_v28, %v2033_v18  ;;  %v1087_v48 = vmul.f32 %v4992_v1, %v4064_v23  ;;  %v4996_v46 = vld [vmem:[#allocation18_spill] sm:$0xff]  ;;  %v5012_v10 = vld [vmem:[#allocation112_spill] sm:$0xff] }
 0x15e   : > { %v1993_v25 = vadd.f32 %v1992_v16, %v4993_v40  ;;  %v1559_v38 = vmul.f32 %v1472_v27, %v4994_v24  ;;  %v1595_v34 = vadd.f32 %v1594_v15, %v1558_v8  ;;  %v1866_v49 = vmul.f32 %v4987_v50, %v4154_v45  ;;  %v4998_v18 = vld [vmem:[#allocation46_spill] sm:$0xff]  ;;  %v5000_v16 = vld [vmem:[#allocation43_spill] sm:$0xff]  ;;  %v5001_v8 = vld [vmem:[#allocation76_spill] sm:$0xff] }
 0x15f   : > { %v1901_v29 = vadd.f32 %v1900_v6, %v1864_v61  ;;  %v2035_v7 = vmul.f32 %v1472_v27, %v4995_v13  ;;  %v2071_v3 = vadd.f32 %v2070_v31, %v2034_v30  ;;  %v1088_v28 = vmul.f32 %v4996_v46, %v4104_v17  ;;  %v4999_v23 = vld [vmem:[#allocation106_spill] sm:$0xff]  ;;  %v1480_v6 = vpop.permute.xlu1 %1479  ;;  %v1492_v61 = vpop.permute.xlu0 %1491 }
 0x160   : > { %v1994_v43 = vadd.f32 %v1993_v25, %v4997_v20  ;;  %v1560_v5 = vmul.f32 %v1476_v42, %v4998_v18  ;;  %v1596_v12 = vadd.f32 %v1595_v34, %v1559_v38  ;;  %v4335_v40 = vmul.f32 %v5000_v16, %v4999_v23  ;;  %v5002_v30 = vld [vmem:[#allocation50_spill] sm:$0xff]  ;;  %v5005_v20 = vld [vmem:[#allocation104_spill] sm:$0xff]  ;;  %v5007_v38 = vld [vmem:[#allocation17_spill] sm:$0xff] }
 0x161   : > { %v1902_v15 = vadd.f32 %v1901_v29, %v1865_v54  ;;  %v2036_v53 = vmul.f32 %v1476_v42, %v5001_v8  ;;  %v2072_v50 = vadd.f32 %v2071_v3, %v2035_v7  ;;  %v1124_v27 = vadd.f32 %v1123_v59, %v1087_v48  ;;  %v5003_v17 = vld [vmem:[#allocation82_spill] sm:$0xff]  ;;  %v5008_v54 = vld [vmem:[#allocation44_spill] sm:$0xff] }
 0x162   : > { %v1561_v31 = vmul.f32 %v1480_v6, %v5002_v30  ;;  %v1597_v45 = vadd.f32 %v1596_v12, %v1560_v5  ;;  %v2037_v36 = vmul.f32 %v1480_v6, %v5003_v17  ;;  %v5004_v25 = vld [vmem:[#allocation114_spill] sm:$0xff]  ;;  %v1089_v34 = vmul.f32 %v5007_v38, %v4134_v39  ;;  %v5010_v48 = vld [vmem:[#allocation20_spill] sm:$0xff]  ;;  %v5011_v5 = vld [vmem:[#allocation85_spill] sm:$0xff] }
 0x163   : > { %v4342_v19 = vmul.f32 %v5005_v20, %v5004_v25  ;;  %v2073_v13 = vadd.f32 %v2072_v50, %v2036_v53  ;;  %v1995_v29 = vadd.f32 %v1994_v43, %v5008_v54  ;;  %v1125_v42 = vadd.f32 %v1124_v27, %v1088_v28  ;;  %v5009_v3 = vld [vmem:[#allocation54_spill] sm:$0xff]  ;;  %v1488_v30 = vpop.permute.xlu1 %1487  ;;  %v1500_v18 = vpop.permute.xlu0 %1499 }
 0x164   : > { %v1903_v7 = vadd.f32 %v1902_v15, %v1866_v49  ;;  %v1562_v8 = vmul.f32 %v1484_v58, %v5009_v3  ;;  %v1598_v59 = vadd.f32 %v1597_v45, %v1561_v31  ;;  %v1090_v12 = vmul.f32 %v5010_v48, %v4170_v32  ;;  %v5013_v50 = vld [vmem:[#allocation58_spill] sm:$0xff]  ;;  %v5015_v45 = vld [vmem:[#allocation19_spill] sm:$0xff]  ;;  %v5016_v32 = vld [vmem:[#allocation48_spill] sm:$0xff] }
 0x165   : > { %5006 = vst [vmem:[#allocation8_spill] sm:$0xff] %v4342_v19  ;;  %v2038_v6 = vmul.f32 %v1484_v58, %v5011_v5  ;;  %v2074_v17 = vadd.f32 %v2073_v13, %v2037_v36  ;;  %v1996_v19 = vadd.f32 %v1995_v29, %v5012_v10  ;;  %v1867_v53 = vmul.f32 %v4992_v1, %v4189_v62  ;;  %v5014_v49 = vld [vmem:[#allocation86_spill] sm:$0xff]  ;;  %v5018_v29 = vld [vmem:[#allocation92_spill] sm:$0xff] }
 0x166   : > { %v1563_v43 = vmul.f32 %v1488_v30, %v5013_v50  ;;  %v1599_v28 = vadd.f32 %v1598_v59, %v1562_v8  ;;  %v2039_v15 = vmul.f32 %v1488_v30, %v5014_v49  ;;  %v1126_v27 = vadd.f32 %v1125_v42, %v1089_v34  ;;  %v5017_v36 = vld [vmem:[#allocation62_spill] sm:$0xff] }
 0x167   : > { %v1091_v31 = vmul.f32 %v5015_v45, %v4194_v37  ;;  %v2075_v54 = vadd.f32 %v2074_v17, %v2038_v6  ;;  %v1997_v58 = vadd.f32 %v1996_v19, %v5016_v32  ;;  %v1564_v13 = vmul.f32 %v1492_v61, %v5017_v36  ;;  %v1496_v42 = vpop.permute.xlu1 %1495  ;;  %v1508_v59 = vpop.permute.xlu0 %1507  ;;  %v5019_v32 = vld [vmem:[#allocation64_spill] sm:$0xff] }
 0x168   : > { %v1600_v39 = vadd.f32 %v1599_v28, %v1563_v43  ;;  %v1965_v10 = vmul.f32 %v4981_v63, %v4299_v2  ;;  %v4364_v1 = vmul.f32 %v4968_v22, %v4968_v22  ;;  %v1127_v8 = vadd.f32 %v1126_v27, %v1090_v12  ;;  %v5020_v28 = vld [vmem:[#allocation102_spill] sm:$0xff]  ;;  %v5021_v27 = vld [vmem:[#allocation68_spill] sm:$0xff] }
 0x169   : > { %v2040_v30 = vmul.f32 %v1492_v61, %v5018_v29  ;;  %v2076_v34 = vadd.f32 %v2075_v54, %v2039_v15  ;;  %v1998_v17 = vadd.f32 %v1997_v58, %v4162_v52  ;;  %v1868_v19 = vmul.f32 %v4996_v46, %v4202_v44 }
 0x16a   : > { %v1565_v6 = vmul.f32 %v1496_v42, %v5019_v32  ;;  %v1601_v43 = vadd.f32 %v1600_v39, %v1564_v13  ;;  %v2041_v63 = vmul.f32 %v1496_v42, %v5020_v28  ;;  %v1128_v37 = vadd.f32 %v1127_v8, %v1091_v31  ;;  %v5022_v31 = vld [vmem:[#allocation78_spill] sm:$0xff] }
 0x16b   : > { %v1904_v62 = vadd.f32 %v1903_v7, %v1867_v53  ;;  %v2077_v49 = vadd.f32 %v2076_v34, %v2040_v30  ;;  %v1999_v12 = vadd.f32 %v1998_v17, %v4174_v26  ;;  %v1566_v61 = vmul.f32 %v1500_v18, %v5021_v27  ;;  %v1504_v58 = vpop.permute.xlu1 %1503  ;;  %v1516_v13 = vpop.permute.xlu0 %1515  ;;  %v5023_v34 = vld [vmem:[#allocation113_spill] sm:$0xff] }
 0x16c   : > { %v1602_v15 = vadd.f32 %v1601_v43, %v1565_v6  ;;  %v4376_v54 = vmul.f32 %v4985_v21, %v4985_v21  ;;  %v1373_v52 = vadd.f32 %v4309_v51, %v4260_v47  ;;  %v2042_v46 = vmul.f32 %v1500_v18, %v4020_v35 }
 0x16d   : > { %v2078_v39 = vadd.f32 %v2077_v49, %v2041_v63  ;;  %v1964_v7 = vmul.f32 %v4969_v33, %v4364_v1  ;;  %v2000_v26 = vadd.f32 %v1999_v12, %v4256_v0  ;;  %v1870_v53 = vmul.f32 %v5010_v48, %v4229_v14 }
 0x16e   : > { %v1567_v8 = vmul.f32 %v1504_v58, %v5022_v31  ;;  %v1603_v30 = vadd.f32 %v1602_v15, %v1566_v61  ;;  %v2043_v42 = vmul.f32 %v1504_v58, %v5023_v34  ;;  %v1869_v47 = vmul.f32 %v5007_v38, %v4215_v4 }
 0x16f   : > { %v2079_v51 = vadd.f32 %v2078_v39, %v2042_v46  ;;  %v2001_v18 = vadd.f32 %v2000_v26, %v1964_v7  ;;  %v4392_v49 = vmul.f32 %v4999_v23, %v4999_v23  ;;  %v1568_v33 = vmul.f32 %v1508_v59, %v3851_v41  ;;  %v1512_v63 = vpop.permute.xlu1 %1511  ;;  %v1524_v12 = vpop.permute.xlu0 %1523 }
 0x170   : > { %v1604_v0 = vadd.f32 %v1603_v30, %v1567_v8  ;;  %v1966_v48 = vmul.f32 %v4986_v11, %v4376_v54  ;;  %v1374_v17 = vadd.f32 %v1373_v52, %v4287_v9  ;;  %v2044_v6 = vmul.f32 %v1508_v59, %v4967_v56  ;;  %v5026_v59 = vld [vmem:[#allocation5_spill] sm:$0xff] }
 0x171   : > { %5024 = vst [vmem:[#allocation60_spill] sm:$0xff] %v4392_v49  ;;  %v2080_v43 = vadd.f32 %v2079_v51, %v2043_v42  ;;  %v2002_v38 = vadd.f32 %v2001_v18, %v1965_v10  ;;  %v4401_v61 = vmul.f32 %v5004_v25, %v5004_v25  ;;  %v1905_v15 = vadd.f32 %v1904_v62, %v1868_v19 }
 0x172   : > { %v1569_v46 = vmul.f32 %v1512_v63, %v4968_v22  ;;  %v1605_v39 = vadd.f32 %v1604_v0, %v1568_v33  ;;  %v2045_v58 = vmul.f32 %v1512_v63, %v4364_v1  ;;  %v1967_v9 = vmul.f32 %v5000_v16, %v4392_v49 }
 0x173   : > { %5025 = vst [vmem:[#allocation11_spill] sm:$0xff] %v4401_v61  ;;  %v2081_v7 = vadd.f32 %v2080_v43, %v2044_v6  ;;  %v2003_v11 = vadd.f32 %v2002_v38, %v1966_v48  ;;  %v4409_v52 = vmul.f32 %v5026_v59, %v5026_v59  ;;  %v1906_v10 = vadd.f32 %v1905_v15, %v1869_v47  ;;  %v1520_v42 = vpop.permute.xlu1 %1519  ;;  %v1532_v51 = vpop.permute.xlu0 %1531  ;;  %v5028_v47 = vld [vmem:[#allocation120_spill] sm:$0xff]  ;;  %v5031_v38 = vld [vmem:[#allocation69_spill] sm:$0xff] }
 0x174   : > { %v1570_v26 = vmul.f32 %v1516_v13, %v4980_v55  ;;  %v1606_v8 = vadd.f32 %v1605_v39, %v1569_v46  ;;  %v1375_v62 = vadd.f32 %v1374_v17, %v4305_v57  ;;  %v2046_v19 = vmul.f32 %v1516_v13, %v4299_v2  ;;  %v5030_v17 = vld [vmem:[#allocation47_spill] sm:$0xff] }
 0x175   : > { %5027 = vst [vmem:[#allocation9_spill] sm:$0xff] %v4409_v52  ;;  %v2082_v30 = vadd.f32 %v2081_v7, %v2045_v58  ;;  %v1968_v18 = vmul.f32 %v5005_v20, %v4401_v61  ;;  %v2004_v16 = vadd.f32 %v2003_v11, %v1967_v9  ;;  %v1571_v33 = vmul.f32 %v1520_v42, %v4985_v21 }
 0x176   : > { %v1607_v0 = vadd.f32 %v1606_v8, %v1570_v26  ;;  %v2047_v48 = vmul.f32 %v1520_v42, %v4376_v54  ;;  %v4420_v6 = vmul.f32 %v5028_v47, %v5028_v47  ;;  %v1871_v57 = vmul.f32 %v5015_v45, %v4250_v60  ;;  %v5032_v42 = vld [vmem:[#allocation107_spill] sm:$0xff] }
 0x177   : > { %v2083_v13 = vadd.f32 %v2082_v30, %v2046_v19  ;;  %v1969_v43 = vmul.f32 %v5030_v17, %v4409_v52  ;;  %v2005_v63 = vadd.f32 %v2004_v16, %v1968_v18  ;;  %v1129_v20 = vadd.f32 %v1128_v37, %v5031_v38  ;;  %v1528_v11 = vpop.permute.xlu1 %1527  ;;  %v1625_v30 = vpop.permute.xlu0 %1624  ;;  %v5033_v18 = vld [vmem:[#allocation21_spill] sm:$0xff] }
 0x178   : > { %5029 = vst [vmem:[#allocation100_spill] sm:$0xff] %v4420_v6  ;;  %v1572_v15 = vmul.f32 %v1524_v12, %v4999_v23  ;;  %v1608_v46 = vadd.f32 %v1607_v0, %v1571_v33  ;;  %v1376_v39 = vadd.f32 %v1375_v62, %v4335_v40  ;;  %v1907_v58 = vadd.f32 %v1906_v10, %v1870_v53  ;;  %v5035_v0 = vld [vmem:[#allocation8_spill] sm:$0xff] }
 0x179   : > { %v2048_v7 = vmul.f32 %v1524_v12, %v4392_v49  ;;  %v2084_v9 = vadd.f32 %v2083_v13, %v2047_v48  ;;  %v2006_v26 = vadd.f32 %v2005_v63, %v1969_v43  ;;  %v1573_v45 = vmul.f32 %v1528_v11, %v5004_v25  ;;  %v5036_v13 = vld [vmem:[#allocation70_spill] sm:$0xff]  ;;  %v5073_v49 = vld [vmem:[#allocation81_spill] sm:$0xff] }
 0x17a   : > { %v1609_v8 = vadd.f32 %v1608_v46, %v1572_v15  ;;  %v2049_v19 = vmul.f32 %v1528_v11, %v4401_v61  ;;  %v1970_v37 = vmul.f32 %v5032_v42, %v4420_v6  ;;  %v1093_v16 = vmul.f32 %v5033_v18, %v4994_v24  ;;  %v5037_v43 = vld [vmem:[#allocation22_spill] sm:$0xff]  ;;  %v5056_v61 = vld [vmem:[#allocation53_spill] sm:$0xff] }
 0x17b   : > { %v1341_v40 = vmul.f32 %v5030_v17, %v5026_v59  ;;  %v1908_v53 = vadd.f32 %v1907_v58, %v1871_v57  ;;  %v2085_v12 = vadd.f32 %v2084_v9, %v2048_v7  ;;  %v1574_v10 = vmul.f32 %v1532_v51, %v5026_v59  ;;  %v1621_v11 = vpop.permute.xlu1 %1620  ;;  %v1637_v6 = vpop.permute.xlu0 %1636  ;;  %v5039_v7 = vld [vmem:[#allocation46_spill] sm:$0xff]  ;;  %v5040_v9 = vld [vmem:[#allocation24_spill] sm:$0xff]  ;;  %v5062_v59 = vld [vmem:[#allocation61_spill] sm:$0xff] }
 0x17c   : > { %v1610_v62 = vadd.f32 %v1609_v8, %v1573_v45  ;;  %v4439_v33 = vadd.f32 %v2006_v26, %v1970_v37  ;;  %v1377_v48 = vadd.f32 %v1376_v39, %v5035_v0  ;;  %v1872_v63 = vmul.f32 %v5037_v43, %v5036_v13  ;;  %v5042_v8 = vld [vmem:[#allocation39_spill] sm:$0xff] }
 0x17d   : > { %v2086_v38 = vadd.f32 %v2085_v12, %v2049_v19  ;;  %v1342_v15 = vmul.f32 %v5032_v42, %v5028_v47  ;;  %v1130_v46 = vadd.f32 %v1129_v20, %v1093_v16  ;;  %v2050_v58 = vmul.f32 %v1532_v51, %v4409_v52  ;;  %v5043_v19 = vld [vmem:[#allocation66_spill] sm:$0xff]  ;;  %v5053_v52 = vld [vmem:[#allocation49_spill] sm:$0xff] }
 0x17e   : > { %5034 = vst [vmem:[#allocation89_spill] sm:$0xff] %v4439_v33  ;;  %v1378_v17 = vadd.f32 %v1377_v48, %v1341_v40  ;;  %v4446_v57 = vadd.f32 %v1610_v62, %v1574_v10  ;;  %v1094_v26 = vmul.f32 %v5040_v9, %v5039_v7  ;;  %v1909_v45 = vadd.f32 %v1908_v53, %v1872_v63  ;;  %v5045_v20 = vld [vmem:[#allocation74_spill] sm:$0xff]  ;;  %v5046_v62 = vld [vmem:[#allocation41_spill] sm:$0xff] }
 0x17f   : > { %v1771_v37 = vmul.f32 %v1621_v11, %v5042_v8  ;;  %v2095_v12 = vmul.f32 %v1621_v11, %v5043_v19  ;;  %v4455_v0 = vadd.f32 %v2086_v38, %v2050_v58  ;;  %v1873_v42 = vmul.f32 %v5033_v18, %v5045_v20  ;;  %v1629_v40 = vpop.permute.xlu1 %1628  ;;  %v1645_v10 = vpop.permute.xlu0 %1644  ;;  %v5047_v48 = vld [vmem:[#allocation65_spill] sm:$0xff]  ;;  %v5051_v8 = vld [vmem:[#allocation23_spill] sm:$0xff]  ;;  %v5052_v19 = vld [vmem:[#allocation76_spill] sm:$0xff] }
 0x180   : > { %5038 = vst [vmem:[#allocation55_spill] sm:$0xff] %v4446_v57  ;;  %v4451_v39 = vadd.f32 %v1378_v17, %v1342_v15  ;;  %v1131_v16 = vadd.f32 %v1130_v46, %v1094_v26  ;;  %v1772_v51 = vmul.f32 %v1625_v30, %v5046_v62  ;;  %v2096_v43 = vmul.f32 %v1625_v30, %v5047_v48  ;;  %v5048_v57 = vld [vmem:[#allocation45_spill] sm:$0xff]  ;;  %v5050_v17 = vld [vmem:[#allocation50_spill] sm:$0xff]  ;;  %v5054_v48 = vld [vmem:[#allocation75_spill] sm:$0xff] }
 0x181   : > { %5044 = vst [vmem:[#allocation90_spill] sm:$0xff] %v4455_v0  ;;  %v1773_v53 = vmul.f32 %v1629_v40, %v5048_v57  ;;  %v5049_v63 = vld [vmem:[#allocation73_spill] sm:$0xff]  ;;  %v1095_v33 = vmul.f32 %v5051_v8, %v5050_v17  ;;  %v1910_v11 = vadd.f32 %v1909_v45, %v1873_v42  ;;  %v1874_v18 = vmul.f32 %v5040_v9, %v5052_v19  ;;  %v5058_v9 = vld [vmem:[#allocation82_spill] sm:$0xff] }
 0x182   : > { %5041 = vst [vmem:[#allocation88_spill] sm:$0xff] %v4451_v39  ;;  %v2097_v15 = vmul.f32 %v1629_v40, %v5049_v63  ;;  %v1809_v38 = vadd.f32 %v1772_v51, %v1771_v37  ;;  %v2133_v58 = vadd.f32 %v2096_v43, %v2095_v12  ;;  %v5055_v40 = vld [vmem:[#allocation26_spill] sm:$0xff]  ;;  %v1775_v45 = vmul.f32 %v1637_v6, %v5056_v61  ;;  %v5057_v37 = vld [vmem:[#allocation80_spill] sm:$0xff] }
 0x183   : > { %v1132_v46 = vadd.f32 %v1131_v16, %v1095_v33  ;;  %v1633_v26 = vpop.permute.xlu1 %1632  ;;  %v1653_v0 = vpop.permute.xlu0 %1652  ;;  %v1096_v63 = vmul.f32 %v5055_v40, %v5009_v3  ;;  %v1911_v47 = vadd.f32 %v1910_v11, %v1874_v18  ;;  %v2099_v12 = vmul.f32 %v1637_v6, %v5057_v37  ;;  %v5061_v11 = vld [vmem:[#allocation25_spill] sm:$0xff] }
 0x184   : > { %v1810_v39 = vadd.f32 %v1809_v38, %v1773_v53  ;;  %v2134_v62 = vadd.f32 %v2133_v58, %v2097_v15  ;;  %v1774_v30 = vmul.f32 %v1633_v26, %v5053_v52  ;;  %v2098_v57 = vmul.f32 %v1633_v26, %v5054_v48  ;;  %v5059_v15 = vld [vmem:[#allocation57_spill] sm:$0xff]  ;;  %v5060_v58 = vld [vmem:[#allocation84_spill] sm:$0xff] }
 0x185   : > { %v1875_v33 = vmul.f32 %v5051_v8, %v5058_v9  ;;  %v1133_v16 = vadd.f32 %v1132_v46, %v1096_v63  ;;  %v1097_v18 = vmul.f32 %v5061_v11, %v5013_v50  ;;  %v1777_v6 = vmul.f32 %v1645_v10, %v5062_v59 }
 0x186   : > { %v1811_v42 = vadd.f32 %v1810_v39, %v1774_v30  ;;  %v2135_v51 = vadd.f32 %v2134_v62, %v2098_v57  ;;  %v5063_v39 = vld [vmem:[#allocation98_spill] sm:$0xff]  ;;  %v1876_v8 = vmul.f32 %v5055_v40, %v5011_v5 }
 0x187   : > { %v1641_v43 = vpop.permute.xlu1 %1640  ;;  %v1661_v53 = vpop.permute.xlu0 %1660  ;;  %v1912_v61 = vadd.f32 %v1911_v47, %v1875_v33  ;;  %v2101_v62 = vmul.f32 %v1645_v10, %v5063_v39  ;;  %v1134_v46 = vadd.f32 %v1133_v16, %v1097_v18  ;;  %v5066_v47 = vld [vmem:[#allocation28_spill] sm:$0xff]  ;;  %v5069_v40 = vld [vmem:[#allocation86_spill] sm:$0xff] }
 0x188   : > { %v1776_v52 = vmul.f32 %v1641_v43, %v5059_v15  ;;  %v1812_v38 = vadd.f32 %v1811_v42, %v1775_v45  ;;  %v2100_v26 = vmul.f32 %v1641_v43, %v5060_v58  ;;  %v2136_v48 = vadd.f32 %v2135_v51, %v2099_v12  ;;  %v5064_v45 = vld [vmem:[#allocation63_spill] sm:$0xff]  ;;  %v5065_v12 = vld [vmem:[#allocation108_spill] sm:$0xff] }
 0x189   : > { %v1098_v33 = vmul.f32 %v5066_v47, %v5017_v36  ;;  %v1913_v59 = vadd.f32 %v1912_v61, %v1876_v8  ;;  %v5067_v58 = vld [vmem:[#allocation67_spill] sm:$0xff]  ;;  %v1877_v16 = vmul.f32 %v5061_v11, %v5069_v40  ;;  %v1878_v11 = vmul.f32 %v5066_v47, %v5018_v29 }
 0x18a   : > { %v1813_v30 = vadd.f32 %v1812_v38, %v1776_v52  ;;  %v2137_v57 = vadd.f32 %v2136_v48, %v2100_v26  ;;  %v1779_v10 = vmul.f32 %v1653_v0, %v5067_v58  ;;  %v5068_v52 = vld [vmem:[#allocation110_spill] sm:$0xff]  ;;  %v5072_v61 = vld [vmem:[#allocation27_spill] sm:$0xff] }
 0x18b   : > { %v1649_v63 = vpop.permute.xlu1 %1648  ;;  %v1669_v37 = vpop.permute.xlu0 %1668  ;;  %v2103_v38 = vmul.f32 %v1653_v0, %v5068_v52  ;;  %v1135_v18 = vadd.f32 %v1134_v46, %v1098_v33  ;;  %v1099_v8 = vmul.f32 %v5072_v61, %v5019_v32  ;;  %v1914_v58 = vadd.f32 %v1913_v59, %v1877_v16  ;;  %v5077_v59 = vld [vmem:[#allocation30_spill] sm:$0xff] }
 0x18c   : > { %v1778_v42 = vmul.f32 %v1649_v63, %v5064_v45  ;;  %v1814_v43 = vadd.f32 %v1813_v30, %v1777_v6  ;;  %v2102_v51 = vmul.f32 %v1649_v63, %v5065_v12  ;;  %v2138_v15 = vadd.f32 %v2137_v57, %v2101_v62  ;;  %v5070_v6 = vld [vmem:[#allocation77_spill] sm:$0xff]  ;;  %v5071_v62 = vld [vmem:[#allocation115_spill] sm:$0xff] }
 0x18d   : > { %v1781_v0 = vmul.f32 %v1661_v53, %v5073_v49  ;;  %v1136_v46 = vadd.f32 %v1135_v18, %v1099_v8  ;;  %v1100_v16 = vmul.f32 %v5077_v59, %v5021_v27  ;;  %v1915_v49 = vadd.f32 %v1914_v58, %v1878_v11  ;;  %v5082_v58 = vld [vmem:[#allocation29_spill] sm:$0xff] }
 0x18e   : > { %v1815_v26 = vadd.f32 %v1814_v43, %v1778_v42  ;;  %v2139_v48 = vadd.f32 %v2138_v15, %v2102_v51  ;;  %v5074_v42 = vld [vmem:[#allocation116_spill] sm:$0xff]  ;;  %v1879_v47 = vmul.f32 %v5072_v61, %v5020_v28  ;;  %v1101_v11 = vmul.f32 %v5082_v58, %v5022_v31 }
 0x18f   : > { %v1657_v39 = vpop.permute.xlu1 %1656  ;;  %v1677_v45 = vpop.permute.xlu0 %1676  ;;  %v2105_v43 = vmul.f32 %v1661_v53, %v5074_v42  ;;  %v1137_v18 = vadd.f32 %v1136_v46, %v1100_v16  ;;  %v1880_v61 = vmul.f32 %v5077_v59, %v4020_v35  ;;  %v1881_v59 = vmul.f32 %v5082_v58, %v5023_v34 }
 0x190   : > { %v1780_v30 = vmul.f32 %v1657_v39, %v5070_v6  ;;  %v1816_v63 = vadd.f32 %v1815_v26, %v1779_v10  ;;  %v2104_v57 = vmul.f32 %v1657_v39, %v5071_v62  ;;  %v2140_v12 = vadd.f32 %v2139_v48, %v2103_v38  ;;  %v5075_v10 = vld [vmem:[#allocation87_spill] sm:$0xff]  ;;  %v5076_v38 = vld [vmem:[#allocation117_spill] sm:$0xff]  ;;  %v5078_v62 = vld [vmem:[#allocation94_spill] sm:$0xff] }
 0x191   : > { %v1783_v53 = vmul.f32 %v1669_v37, %v5078_v62  ;;  %v5083_v62 = vld [vmem:[#allocation3_spill] sm:$0xff]  ;;  %v1138_v46 = vadd.f32 %v1137_v18, %v1101_v11 }
 0x192   : > { %v1817_v51 = vadd.f32 %v1816_v63, %v1780_v30  ;;  %v2141_v15 = vadd.f32 %v2140_v12, %v2104_v57  ;;  %v5079_v30 = vld [vmem:[#allocation119_spill] sm:$0xff] }
 0x193   : > { %v1665_v33 = vpop.permute.xlu1 %1664  ;;  %v1685_v52 = vpop.permute.xlu0 %1684  ;;  %v2107_v63 = vmul.f32 %v1669_v37, %v5079_v30  ;;  %v1785_v37 = vmul.f32 %v1677_v45, %v5083_v62  ;;  %v5088_v62 = vld [vmem:[#allocation52_spill] sm:$0xff] }
 0x194   : > { %v1782_v26 = vmul.f32 %v1665_v33, %v5075_v10  ;;  %v1818_v39 = vadd.f32 %v1817_v51, %v1781_v0  ;;  %v2106_v48 = vmul.f32 %v1665_v33, %v5076_v38  ;;  %v2142_v6 = vadd.f32 %v2141_v15, %v2105_v43  ;;  %v5080_v0 = vld [vmem:[#allocation2_spill] sm:$0xff]  ;;  %v5081_v43 = vld [vmem:[#allocation121_spill] sm:$0xff] }
 0x195   : > { %v1916_v38 = vadd.f32 %v1915_v49, %v1879_v47  ;;  %v5087_v49 = vld [vmem:[#allocation32_spill] sm:$0xff] }
 0x196   : > { %v1819_v57 = vadd.f32 %v1818_v39, %v1782_v26  ;;  %v2143_v12 = vadd.f32 %v2142_v6, %v2106_v48  ;;  %v5084_v26 = vld [vmem:[#allocation56_spill] sm:$0xff]  ;;  %v1102_v47 = vmul.f32 %v5087_v49, %v3851_v41  ;;  %v1882_v58 = vmul.f32 %v5087_v49, %v4967_v56 }
 0x197   : > { %v1673_v8 = vpop.permute.xlu1 %1672  ;;  %v1693_v42 = vpop.permute.xlu0 %1692  ;;  %v2109_v39 = vmul.f32 %v1677_v45, %v5084_v26  ;;  %v1787_v45 = vmul.f32 %v1685_v52, %v5088_v62 }
 0x198   : > { %v1784_v51 = vmul.f32 %v1673_v8, %v5080_v0  ;;  %v1820_v33 = vadd.f32 %v1819_v57, %v1783_v53  ;;  %v2108_v15 = vmul.f32 %v1673_v8, %v5081_v43  ;;  %v2144_v10 = vadd.f32 %v2143_v12, %v2107_v63  ;;  %v5085_v53 = vld [vmem:[#allocation4_spill] sm:$0xff]  ;;  %v5086_v63 = vld [vmem:[#allocation7_spill] sm:$0xff] }
 0x199   : > { %v1917_v43 = vadd.f32 %v1916_v38, %v1880_v61  ;;  %v1139_v18 = vadd.f32 %v1138_v46, %v1102_v47  ;;  %v5090_v38 = vld [vmem:[#allocation31_spill] sm:$0xff] }
 0x19a   : > { %v1821_v48 = vadd.f32 %v1820_v33, %v1784_v51  ;;  %v2145_v6 = vadd.f32 %v2144_v10, %v2108_v15  ;;  %v2111_v51 = vmul.f32 %v1685_v52, %v4202_v44  ;;  %v1103_v61 = vmul.f32 %v5090_v38, %v4968_v22 }
 0x19b   : > { %v1681_v16 = vpop.permute.xlu1 %1680  ;;  %v1701_v30 = vpop.permute.xlu0 %1700  ;;  %v2113_v52 = vmul.f32 %v1693_v42, %v4229_v14  ;;  %v1883_v49 = vmul.f32 %v5090_v38, %v4364_v1 }
 0x19c   : > { %v1786_v57 = vmul.f32 %v1681_v16, %v5085_v53  ;;  %v1822_v8 = vadd.f32 %v1821_v48, %v1785_v37  ;;  %v2110_v12 = vmul.f32 %v1681_v16, %v5086_v63  ;;  %v2146_v0 = vadd.f32 %v2145_v6, %v2109_v39  ;;  %v5089_v37 = vld [vmem:[#allocation6_spill] sm:$0xff]  ;;  %v5091_v53 = vld [vmem:[#allocation83_spill] sm:$0xff] }
 0x19d   : > { %v1918_v16 = vadd.f32 %v1917_v43, %v1881_v59  ;;  %v1789_v44 = vmul.f32 %v1693_v42, %v5091_v53  ;;  %v5093_v43 = vld [vmem:[#allocation34_spill] sm:$0xff]  ;;  %v2115_v42 = vmul.f32 %v1701_v30, %v5036_v13 }
 0x19e   : > { %v1823_v33 = vadd.f32 %v1822_v8, %v1786_v57  ;;  %v2147_v15 = vadd.f32 %v2146_v0, %v2110_v12  ;;  %v1140_v12 = vadd.f32 %v1139_v18, %v1103_v61  ;;  %v5092_v0 = vld [vmem:[#allocation59_spill] sm:$0xff]  ;;  %v5095_v61 = vld [vmem:[#allocation33_spill] sm:$0xff]  ;;  %v1884_v38 = vmul.f32 %v5093_v43, %v4299_v2 }
 0x19f   : > { %v1689_v10 = vpop.permute.xlu1 %1688  ;;  %v1709_v11 = vpop.permute.xlu0 %1708 }
 0x1a0   : > { %v1788_v26 = vmul.f32 %v1689_v10, %v5089_v37  ;;  %v1824_v48 = vadd.f32 %v1823_v33, %v1787_v45  ;;  %v2112_v39 = vmul.f32 %v1689_v10, %v4215_v4  ;;  %v2148_v6 = vadd.f32 %v2147_v15, %v2111_v51  ;;  %v5094_v15 = vld [vmem:[#allocation40_spill] sm:$0xff] }
 0x1a1   : > { %v1104_v51 = vmul.f32 %v5093_v43, %v4980_v55  ;;  %v1919_v33 = vadd.f32 %v1918_v16, %v1882_v58  ;;  %v1791_v14 = vmul.f32 %v1701_v30, %v5094_v15  ;;  %v1105_v16 = vmul.f32 %v5095_v61, %v4985_v21 }
 0x1a2   : > { %v1825_v57 = vadd.f32 %v1824_v48, %v1788_v26  ;;  %v2149_v8 = vadd.f32 %v2148_v6, %v2112_v39  ;;  %v1793_v13 = vmul.f32 %v1709_v11, %v5039_v7  ;;  %v2117_v30 = vmul.f32 %v1709_v11, %v5052_v19 }
 0x1a3   : > { %v1697_v46 = vpop.permute.xlu1 %1696  ;;  %v1717_v63 = vpop.permute.xlu0 %1716  ;;  %v1141_v26 = vadd.f32 %v1140_v12, %v1104_v51  ;;  %v1920_v53 = vadd.f32 %v1919_v33, %v1883_v49 }
 0x1a4   : > { %v1790_v47 = vmul.f32 %v1697_v46, %v5092_v0  ;;  %v1826_v4 = vadd.f32 %v1825_v57, %v1789_v44  ;;  %v2114_v62 = vmul.f32 %v1697_v46, %v4250_v60  ;;  %v2150_v45 = vadd.f32 %v2149_v8, %v2113_v52  ;;  %v5096_v0 = vld [vmem:[#allocation36_spill] sm:$0xff] }
 0x1a5   : > { %v1921_v7 = vadd.f32 %v1920_v53, %v1884_v38  ;;  %v1795_v19 = vmul.f32 %v1717_v63, %v5009_v3  ;;  %v2119_v11 = vmul.f32 %v1717_v63, %v5011_v5  ;;  %v5100_v53 = vld [vmem:[#allocation38_spill] sm:$0xff] }
 0x1a6   : > { %v1827_v59 = vadd.f32 %v1826_v4, %v1790_v47  ;;  %v2151_v10 = vadd.f32 %v2150_v45, %v2114_v62  ;;  %v1106_v47 = vmul.f32 %v5096_v0, %v4999_v23  ;;  %v1885_v45 = vmul.f32 %v5095_v61, %v4376_v54 }
 0x1a7   : > { %v1705_v18 = vpop.permute.xlu1 %1704  ;;  %v1725_v37 = vpop.permute.xlu0 %1724 }
 0x1a8   : > { %v1792_v48 = vmul.f32 %v1705_v18, %v4994_v24  ;;  %v1828_v60 = vadd.f32 %v1827_v59, %v1791_v14  ;;  %v2116_v39 = vmul.f32 %v1705_v18, %v5045_v20  ;;  %v2152_v6 = vadd.f32 %v2151_v10, %v2115_v42  ;;  %v5097_v42 = vld [vmem:[#allocation35_spill] sm:$0xff]  ;;  %v5098_v18 = vld [vmem:[#allocation60_spill] sm:$0xff] }
 0x1a9   : > { %v1142_v24 = vadd.f32 %v1141_v26, %v1105_v16  ;;  %v1107_v59 = vmul.f32 %v5097_v42, %v5004_v25  ;;  %v1922_v3 = vadd.f32 %v1921_v7, %v1885_v45  ;;  %v1797_v5 = vmul.f32 %v1725_v37, %v5017_v36  ;;  %v5099_v16 = vld [vmem:[#allocation5_spill] sm:$0xff] }
 0x1aa   : > { %v1829_v44 = vadd.f32 %v1828_v60, %v1792_v48  ;;  %v2153_v52 = vadd.f32 %v2152_v6, %v2116_v39  ;;  %v2121_v63 = vmul.f32 %v1725_v37, %v5018_v29  ;;  %v1886_v26 = vmul.f32 %v5096_v0, %v5098_v18 }
 0x1ab   : > { %v1143_v51 = vadd.f32 %v1142_v24, %v1106_v47 }
 0x1ac   : > { %v1713_v57 = vpop.permute.xlu1 %1712  ;;  %v1830_v20 = vadd.f32 %v1829_v44, %v1793_v13  ;;  %v2154_v12 = vadd.f32 %v2153_v52, %v2117_v30  ;;  %v1108_v13 = vmul.f32 %v5100_v53, %v5099_v16  ;;  %v1923_v36 = vadd.f32 %v1922_v3, %v1886_v26  ;;  %v5101_v52 = vld [vmem:[#allocation11_spill] sm:$0xff] }
 0x1ad   : > { %v1733_v8 = vpop.permute.xlu0 %1732  ;;  %v1794_v58 = vmul.f32 %v1713_v57, %v5050_v17  ;;  %v2118_v46 = vmul.f32 %v1713_v57, %v5058_v9  ;;  %v1887_v38 = vmul.f32 %v5097_v42, %v5101_v52  ;;  %v5105_v42 = vld [vmem:[#allocation100_spill] sm:$0xff] }
 0x1ae   : > { %v1799_v29 = vmul.f32 %v1733_v8, %v5021_v27  ;;  %v2123_v37 = vmul.f32 %v1733_v8, %v4020_v35 }
 0x1af   : > { %v1831_v4 = vadd.f32 %v1830_v20, %v1794_v58  ;;  %v2155_v62 = vadd.f32 %v2154_v12, %v2118_v46  ;;  %v5102_v46 = vld [vmem:[#allocation120_spill] sm:$0xff]  ;;  %v5103_v12 = vld [vmem:[#allocation37_spill] sm:$0xff]  ;;  %v1924_v47 = vadd.f32 %v1923_v36, %v1887_v38 }
 0x1b0   : > { %v1721_v43 = vpop.permute.xlu1 %1720  ;;  %v1109_v0 = vmul.f32 %v5103_v12, %v5102_v46 }
 0x1b1   : > { %v1796_v17 = vmul.f32 %v1721_v43, %v5013_v50  ;;  %v1832_v33 = vadd.f32 %v1831_v4, %v1795_v19  ;;  %v2120_v9 = vmul.f32 %v1721_v43, %v5069_v40  ;;  %v2156_v15 = vadd.f32 %v2155_v62, %v2119_v11  ;;  %v5104_v11 = vld [vmem:[#allocation9_spill] sm:$0xff] }
 0x1b2   : > { %v1741_v14 = vpop.permute.xlu0 %1740  ;;  %v1144_v50 = vadd.f32 %v1143_v51, %v1107_v59  ;;  %v1888_v4 = vmul.f32 %v5100_v53, %v5104_v11  ;;  %v1889_v59 = vmul.f32 %v5103_v12, %v5105_v42 }
 0x1b3   : > { %v1833_v10 = vadd.f32 %v1832_v33, %v1796_v17  ;;  %v2157_v49 = vadd.f32 %v2156_v15, %v2120_v9  ;;  %v1801_v35 = vmul.f32 %v1741_v14, %v3851_v41  ;;  %v2125_v8 = vmul.f32 %v1741_v14, %v4967_v56 }
 0x1b4   : > { %v1729_v48 = vpop.permute.xlu1 %1728  ;;  %v1925_v17 = vadd.f32 %v1924_v47, %v1888_v4  ;;  %v5108_v47 = vld [vmem:[#allocation55_spill] sm:$0xff] }
 0x1b5   : > { %v1798_v60 = vmul.f32 %v1729_v48, %v5019_v32  ;;  %v1834_v40 = vadd.f32 %v1833_v10, %v1797_v5  ;;  %v2122_v39 = vmul.f32 %v1729_v48, %v5020_v28  ;;  %v2158_v6 = vadd.f32 %v2157_v49, %v2121_v63  ;;  %v5106_v5 = vld [vmem:[#allocation88_spill] sm:$0xff] }
 0x1b6   : > { %v1749_v61 = vpop.permute.xlu0 %1748  ;;  %v1145_v32 = vadd.f32 %v1144_v50, %v1108_v13  ;;  %v1380_v63 = vrot.slane %v5106_v5, 4  ;;  %v1926_v26 = vadd.f32 %v1925_v17, %v1889_v59 }
 0x1b7   : > { %v1835_v30 = vadd.f32 %v1834_v40, %v1798_v60  ;;  %v2159_v44 = vadd.f32 %v2158_v6, %v2122_v39  ;;  %v1803_v33 = vmul.f32 %v1749_v61, %v4980_v55  ;;  %v2127_v41 = vmul.f32 %v1749_v61, %v4299_v2 }
 0x1b8   : > { %v1737_v57 = vpop.permute.xlu1 %1736  ;;  %v1381_v39 = vadd.f32 %v1380_v63, %v5106_v5  ;;  %v1927_v13 = vrot.slane %v1926_v26, 4 }
 0x1b9   : > { %v1800_v24 = vmul.f32 %v1737_v57, %v5022_v31  ;;  %v1836_v28 = vadd.f32 %v1835_v30, %v1799_v29  ;;  %v2124_v58 = vmul.f32 %v1737_v57, %v5023_v34  ;;  %v2160_v20 = vadd.f32 %v2159_v44, %v2123_v37 }
 0x1ba   : > { %v1757_v27 = vpop.permute.xlu0 %1756  ;;  %v1146_v31 = vadd.f32 %v1145_v32, %v1109_v0  ;;  %v1382_v38 = vrot.slane %v1381_v39, 2 }
 0x1bb   : > { %v1837_v7 = vadd.f32 %v1836_v28, %v1800_v24  ;;  %v2161_v19 = vadd.f32 %v2160_v20, %v2124_v58  ;;  %v1805_v55 = vmul.f32 %v1757_v27, %v4999_v23  ;;  %v2129_v2 = vmul.f32 %v1757_v27, %v5098_v18 }
 0x1bc   : > { %v1147_v3 = vrot.slane %v1146_v31, 4  ;;  %v1928_v28 = vadd.f32 %v1927_v13, %v1926_v26  ;;  %v1383_v4 = vadd.f32 %v1382_v38, %v1381_v39 }
 0x1bd   : > { %v1745_v62 = vpop.permute.xlu1 %1744  ;;  %v1838_v34 = vadd.f32 %v1837_v7, %v1801_v35  ;;  %v2162_v51 = vadd.f32 %v2161_v19, %v2125_v8  ;;  %v5109_v35 = vld [vmem:[#allocation90_spill] sm:$0xff] }
 0x1be   : > { %v1802_v45 = vmul.f32 %v1745_v62, %v4968_v22  ;;  %v2126_v43 = vmul.f32 %v1745_v62, %v4364_v1  ;;  %v1765_v15 = vpop.permute.xlu0 %1764  ;;  %v1148_v40 = vadd.f32 %v1147_v3, %v1146_v31  ;;  %v1929_v62 = vrot.slane %v1928_v28, 2 }
 0x1bf   : > { %v1807_v23 = vmul.f32 %v1765_v15, %v5099_v16  ;;  %v2131_v18 = vmul.f32 %v1765_v15, %v5104_v11 }
 0x1c0   : > { %v1839_v9 = vadd.f32 %v1838_v34, %v1802_v45  ;;  %v2163_v56 = vadd.f32 %v2162_v51, %v2126_v43  ;;  %v1149_v44 = vrot.slane %v1148_v40, 2  ;;  %v1930_v15 = vadd.f32 %v1929_v62, %v1928_v28 }
 0x1c1   : > { %v1753_v14 = vpop.permute.xlu1 %1752 }
 0x1c2   : > { %v1804_v22 = vmul.f32 %v1753_v14, %v4985_v21  ;;  %v1840_v10 = vadd.f32 %v1839_v9, %v1803_v33  ;;  %v2128_v1 = vmul.f32 %v1753_v14, %v4376_v54  ;;  %v2164_v49 = vadd.f32 %v2163_v56, %v2127_v41  ;;  %v5107_v54 = vld [vmem:[#allocation89_spill] sm:$0xff]  ;;  %v1769_v29 = vpop.permute.xlu0 %1768 }
 0x1c3   : > { %v2008_v36 = vrot.slane %v5107_v54, 4  ;;  %v1808_v57 = vmul.f32 %v1769_v29, %v5102_v46  ;;  %v1150_v11 = vadd.f32 %v1149_v44, %v1148_v40  ;;  %v1384_v56 = vrot.slane %v1383_v4, 1 }
 0x1c4   : > { %v1841_v48 = vadd.f32 %v1840_v10, %v1804_v22  ;;  %v2165_v50 = vadd.f32 %v2164_v49, %v2128_v1 }
 0x1c5   : > { %v1761_v60 = vpop.permute.xlu1 %1760  ;;  %v2009_v16 = vadd.f32 %v2008_v36, %v5107_v54  ;;  %v1151_v9 = vrot.slane %v1150_v11, 1  ;;  %v1385_v49 = vadd.f32 %v1384_v56, %v1383_v4 }
 0x1c6   : > { %v1806_v6 = vmul.f32 %v1761_v60, %v5004_v25  ;;  %v1842_v61 = vadd.f32 %v1841_v48, %v1805_v55  ;;  %v2130_v21 = vmul.f32 %v1761_v60, %v5101_v52  ;;  %v2166_v53 = vadd.f32 %v2165_v50, %v2129_v2 }
 0x1c7   : > { %v2132_v25 = vmul.f32 %v1769_v29, %v5105_v42  ;;  %v2010_v34 = vrot.slane %v2009_v16, 2  ;;  %v1152_v1 = vadd.f32 %v1151_v9, %v1150_v11  ;;  %v1931_v55 = vrot.slane %v1930_v15, 1 }
 0x1c8   : > { %v1843_v37 = vadd.f32 %v1842_v61, %v1806_v6  ;;  %v2167_v30 = vadd.f32 %v2166_v53, %v2130_v21 }
 0x1c9   : > { %v2011_v3 = vadd.f32 %v2010_v34, %v2009_v16  ;;  %v2177_v39 = vsel %vm2176_vm1, %v1152_v1, %v1385_v49  ;;  %v1932_v6 = vadd.f32 %v1931_v55, %v1930_v15 }
 0x1ca   : > { %v1844_v32 = vadd.f32 %v1843_v37, %v1807_v23  ;;  %v2168_v24 = vadd.f32 %v2167_v30, %v2131_v18 }
 0x1cb   : > { %v2012_v2 = vrot.slane %v2011_v3, 1 }
 0x1cc   : > { %v1536_v52 = vpop.permute.xlu1 %1535  ;;  %v1845_v12 = vadd.f32 %v1844_v32, %v1808_v57  ;;  %v2169_v0 = vadd.f32 %v2168_v24, %v2132_v25 }
 0x1cd   : > { %v1575_v58 = vmul.f32 %v1536_v52, %v5102_v46  ;;  %v2051_v20 = vmul.f32 %v1536_v52, %v5105_v42  ;;  %v2013_v21 = vadd.f32 %v2012_v2, %v2011_v3 }
 0x1ce   : > { %v1846_v7 = vrot.slane %v1845_v12, 4  ;;  %v2170_v19 = vrot.slane %v2169_v0, 4 }
 0x1cf   : > { %v1612_v27 = vadd.f32 %v5108_v47, %v1575_v58  ;;  %v2088_v8 = vadd.f32 %v5109_v35, %v2051_v20 }
 0x1d0   : > { %v1847_v46 = vadd.f32 %v1846_v7, %v1845_v12  ;;  %v2171_v43 = vadd.f32 %v2170_v19, %v2169_v0 }
 0x1d1   : > { %v1613_v31 = vrot.slane %v1612_v27, 4  ;;  %v2089_v45 = vrot.slane %v2088_v8, 4 }
 0x1d2   : > { %v1848_v33 = vrot.slane %v1847_v46, 2  ;;  %v2172_v41 = vrot.slane %v2171_v43, 2 }
 0x1d3   : > { %v1614_v51 = vadd.f32 %v1613_v31, %v1612_v27  ;;  %v2090_v17 = vadd.f32 %v2089_v45, %v2088_v8 }
 0x1d4   : > { %v1849_v59 = vadd.f32 %v1848_v33, %v1847_v46  ;;  %v2173_v10 = vadd.f32 %v2172_v41, %v2171_v43 }
 0x1d5   : > { %v1615_v14 = vrot.slane %v1614_v51, 2  ;;  %v2091_v42 = vrot.slane %v2090_v17, 2 }
 0x1d6   : > { %v1850_v22 = vrot.slane %v1849_v59, 1  ;;  %v2174_v40 = vrot.slane %v2173_v10, 1 }
 0x1d7   : > { %v1616_v5 = vadd.f32 %v1615_v14, %v1614_v51  ;;  %v2092_v63 = vadd.f32 %v2091_v42, %v2090_v17 }
 0x1d8   : > { %v1851_v60 = vadd.f32 %v1850_v22, %v1849_v59  ;;  %v2175_v36 = vadd.f32 %v2174_v40, %v2173_v10 }
 0x1d9   : > { %v1617_v26 = vrot.slane %v1616_v5, 1  ;;  %v2093_v50 = vrot.slane %v2092_v63, 1 }
 0x1db   : > { %v1618_v48 = vadd.f32 %v1617_v26, %v1616_v5  ;;  %v2094_v13 = vadd.f32 %v2093_v50, %v2092_v63 }
 0x1dd   : > { %v2179_v61 = vsel %vm2178_vm2, %v2177_v39, %v1618_v48 }
 0x1de   : > { %v2181_v53 = vsel %vm2180_vm3, %v2179_v61, %v1851_v60 }
 0x1df   : > { %v2183_v54 = vsel %vm2182_vm4, %v2181_v53, %v1932_v6 }
 0x1e0   : > { %v2185_v29 = vsel %vm2184_vm5, %v2183_v54, %v2013_v21 }
 0x1e1   : > { %v2187_v23 = vsel %vm2186_vm6, %v2185_v29, %v2094_v13 }
 0x1e2   : > { %v2189_v18 = vsel %vm2188_vm7, %v2187_v23, %v2175_v36 }
 0x1e3   : > { %2190 = vst [vmem:[%s332_s16] sm:$0xff] %v2189_v18 }
 0x1e4 PF: > { %s17_s23 = sadd.s32 1, %s3047_s23   ;;  %s5110_s21 = smov %s3043_s22 }
 0x1e5   : > { %p14_p6 = scmp.ge.s32.totalorder %s17_s23, 4   ;;  %s5111_s22 = smov %s5113_s24 }
 0x1e7   :  { %16 = sbr.rel (!%p14_p6) target bundleno = 2 (0x2), region = 88 }

// kernel: generator_forward.9
= control target key start
LH: loop header
LB: loop body
LE: loop exit
PB: predicated region body
PF: predicated region fallthrough
CT: control target
= control target key end

     0   :  { %s2063_s15 = smov 0   ;;  %s2065_s16 = smov 0   ;;  %s2315_s0 = inlined_call_operand.vmem [shape: f32[1,128], index: 0, kind: input, shape index: {}]   ;;  %s2316_s1 = inlined_call_operand.vmem [shape: f32[1,128], index: 1, kind: input, shape index: {}]   ;;  %s2317_s2 = inlined_call_operand.vmem [shape: bf16[2240,128], index: 2, kind: input, shape index: {}]   ;;  %s2318_s3 = inlined_call_operand.vmem [shape: bf16[128,128], index: 3, kind: input, shape index: {}]   ;;  %s2319_s4 = inlined_call_operand.vmem [shape: bf16[2240,128], index: 4, kind: output, shape index: {}]  }
   0x1   :  { %s2067_s17 = smov 0  }
   0x2 LB: > { %s26_s18 = sadd.s32 1, %s2032_s16  ;;  %p1313_p0 = scmp.ge.s32.totalorder %s2036_s17, 1  ;;  %s2036_s17 = sphi %s2067_s17, %s14_s17   ;;  %s2032_s16 = sphi %s2065_s16, %s2321_s16   ;;  %s2028_s15 = sphi %s2063_s15, %s2320_s15  }
   0x3   : > { %p28_p1 = scmp.ge.s32.totalorder %s26_s18, 5  ;;  %p186_p2 = scmp.lt.s32.totalorder %s2036_s17, 6 }
   0x5   : > { %s2323_s18 = smov (%p28_p1, %s26_s18), 0  ;;  %p187_p3 = pnand %p1313_p0, %p186_p2 }
   0x6   : > { %s219_s21 = smul.u32 (!%p187_p3), 56, %s2028_s15 }
   0x7   : > { %190 = sbr.rel (%p187_p3) target bundleno = 310 (0x136), region = 36 }
   0x8   : > { %p220_p4 = scmp.lt.s32.totalorder (!%p187_p3), %s219_s21, 279 }
   0xc   : > { %v1894_v0 = vld [vmem:[%s2318_s3 + $0x38] sm:$0xff]   ;;  %v1895_v1 = vld [vmem:[%s2318_s3 + $0x30] sm:$0xff]   ;;  %v1896_v2 = vld [vmem:[%s2318_s3 + $0x28] sm:$0xff]   ;;  %s2325_s21 = smov (!%p220_p4, %s219_s21), 279 }
   0xd   : > { %1782 = vmatprep.subr.bf16.mxu0 %v1894_v0  ;;  %1854 = vmatprep.subr.bf16.mxu1 %v1894_v0  ;;  %s1314_s26 = sshll.u32 %s2325_s21, 2  ;;  %v1897_v3 = vld [vmem:[%s2318_s3 + $0x20] sm:$0xff]   ;;  %v1898_v21 = vld [vmem:[%s2318_s3 + $0x18] sm:$0xff]   ;;  %v1899_v39 = vld [vmem:[%s2318_s3 + $0x10] sm:$0xff]  }
   0xe   : > { %1783 = vmatpush3.bf16.msra.mxu0 %v1894_v0  ;;  %1862 = vmatpush3.bf16.msra.mxu1 %v1894_v0  ;;  %s2098_s29 = scalar_lea.vmem %s2317_s2, %s1314_s26  ;;  %v2107_v5 = vld [vmem:[%s2315_s0] ss:$0 sm:$0xff]  ;;  %v1900_v57 = vld [vmem:[%s2318_s3 + $0x8] sm:$0xff]   ;;  %s2276_s24 = scalar_lea.vmem %s2319_s4, %s1314_s26 }
   0xf   : > { %1784 = vmatprep.subr.bf16.mxu0 %v1895_v1  ;;  %1855 = vmatprep.subr.bf16.mxu1 %v1895_v1  ;;  %v1441_v4 = vld [vmem:[%s2098_s29] sm:$0xff]   ;;  %v1705_v8 = vld [vmem:[%s2098_s29 + $0x70] sm:$0xff]   ;;  %v1692_v9 = vld [vmem:[%s2098_s29 + $0x8] sm:$0xff]  }
  0x10   : > { %v1442_v6 = vunpack.c.l.bf16 %v1441_v4  ;;  %v1443_v7 = vunpack.c.h.bf16 %v1441_v4  ;;  %v1706_v10 = vld [vmem:[%s2098_s29 + $0x78] sm:$0xff]   ;;  %v2115_v11 = vld [vmem:[%s2316_s1] ss:$0 sm:$0xff]  ;;  %v1498_v12 = vunpack.c.l.bf16 %v1705_v8  ;;  %v1499_v13 = vunpack.c.h.bf16 %v1705_v8  ;;  %v1693_v16 = vld [vmem:[%s2098_s29 + $0x10] sm:$0xff]  }
  0x11   : > { %v1446_v14 = vunpack.c.l.bf16 %v1692_v9  ;;  %v1447_v15 = vunpack.c.h.bf16 %v1692_v9  ;;  %v1502_v19 = vunpack.c.l.bf16 %v1706_v10  ;;  %v1503_v20 = vunpack.c.h.bf16 %v1706_v10  ;;  %v1707_v38 = vld [vmem:[%s2098_s29 + $0x80] sm:$0xff]   ;;  %v1694_v44 = vld [vmem:[%s2098_s29 + $0x18] sm:$0xff]   ;;  %v1708_v52 = vld [vmem:[%s2098_s29 + $0x88] sm:$0xff]  }
  0x12   : > { %1785 = vmatpush3.bf16.msra.mxu0 %v1895_v1  ;;  %1863 = vmatpush3.bf16.msra.mxu1 %v1895_v1  ;;  %v358_v17 = vmul.f32 %v1442_v6, %v2107_v5  ;;  %v359_v18 = vmul.f32 %v1443_v7, %v2107_v5  ;;  %v386_v22 = vmul.f32 %v1498_v12, %v2107_v5  ;;  %v1450_v25 = vunpack.c.l.bf16 %v1693_v16 }
  0x13   : > { %1786 = vmatprep.subr.bf16.mxu0 %v1896_v2  ;;  %1856 = vmatprep.subr.bf16.mxu1 %v1896_v2  ;;  %v387_v23 = vmul.f32 %v1499_v13, %v2107_v5  ;;  %v360_v24 = vmul.f32 %v1446_v14, %v2107_v5  ;;  %v361_v28 = vmul.f32 %v1447_v15, %v2107_v5  ;;  %v1451_v47 = vunpack.c.h.bf16 %v1693_v16  ;;  %v1901_v13 = vld [vmem:[%s2318_s3] sm:$0xff]  }
  0x14   : > { %v421_v26 = vadd.f32 %v2115_v11, %v358_v17  ;;  %v422_v27 = vadd.f32 %v2115_v11, %v359_v18  ;;  %v388_v29 = vmul.f32 %v1502_v19, %v2107_v5  ;;  %v449_v30 = vadd.f32 %v2115_v11, %v386_v22  ;;  %v1709_v18 = vld [vmem:[%s2098_s29 + $0x90] sm:$0xff]  }
  0x15   : > { %v450_v31 = vadd.f32 %v2115_v11, %v387_v23  ;;  %v423_v32 = vadd.f32 %v2115_v11, %v360_v24  ;;  %v389_v33 = vmul.f32 %v1503_v20, %v2107_v5  ;;  %v424_v36 = vadd.f32 %v2115_v11, %v361_v28 }
  0x16   : > { %1787 = vmatpush3.bf16.msra.mxu0 %v1896_v2  ;;  %1864 = vmatpush3.bf16.msra.mxu1 %v1896_v2  ;;  %v477_v34 = vmax.f32 %v421_v26, 0.0  ;;  %v478_v35 = vmax.f32 %v422_v27, 0.0  ;;  %v451_v37 = vadd.f32 %v2115_v11, %v388_v29  ;;  %v505_v40 = vmax.f32 %v449_v30, 0.0  ;;  %v1695_v2 = vld [vmem:[%s2098_s29 + $0x20] sm:$0xff]   ;;  %v1696_v27 = vld [vmem:[%s2098_s29 + $0x28] sm:$0xff]  }
  0x17   : > { %1788 = vmatprep.subr.bf16.mxu0 %v1897_v3  ;;  %1857 = vmatprep.subr.bf16.mxu1 %v1897_v3  ;;  %v506_v41 = vmax.f32 %v450_v31, 0.0  ;;  %v479_v42 = vmax.f32 %v423_v32, 0.0  ;;  %v452_v43 = vadd.f32 %v2115_v11, %v389_v33  ;;  %v480_v46 = vmax.f32 %v424_v36, 0.0  ;;  %v1710_v32 = vld [vmem:[%s2098_s29 + $0x98] sm:$0xff]  }
  0x18   : > { %v533_v45 = vpack.c.bf16 %v478_v35, %v477_v34  ;;  %v507_v49 = vmax.f32 %v451_v37, 0.0  ;;  %v362_v50 = vmul.f32 %v1450_v25, %v2107_v5  ;;  %v1506_v51 = vunpack.c.l.bf16 %v1707_v38 }
  0x19   : > { %v547_v48 = vpack.c.bf16 %v506_v41, %v505_v40  ;;  %v508_v53 = vmax.f32 %v452_v43, 0.0  ;;  %v363_v54 = vmul.f32 %v1451_v47, %v2107_v5  ;;  %v1507_v55 = vunpack.c.h.bf16 %v1707_v38  ;;  %v1697_v41 = vld [vmem:[%s2098_s29 + $0x30] sm:$0xff]  }
  0x1a   : > { %1789 = vmatpush3.bf16.msra.mxu0 %v1897_v3  ;;  %1865 = vmatpush3.bf16.msra.mxu1 %v1897_v3  ;;  %v1454_v56 = vunpack.c.l.bf16 %v1694_v44  ;;  %v2148_v58 = vpack.c.bf16 %v480_v46, %v479_v42  ;;  %v425_v59 = vadd.f32 %v2115_v11, %v362_v50  ;;  %v390_v60 = vmul.f32 %v1506_v51, %v2107_v5 }
  0x1b   : > { %1790 = vmatprep.subr.bf16.mxu0 %v1898_v21  ;;  %1858 = vmatprep.subr.bf16.mxu1 %v1898_v21  ;;  %v1455_v61 = vunpack.c.h.bf16 %v1694_v44  ;;  %v426_v62 = vadd.f32 %v2115_v11, %v363_v54  ;;  %v391_v63 = vmul.f32 %v1507_v55, %v2107_v5  ;;  %v1510_v1 = vunpack.c.l.bf16 %v1708_v52 }
  0x1c   : > { %1798 = vmatprep.mubr.bf16.mxu0 %v533_v45  ;;  %1826 = vmatprep.mubr.bf16.mxu1 %v547_v48  ;;  %v364_v0 = vmul.f32 %v1454_v56, %v2107_v5  ;;  %v481_v3 = vmax.f32 %v425_v59, 0.0  ;;  %v453_v4 = vadd.f32 %v2115_v11, %v390_v60  ;;  %v1511_v7 = vunpack.c.h.bf16 %v1708_v52  ;;  %v1711_v59 = vld [vmem:[%s2098_s29 + $0xa0] sm:$0xff]  }
  0x1d   : > { %v365_v6 = vmul.f32 %v1455_v61, %v2107_v5  ;;  %v482_v8 = vmax.f32 %v426_v62, 0.0  ;;  %v454_v9 = vadd.f32 %v2115_v11, %v391_v63  ;;  %v392_v12 = vmul.f32 %v1510_v1, %v2107_v5 }
  0x1e   : > { %1791 = vmatpush3.bf16.msra.mxu0 %v1898_v21  ;;  %1866 = vmatpush3.bf16.msra.mxu1 %v1898_v21  ;;  %v427_v10 = vadd.f32 %v2115_v11, %v364_v0  ;;  %v509_v14 = vmax.f32 %v453_v4, 0.0  ;;  %v393_v16 = vmul.f32 %v1511_v7, %v2107_v5  ;;  %v1458_v17 = vunpack.c.l.bf16 %v1695_v2  ;;  %v1698_v0 = vld [vmem:[%s2098_s29 + $0x38] sm:$0xff]  }
  0x1f   : > { %1792 = vmatprep.subr.bf16.mxu0 %v1899_v39  ;;  %1859 = vmatprep.subr.bf16.mxu1 %v1899_v39  ;;  %v428_v15 = vadd.f32 %v2115_v11, %v365_v6  ;;  %v548_v19 = vpack.c.bf16 %v508_v53, %v507_v49  ;;  %v510_v20 = vmax.f32 %v454_v9, 0.0  ;;  %v455_v22 = vadd.f32 %v2115_v11, %v392_v12 }
  0x20   : > { %v483_v21 = vmax.f32 %v427_v10, 0.0  ;;  %v456_v24 = vadd.f32 %v2115_v11, %v393_v16  ;;  %v1459_v25 = vunpack.c.h.bf16 %v1695_v2  ;;  %v366_v26 = vmul.f32 %v1458_v17, %v2107_v5 }
  0x21   : > { %v484_v23 = vmax.f32 %v428_v15, 0.0  ;;  %v535_v28 = vpack.c.bf16 %v482_v8, %v481_v3  ;;  %v549_v29 = vpack.c.bf16 %v510_v20, %v509_v14  ;;  %v1514_v30 = vunpack.c.l.bf16 %v1709_v18  ;;  %v1712_v14 = vld [vmem:[%s2098_s29 + $0xa8] sm:$0xff]  }
  0x22   : > { %1793 = vmatpush3.bf16.msra.mxu0 %v1899_v39  ;;  %1867 = vmatpush3.bf16.msra.mxu1 %v1899_v39  ;;  %v1515_v31 = vunpack.c.h.bf16 %v1709_v18  ;;  %v511_v34 = vmax.f32 %v455_v22, 0.0  ;;  %v367_v35 = vmul.f32 %v1459_v25, %v2107_v5  ;;  %v429_v36 = vadd.f32 %v2115_v11, %v366_v26 }
  0x23   : > { %1794 = vmatprep.subr.bf16.mxu0 %v1900_v57  ;;  %1860 = vmatprep.subr.bf16.mxu1 %v1900_v57  ;;  %v2172_v33 = vpack.c.bf16 %v484_v23, %v483_v21  ;;  %v394_v37 = vmul.f32 %v1514_v30, %v2107_v5  ;;  %v1462_v39 = vunpack.c.l.bf16 %v1696_v27  ;;  %v1463_v40 = vunpack.c.h.bf16 %v1696_v27 }
  0x24   : > { %v395_v38 = vmul.f32 %v1515_v31, %v2107_v5  ;;  %v512_v42 = vmax.f32 %v456_v24, 0.0  ;;  %v430_v43 = vadd.f32 %v2115_v11, %v367_v35  ;;  %v485_v44 = vmax.f32 %v429_v36, 0.0 }
  0x25   : > { %v1518_v45 = vunpack.c.l.bf16 %v1710_v32  ;;  %v457_v46 = vadd.f32 %v2115_v11, %v394_v37  ;;  %v368_v48 = vmul.f32 %v1462_v39, %v2107_v5  ;;  %v1519_v49 = vunpack.c.h.bf16 %v1710_v32  ;;  %v1713_v32 = vld [vmem:[%s2098_s29 + $0xb0] sm:$0xff]  }
  0x26   : > { %1795 = vmatpush3.bf16.msra.mxu0 %v1900_v57  ;;  %1868 = vmatpush3.bf16.msra.mxu1 %v1900_v57  ;;  %v458_v47 = vadd.f32 %v2115_v11, %v395_v38  ;;  %v486_v50 = vmax.f32 %v430_v43, 0.0  ;;  %v369_v51 = vmul.f32 %v1463_v40, %v2107_v5  ;;  %v1466_v53 = vunpack.c.l.bf16 %v1697_v41 }
  0x27   : > { %1796 = vmatprep.subr.bf16.mxu0 %v1901_v13  ;;  %1861 = vmatprep.subr.bf16.mxu1 %v1901_v13  ;;  %v396_v52 = vmul.f32 %v1518_v45, %v2107_v5  ;;  %v513_v54 = vmax.f32 %v457_v46, 0.0  ;;  %v431_v56 = vadd.f32 %v2115_v11, %v368_v48  ;;  %v397_v57 = vmul.f32 %v1519_v49, %v2107_v5  ;;  %v1700_v45 = vld [vmem:[%s2098_s29 + $0x48] sm:$0xff]  }
  0x28   : > { %v514_v55 = vmax.f32 %v458_v47, 0.0  ;;  %v550_v60 = vpack.c.bf16 %v512_v42, %v511_v34  ;;  %v432_v61 = vadd.f32 %v2115_v11, %v369_v51  ;;  %v1467_v63 = vunpack.c.h.bf16 %v1697_v41 }
  0x29   : > { %v459_v62 = vadd.f32 %v2115_v11, %v396_v52  ;;  %v537_v1 = vpack.c.bf16 %v486_v50, %v485_v44  ;;  %v487_v2 = vmax.f32 %v431_v56, 0.0  ;;  %v460_v3 = vadd.f32 %v2115_v11, %v397_v57  ;;  %v1714_v50 = vld [vmem:[%s2098_s29 + $0xb8] sm:$0xff]  }
  0x2a   : > { %1797 = vmatpush3.bf16.msra.mxu0 %v1901_v13  ;;  %1869 = vmatpush3.bf16.msra.mxu1 %v1901_v13  ;;  %v370_v4 = vmul.f32 %v1466_v53, %v2107_v5  ;;  %v551_v6 = vpack.c.bf16 %v514_v55, %v513_v54  ;;  %v371_v7 = vmul.f32 %v1467_v63, %v2107_v5  ;;  %v1522_v8 = vunpack.c.l.bf16 %v1711_v59 }
  0x2b   : > { %v515_v9 = vmax.f32 %v459_v62, 0.0  ;;  %v1523_v12 = vunpack.c.h.bf16 %v1711_v59  ;;  %v1470_v13 = vunpack.c.l.bf16 %v1698_v0  ;;  %v516_v15 = vmax.f32 %v460_v3, 0.0 }
  0x2c   : > { %v433_v10 = vadd.f32 %v2115_v11, %v370_v4  ;;  %v434_v16 = vadd.f32 %v2115_v11, %v371_v7  ;;  %v398_v17 = vmul.f32 %v1522_v8, %v2107_v5  ;;  %v1471_v18 = vunpack.c.h.bf16 %v1698_v0  ;;  %v1701_v0 = vld [vmem:[%s2098_s29 + $0x50] sm:$0xff]  }
  0x2d   : > { %1799 = vmatmul.mubr.bf16.vlgmr.msra.gmra.mxu0 %v2148_v58  ;;  %1827 = vmatmul.mubr.bf16.vlgmr.msra.gmra.mxu1 %v548_v19  ;;  %v488_v58 = vmax.f32 %v432_v61, 0.0  ;;  %v1699_v19 = vld [vmem:[%s2098_s29 + $0x40] sm:$0xff]   ;;  %v399_v22 = vmul.f32 %v1523_v12, %v2107_v5  ;;  %v372_v23 = vmul.f32 %v1470_v13, %v2107_v5  ;;  %v1526_v27 = vunpack.c.l.bf16 %v1712_v14 }
  0x2e   : > { %1802 = vmatprep.mubr.bf16.mxu0 %v535_v28  ;;  %1830 = vmatprep.mubr.bf16.mxu1 %v549_v29  ;;  %v489_v21 = vmax.f32 %v433_v10, 0.0  ;;  %v490_v24 = vmax.f32 %v434_v16, 0.0  ;;  %v461_v25 = vadd.f32 %v2115_v11, %v398_v17  ;;  %v373_v26 = vmul.f32 %v1471_v18, %v2107_v5 }
  0x2f   : > { %v538_v20 = vpack.c.bf16 %v488_v58, %v487_v2  ;;  %v462_v28 = vadd.f32 %v2115_v11, %v399_v22  ;;  %v435_v29 = vadd.f32 %v2115_v11, %v372_v23  ;;  %v1527_v30 = vunpack.c.h.bf16 %v1712_v14 }
  0x30   : > { %v1474_v31 = vunpack.c.l.bf16 %v1699_v19  ;;  %v552_v34 = vpack.c.bf16 %v516_v15, %v515_v9  ;;  %v517_v35 = vmax.f32 %v461_v25, 0.0  ;;  %v436_v36 = vadd.f32 %v2115_v11, %v373_v26  ;;  %v1715_v9 = vld [vmem:[%s2098_s29 + $0xc0] sm:$0xff]  }
  0x31   : > { %v400_v37 = vmul.f32 %v1526_v27, %v2107_v5  ;;  %v518_v38 = vmax.f32 %v462_v28, 0.0  ;;  %v491_v39 = vmax.f32 %v435_v29, 0.0  ;;  %v401_v40 = vmul.f32 %v1527_v30, %v2107_v5 }
  0x32   : > { %v1475_v41 = vunpack.c.h.bf16 %v1699_v19  ;;  %v492_v42 = vmax.f32 %v436_v36, 0.0  ;;  %v1530_v44 = vunpack.c.l.bf16 %v1713_v32  ;;  %v539_v46 = vpack.c.bf16 %v490_v24, %v489_v21  ;;  %v1702_v19 = vld [vmem:[%s2098_s29 + $0x58] sm:$0xff]  }
  0x33   : > { %v463_v43 = vadd.f32 %v2115_v11, %v400_v37  ;;  %v464_v47 = vadd.f32 %v2115_v11, %v401_v40  ;;  %v1531_v49 = vunpack.c.h.bf16 %v1713_v32  ;;  %v553_v51 = vpack.c.bf16 %v518_v38, %v517_v35  ;;  %v1716_v32 = vld [vmem:[%s2098_s29 + $0xc8] sm:$0xff]  }
  0x34   : > { %v375_v48 = vmul.f32 %v1475_v41, %v2107_v5  ;;  %v402_v54 = vmul.f32 %v1530_v44, %v2107_v5  ;;  %v1478_v59 = vunpack.c.l.bf16 %v1700_v45  ;;  %v1479_v62 = vunpack.c.h.bf16 %v1700_v45 }
  0x35   : > { %1803 = vmatmul.mubr.bf16.gmra.mxu0 %v2172_v33  ;;  %1831 = vmatmul.mubr.bf16.gmra.mxu1 %v550_v60  ;;  %v374_v33 = vmul.f32 %v1474_v31, %v2107_v5  ;;  %v519_v52 = vmax.f32 %v463_v43, 0.0  ;;  %v520_v55 = vmax.f32 %v464_v47, 0.0  ;;  %v403_v57 = vmul.f32 %v1531_v49, %v2107_v5 }
  0x36   : > { %1806 = vmatprep.mubr.bf16.mxu0 %v537_v1  ;;  %1834 = vmatprep.mubr.bf16.mxu1 %v551_v6  ;;  %v438_v56 = vadd.f32 %v2115_v11, %v375_v48  ;;  %v540_v60 = vpack.c.bf16 %v492_v42, %v491_v39  ;;  %v465_v61 = vadd.f32 %v2115_v11, %v402_v54  ;;  %v1534_v63 = vunpack.c.l.bf16 %v1714_v50  ;;  %v1703_v42 = vld [vmem:[%s2098_s29 + $0x60] sm:$0xff]  }
  0x37   : > { %v437_v53 = vadd.f32 %v2115_v11, %v374_v33  ;;  %v466_v3 = vadd.f32 %v2115_v11, %v403_v57  ;;  %v376_v4 = vmul.f32 %v1478_v59, %v2107_v5  ;;  %v377_v58 = vmul.f32 %v1479_v62, %v2107_v5 }
  0x38   : > { %v494_v2 = vmax.f32 %v438_v56, 0.0  ;;  %v521_v6 = vmax.f32 %v465_v61, 0.0  ;;  %v1535_v7 = vunpack.c.h.bf16 %v1714_v50  ;;  %v404_v8 = vmul.f32 %v1534_v63, %v2107_v5  ;;  %v1717_v50 = vld [vmem:[%s2098_s29 + $0xd0] sm:$0xff]  }
  0x39   : > { %v493_v1 = vmax.f32 %v437_v53, 0.0  ;;  %v554_v10 = vpack.c.bf16 %v520_v55, %v519_v52  ;;  %v522_v12 = vmax.f32 %v466_v3, 0.0  ;;  %v439_v13 = vadd.f32 %v2115_v11, %v376_v4 }
  0x3a   : > { %v1482_v14 = vunpack.c.l.bf16 %v1701_v0  ;;  %v440_v15 = vadd.f32 %v2115_v11, %v377_v58  ;;  %v405_v16 = vmul.f32 %v1535_v7, %v2107_v5  ;;  %v467_v17 = vadd.f32 %v2115_v11, %v404_v8 }
  0x3b   : > { %v1483_v18 = vunpack.c.h.bf16 %v1701_v0  ;;  %v555_v21 = vpack.c.bf16 %v522_v12, %v521_v6  ;;  %v1538_v23 = vunpack.c.l.bf16 %v1715_v9  ;;  %v495_v24 = vmax.f32 %v439_v13, 0.0  ;;  %v1704_v0 = vld [vmem:[%s2098_s29 + $0x68] sm:$0xff]   ;;  %v1718_v6 = vld [vmem:[%s2098_s29 + $0xd8] sm:$0xff]  }
  0x3c   : > { %v378_v22 = vmul.f32 %v1482_v14, %v2107_v5  ;;  %v496_v25 = vmax.f32 %v440_v15, 0.0  ;;  %v468_v26 = vadd.f32 %v2115_v11, %v405_v16  ;;  %v1539_v29 = vunpack.c.h.bf16 %v1715_v9 }
  0x3d   : > { %1807 = vmatmul.mubr.bf16.gmra.mxu0 %v538_v20  ;;  %1835 = vmatmul.mubr.bf16.gmra.mxu1 %v552_v34  ;;  %v541_v20 = vpack.c.bf16 %v494_v2, %v493_v1  ;;  %v379_v27 = vmul.f32 %v1483_v18, %v2107_v5  ;;  %v406_v30 = vmul.f32 %v1538_v23, %v2107_v5  ;;  %v1486_v31 = vunpack.c.l.bf16 %v1702_v19 }
  0x3e   : > { %1810 = vmatprep.mubr.bf16.mxu0 %v539_v46  ;;  %1838 = vmatprep.mubr.bf16.mxu1 %v553_v51  ;;  %v441_v28 = vadd.f32 %v2115_v11, %v378_v22  ;;  %v523_v34 = vmax.f32 %v467_v17, 0.0  ;;  %v524_v35 = vmax.f32 %v468_v26, 0.0  ;;  %v1487_v37 = vunpack.c.h.bf16 %v1702_v19 }
  0x3f   : > { %v442_v36 = vadd.f32 %v2115_v11, %v379_v27  ;;  %v407_v39 = vmul.f32 %v1539_v29, %v2107_v5  ;;  %v469_v40 = vadd.f32 %v2115_v11, %v406_v30  ;;  %v380_v41 = vmul.f32 %v1486_v31, %v2107_v5 }
  0x40   : > { %v497_v38 = vmax.f32 %v441_v28, 0.0  ;;  %v542_v43 = vpack.c.bf16 %v496_v25, %v495_v24  ;;  %v381_v44 = vmul.f32 %v1487_v37, %v2107_v5  ;;  %v1542_v45 = vunpack.c.l.bf16 %v1716_v32 }
  0x41   : > { %v498_v33 = vmax.f32 %v442_v36, 0.0  ;;  %v470_v46 = vadd.f32 %v2115_v11, %v407_v39  ;;  %v525_v47 = vmax.f32 %v469_v40, 0.0  ;;  %v443_v48 = vadd.f32 %v2115_v11, %v380_v41 }
  0x42   : > { %v1543_v49 = vunpack.c.h.bf16 %v1716_v32  ;;  %v556_v51 = vpack.c.bf16 %v524_v35, %v523_v34  ;;  %v444_v52 = vadd.f32 %v2115_v11, %v381_v44  ;;  %v408_v53 = vmul.f32 %v1542_v45, %v2107_v5 }
  0x43   : > { %v1490_v54 = vunpack.c.l.bf16 %v1703_v42  ;;  %v543_v55 = vpack.c.bf16 %v498_v33, %v497_v38  ;;  %v526_v56 = vmax.f32 %v470_v46, 0.0  ;;  %v1491_v59 = vunpack.c.h.bf16 %v1703_v42 }
  0x44   : > { %v409_v57 = vmul.f32 %v1543_v49, %v2107_v5  ;;  %v471_v61 = vadd.f32 %v2115_v11, %v408_v53  ;;  %v1546_v63 = vunpack.c.l.bf16 %v1717_v50  ;;  %v1547_v4 = vunpack.c.h.bf16 %v1717_v50 }
  0x45   : > { %1811 = vmatmul.mubr.bf16.gmra.mxu0 %v540_v60  ;;  %1839 = vmatmul.mubr.bf16.gmra.mxu1 %v554_v10  ;;  %v499_v60 = vmax.f32 %v443_v48, 0.0  ;;  %v382_v62 = vmul.f32 %v1490_v54, %v2107_v5  ;;  %v557_v1 = vpack.c.bf16 %v526_v56, %v525_v47  ;;  %v383_v3 = vmul.f32 %v1491_v59, %v2107_v5 }
  0x46   : > { %1814 = vmatprep.mubr.bf16.mxu0 %v541_v20  ;;  %1842 = vmatprep.mubr.bf16.mxu1 %v555_v21  ;;  %v472_v2 = vadd.f32 %v2115_v11, %v409_v57  ;;  %v500_v58 = vmax.f32 %v444_v52, 0.0  ;;  %v527_v7 = vmax.f32 %v471_v61, 0.0  ;;  %v410_v9 = vmul.f32 %v1546_v63, %v2107_v5 }
  0x47   : > { %v445_v8 = vadd.f32 %v2115_v11, %v382_v62  ;;  %v446_v12 = vadd.f32 %v2115_v11, %v383_v3  ;;  %v411_v13 = vmul.f32 %v1547_v4, %v2107_v5  ;;  %v1494_v14 = vunpack.c.l.bf16 %v1704_v0 }
  0x48   : > { %v528_v10 = vmax.f32 %v472_v2, 0.0  ;;  %v473_v15 = vadd.f32 %v2115_v11, %v410_v9  ;;  %v1495_v16 = vunpack.c.h.bf16 %v1704_v0  ;;  %v1550_v17 = vunpack.c.l.bf16 %v1718_v6 }
  0x49   : > { %v501_v18 = vmax.f32 %v445_v8, 0.0  ;;  %v502_v19 = vmax.f32 %v446_v12, 0.0  ;;  %v474_v20 = vadd.f32 %v2115_v11, %v411_v13  ;;  %v384_v21 = vmul.f32 %v1494_v14, %v2107_v5 }
  0x4a   : > { %v529_v22 = vmax.f32 %v473_v15, 0.0  ;;  %v385_v23 = vmul.f32 %v1495_v16, %v2107_v5  ;;  %v1551_v24 = vunpack.c.h.bf16 %v1718_v6  ;;  %v412_v25 = vmul.f32 %v1550_v17, %v2107_v5 }
  0x4b   : > { %v544_v26 = vpack.c.bf16 %v500_v58, %v499_v60  ;;  %v558_v27 = vpack.c.bf16 %v528_v10, %v527_v7  ;;  %v530_v28 = vmax.f32 %v474_v20, 0.0  ;;  %v447_v29 = vadd.f32 %v2115_v11, %v384_v21 }
  0x4c   : > { %v448_v30 = vadd.f32 %v2115_v11, %v385_v23  ;;  %v413_v31 = vmul.f32 %v1551_v24, %v2107_v5  ;;  %v475_v32 = vadd.f32 %v2115_v11, %v412_v25  ;;  %v545_v34 = vpack.c.bf16 %v502_v19, %v501_v18 }
  0x4d   : > { %1815 = vmatmul.mubr.bf16.gmra.mxu0 %v542_v43  ;;  %1843 = vmatmul.mubr.bf16.gmra.mxu1 %v556_v51  ;;  %v559_v35 = vpack.c.bf16 %v530_v28, %v529_v22  ;;  %v503_v37 = vmax.f32 %v447_v29, 0.0 }
  0x4e   : > { %1818 = vmatprep.mubr.bf16.mxu0 %v543_v55  ;;  %1846 = vmatprep.mubr.bf16.mxu1 %v557_v1  ;;  %v476_v36 = vadd.f32 %v2115_v11, %v413_v31  ;;  %v504_v38 = vmax.f32 %v448_v30, 0.0  ;;  %v531_v39 = vmax.f32 %v475_v32, 0.0 }
  0x50   : > { %v532_v40 = vmax.f32 %v476_v36, 0.0  ;;  %v546_v41 = vpack.c.bf16 %v504_v38, %v503_v37 }
  0x52   : > { %v560_v42 = vpack.c.bf16 %v532_v40, %v531_v39 }
  0x55   : > { %1819 = vmatmul.mubr.bf16.gmra.mxu0 %v544_v26  ;;  %1847 = vmatmul.mubr.bf16.gmra.mxu1 %v558_v27 }
  0x56   : > { %1822 = vmatprep.mubr.bf16.mxu0 %v545_v34  ;;  %1850 = vmatprep.mubr.bf16.mxu1 %v559_v35 }
  0x5d   : > { %1823 = vmatmul.mubr.bf16.gmra.mxu0 %v546_v41  ;;  %1851 = vmatmul.mubr.bf16.gmra.mxu1 %v560_v42 }
  0xed   : > { %v1800_v43 = vpop.f32.mrf.mxu0  ;;  %v1828_v5 = vpop.f32.mrf.mxu1 }
  0xee   : > { %1902 = vtanh.f32 %v1800_v43 }
  0xef   : > { %1904 = vtanh.f32 %v1828_v5  ;;  %v659_v33 = vpop.f32.mrf.mxu0  ;;  %v771_v44 = vpop.f32.mrf.mxu1 }
  0xf0   : > { %1906 = vtanh.f32 %v659_v33 }
  0xf1   : > { %1908 = vtanh.f32 %v771_v44  ;;  %v1801_v11 = vpop.f32.mrf.mxu0  ;;  %v1829_v45 = vpop.f32.mrf.mxu1 }
  0xf2   : > { %1910 = vtanh.f32 %v1801_v11 }
  0xf3   : > { %1912 = vtanh.f32 %v1829_v45  ;;  %v662_v46 = vpop.f32.mrf.mxu0  ;;  %v774_v47 = vpop.f32.mrf.mxu1 }
  0xf4   : > { %1914 = vtanh.f32 %v662_v46 }
  0xf5   : > { %1916 = vtanh.f32 %v774_v47  ;;  %v1804_v48 = vpop.f32.mrf.mxu0  ;;  %v1832_v49 = vpop.f32.mrf.mxu1 }
  0xf6   : > { %1918 = vtanh.f32 %v1804_v48 }
  0xf7   : > { %1920 = vtanh.f32 %v1832_v49  ;;  %v675_v50 = vpop.f32.mrf.mxu0  ;;  %v787_v51 = vpop.f32.mrf.mxu1 }
  0xf8   : > { %1922 = vtanh.f32 %v675_v50 }
  0xf9   : > { %1924 = vtanh.f32 %v787_v51  ;;  %v1805_v52 = vpop.f32.mrf.mxu0  ;;  %v1833_v53 = vpop.f32.mrf.mxu1 }
  0xfa   : > { %1926 = vtanh.f32 %v1805_v52 }
  0xfb   : > { %v1903_v54 = vpop.eup %1902  ;;  %1928 = vtanh.f32 %v1833_v53  ;;  %v678_v55 = vpop.f32.mrf.mxu0 }
  0xfc   : > { %v790_v56 = vpop.f32.mrf.mxu1  ;;  %v1905_v57 = vpop.eup %1904  ;;  %1930 = vtanh.f32 %v678_v55 }
  0xfd   : > { %v1907_v59 = vpop.eup %1906  ;;  %1932 = vtanh.f32 %v790_v56  ;;  %v1808_v60 = vpop.f32.mrf.mxu0 }
  0xfe   : > { %v1836_v61 = vpop.f32.mrf.mxu1  ;;  %v1909_v62 = vpop.eup %1908  ;;  %1934 = vtanh.f32 %v1808_v60 }
  0xff   : > { %v1911_v63 = vpop.eup %1910  ;;  %1936 = vtanh.f32 %v1836_v61  ;;  %v691_v0 = vpop.f32.mrf.mxu0 }
 0x100   : > { %v803_v1 = vpop.f32.mrf.mxu1  ;;  %v1913_v2 = vpop.eup %1912  ;;  %v1560_v3 = vpack.c.bf16 %v1911_v63, %v1903_v54  ;;  %1938 = vtanh.f32 %v691_v0 }
 0x101   : > { %v1915_v4 = vpop.eup %1914  ;;  %v1630_v6 = vpack.c.bf16 %v1913_v2, %v1905_v57  ;;  %1940 = vtanh.f32 %v803_v1  ;;  %v1809_v58 = vpop.f32.mrf.mxu0 }
 0x102   : > { %v1837_v7 = vpop.f32.mrf.mxu1  ;;  %v1917_v8 = vpop.eup %1916  ;;  %1719 = vst [vmem:[%s2276_s24 + $0x8] sm:$0xff] %v1560_v3   ;;  %v1555_v9 = vpack.c.bf16 %v1915_v4, %v1907_v59  ;;  %1942 = vtanh.f32 %v1809_v58 }
 0x103   : > { %v1919_v10 = vpop.eup %1918  ;;  %1733 = vst [vmem:[%s2276_s24 + $0x78] sm:$0xff] %v1630_v6   ;;  %v1625_v12 = vpack.c.bf16 %v1917_v8, %v1909_v62  ;;  %1944 = vtanh.f32 %v1837_v7  ;;  %v694_v13 = vpop.f32.mrf.mxu0 }
 0x104   : > { %v806_v14 = vpop.f32.mrf.mxu1  ;;  %v1921_v15 = vpop.eup %1920  ;;  %1556 = vst [vmem:[%s2276_s24] sm:$0xff] %v1555_v9   ;;  %1946 = vtanh.f32 %v694_v13 }
 0x105   : > { %v1923_v16 = vpop.eup %1922  ;;  %1732 = vst [vmem:[%s2276_s24 + $0x70] sm:$0xff] %v1625_v12   ;;  %1948 = vtanh.f32 %v806_v14  ;;  %v1812_v17 = vpop.f32.mrf.mxu0 }
 0x106   : > { %v1840_v18 = vpop.f32.mrf.mxu1  ;;  %v1925_v19 = vpop.eup %1924  ;;  %1950 = vtanh.f32 %v1812_v17 }
 0x107   : > { %v1927_v20 = vpop.eup %1926  ;;  %1952 = vtanh.f32 %v1840_v18  ;;  %v707_v21 = vpop.f32.mrf.mxu0 }
 0x108   : > { %v819_v22 = vpop.f32.mrf.mxu1  ;;  %v1929_v23 = vpop.eup %1928  ;;  %v1570_v24 = vpack.c.bf16 %v1927_v20, %v1919_v10  ;;  %1954 = vtanh.f32 %v707_v21 }
 0x109   : > { %v1931_v25 = vpop.eup %1930  ;;  %v1640_v26 = vpack.c.bf16 %v1929_v23, %v1921_v15  ;;  %1956 = vtanh.f32 %v819_v22  ;;  %v1813_v27 = vpop.f32.mrf.mxu0 }
 0x10a   : > { %v1841_v28 = vpop.f32.mrf.mxu1  ;;  %v1933_v29 = vpop.eup %1932  ;;  %1721 = vst [vmem:[%s2276_s24 + $0x18] sm:$0xff] %v1570_v24   ;;  %v1565_v30 = vpack.c.bf16 %v1931_v25, %v1923_v16  ;;  %1958 = vtanh.f32 %v1813_v27 }
 0x10b   : > { %v1935_v31 = vpop.eup %1934  ;;  %1735 = vst [vmem:[%s2276_s24 + $0x88] sm:$0xff] %v1640_v26   ;;  %v1635_v32 = vpack.c.bf16 %v1933_v29, %v1925_v19  ;;  %1960 = vtanh.f32 %v1841_v28  ;;  %v710_v34 = vpop.f32.mrf.mxu0 }
 0x10c   : > { %v822_v35 = vpop.f32.mrf.mxu1  ;;  %v1937_v36 = vpop.eup %1936  ;;  %1720 = vst [vmem:[%s2276_s24 + $0x10] sm:$0xff] %v1565_v30   ;;  %1962 = vtanh.f32 %v710_v34 }
 0x10d   : > { %v1939_v37 = vpop.eup %1938  ;;  %1734 = vst [vmem:[%s2276_s24 + $0x80] sm:$0xff] %v1635_v32   ;;  %1964 = vtanh.f32 %v822_v35  ;;  %v1816_v38 = vpop.f32.mrf.mxu0 }
 0x10e   : > { %v1844_v39 = vpop.f32.mrf.mxu1  ;;  %v1941_v40 = vpop.eup %1940  ;;  %1966 = vtanh.f32 %v1816_v38 }
 0x10f   : > { %v1943_v41 = vpop.eup %1942  ;;  %1968 = vtanh.f32 %v1844_v39  ;;  %v723_v42 = vpop.f32.mrf.mxu0 }
 0x110   : > { %v835_v43 = vpop.f32.mrf.mxu1  ;;  %v1945_v5 = vpop.eup %1944  ;;  %v1580_v33 = vpack.c.bf16 %v1943_v41, %v1935_v31  ;;  %1970 = vtanh.f32 %v723_v42 }
 0x111   : > { %v1947_v44 = vpop.eup %1946  ;;  %v1650_v11 = vpack.c.bf16 %v1945_v5, %v1937_v36  ;;  %1972 = vtanh.f32 %v835_v43  ;;  %v1817_v45 = vpop.f32.mrf.mxu0 }
 0x112   : > { %v1845_v46 = vpop.f32.mrf.mxu1  ;;  %v1949_v47 = vpop.eup %1948  ;;  %1723 = vst [vmem:[%s2276_s24 + $0x28] sm:$0xff] %v1580_v33   ;;  %v1575_v48 = vpack.c.bf16 %v1947_v44, %v1939_v37  ;;  %1974 = vtanh.f32 %v1817_v45 }
 0x113   : > { %v1951_v49 = vpop.eup %1950  ;;  %1737 = vst [vmem:[%s2276_s24 + $0x98] sm:$0xff] %v1650_v11   ;;  %v1645_v50 = vpack.c.bf16 %v1949_v47, %v1941_v40  ;;  %1976 = vtanh.f32 %v1845_v46  ;;  %v726_v51 = vpop.f32.mrf.mxu0 }
 0x114   : > { %v838_v52 = vpop.f32.mrf.mxu1  ;;  %v1953_v53 = vpop.eup %1952  ;;  %1722 = vst [vmem:[%s2276_s24 + $0x20] sm:$0xff] %v1575_v48   ;;  %1978 = vtanh.f32 %v726_v51 }
 0x115   : > { %v1955_v54 = vpop.eup %1954  ;;  %1736 = vst [vmem:[%s2276_s24 + $0x90] sm:$0xff] %v1645_v50   ;;  %1980 = vtanh.f32 %v838_v52  ;;  %v1820_v55 = vpop.f32.mrf.mxu0 }
 0x116   : > { %v1848_v56 = vpop.f32.mrf.mxu1  ;;  %v1957_v57 = vpop.eup %1956  ;;  %1982 = vtanh.f32 %v1820_v55 }
 0x117   : > { %v1959_v59 = vpop.eup %1958  ;;  %1984 = vtanh.f32 %v1848_v56  ;;  %v739_v60 = vpop.f32.mrf.mxu0 }
 0x118   : > { %v851_v61 = vpop.f32.mrf.mxu1  ;;  %v1961_v62 = vpop.eup %1960  ;;  %v1590_v63 = vpack.c.bf16 %v1959_v59, %v1951_v49  ;;  %1986 = vtanh.f32 %v739_v60 }
 0x119   : > { %v1963_v0 = vpop.eup %1962  ;;  %v1660_v1 = vpack.c.bf16 %v1961_v62, %v1953_v53  ;;  %1988 = vtanh.f32 %v851_v61  ;;  %v1821_v2 = vpop.f32.mrf.mxu0 }
 0x11a   : > { %v1849_v3 = vpop.f32.mrf.mxu1  ;;  %v1965_v4 = vpop.eup %1964  ;;  %1725 = vst [vmem:[%s2276_s24 + $0x38] sm:$0xff] %v1590_v63   ;;  %v1585_v6 = vpack.c.bf16 %v1963_v0, %v1955_v54  ;;  %1990 = vtanh.f32 %v1821_v2 }
 0x11b   : > { %v1967_v58 = vpop.eup %1966  ;;  %1739 = vst [vmem:[%s2276_s24 + $0xa8] sm:$0xff] %v1660_v1   ;;  %v1655_v7 = vpack.c.bf16 %v1965_v4, %v1957_v57  ;;  %1992 = vtanh.f32 %v1849_v3  ;;  %v742_v8 = vpop.f32.mrf.mxu0 }
 0x11c   : > { %v854_v9 = vpop.f32.mrf.mxu1  ;;  %v1969_v10 = vpop.eup %1968  ;;  %1724 = vst [vmem:[%s2276_s24 + $0x30] sm:$0xff] %v1585_v6   ;;  %1994 = vtanh.f32 %v742_v8 }
 0x11d   : > { %v1971_v12 = vpop.eup %1970  ;;  %1738 = vst [vmem:[%s2276_s24 + $0xa0] sm:$0xff] %v1655_v7   ;;  %1996 = vtanh.f32 %v854_v9  ;;  %v1824_v13 = vpop.f32.mrf.mxu0 }
 0x11e   : > { %v1852_v14 = vpop.f32.mrf.mxu1  ;;  %v1973_v15 = vpop.eup %1972  ;;  %1998 = vtanh.f32 %v1824_v13 }
 0x11f   : > { %v1975_v16 = vpop.eup %1974  ;;  %2000 = vtanh.f32 %v1852_v14  ;;  %v755_v17 = vpop.f32.mrf.mxu0 }
 0x120   : > { %v867_v18 = vpop.f32.mrf.mxu1  ;;  %v1977_v19 = vpop.eup %1976  ;;  %v1600_v20 = vpack.c.bf16 %v1975_v16, %v1967_v58  ;;  %2002 = vtanh.f32 %v755_v17 }
 0x121   : > { %v1979_v21 = vpop.eup %1978  ;;  %v1670_v22 = vpack.c.bf16 %v1977_v19, %v1969_v10  ;;  %2004 = vtanh.f32 %v867_v18  ;;  %v1825_v23 = vpop.f32.mrf.mxu0 }
 0x122   : > { %v1853_v24 = vpop.f32.mrf.mxu1  ;;  %v1981_v25 = vpop.eup %1980  ;;  %1727 = vst [vmem:[%s2276_s24 + $0x48] sm:$0xff] %v1600_v20   ;;  %v1595_v26 = vpack.c.bf16 %v1979_v21, %v1971_v12  ;;  %2006 = vtanh.f32 %v1825_v23 }
 0x123   : > { %v1983_v27 = vpop.eup %1982  ;;  %1741 = vst [vmem:[%s2276_s24 + $0xb8] sm:$0xff] %v1670_v22   ;;  %v1665_v28 = vpack.c.bf16 %v1981_v25, %v1973_v15  ;;  %2008 = vtanh.f32 %v1853_v24  ;;  %v758_v29 = vpop.f32.mrf.mxu0 }
 0x124   : > { %v870_v30 = vpop.f32.mrf.mxu1  ;;  %v1985_v31 = vpop.eup %1984  ;;  %1726 = vst [vmem:[%s2276_s24 + $0x40] sm:$0xff] %v1595_v26   ;;  %2010 = vtanh.f32 %v758_v29 }
 0x125   : > { %v1987_v32 = vpop.eup %1986  ;;  %1740 = vst [vmem:[%s2276_s24 + $0xb0] sm:$0xff] %v1665_v28   ;;  %2012 = vtanh.f32 %v870_v30 }
 0x126   : > { %v1989_v34 = vpop.eup %1988 }
 0x127   : > { %v1991_v35 = vpop.eup %1990 }
 0x128   : > { %v1993_v36 = vpop.eup %1992  ;;  %v1610_v37 = vpack.c.bf16 %v1991_v35, %v1983_v27 }
 0x129   : > { %v1995_v38 = vpop.eup %1994  ;;  %v1680_v39 = vpack.c.bf16 %v1993_v36, %v1985_v31 }
 0x12a   : > { %v1997_v40 = vpop.eup %1996  ;;  %1729 = vst [vmem:[%s2276_s24 + $0x58] sm:$0xff] %v1610_v37   ;;  %v1605_v41 = vpack.c.bf16 %v1995_v38, %v1987_v32 }
 0x12b   : > { %v1999_v42 = vpop.eup %1998  ;;  %1743 = vst [vmem:[%s2276_s24 + $0xc8] sm:$0xff] %v1680_v39   ;;  %v1675_v43 = vpack.c.bf16 %v1997_v40, %v1989_v34 }
 0x12c   : > { %v2001_v5 = vpop.eup %2000  ;;  %1728 = vst [vmem:[%s2276_s24 + $0x50] sm:$0xff] %v1605_v41  }
 0x12d   : > { %v2003_v33 = vpop.eup %2002  ;;  %1742 = vst [vmem:[%s2276_s24 + $0xc0] sm:$0xff] %v1675_v43  }
 0x12e   : > { %v2005_v44 = vpop.eup %2004 }
 0x12f   : > { %v2007_v11 = vpop.eup %2006 }
 0x130   : > { %v2009_v45 = vpop.eup %2008  ;;  %v1620_v46 = vpack.c.bf16 %v2007_v11, %v1999_v42 }
 0x131   : > { %v2011_v47 = vpop.eup %2010  ;;  %v1690_v48 = vpack.c.bf16 %v2009_v45, %v2001_v5 }
 0x132   : > { %v2013_v49 = vpop.eup %2012  ;;  %1731 = vst [vmem:[%s2276_s24 + $0x68] sm:$0xff] %v1620_v46   ;;  %v1615_v50 = vpack.c.bf16 %v2011_v47, %v2003_v33 }
 0x133   : > { %1745 = vst [vmem:[%s2276_s24 + $0xd8] sm:$0xff] %v1690_v48   ;;  %v1685_v51 = vpack.c.bf16 %v2013_v49, %v2005_v44 }
 0x134   : > { %1730 = vst [vmem:[%s2276_s24 + $0x60] sm:$0xff] %v1615_v50  }
 0x135   : > { %1744 = vst [vmem:[%s2276_s24 + $0xd0] sm:$0xff] %v1685_v51  }
 0x136 PF: > { %s14_s17 = sadd.s32 1, %s2036_s17   ;;  %s2320_s15 = smov %s2032_s16 }
 0x137   : > { %p11_p5 = scmp.ge.s32.totalorder %s14_s17, 7   ;;  %s2321_s16 = smov %s2323_s18 }
 0x139   :  { %13 = sbr.rel (!%p11_p5) target bundleno = 2 (0x2), region = 69 }

</bundles_post_ra>
